<compile_context>
chip_gen: v6e
topology: v6e:2x2x1
jax: 0.10.0
libtpu: 0.0.40
codegen_flags: <defaults>
</compile_context>

<pallas_src>
import functools

import numpy as np
import jax
import jax.numpy as jnp
from jax.experimental import pallas as pl
from jax.experimental.pallas import tpu as pltpu

BF16 = jnp.bfloat16
F32 = jnp.float32
EPS = 1e-5


# ---------------------------------------------------------------------------
# static helpers (tap ordering for the sub-pixel transposed conv)
# ---------------------------------------------------------------------------
def _subpixel_taps(k=5):
    """Phase-major tap order for a stride-2, k=5, pad=2, output_padding=1
    transposed conv.  Returns (taps, bounds) with bounds delimiting phases."""
    taps, bounds = [], [0]
    for a in range(2):
        for b in range(2):
            for kh in range(a, k, 2):
                for kw in range(b, k, 2):
                    taps.append((kh, kw))
            bounds.append(len(taps))
    return taps, tuple(bounds)


# ---------------------------------------------------------------------------
# 0/1 selection matrices (host-side, shape-only constants)
# ---------------------------------------------------------------------------
def _conv_sel(Hi, Wi, k, stride, pad):
    """sel[t, s_in, s_out] = 1  iff input pixel s_in feeds output pixel s_out
    under tap t of a standard conv (padding folded in as missing rows)."""
    Ho = (Hi + 2 * pad - k) // stride + 1
    Wo = (Wi + 2 * pad - k) // stride + 1
    sel = np.zeros((k * k, Hi * Wi, Ho * Wo), np.float32)
    for kh in range(k):
        for kw in range(k):
            t = kh * k + kw
            for ho in range(Ho):
                hi = stride * ho + kh - pad
                if hi < 0 or hi >= Hi:
                    continue
                for wo in range(Wo):
                    wi = stride * wo + kw - pad
                    if 0 <= wi < Wi:
                        sel[t, hi * Wi + wi, ho * Wo + wo] = 1.0
    return sel


def _convT_sel(Hi, Wi, k, stride, pad, outpad):
    """Selection matrices for ConvTranspose2d (y = stride*i - pad + kh)."""
    Ho = (Hi - 1) * stride - 2 * pad + k + outpad
    Wo = (Wi - 1) * stride - 2 * pad + k + outpad
    sel = np.zeros((k * k, Hi * Wi, Ho * Wo), np.float32)
    for kh in range(k):
        for kw in range(k):
            t = kh * k + kw
            for hi in range(Hi):
                ho = stride * hi - pad + kh
                if ho < 0 or ho >= Ho:
                    continue
                for wi in range(Wi):
                    wo = stride * wi - pad + kw
                    if 0 <= wo < Wo:
                        sel[t, hi * Wi + wi, ho * Wo + wo] = 1.0
    return sel


def _convT_subpixel_sel(Hi, Wi, taps):
    """Sub-pixel (4-phase) selection for the last transposed conv: each tap
    writes the phase-local (Hi x Wi) output grid (no dilation zeros)."""
    sel = np.zeros((len(taps), Hi * Wi, Hi * Wi), np.float32)
    for t, (kh, kw) in enumerate(taps):
        a, b = kh % 2, kw % 2
        dh = (kh - a) // 2 - 1          # io = hi + dh  (pad=2, stride=2)
        dw = (kw - b) // 2 - 1
        for hi in range(Hi):
            io = hi + dh
            if io < 0 or io >= Hi:
                continue
            for wi in range(Wi):
                jo = wi + dw
                if 0 <= jo < Wi:
                    sel[t, hi * Wi + wi, io * Wi + jo] = 1.0
    return sel


def build_consts(H):
    taps, _ = _subpixel_taps()
    h1, h2, h3, h4 = H // 2, H // 4, H // 8, H // 16
    c = {
        'sel_e2': _conv_sel(h1, h1, 5, 2, 2),
        'sel_e3': _conv_sel(h2, h2, 5, 2, 2),
        'sel_e4': _conv_sel(h3, h3, 5, 2, 2),
        'sel_d1': _convT_sel(h4, h4, 5, 2, 2, 1),
        'sel_d2': _convT_sel(h3, h3, 5, 2, 2, 1),
        'sel_d3': _convT_sel(h2, h2, 5, 2, 2, 1),
        'sel_d4': _convT_subpixel_sel(h1, h1, taps),
    }
    return {k: jnp.asarray(v, dtype=BF16) for k, v in c.items()}


# ---------------------------------------------------------------------------
# weight layout conversion (torch layout -> row-matrix, tap-major)
# ---------------------------------------------------------------------------
def _conv_w_to_rowmat(w):
    # torch Conv2d weight (Co, Ci, kh, kw) -> (Co, kh*kw*Ci), tap-major.
    Co, Ci, kh, kw = w.shape
    return jnp.transpose(w, (0, 2, 3, 1)).reshape(Co, kh * kw * Ci)


def _convT_w_to_rowmat(w):
    # torch ConvTranspose2d weight (Ci, Co, kh, kw) -> (Co, kh*kw*Ci).
    Ci, Co, kh, kw = w.shape
    return jnp.transpose(w, (1, 2, 3, 0)).reshape(Co, kh * kw * Ci)


def _convT_w_phase_mats(w, taps, bounds):
    # per-phase (Co, n_taps*Ci) matrices for the sub-pixel decomposition.
    mats = []
    for ph in range(4):
        cols = [jnp.transpose(w[:, :, kh, kw], (1, 0))
                for (kh, kw) in taps[bounds[ph]:bounds[ph + 1]]]
        mats.append(jnp.concatenate(cols, axis=1))
    return mats


def init_params(key, bneck):
    keys = iter(jax.random.split(key, 32))

    def nrm(shape, scale=0.1):
        return jax.random.normal(next(keys), shape, dtype=jnp.float32) * scale

    taps, bounds = _subpixel_taps()
    p = {}
    # Encoder.  Conv biases omitted: every encoder conv is followed by
    # InstanceNorm2d(affine=False), in which a per-channel bias cancels exactly.
    p['w1'] = _conv_w_to_rowmat(nrm((32, 1, 5, 5))).astype(BF16)
    p['w2'] = _conv_w_to_rowmat(nrm((32, 32, 5, 5))).astype(BF16)
    p['w3'] = _conv_w_to_rowmat(nrm((32, 32, 5, 5))).astype(BF16)
    p['w4'] = _conv_w_to_rowmat(nrm((32, 32, 5, 5))).astype(BF16)
    p['wb'] = nrm((bneck, 32, 1, 1)).reshape(bneck, 32).astype(BF16)  # bias=False
    # Decoder transposed convs (biases dropped for the same IN reason).
    p['v1'] = _convT_w_to_rowmat(nrm((bneck, 32, 5, 5))).astype(BF16)
    p['v2'] = _convT_w_to_rowmat(nrm((32, 32, 5, 5))).astype(BF16)
    p['v3'] = _convT_w_to_rowmat(nrm((32, 32, 5, 5))).astype(BF16)
    u = _convT_w_phase_mats(nrm((32, 32, 5, 5)), taps, bounds)
    p['u0'], p['u1'], p['u2'], p['u3'] = [m.astype(BF16) for m in u]
    # Decoder tail (no IN, so biases matter).
    p['w5'] = _conv_w_to_rowmat(nrm((32, 32, 3, 3))).astype(BF16)
    p['b5'] = nrm((32,)).reshape(32, 1)
    p['w6'] = nrm((32, 32, 1, 1)).reshape(32, 32).astype(BF16)
    p['b6'] = nrm((32,)).reshape(32, 1)
    p['w7'] = nrm((1, 32, 1, 1)).reshape(1, 32).astype(BF16)
    p['b7'] = nrm((1,)).reshape(1, 1)
    return p


# ---------------------------------------------------------------------------
# in-kernel building blocks
# ---------------------------------------------------------------------------
def _instnorm_relu(y):
    # InstanceNorm2d(affine=False, eps=1e-5) over the spatial (lane) axis,
    # biased variance, one-pass statistics, then ReLU.  All f32.
    mean = jnp.mean(y, axis=1, keepdims=True)
    var = jnp.maximum(jnp.mean(y * y, axis=1, keepdims=True) - mean * mean, 0.0)
    return jnp.maximum((y - mean) * jax.lax.rsqrt(var + EPS), 0.0)


def _gathered_conv(xT, sel_ref, w_ref, patch_ref, *, tap_lo, tap_hi, c_in, s_out):
    """out^T (C_out, s_out) = W (C_out, nt*c_in) @ patches^T (nt*c_in, s_out)
    where the tap-t patch rows are  x^T (c_in, S_in) @ Sel_t (S_in, s_out)."""
    xb = xT.astype(BF16)
    nt = tap_hi - tap_lo

    @pl.loop(0, nt)
    def _(i):
        g = jnp.dot(xb, sel_ref[tap_lo + i], preferred_element_type=F32)
        row = i * c_in
        if c_in % 8 == 0:
            row = pl.multiple_of(row, 8)
        patch_ref[pl.ds(row, c_in), :s_out] = g

    p = patch_ref[: nt * c_in, :s_out].astype(BF16)
    return jnp.dot(w_ref[...], p, preferred_element_type=F32)


# ---------------------------------------------------------------------------
# launch 1: encoder + quantize + decoder transposed convs 1-4
# ---------------------------------------------------------------------------
def _encdec_kernel(p1_ref,
                   se2_ref, se3_ref, se4_ref,
                   sd1_ref, sd2_ref, sd3_ref, sd4_ref,
                   w1_ref, w2_ref, w3_ref, w4_ref, wb_ref,
                   v1_ref, v2_ref, v3_ref,
                   u0_ref, u1_ref, u2_ref, u3_ref,
                   sym_ref, act_ref,
                   patch_ref,
                   *, L, bneck, S1, S2, S3, S4, phase_bounds):
    # ---------------- encoder ----------------
    x = jnp.dot(w1_ref[...], p1_ref[0], preferred_element_type=F32)     # (32, S1)
    x = _instnorm_relu(x)
    x = _instnorm_relu(_gathered_conv(x, se2_ref, w2_ref, patch_ref,
                                      tap_lo=0, tap_hi=25, c_in=32, s_out=S2))
    x = _instnorm_relu(_gathered_conv(x, se3_ref, w3_ref, patch_ref,
                                      tap_lo=0, tap_hi=25, c_in=32, s_out=S3))
    x = _instnorm_relu(_gathered_conv(x, se4_ref, w4_ref, patch_ref,
                                      tap_lo=0, tap_hi=25, c_in=32, s_out=S4))
    # 1x1 bottleneck conv (bias=False, no IN, no ReLU)
    z = jnp.dot(wb_ref[...], x.astype(BF16), preferred_element_type=F32)  # (bneck, S4)

    # ------------- latent sigmoid / scale / STE round -------------
    spread = float(L - 1) + 0.2
    lat = 1.0 / (1.0 + jnp.exp(-z))
    lat = lat * spread - spread / 2.0
    q = jnp.round(lat)                                                  # STE forward
    # TODO(synk): PyTorch emits int64 symbols; JAX x64 is disabled so int32 is used.
    sym_ref[0] = (q + float(L // 2)).astype(jnp.int32)

    # ---------------- decoder: transposed convs 1-3 ----------------
    x = _instnorm_relu(_gathered_conv(q, sd1_ref, v1_ref, patch_ref,
                                      tap_lo=0, tap_hi=25, c_in=bneck, s_out=S3))
    x = _instnorm_relu(_gathered_conv(x, sd2_ref, v2_ref, patch_ref,
                                      tap_lo=0, tap_hi=25, c_in=32, s_out=S2))
    x = _instnorm_relu(_gathered_conv(x, sd3_ref, v3_ref, patch_ref,
                                      tap_lo=0, tap_hi=25, c_in=32, s_out=S1))

    # ---- transposed conv 4: sub-pixel phases, then joint IN + ReLU ----
    uw = (u0_ref, u1_ref, u2_ref, u3_ref)
    for ph in range(4):
        y = _gathered_conv(x, sd4_ref, uw[ph], patch_ref,
                           tap_lo=phase_bounds[ph], tap_hi=phase_bounds[ph + 1],
                           c_in=32, s_out=S1)
        act_ref[0, :, ph * S1:(ph + 1) * S1] = y
    act_ref[0] = _instnorm_relu(act_ref[0])


def _const_spec(arr):
    nd = arr.ndim
    return pl.BlockSpec(arr.shape, lambda n, _nd=nd: (0,) * _nd)


def _encdec_call(p1, consts, params, *, L, bneck, H):
    N = p1.shape[0]
    S1, S2, S3, S4 = (H // 2) ** 2, (H // 4) ** 2, (H // 8) ** 2, (H // 16) ** 2
    _, bounds = _subpixel_taps()
    kern = functools.partial(_encdec_kernel, L=L, bneck=bneck,
                             S1=S1, S2=S2, S3=S3, S4=S4, phase_bounds=bounds)
    sel_args = [consts[k] for k in ('sel_e2', 'sel_e3', 'sel_e4',
                                    'sel_d1', 'sel_d2', 'sel_d3', 'sel_d4')]
    w_args = [params[k] for k in ('w1', 'w2', 'w3', 'w4', 'wb',
                                  'v1', 'v2', 'v3', 'u0', 'u1', 'u2', 'u3')]
    in_specs = ([pl.BlockSpec((1, 25, S1), lambda n: (n, 0, 0))]
                + [_const_spec(a) for a in sel_args]
                + [_const_spec(a) for a in w_args])
    out_shape = (jax.ShapeDtypeStruct((N, bneck, S4), jnp.int32),
                 jax.ShapeDtypeStruct((N, 32, 4 * S1), jnp.float32))
    out_specs = (pl.BlockSpec((1, bneck, S4), lambda n: (n, 0, 0)),
                 pl.BlockSpec((1, 32, 4 * S1), lambda n: (n, 0, 0)))
    return pl.pallas_call(
        kern,
        grid=(N,),
        in_specs=in_specs,
        out_specs=out_specs,
        out_shape=out_shape,
        scratch_shapes=[pltpu.VMEM((25 * 32, S1), jnp.float32)],
        compiler_params=pltpu.CompilerParams(
            dimension_semantics=("parallel",),
            vmem_limit_bytes=32 * 1024 * 1024),
    )(p1, *sel_args, *w_args)


# ---------------------------------------------------------------------------
# launch 2: decoder tail  (conv3x3 + ReLU, conv1x1 + ReLU, conv1x1)
# ---------------------------------------------------------------------------
def _tail_kernel(p_ref, w5_ref, b5_ref, w6_ref, b6_ref, w7_ref, b7_ref, o_ref):
    x = jnp.dot(w5_ref[...], p_ref[0], preferred_element_type=F32) + b5_ref[...]
    x = jnp.maximum(x, 0.0)
    x = jnp.dot(w6_ref[...], x.astype(BF16), preferred_element_type=F32) + b6_ref[...]
    x = jnp.maximum(x, 0.0)
    o_ref[0] = jnp.dot(w7_ref[...], x.astype(BF16),
                       preferred_element_type=F32) + b7_ref[...]


def _tail_call(patchesT, params):
    N, K, S = patchesT.shape
    w_args = [params['w5'], params['b5'], params['w6'], params['b6'],
              params['w7'], params['b7']]
    return pl.pallas_call(
        _tail_kernel,
        grid=(N,),
        in_specs=[pl.BlockSpec((1, K, S), lambda n: (n, 0, 0))]
                 + [_const_spec(a) for a in w_args],
        out_specs=pl.BlockSpec((1, 1, S), lambda n: (n, 0, 0)),
        out_shape=jax.ShapeDtypeStruct((N, 1, S), jnp.float32),
        compiler_params=pltpu.CompilerParams(
            dimension_semantics=("parallel",),
            vmem_limit_bytes=32 * 1024 * 1024),
    )(patchesT, *w_args)


# ---------------------------------------------------------------------------
# plain-JAX glue (tiny tensors only)
# ---------------------------------------------------------------------------
def _enc1_patches(image_nchw, H):
    """(N, 1, H, H) -> (N, 25, (H//2)**2) bf16, taps in (kh*5+kw) order.
    Only the raw 1-channel input is expanded (a few KB)."""
    N = image_nchw.shape[0]
    x = image_nchw[:, 0, :, :].astype(jnp.float32)
    xp = jnp.pad(x, ((0, 0), (2, 2), (2, 2)))
    Ho = H // 2
    taps = []
    for kh in range(5):
        for kw in range(5):
            taps.append(xp[:, kh:kh + 2 * Ho - 1:2, kw:kw + 2 * Ho - 1:2]
                        .reshape(N, Ho * Ho))
    return jnp.stack(taps, axis=1).astype(BF16)


def _phases_to_nhwc(act, H):
    """Phase-blocked (N, 32, 4*(H//2)**2) -> NHWC (N, H, H, 32)."""
    N = act.shape[0]
    h = H // 2
    x = act.reshape(N, 32, 2, 2, h, h)          # (N, c, a, b, io, jo)
    x = jnp.transpose(x, (0, 4, 2, 5, 3, 1))    # (N, io, a, jo, b, c)
    return x.reshape(N, H, H, 32)


def _conv3_patchesT(x):
    """NHWC (N, H, W, C) -> transposed 3x3/pad-1 im2col (N, 9*C, H*W) bf16."""
    N, H, W, C = x.shape
    xp = jnp.pad(x, ((0, 0), (1, 1), (1, 1), (0, 0)))
    taps = []
    for kh in range(3):
        for kw in range(3):
            taps.append(xp[:, kh:kh + H, kw:kw + W, :].reshape(N, H * W, C))
    p = jnp.concatenate(taps, axis=2)           # (N, H*W, 9*C), tap-major
    return jnp.transpose(p, (0, 2, 1)).astype(BF16)


# ---------------------------------------------------------------------------
# forward pass
# ---------------------------------------------------------------------------
def autoencoder_forward(image_nchw, params, consts, *, L, bneck):
    N, _, H, W = image_nchw.shape
    # bottleneck_shape = (bneck, 2, 2)  =>  four stride-2 convs  =>  32x32 input.
    p1 = _enc1_patches(image_nchw, H)
    sym, act = _encdec_call(p1, consts, params, L=L, bneck=bneck, H=H)
    x = _phases_to_nhwc(act, H)
    patchesT = _conv3_patchesT(x)
    out = _tail_call(patchesT, params)                    # (N, 1, H*W)
    reconstructions = out.reshape(N, 1, H, W)
    sym_nchw = sym.reshape(N, bneck, H // 16, W // 16)
    return reconstructions, sym_nchw


# ---------------------------------------------------------------------------
if __name__ == "__main__":
    L = 5                 # must be odd (matches the PyTorch constructor check)
    bneck = 8             # bottleneck_size; bottleneck_shape = (bneck, 2, 2)
    key = jax.random.PRNGKey(0)
    kp, kx = jax.random.split(key)
    params = init_params(kp, bneck)
    consts = build_consts(32)

    # bottleneck_shape (bneck, 2, 2) implies 4 stride-2 convs => 32x32 input.
    image = jax.random.uniform(kx, (2, 1, 32, 32), dtype=jnp.float32)

    fwd = jax.jit(functools.partial(autoencoder_forward, L=L, bneck=bneck))
    recon, sym = fwd(image, params, consts)
    jax.block_until_ready((recon, sym))

    assert recon.shape == (2, 1, 32, 32) and recon.dtype == jnp.float32
    assert sym.shape == (2, bneck, 2, 2) and sym.dtype == jnp.int32
    assert int(sym.min()) >= 0 and int(sym.max()) <= L - 1
    print("KERNEL_OK")
</pallas_src>

<mosaic_0001>
module attributes {stable_mosaic.version = 11 : i64} {
  func.func @_encdec_kernel(%arg0: i32, %arg1: memref<1x25x256xbf16, #tpu.memory_space<vmem>>, %arg2: memref<25x256x64xbf16, #tpu.memory_space<vmem>>, %arg3: memref<25x64x16xbf16, #tpu.memory_space<vmem>>, %arg4: memref<25x16x4xbf16, #tpu.memory_space<vmem>>, %arg5: memref<25x4x16xbf16, #tpu.memory_space<vmem>>, %arg6: memref<25x16x64xbf16, #tpu.memory_space<vmem>>, %arg7: memref<25x64x256xbf16, #tpu.memory_space<vmem>>, %arg8: memref<25x256x256xbf16, #tpu.memory_space<vmem>>, %arg9: memref<32x25xbf16, #tpu.memory_space<vmem>>, %arg10: memref<32x800xbf16, #tpu.memory_space<vmem>>, %arg11: memref<32x800xbf16, #tpu.memory_space<vmem>>, %arg12: memref<32x800xbf16, #tpu.memory_space<vmem>>, %arg13: memref<8x32xbf16, #tpu.memory_space<vmem>>, %arg14: memref<32x200xbf16, #tpu.memory_space<vmem>>, %arg15: memref<32x800xbf16, #tpu.memory_space<vmem>>, %arg16: memref<32x800xbf16, #tpu.memory_space<vmem>>, %arg17: memref<32x288xbf16, #tpu.memory_space<vmem>>, %arg18: memref<32x192xbf16, #tpu.memory_space<vmem>>, %arg19: memref<32x192xbf16, #tpu.memory_space<vmem>>, %arg20: memref<32x128xbf16, #tpu.memory_space<vmem>>, %arg21: memref<1x8x4xi32, #tpu.memory_space<vmem>>, %arg22: memref<1x32x1024xf32, #tpu.memory_space<vmem>>, %arg23: memref<800x256xf32, #tpu.memory_space<vmem>>) attributes {dimension_semantics = [#tpu.dimension_semantics<parallel>], iteration_bounds = array<i64: 2>, scalar_prefetch = 0 : i64, scratch_operands = 1 : i64, tpu.core_type = #tpu.core_type<tc>, window_params = [{transform_indices = @transform_0, window_bounds = array<i64: 1, 25, 256>}, {pipeline_mode = #tpu.pipeline_mode<synchronous>, transform_indices = @transform_1, window_bounds = array<i64: 25, 256, 64>}, {pipeline_mode = #tpu.pipeline_mode<synchronous>, transform_indices = @transform_2, window_bounds = array<i64: 25, 64, 16>}, {pipeline_mode = #tpu.pipeline_mode<synchronous>, transform_indices = @transform_3, window_bounds = array<i64: 25, 16, 4>}, {pipeline_mode = #tpu.pipeline_mode<synchronous>, transform_indices = @transform_4, window_bounds = array<i64: 25, 4, 16>}, {pipeline_mode = #tpu.pipeline_mode<synchronous>, transform_indices = @transform_5, window_bounds = array<i64: 25, 16, 64>}, {pipeline_mode = #tpu.pipeline_mode<synchronous>, transform_indices = @transform_6, window_bounds = array<i64: 25, 64, 256>}, {pipeline_mode = #tpu.pipeline_mode<synchronous>, transform_indices = @transform_7, window_bounds = array<i64: 25, 256, 256>}, {pipeline_mode = #tpu.pipeline_mode<synchronous>, transform_indices = @transform_8, window_bounds = array<i64: 32, 25>}, {pipeline_mode = #tpu.pipeline_mode<synchronous>, transform_indices = @transform_9, window_bounds = array<i64: 32, 800>}, {pipeline_mode = #tpu.pipeline_mode<synchronous>, transform_indices = @transform_10, window_bounds = array<i64: 32, 800>}, {pipeline_mode = #tpu.pipeline_mode<synchronous>, transform_indices = @transform_11, window_bounds = array<i64: 32, 800>}, {pipeline_mode = #tpu.pipeline_mode<synchronous>, transform_indices = @transform_12, window_bounds = array<i64: 8, 32>}, {pipeline_mode = #tpu.pipeline_mode<synchronous>, transform_indices = @transform_13, window_bounds = array<i64: 32, 200>}, {pipeline_mode = #tpu.pipeline_mode<synchronous>, transform_indices = @transform_14, window_bounds = array<i64: 32, 800>}, {pipeline_mode = #tpu.pipeline_mode<synchronous>, transform_indices = @transform_15, window_bounds = array<i64: 32, 800>}, {pipeline_mode = #tpu.pipeline_mode<synchronous>, transform_indices = @transform_16, window_bounds = array<i64: 32, 288>}, {pipeline_mode = #tpu.pipeline_mode<synchronous>, transform_indices = @transform_17, window_bounds = array<i64: 32, 192>}, {pipeline_mode = #tpu.pipeline_mode<synchronous>, transform_indices = @transform_18, window_bounds = array<i64: 32, 192>}, {pipeline_mode = #tpu.pipeline_mode<synchronous>, transform_indices = @transform_19, window_bounds = array<i64: 32, 128>}, {transform_indices = @transform_20, window_bounds = array<i64: 1, 8, 4>}, {transform_indices = @transform_21, window_bounds = array<i64: 1, 32, 1024>}]} {
    %c0 = arith.constant 0 : index
    %c0_0 = arith.constant 0 : index
    %0 = vector.load %arg9[%c0, %c0_0] : memref<32x25xbf16, #tpu.memory_space<vmem>>, vector<32x25xbf16>
    %c0_1 = arith.constant 0 : index
    %c0_2 = arith.constant 0 : index
    %c0_3 = arith.constant 0 : index
    %1 = vector.load %arg1[%c0_1, %c0_2, %c0_3] : memref<1x25x256xbf16, #tpu.memory_space<vmem>>, vector<1x25x256xbf16>
    %2 = vector.shape_cast %1 : vector<1x25x256xbf16> to vector<25x256xbf16>
    %cst = arith.constant dense<0.000000e+00> : vector<32x256xf32>
    %3 = tpu.matmul %0, %2, %cst {dimension_numbers = #tpu.dot_dimension_numbers<[1], [0], [0], [1], [0, 0, 1, 1], [], []>} : vector<32x25xbf16>, vector<25x256xbf16>, vector<32x256xf32> -> vector<32x256xf32>
    %cst_4 = arith.constant dense<0.000000e+00> : vector<32xf32>
    %4 = vector.multi_reduction <add>, %3, %cst_4 [1] : vector<32x256xf32> to vector<32xf32>
    %5 = vector.shape_cast %4 : vector<32xf32> to vector<32x1xf32>
    %cst_5 = arith.constant 2.560000e+02 : f32
    %6 = vector.broadcast %cst_5 : f32 to vector<32x1xf32>
    %7 = arith.divf %5, %6 : vector<32x1xf32>
    %8 = arith.mulf %3, %3 : vector<32x256xf32>
    %cst_6 = arith.constant dense<0.000000e+00> : vector<32xf32>
    %9 = vector.multi_reduction <add>, %8, %cst_6 [1] : vector<32x256xf32> to vector<32xf32>
    %10 = vector.shape_cast %9 : vector<32xf32> to vector<32x1xf32>
    %cst_7 = arith.constant 2.560000e+02 : f32
    %11 = vector.broadcast %cst_7 : f32 to vector<32x1xf32>
    %12 = arith.divf %10, %11 : vector<32x1xf32>
    %13 = arith.mulf %7, %7 : vector<32x1xf32>
    %14 = arith.subf %12, %13 : vector<32x1xf32>
    %cst_8 = arith.constant 0.000000e+00 : f32
    %15 = vector.broadcast %cst_8 : f32 to vector<32x1xf32>
    %16 = arith.maximumf %14, %15 : vector<32x1xf32>
    %17 = vector.broadcast %7 : vector<32x1xf32> to vector<32x256xf32>
    %18 = arith.subf %3, %17 : vector<32x256xf32>
    %cst_9 = arith.constant 9.99999974E-6 : f32
    %19 = vector.broadcast %cst_9 : f32 to vector<32x1xf32>
    %20 = arith.addf %16, %19 : vector<32x1xf32>
    %21 = math.rsqrt %20 : vector<32x1xf32>
    %22 = vector.broadcast %21 : vector<32x1xf32> to vector<32x256xf32>
    %23 = arith.mulf %18, %22 : vector<32x256xf32>
    %cst_10 = arith.constant 0.000000e+00 : f32
    %24 = vector.broadcast %cst_10 : f32 to vector<32x256xf32>
    %25 = arith.maximumf %23, %24 : vector<32x256xf32>
    %26 = arith.truncf %25 : vector<32x256xf32> to vector<32x256xbf16>
    %c0_i32 = arith.constant 0 : i32
    %c25_i32 = arith.constant 25 : i32
    %27 = arith.addi %c0_i32, %c25_i32 : i32
    %c1_i32 = arith.constant 1 : i32
    scf.for %arg24 = %c0_i32 to %27 step %c1_i32  : i32 {
      %c1_i32_171 = arith.constant 1 : i32
      %278 = arith.muli %arg24, %c1_i32_171 : i32
      %c0_i32_172 = arith.constant 0 : i32
      %279 = arith.addi %c0_i32_172, %278 : i32
      %c0_i32_173 = arith.constant 0 : i32
      %280 = arith.addi %c0_i32_173, %279 : i32
      %281 = arith.index_cast %280 : i32 to index
      %c0_174 = arith.constant 0 : index
      %c0_175 = arith.constant 0 : index
      %282 = vector.load %arg2[%281, %c0_174, %c0_175] : memref<25x256x64xbf16, #tpu.memory_space<vmem>>, vector<1x256x64xbf16>
      %283 = vector.shape_cast %282 : vector<1x256x64xbf16> to vector<256x64xbf16>
      %cst_176 = arith.constant dense<0.000000e+00> : vector<32x64xf32>
      %284 = tpu.matmul %26, %283, %cst_176 {dimension_numbers = #tpu.dot_dimension_numbers<[1], [0], [0], [1], [0, 0, 1, 1], [], []>} : vector<32x256xbf16>, vector<256x64xbf16>, vector<32x64xf32> -> vector<32x64xf32>
      %c32_i32 = arith.constant 32 : i32
      %285 = arith.muli %279, %c32_i32 : i32
      %286 = tpu.assume_multiple %285, 8 : i32
      %287 = arith.index_cast %286 : i32 to index
      %c0_177 = arith.constant 0 : index
      %288 = vector.load %arg23[%287, %c0_177] : memref<800x256xf32, #tpu.memory_space<vmem>>, vector<32x64xf32>
      tpu.vector_store %arg23[%287, %c0_177], %284 {strides = array<i32>} : memref<800x256xf32, #tpu.memory_space<vmem>>, vector<32x64xf32>,
    }
    %c25_i32_11 = arith.constant 25 : i32
    %c0_12 = arith.constant 0 : index
    %c0_13 = arith.constant 0 : index
    %28 = vector.load %arg23[%c0_12, %c0_13] : memref<800x256xf32, #tpu.memory_space<vmem>>, vector<800x64xf32>
    %29 = arith.truncf %28 : vector<800x64xf32> to vector<800x64xbf16>
    %c0_14 = arith.constant 0 : index
    %c0_15 = arith.constant 0 : index
    %30 = vector.load %arg10[%c0_14, %c0_15] : memref<32x800xbf16, #tpu.memory_space<vmem>>, vector<32x800xbf16>
    %cst_16 = arith.constant dense<0.000000e+00> : vector<32x64xf32>
    %31 = tpu.matmul %30, %29, %cst_16 {dimension_numbers = #tpu.dot_dimension_numbers<[1], [0], [0], [1], [0, 0, 1, 1], [], []>} : vector<32x800xbf16>, vector<800x64xbf16>, vector<32x64xf32> -> vector<32x64xf32>
    %cst_17 = arith.constant dense<0.000000e+00> : vector<32xf32>
    %32 = vector.multi_reduction <add>, %31, %cst_17 [1] : vector<32x64xf32> to vector<32xf32>
    %33 = vector.shape_cast %32 : vector<32xf32> to vector<32x1xf32>
    %cst_18 = arith.constant 6.400000e+01 : f32
    %34 = vector.broadcast %cst_18 : f32 to vector<32x1xf32>
    %35 = arith.divf %33, %34 : vector<32x1xf32>
    %36 = arith.mulf %31, %31 : vector<32x64xf32>
    %cst_19 = arith.constant dense<0.000000e+00> : vector<32xf32>
    %37 = vector.multi_reduction <add>, %36, %cst_19 [1] : vector<32x64xf32> to vector<32xf32>
    %38 = vector.shape_cast %37 : vector<32xf32> to vector<32x1xf32>
    %cst_20 = arith.constant 6.400000e+01 : f32
    %39 = vector.broadcast %cst_20 : f32 to vector<32x1xf32>
    %40 = arith.divf %38, %39 : vector<32x1xf32>
    %41 = arith.mulf %35, %35 : vector<32x1xf32>
    %42 = arith.subf %40, %41 : vector<32x1xf32>
    %cst_21 = arith.constant 0.000000e+00 : f32
    %43 = vector.broadcast %cst_21 : f32 to vector<32x1xf32>
    %44 = arith.maximumf %42, %43 : vector<32x1xf32>
    %45 = vector.broadcast %35 : vector<32x1xf32> to vector<32x64xf32>
    %46 = arith.subf %31, %45 : vector<32x64xf32>
    %cst_22 = arith.constant 9.99999974E-6 : f32
    %47 = vector.broadcast %cst_22 : f32 to vector<32x1xf32>
    %48 = arith.addf %44, %47 : vector<32x1xf32>
    %49 = math.rsqrt %48 : vector<32x1xf32>
    %50 = vector.broadcast %49 : vector<32x1xf32> to vector<32x64xf32>
    %51 = arith.mulf %46, %50 : vector<32x64xf32>
    %cst_23 = arith.constant 0.000000e+00 : f32
    %52 = vector.broadcast %cst_23 : f32 to vector<32x64xf32>
    %53 = arith.maximumf %51, %52 : vector<32x64xf32>
    %54 = arith.truncf %53 : vector<32x64xf32> to vector<32x64xbf16>
    %c0_i32_24 = arith.constant 0 : i32
    %c25_i32_25 = arith.constant 25 : i32
    %55 = arith.addi %c0_i32_24, %c25_i32_25 : i32
    %c1_i32_26 = arith.constant 1 : i32
    scf.for %arg24 = %c0_i32_24 to %55 step %c1_i32_26  : i32 {
      %c1_i32_171 = arith.constant 1 : i32
      %278 = arith.muli %arg24, %c1_i32_171 : i32
      %c0_i32_172 = arith.constant 0 : i32
      %279 = arith.addi %c0_i32_172, %278 : i32
      %c0_i32_173 = arith.constant 0 : i32
      %280 = arith.addi %c0_i32_173, %279 : i32
      %281 = arith.index_cast %280 : i32 to index
      %c0_174 = arith.constant 0 : index
      %c0_175 = arith.constant 0 : index
      %282 = vector.load %arg3[%281, %c0_174, %c0_175] : memref<25x64x16xbf16, #tpu.memory_space<vmem>>, vector<1x64x16xbf16>
      %283 = vector.shape_cast %282 : vector<1x64x16xbf16> to vector<64x16xbf16>
      %cst_176 = arith.constant dense<0.000000e+00> : vector<32x16xf32>
      %284 = tpu.matmul %54, %283, %cst_176 {dimension_numbers = #tpu.dot_dimension_numbers<[1], [0], [0], [1], [0, 0, 1, 1], [], []>} : vector<32x64xbf16>, vector<64x16xbf16>, vector<32x16xf32> -> vector<32x16xf32>
      %c32_i32 = arith.constant 32 : i32
      %285 = arith.muli %279, %c32_i32 : i32
      %286 = tpu.assume_multiple %285, 8 : i32
      %287 = arith.index_cast %286 : i32 to index
      %c0_177 = arith.constant 0 : index
      %288 = vector.load %arg23[%287, %c0_177] : memref<800x256xf32, #tpu.memory_space<vmem>>, vector<32x16xf32>
      tpu.vector_store %arg23[%287, %c0_177], %284 {strides = array<i32>} : memref<800x256xf32, #tpu.memory_space<vmem>>, vector<32x16xf32>,
    }
    %c25_i32_27 = arith.constant 25 : i32
    %c0_28 = arith.constant 0 : index
    %c0_29 = arith.constant 0 : index
    %56 = vector.load %arg23[%c0_28, %c0_29] : memref<800x256xf32, #tpu.memory_space<vmem>>, vector<800x16xf32>
    %57 = arith.truncf %56 : vector<800x16xf32> to vector<800x16xbf16>
    %c0_30 = arith.constant 0 : index
    %c0_31 = arith.constant 0 : index
    %58 = vector.load %arg11[%c0_30, %c0_31] : memref<32x800xbf16, #tpu.memory_space<vmem>>, vector<32x800xbf16>
    %cst_32 = arith.constant dense<0.000000e+00> : vector<32x16xf32>
    %59 = tpu.matmul %58, %57, %cst_32 {dimension_numbers = #tpu.dot_dimension_numbers<[1], [0], [0], [1], [0, 0, 1, 1], [], []>} : vector<32x800xbf16>, vector<800x16xbf16>, vector<32x16xf32> -> vector<32x16xf32>
    %cst_33 = arith.constant dense<0.000000e+00> : vector<32xf32>
    %60 = vector.multi_reduction <add>, %59, %cst_33 [1] : vector<32x16xf32> to vector<32xf32>
    %61 = vector.shape_cast %60 : vector<32xf32> to vector<32x1xf32>
    %cst_34 = arith.constant 1.600000e+01 : f32
    %62 = vector.broadcast %cst_34 : f32 to vector<32x1xf32>
    %63 = arith.divf %61, %62 : vector<32x1xf32>
    %64 = arith.mulf %59, %59 : vector<32x16xf32>
    %cst_35 = arith.constant dense<0.000000e+00> : vector<32xf32>
    %65 = vector.multi_reduction <add>, %64, %cst_35 [1] : vector<32x16xf32> to vector<32xf32>
    %66 = vector.shape_cast %65 : vector<32xf32> to vector<32x1xf32>
    %cst_36 = arith.constant 1.600000e+01 : f32
    %67 = vector.broadcast %cst_36 : f32 to vector<32x1xf32>
    %68 = arith.divf %66, %67 : vector<32x1xf32>
    %69 = arith.mulf %63, %63 : vector<32x1xf32>
    %70 = arith.subf %68, %69 : vector<32x1xf32>
    %cst_37 = arith.constant 0.000000e+00 : f32
    %71 = vector.broadcast %cst_37 : f32 to vector<32x1xf32>
    %72 = arith.maximumf %70, %71 : vector<32x1xf32>
    %73 = vector.broadcast %63 : vector<32x1xf32> to vector<32x16xf32>
    %74 = arith.subf %59, %73 : vector<32x16xf32>
    %cst_38 = arith.constant 9.99999974E-6 : f32
    %75 = vector.broadcast %cst_38 : f32 to vector<32x1xf32>
    %76 = arith.addf %72, %75 : vector<32x1xf32>
    %77 = math.rsqrt %76 : vector<32x1xf32>
    %78 = vector.broadcast %77 : vector<32x1xf32> to vector<32x16xf32>
    %79 = arith.mulf %74, %78 : vector<32x16xf32>
    %cst_39 = arith.constant 0.000000e+00 : f32
    %80 = vector.broadcast %cst_39 : f32 to vector<32x16xf32>
    %81 = arith.maximumf %79, %80 : vector<32x16xf32>
    %82 = arith.truncf %81 : vector<32x16xf32> to vector<32x16xbf16>
    %c0_i32_40 = arith.constant 0 : i32
    %c25_i32_41 = arith.constant 25 : i32
    %83 = arith.addi %c0_i32_40, %c25_i32_41 : i32
    %c1_i32_42 = arith.constant 1 : i32
    scf.for %arg24 = %c0_i32_40 to %83 step %c1_i32_42  : i32 {
      %c1_i32_171 = arith.constant 1 : i32
      %278 = arith.muli %arg24, %c1_i32_171 : i32
      %c0_i32_172 = arith.constant 0 : i32
      %279 = arith.addi %c0_i32_172, %278 : i32
      %c0_i32_173 = arith.constant 0 : i32
      %280 = arith.addi %c0_i32_173, %279 : i32
      %281 = arith.index_cast %280 : i32 to index
      %c0_174 = arith.constant 0 : index
      %c0_175 = arith.constant 0 : index
      %282 = vector.load %arg4[%281, %c0_174, %c0_175] : memref<25x16x4xbf16, #tpu.memory_space<vmem>>, vector<1x16x4xbf16>
      %283 = vector.shape_cast %282 : vector<1x16x4xbf16> to vector<16x4xbf16>
      %cst_176 = arith.constant dense<0.000000e+00> : vector<32x4xf32>
      %284 = tpu.matmul %82, %283, %cst_176 {dimension_numbers = #tpu.dot_dimension_numbers<[1], [0], [0], [1], [0, 0, 1, 1], [], []>} : vector<32x16xbf16>, vector<16x4xbf16>, vector<32x4xf32> -> vector<32x4xf32>
      %c32_i32 = arith.constant 32 : i32
      %285 = arith.muli %279, %c32_i32 : i32
      %286 = tpu.assume_multiple %285, 8 : i32
      %287 = arith.index_cast %286 : i32 to index
      %c0_177 = arith.constant 0 : index
      %288 = vector.load %arg23[%287, %c0_177] : memref<800x256xf32, #tpu.memory_space<vmem>>, vector<32x4xf32>
      tpu.vector_store %arg23[%287, %c0_177], %284 {strides = array<i32>} : memref<800x256xf32, #tpu.memory_space<vmem>>, vector<32x4xf32>,
    }
    %c25_i32_43 = arith.constant 25 : i32
    %c0_44 = arith.constant 0 : index
    %c0_45 = arith.constant 0 : index
    %84 = vector.load %arg23[%c0_44, %c0_45] : memref<800x256xf32, #tpu.memory_space<vmem>>, vector<800x4xf32>
    %85 = arith.truncf %84 : vector<800x4xf32> to vector<800x4xbf16>
    %c0_46 = arith.constant 0 : index
    %c0_47 = arith.constant 0 : index
    %86 = vector.load %arg12[%c0_46, %c0_47] : memref<32x800xbf16, #tpu.memory_space<vmem>>, vector<32x800xbf16>
    %cst_48 = arith.constant dense<0.000000e+00> : vector<32x4xf32>
    %87 = tpu.matmul %86, %85, %cst_48 {dimension_numbers = #tpu.dot_dimension_numbers<[1], [0], [0], [1], [0, 0, 1, 1], [], []>} : vector<32x800xbf16>, vector<800x4xbf16>, vector<32x4xf32> -> vector<32x4xf32>
    %cst_49 = arith.constant dense<0.000000e+00> : vector<32xf32>
    %88 = vector.multi_reduction <add>, %87, %cst_49 [1] : vector<32x4xf32> to vector<32xf32>
    %89 = vector.shape_cast %88 : vector<32xf32> to vector<32x1xf32>
    %cst_50 = arith.constant 4.000000e+00 : f32
    %90 = vector.broadcast %cst_50 : f32 to vector<32x1xf32>
    %91 = arith.divf %89, %90 : vector<32x1xf32>
    %92 = arith.mulf %87, %87 : vector<32x4xf32>
    %cst_51 = arith.constant dense<0.000000e+00> : vector<32xf32>
    %93 = vector.multi_reduction <add>, %92, %cst_51 [1] : vector<32x4xf32> to vector<32xf32>
    %94 = vector.shape_cast %93 : vector<32xf32> to vector<32x1xf32>
    %cst_52 = arith.constant 4.000000e+00 : f32
    %95 = vector.broadcast %cst_52 : f32 to vector<32x1xf32>
    %96 = arith.divf %94, %95 : vector<32x1xf32>
    %97 = arith.mulf %91, %91 : vector<32x1xf32>
    %98 = arith.subf %96, %97 : vector<32x1xf32>
    %cst_53 = arith.constant 0.000000e+00 : f32
    %99 = vector.broadcast %cst_53 : f32 to vector<32x1xf32>
    %100 = arith.maximumf %98, %99 : vector<32x1xf32>
    %101 = vector.broadcast %91 : vector<32x1xf32> to vector<32x4xf32>
    %102 = arith.subf %87, %101 : vector<32x4xf32>
    %cst_54 = arith.constant 9.99999974E-6 : f32
    %103 = vector.broadcast %cst_54 : f32 to vector<32x1xf32>
    %104 = arith.addf %100, %103 : vector<32x1xf32>
    %105 = math.rsqrt %104 : vector<32x1xf32>
    %106 = vector.broadcast %105 : vector<32x1xf32> to vector<32x4xf32>
    %107 = arith.mulf %102, %106 : vector<32x4xf32>
    %cst_55 = arith.constant 0.000000e+00 : f32
    %108 = vector.broadcast %cst_55 : f32 to vector<32x4xf32>
    %109 = arith.maximumf %107, %108 : vector<32x4xf32>
    %c0_56 = arith.constant 0 : index
    %c0_57 = arith.constant 0 : index
    %110 = vector.load %arg13[%c0_56, %c0_57] : memref<8x32xbf16, #tpu.memory_space<vmem>>, vector<8x32xbf16>
    %111 = arith.truncf %109 : vector<32x4xf32> to vector<32x4xbf16>
    %cst_58 = arith.constant dense<0.000000e+00> : vector<8x4xf32>
    %112 = tpu.matmul %110, %111, %cst_58 {dimension_numbers = #tpu.dot_dimension_numbers<[1], [0], [0], [1], [0, 0, 1, 1], [], []>} : vector<8x32xbf16>, vector<32x4xbf16>, vector<8x4xf32> -> vector<8x4xf32>
    %cst_59 = arith.constant 0.000000e+00 : f32
    %113 = vector.broadcast %cst_59 : f32 to vector<8x4xf32>
    %114 = arith.subf %113, %112 : vector<8x4xf32>
    %115 = math.exp %114 : vector<8x4xf32>
    %cst_60 = arith.constant 1.000000e+00 : f32
    %116 = vector.broadcast %cst_60 : f32 to vector<8x4xf32>
    %117 = arith.addf %116, %115 : vector<8x4xf32>
    %cst_61 = arith.constant 1.000000e+00 : f32
    %118 = vector.broadcast %cst_61 : f32 to vector<8x4xf32>
    %119 = arith.divf %118, %117 : vector<8x4xf32>
    %cst_62 = arith.constant 4.200000e+00 : f32
    %120 = vector.broadcast %cst_62 : f32 to vector<8x4xf32>
    %121 = arith.mulf %119, %120 : vector<8x4xf32>
    %cst_63 = arith.constant 2.100000e+00 : f32
    %122 = vector.broadcast %cst_63 : f32 to vector<8x4xf32>
    %123 = arith.subf %121, %122 : vector<8x4xf32>
    %124 = math.roundeven %123 : vector<8x4xf32>
    %cst_64 = arith.constant 2.000000e+00 : f32
    %125 = vector.broadcast %cst_64 : f32 to vector<8x4xf32>
    %126 = arith.addf %124, %125 : vector<8x4xf32>
    %127 = arith.fptosi %126 : vector<8x4xf32> to vector<8x4xi32>
    %c0_65 = arith.constant 0 : index
    %c0_66 = arith.constant 0 : index
    %c0_67 = arith.constant 0 : index
    %128 = vector.load %arg21[%c0_65, %c0_66, %c0_67] : memref<1x8x4xi32, #tpu.memory_space<vmem>>, vector<1x8x4xi32>
    %129 = vector.shape_cast %128 : vector<1x8x4xi32> to vector<8x4xi32>
    %130 = vector.shape_cast %127 : vector<8x4xi32> to vector<1x8x4xi32>
    tpu.vector_store %arg21[%c0_65, %c0_66, %c0_67], %130 {strides = array<i32>} : memref<1x8x4xi32, #tpu.memory_space<vmem>>, vector<1x8x4xi32>,
    %131 = arith.truncf %124 : vector<8x4xf32> to vector<8x4xbf16>
    %c0_i32_68 = arith.constant 0 : i32
    %c25_i32_69 = arith.constant 25 : i32
    %132 = arith.addi %c0_i32_68, %c25_i32_69 : i32
    %c1_i32_70 = arith.constant 1 : i32
    scf.for %arg24 = %c0_i32_68 to %132 step %c1_i32_70  : i32 {
      %c1_i32_171 = arith.constant 1 : i32
      %278 = arith.muli %arg24, %c1_i32_171 : i32
      %c0_i32_172 = arith.constant 0 : i32
      %279 = arith.addi %c0_i32_172, %278 : i32
      %c0_i32_173 = arith.constant 0 : i32
      %280 = arith.addi %c0_i32_173, %279 : i32
      %281 = arith.index_cast %280 : i32 to index
      %c0_174 = arith.constant 0 : index
      %c0_175 = arith.constant 0 : index
      %282 = vector.load %arg5[%281, %c0_174, %c0_175] : memref<25x4x16xbf16, #tpu.memory_space<vmem>>, vector<1x4x16xbf16>
      %283 = vector.shape_cast %282 : vector<1x4x16xbf16> to vector<4x16xbf16>
      %cst_176 = arith.constant dense<0.000000e+00> : vector<8x16xf32>
      %284 = tpu.matmul %131, %283, %cst_176 {dimension_numbers = #tpu.dot_dimension_numbers<[1], [0], [0], [1], [0, 0, 1, 1], [], []>} : vector<8x4xbf16>, vector<4x16xbf16>, vector<8x16xf32> -> vector<8x16xf32>
      %c8_i32 = arith.constant 8 : i32
      %285 = arith.muli %279, %c8_i32 : i32
      %286 = tpu.assume_multiple %285, 8 : i32
      %287 = arith.index_cast %286 : i32 to index
      %c0_177 = arith.constant 0 : index
      %288 = vector.load %arg23[%287, %c0_177] : memref<800x256xf32, #tpu.memory_space<vmem>>, vector<8x16xf32>
      tpu.vector_store %arg23[%287, %c0_177], %284 {strides = array<i32>} : memref<800x256xf32, #tpu.memory_space<vmem>>, vector<8x16xf32>,
    }
    %c25_i32_71 = arith.constant 25 : i32
    %c0_72 = arith.constant 0 : index
    %c0_73 = arith.constant 0 : index
    %133 = vector.load %arg23[%c0_72, %c0_73] : memref<800x256xf32, #tpu.memory_space<vmem>>, vector<200x16xf32>
    %134 = arith.truncf %133 : vector<200x16xf32> to vector<200x16xbf16>
    %c0_74 = arith.constant 0 : index
    %c0_75 = arith.constant 0 : index
    %135 = vector.load %arg14[%c0_74, %c0_75] : memref<32x200xbf16, #tpu.memory_space<vmem>>, vector<32x200xbf16>
    %cst_76 = arith.constant dense<0.000000e+00> : vector<32x16xf32>
    %136 = tpu.matmul %135, %134, %cst_76 {dimension_numbers = #tpu.dot_dimension_numbers<[1], [0], [0], [1], [0, 0, 1, 1], [], []>} : vector<32x200xbf16>, vector<200x16xbf16>, vector<32x16xf32> -> vector<32x16xf32>
    %cst_77 = arith.constant dense<0.000000e+00> : vector<32xf32>
    %137 = vector.multi_reduction <add>, %136, %cst_77 [1] : vector<32x16xf32> to vector<32xf32>
    %138 = vector.shape_cast %137 : vector<32xf32> to vector<32x1xf32>
    %cst_78 = arith.constant 1.600000e+01 : f32
    %139 = vector.broadcast %cst_78 : f32 to vector<32x1xf32>
    %140 = arith.divf %138, %139 : vector<32x1xf32>
    %141 = arith.mulf %136, %136 : vector<32x16xf32>
    %cst_79 = arith.constant dense<0.000000e+00> : vector<32xf32>
    %142 = vector.multi_reduction <add>, %141, %cst_79 [1] : vector<32x16xf32> to vector<32xf32>
    %143 = vector.shape_cast %142 : vector<32xf32> to vector<32x1xf32>
    %cst_80 = arith.constant 1.600000e+01 : f32
    %144 = vector.broadcast %cst_80 : f32 to vector<32x1xf32>
    %145 = arith.divf %143, %144 : vector<32x1xf32>
    %146 = arith.mulf %140, %140 : vector<32x1xf32>
    %147 = arith.subf %145, %146 : vector<32x1xf32>
    %cst_81 = arith.constant 0.000000e+00 : f32
    %148 = vector.broadcast %cst_81 : f32 to vector<32x1xf32>
    %149 = arith.maximumf %147, %148 : vector<32x1xf32>
    %150 = vector.broadcast %140 : vector<32x1xf32> to vector<32x16xf32>
    %151 = arith.subf %136, %150 : vector<32x16xf32>
    %cst_82 = arith.constant 9.99999974E-6 : f32
    %152 = vector.broadcast %cst_82 : f32 to vector<32x1xf32>
    %153 = arith.addf %149, %152 : vector<32x1xf32>
    %154 = math.rsqrt %153 : vector<32x1xf32>
    %155 = vector.broadcast %154 : vector<32x1xf32> to vector<32x16xf32>
    %156 = arith.mulf %151, %155 : vector<32x16xf32>
    %cst_83 = arith.constant 0.000000e+00 : f32
    %157 = vector.broadcast %cst_83 : f32 to vector<32x16xf32>
    %158 = arith.maximumf %156, %157 : vector<32x16xf32>
    %159 = arith.truncf %158 : vector<32x16xf32> to vector<32x16xbf16>
    %c0_i32_84 = arith.constant 0 : i32
    %c25_i32_85 = arith.constant 25 : i32
    %160 = arith.addi %c0_i32_84, %c25_i32_85 : i32
    %c1_i32_86 = arith.constant 1 : i32
    scf.for %arg24 = %c0_i32_84 to %160 step %c1_i32_86  : i32 {
      %c1_i32_171 = arith.constant 1 : i32
      %278 = arith.muli %arg24, %c1_i32_171 : i32
      %c0_i32_172 = arith.constant 0 : i32
      %279 = arith.addi %c0_i32_172, %278 : i32
      %c0_i32_173 = arith.constant 0 : i32
      %280 = arith.addi %c0_i32_173, %279 : i32
      %281 = arith.index_cast %280 : i32 to index
      %c0_174 = arith.constant 0 : index
      %c0_175 = arith.constant 0 : index
      %282 = vector.load %arg6[%281, %c0_174, %c0_175] : memref<25x16x64xbf16, #tpu.memory_space<vmem>>, vector<1x16x64xbf16>
      %283 = vector.shape_cast %282 : vector<1x16x64xbf16> to vector<16x64xbf16>
      %cst_176 = arith.constant dense<0.000000e+00> : vector<32x64xf32>
      %284 = tpu.matmul %159, %283, %cst_176 {dimension_numbers = #tpu.dot_dimension_numbers<[1], [0], [0], [1], [0, 0, 1, 1], [], []>} : vector<32x16xbf16>, vector<16x64xbf16>, vector<32x64xf32> -> vector<32x64xf32>
      %c32_i32 = arith.constant 32 : i32
      %285 = arith.muli %279, %c32_i32 : i32
      %286 = tpu.assume_multiple %285, 8 : i32
      %287 = arith.index_cast %286 : i32 to index
      %c0_177 = arith.constant 0 : index
      %288 = vector.load %arg23[%287, %c0_177] : memref<800x256xf32, #tpu.memory_space<vmem>>, vector<32x64xf32>
      tpu.vector_store %arg23[%287, %c0_177], %284 {strides = array<i32>} : memref<800x256xf32, #tpu.memory_space<vmem>>, vector<32x64xf32>,
    }
    %c25_i32_87 = arith.constant 25 : i32
    %c0_88 = arith.constant 0 : index
    %c0_89 = arith.constant 0 : index
    %161 = vector.load %arg23[%c0_88, %c0_89] : memref<800x256xf32, #tpu.memory_space<vmem>>, vector<800x64xf32>
    %162 = arith.truncf %161 : vector<800x64xf32> to vector<800x64xbf16>
    %c0_90 = arith.constant 0 : index
    %c0_91 = arith.constant 0 : index
    %163 = vector.load %arg15[%c0_90, %c0_91] : memref<32x800xbf16, #tpu.memory_space<vmem>>, vector<32x800xbf16>
    %cst_92 = arith.constant dense<0.000000e+00> : vector<32x64xf32>
    %164 = tpu.matmul %163, %162, %cst_92 {dimension_numbers = #tpu.dot_dimension_numbers<[1], [0], [0], [1], [0, 0, 1, 1], [], []>} : vector<32x800xbf16>, vector<800x64xbf16>, vector<32x64xf32> -> vector<32x64xf32>
    %cst_93 = arith.constant dense<0.000000e+00> : vector<32xf32>
    %165 = vector.multi_reduction <add>, %164, %cst_93 [1] : vector<32x64xf32> to vector<32xf32>
    %166 = vector.shape_cast %165 : vector<32xf32> to vector<32x1xf32>
    %cst_94 = arith.constant 6.400000e+01 : f32
    %167 = vector.broadcast %cst_94 : f32 to vector<32x1xf32>
    %168 = arith.divf %166, %167 : vector<32x1xf32>
    %169 = arith.mulf %164, %164 : vector<32x64xf32>
    %cst_95 = arith.constant dense<0.000000e+00> : vector<32xf32>
    %170 = vector.multi_reduction <add>, %169, %cst_95 [1] : vector<32x64xf32> to vector<32xf32>
    %171 = vector.shape_cast %170 : vector<32xf32> to vector<32x1xf32>
    %cst_96 = arith.constant 6.400000e+01 : f32
    %172 = vector.broadcast %cst_96 : f32 to vector<32x1xf32>
    %173 = arith.divf %171, %172 : vector<32x1xf32>
    %174 = arith.mulf %168, %168 : vector<32x1xf32>
    %175 = arith.subf %173, %174 : vector<32x1xf32>
    %cst_97 = arith.constant 0.000000e+00 : f32
    %176 = vector.broadcast %cst_97 : f32 to vector<32x1xf32>
    %177 = arith.maximumf %175, %176 : vector<32x1xf32>
    %178 = vector.broadcast %168 : vector<32x1xf32> to vector<32x64xf32>
    %179 = arith.subf %164, %178 : vector<32x64xf32>
    %cst_98 = arith.constant 9.99999974E-6 : f32
    %180 = vector.broadcast %cst_98 : f32 to vector<32x1xf32>
    %181 = arith.addf %177, %180 : vector<32x1xf32>
    %182 = math.rsqrt %181 : vector<32x1xf32>
    %183 = vector.broadcast %182 : vector<32x1xf32> to vector<32x64xf32>
    %184 = arith.mulf %179, %183 : vector<32x64xf32>
    %cst_99 = arith.constant 0.000000e+00 : f32
    %185 = vector.broadcast %cst_99 : f32 to vector<32x64xf32>
    %186 = arith.maximumf %184, %185 : vector<32x64xf32>
    %187 = arith.truncf %186 : vector<32x64xf32> to vector<32x64xbf16>
    %c0_i32_100 = arith.constant 0 : i32
    %c25_i32_101 = arith.constant 25 : i32
    %188 = arith.addi %c0_i32_100, %c25_i32_101 : i32
    %c1_i32_102 = arith.constant 1 : i32
    scf.for %arg24 = %c0_i32_100 to %188 step %c1_i32_102  : i32 {
      %c1_i32_171 = arith.constant 1 : i32
      %278 = arith.muli %arg24, %c1_i32_171 : i32
      %c0_i32_172 = arith.constant 0 : i32
      %279 = arith.addi %c0_i32_172, %278 : i32
      %c0_i32_173 = arith.constant 0 : i32
      %280 = arith.addi %c0_i32_173, %279 : i32
      %281 = arith.index_cast %280 : i32 to index
      %c0_174 = arith.constant 0 : index
      %c0_175 = arith.constant 0 : index
      %282 = vector.load %arg7[%281, %c0_174, %c0_175] : memref<25x64x256xbf16, #tpu.memory_space<vmem>>, vector<1x64x256xbf16>
      %283 = vector.shape_cast %282 : vector<1x64x256xbf16> to vector<64x256xbf16>
      %cst_176 = arith.constant dense<0.000000e+00> : vector<32x256xf32>
      %284 = tpu.matmul %187, %283, %cst_176 {dimension_numbers = #tpu.dot_dimension_numbers<[1], [0], [0], [1], [0, 0, 1, 1], [], []>} : vector<32x64xbf16>, vector<64x256xbf16>, vector<32x256xf32> -> vector<32x256xf32>
      %c32_i32 = arith.constant 32 : i32
      %285 = arith.muli %279, %c32_i32 : i32
      %286 = tpu.assume_multiple %285, 8 : i32
      %287 = arith.index_cast %286 : i32 to index
      %c0_177 = arith.constant 0 : index
      %288 = vector.load %arg23[%287, %c0_177] : memref<800x256xf32, #tpu.memory_space<vmem>>, vector<32x256xf32>
      tpu.vector_store %arg23[%287, %c0_177], %284 {strides = array<i32>} : memref<800x256xf32, #tpu.memory_space<vmem>>, vector<32x256xf32>,
    }
    %c25_i32_103 = arith.constant 25 : i32
    %c0_104 = arith.constant 0 : index
    %c0_105 = arith.constant 0 : index
    %189 = vector.load %arg23[%c0_104, %c0_105] : memref<800x256xf32, #tpu.memory_space<vmem>>, vector<800x256xf32>
    %190 = arith.truncf %189 : vector<800x256xf32> to vector<800x256xbf16>
    %c0_106 = arith.constant 0 : index
    %c0_107 = arith.constant 0 : index
    %191 = vector.load %arg16[%c0_106, %c0_107] : memref<32x800xbf16, #tpu.memory_space<vmem>>, vector<32x800xbf16>
    %cst_108 = arith.constant dense<0.000000e+00> : vector<32x256xf32>
    %192 = tpu.matmul %191, %190, %cst_108 {dimension_numbers = #tpu.dot_dimension_numbers<[1], [0], [0], [1], [0, 0, 1, 1], [], []>} : vector<32x800xbf16>, vector<800x256xbf16>, vector<32x256xf32> -> vector<32x256xf32>
    %cst_109 = arith.constant dense<0.000000e+00> : vector<32xf32>
    %193 = vector.multi_reduction <add>, %192, %cst_109 [1] : vector<32x256xf32> to vector<32xf32>
    %194 = vector.shape_cast %193 : vector<32xf32> to vector<32x1xf32>
    %cst_110 = arith.constant 2.560000e+02 : f32
    %195 = vector.broadcast %cst_110 : f32 to vector<32x1xf32>
    %196 = arith.divf %194, %195 : vector<32x1xf32>
    %197 = arith.mulf %192, %192 : vector<32x256xf32>
    %cst_111 = arith.constant dense<0.000000e+00> : vector<32xf32>
    %198 = vector.multi_reduction <add>, %197, %cst_111 [1] : vector<32x256xf32> to vector<32xf32>
    %199 = vector.shape_cast %198 : vector<32xf32> to vector<32x1xf32>
    %cst_112 = arith.constant 2.560000e+02 : f32
    %200 = vector.broadcast %cst_112 : f32 to vector<32x1xf32>
    %201 = arith.divf %199, %200 : vector<32x1xf32>
    %202 = arith.mulf %196, %196 : vector<32x1xf32>
    %203 = arith.subf %201, %202 : vector<32x1xf32>
    %cst_113 = arith.constant 0.000000e+00 : f32
    %204 = vector.broadcast %cst_113 : f32 to vector<32x1xf32>
    %205 = arith.maximumf %203, %204 : vector<32x1xf32>
    %206 = vector.broadcast %196 : vector<32x1xf32> to vector<32x256xf32>
    %207 = arith.subf %192, %206 : vector<32x256xf32>
    %cst_114 = arith.constant 9.99999974E-6 : f32
    %208 = vector.broadcast %cst_114 : f32 to vector<32x1xf32>
    %209 = arith.addf %205, %208 : vector<32x1xf32>
    %210 = math.rsqrt %209 : vector<32x1xf32>
    %211 = vector.broadcast %210 : vector<32x1xf32> to vector<32x256xf32>
    %212 = arith.mulf %207, %211 : vector<32x256xf32>
    %cst_115 = arith.constant 0.000000e+00 : f32
    %213 = vector.broadcast %cst_115 : f32 to vector<32x256xf32>
    %214 = arith.maximumf %212, %213 : vector<32x256xf32>
    %215 = arith.truncf %214 : vector<32x256xf32> to vector<32x256xbf16>
    %c0_i32_116 = arith.constant 0 : i32
    %c9_i32 = arith.constant 9 : i32
    %216 = arith.addi %c0_i32_116, %c9_i32 : i32
    %c1_i32_117 = arith.constant 1 : i32
    scf.for %arg24 = %c0_i32_116 to %216 step %c1_i32_117  : i32 {
      %c1_i32_171 = arith.constant 1 : i32
      %278 = arith.muli %arg24, %c1_i32_171 : i32
      %c0_i32_172 = arith.constant 0 : i32
      %279 = arith.addi %c0_i32_172, %278 : i32
      %c0_i32_173 = arith.constant 0 : i32
      %280 = arith.addi %c0_i32_173, %279 : i32
      %281 = arith.index_cast %280 : i32 to index
      %c0_174 = arith.constant 0 : index
      %c0_175 = arith.constant 0 : index
      %282 = vector.load %arg8[%281, %c0_174, %c0_175] : memref<25x256x256xbf16, #tpu.memory_space<vmem>>, vector<1x256x256xbf16>
      %283 = vector.shape_cast %282 : vector<1x256x256xbf16> to vector<256x256xbf16>
      %cst_176 = arith.constant dense<0.000000e+00> : vector<32x256xf32>
      %284 = tpu.matmul %215, %283, %cst_176 {dimension_numbers = #tpu.dot_dimension_numbers<[1], [0], [0], [1], [0, 0, 1, 1], [], []>} : vector<32x256xbf16>, vector<256x256xbf16>, vector<32x256xf32> -> vector<32x256xf32>
      %c32_i32 = arith.constant 32 : i32
      %285 = arith.muli %279, %c32_i32 : i32
      %286 = tpu.assume_multiple %285, 8 : i32
      %287 = arith.index_cast %286 : i32 to index
      %c0_177 = arith.constant 0 : index
      %288 = vector.load %arg23[%287, %c0_177] : memref<800x256xf32, #tpu.memory_space<vmem>>, vector<32x256xf32>
      tpu.vector_store %arg23[%287, %c0_177], %284 {strides = array<i32>} : memref<800x256xf32, #tpu.memory_space<vmem>>, vector<32x256xf32>,
    }
    %c9_i32_118 = arith.constant 9 : i32
    %c0_119 = arith.constant 0 : index
    %c0_120 = arith.constant 0 : index
    %217 = vector.load %arg23[%c0_119, %c0_120] : memref<800x256xf32, #tpu.memory_space<vmem>>, vector<288x256xf32>
    %218 = arith.truncf %217 : vector<288x256xf32> to vector<288x256xbf16>
    %c0_121 = arith.constant 0 : index
    %c0_122 = arith.constant 0 : index
    %219 = vector.load %arg17[%c0_121, %c0_122] : memref<32x288xbf16, #tpu.memory_space<vmem>>, vector<32x288xbf16>
    %cst_123 = arith.constant dense<0.000000e+00> : vector<32x256xf32>
    %220 = tpu.matmul %219, %218, %cst_123 {dimension_numbers = #tpu.dot_dimension_numbers<[1], [0], [0], [1], [0, 0, 1, 1], [], []>} : vector<32x288xbf16>, vector<288x256xbf16>, vector<32x256xf32> -> vector<32x256xf32>
    %c0_124 = arith.constant 0 : index
    %c0_125 = arith.constant 0 : index
    %c0_126 = arith.constant 0 : index
    %221 = vector.load %arg22[%c0_124, %c0_125, %c0_126] : memref<1x32x1024xf32, #tpu.memory_space<vmem>>, vector<1x32x256xf32>
    %222 = vector.shape_cast %221 : vector<1x32x256xf32> to vector<32x256xf32>
    %223 = vector.shape_cast %220 : vector<32x256xf32> to vector<1x32x256xf32>
    tpu.vector_store %arg22[%c0_124, %c0_125, %c0_126], %223 {strides = array<i32>} : memref<1x32x1024xf32, #tpu.memory_space<vmem>>, vector<1x32x256xf32>,
    %224 = arith.truncf %214 : vector<32x256xf32> to vector<32x256xbf16>
    %c0_i32_127 = arith.constant 0 : i32
    %c6_i32 = arith.constant 6 : i32
    %225 = arith.addi %c0_i32_127, %c6_i32 : i32
    %c1_i32_128 = arith.constant 1 : i32
    scf.for %arg24 = %c0_i32_127 to %225 step %c1_i32_128  : i32 {
      %c1_i32_171 = arith.constant 1 : i32
      %278 = arith.muli %arg24, %c1_i32_171 : i32
      %c0_i32_172 = arith.constant 0 : i32
      %279 = arith.addi %c0_i32_172, %278 : i32
      %c9_i32_173 = arith.constant 9 : i32
      %280 = arith.addi %c9_i32_173, %279 : i32
      %281 = arith.index_cast %280 : i32 to index
      %c0_174 = arith.constant 0 : index
      %c0_175 = arith.constant 0 : index
      %282 = vector.load %arg8[%281, %c0_174, %c0_175] : memref<25x256x256xbf16, #tpu.memory_space<vmem>>, vector<1x256x256xbf16>
      %283 = vector.shape_cast %282 : vector<1x256x256xbf16> to vector<256x256xbf16>
      %cst_176 = arith.constant dense<0.000000e+00> : vector<32x256xf32>
      %284 = tpu.matmul %224, %283, %cst_176 {dimension_numbers = #tpu.dot_dimension_numbers<[1], [0], [0], [1], [0, 0, 1, 1], [], []>} : vector<32x256xbf16>, vector<256x256xbf16>, vector<32x256xf32> -> vector<32x256xf32>
      %c32_i32 = arith.constant 32 : i32
      %285 = arith.muli %279, %c32_i32 : i32
      %286 = tpu.assume_multiple %285, 8 : i32
      %287 = arith.index_cast %286 : i32 to index
      %c0_177 = arith.constant 0 : index
      %288 = vector.load %arg23[%287, %c0_177] : memref<800x256xf32, #tpu.memory_space<vmem>>, vector<32x256xf32>
      tpu.vector_store %arg23[%287, %c0_177], %284 {strides = array<i32>} : memref<800x256xf32, #tpu.memory_space<vmem>>, vector<32x256xf32>,
    }
    %c6_i32_129 = arith.constant 6 : i32
    %c0_130 = arith.constant 0 : index
    %c0_131 = arith.constant 0 : index
    %226 = vector.load %arg23[%c0_130, %c0_131] : memref<800x256xf32, #tpu.memory_space<vmem>>, vector<192x256xf32>
    %227 = arith.truncf %226 : vector<192x256xf32> to vector<192x256xbf16>
    %c0_132 = arith.constant 0 : index
    %c0_133 = arith.constant 0 : index
    %228 = vector.load %arg18[%c0_132, %c0_133] : memref<32x192xbf16, #tpu.memory_space<vmem>>, vector<32x192xbf16>
    %cst_134 = arith.constant dense<0.000000e+00> : vector<32x256xf32>
    %229 = tpu.matmul %228, %227, %cst_134 {dimension_numbers = #tpu.dot_dimension_numbers<[1], [0], [0], [1], [0, 0, 1, 1], [], []>} : vector<32x192xbf16>, vector<192x256xbf16>, vector<32x256xf32> -> vector<32x256xf32>
    %c0_135 = arith.constant 0 : index
    %c0_136 = arith.constant 0 : index
    %c256 = arith.constant 256 : index
    %230 = vector.load %arg22[%c0_135, %c0_136, %c256] : memref<1x32x1024xf32, #tpu.memory_space<vmem>>, vector<1x32x256xf32>
    %231 = vector.shape_cast %230 : vector<1x32x256xf32> to vector<32x256xf32>
    %232 = vector.shape_cast %229 : vector<32x256xf32> to vector<1x32x256xf32>
    tpu.vector_store %arg22[%c0_135, %c0_136, %c256], %232 {strides = array<i32>} : memref<1x32x1024xf32, #tpu.memory_space<vmem>>, vector<1x32x256xf32>,
    %233 = arith.truncf %214 : vector<32x256xf32> to vector<32x256xbf16>
    %c0_i32_137 = arith.constant 0 : i32
    %c6_i32_138 = arith.constant 6 : i32
    %234 = arith.addi %c0_i32_137, %c6_i32_138 : i32
    %c1_i32_139 = arith.constant 1 : i32
    scf.for %arg24 = %c0_i32_137 to %234 step %c1_i32_139  : i32 {
      %c1_i32_171 = arith.constant 1 : i32
      %278 = arith.muli %arg24, %c1_i32_171 : i32
      %c0_i32_172 = arith.constant 0 : i32
      %279 = arith.addi %c0_i32_172, %278 : i32
      %c15_i32 = arith.constant 15 : i32
      %280 = arith.addi %c15_i32, %279 : i32
      %281 = arith.index_cast %280 : i32 to index
      %c0_173 = arith.constant 0 : index
      %c0_174 = arith.constant 0 : index
      %282 = vector.load %arg8[%281, %c0_173, %c0_174] : memref<25x256x256xbf16, #tpu.memory_space<vmem>>, vector<1x256x256xbf16>
      %283 = vector.shape_cast %282 : vector<1x256x256xbf16> to vector<256x256xbf16>
      %cst_175 = arith.constant dense<0.000000e+00> : vector<32x256xf32>
      %284 = tpu.matmul %233, %283, %cst_175 {dimension_numbers = #tpu.dot_dimension_numbers<[1], [0], [0], [1], [0, 0, 1, 1], [], []>} : vector<32x256xbf16>, vector<256x256xbf16>, vector<32x256xf32> -> vector<32x256xf32>
      %c32_i32 = arith.constant 32 : i32
      %285 = arith.muli %279, %c32_i32 : i32
      %286 = tpu.assume_multiple %285, 8 : i32
      %287 = arith.index_cast %286 : i32 to index
      %c0_176 = arith.constant 0 : index
      %288 = vector.load %arg23[%287, %c0_176] : memref<800x256xf32, #tpu.memory_space<vmem>>, vector<32x256xf32>
      tpu.vector_store %arg23[%287, %c0_176], %284 {strides = array<i32>} : memref<800x256xf32, #tpu.memory_space<vmem>>, vector<32x256xf32>,
    }
    %c6_i32_140 = arith.constant 6 : i32
    %c0_141 = arith.constant 0 : index
    %c0_142 = arith.constant 0 : index
    %235 = vector.load %arg23[%c0_141, %c0_142] : memref<800x256xf32, #tpu.memory_space<vmem>>, vector<192x256xf32>
    %236 = arith.truncf %235 : vector<192x256xf32> to vector<192x256xbf16>
    %c0_143 = arith.constant 0 : index
    %c0_144 = arith.constant 0 : index
    %237 = vector.load %arg19[%c0_143, %c0_144] : memref<32x192xbf16, #tpu.memory_space<vmem>>, vector<32x192xbf16>
    %cst_145 = arith.constant dense<0.000000e+00> : vector<32x256xf32>
    %238 = tpu.matmul %237, %236, %cst_145 {dimension_numbers = #tpu.dot_dimension_numbers<[1], [0], [0], [1], [0, 0, 1, 1], [], []>} : vector<32x192xbf16>, vector<192x256xbf16>, vector<32x256xf32> -> vector<32x256xf32>
    %c0_146 = arith.constant 0 : index
    %c0_147 = arith.constant 0 : index
    %c512 = arith.constant 512 : index
    %239 = vector.load %arg22[%c0_146, %c0_147, %c512] : memref<1x32x1024xf32, #tpu.memory_space<vmem>>, vector<1x32x256xf32>
    %240 = vector.shape_cast %239 : vector<1x32x256xf32> to vector<32x256xf32>
    %241 = vector.shape_cast %238 : vector<32x256xf32> to vector<1x32x256xf32>
    tpu.vector_store %arg22[%c0_146, %c0_147, %c512], %241 {strides = array<i32>} : memref<1x32x1024xf32, #tpu.memory_space<vmem>>, vector<1x32x256xf32>,
    %242 = arith.truncf %214 : vector<32x256xf32> to vector<32x256xbf16>
    %c0_i32_148 = arith.constant 0 : i32
    %c4_i32 = arith.constant 4 : i32
    %243 = arith.addi %c0_i32_148, %c4_i32 : i32
    %c1_i32_149 = arith.constant 1 : i32
    scf.for %arg24 = %c0_i32_148 to %243 step %c1_i32_149  : i32 {
      %c1_i32_171 = arith.constant 1 : i32
      %278 = arith.muli %arg24, %c1_i32_171 : i32
      %c0_i32_172 = arith.constant 0 : i32
      %279 = arith.addi %c0_i32_172, %278 : i32
      %c21_i32 = arith.constant 21 : i32
      %280 = arith.addi %c21_i32, %279 : i32
      %281 = arith.index_cast %280 : i32 to index
      %c0_173 = arith.constant 0 : index
      %c0_174 = arith.constant 0 : index
      %282 = vector.load %arg8[%281, %c0_173, %c0_174] : memref<25x256x256xbf16, #tpu.memory_space<vmem>>, vector<1x256x256xbf16>
      %283 = vector.shape_cast %282 : vector<1x256x256xbf16> to vector<256x256xbf16>
      %cst_175 = arith.constant dense<0.000000e+00> : vector<32x256xf32>
      %284 = tpu.matmul %242, %283, %cst_175 {dimension_numbers = #tpu.dot_dimension_numbers<[1], [0], [0], [1], [0, 0, 1, 1], [], []>} : vector<32x256xbf16>, vector<256x256xbf16>, vector<32x256xf32> -> vector<32x256xf32>
      %c32_i32 = arith.constant 32 : i32
      %285 = arith.muli %279, %c32_i32 : i32
      %286 = tpu.assume_multiple %285, 8 : i32
      %287 = arith.index_cast %286 : i32 to index
      %c0_176 = arith.constant 0 : index
      %288 = vector.load %arg23[%287, %c0_176] : memref<800x256xf32, #tpu.memory_space<vmem>>, vector<32x256xf32>
      tpu.vector_store %arg23[%287, %c0_176], %284 {strides = array<i32>} : memref<800x256xf32, #tpu.memory_space<vmem>>, vector<32x256xf32>,
    }
    %c4_i32_150 = arith.constant 4 : i32
    %c0_151 = arith.constant 0 : index
    %c0_152 = arith.constant 0 : index
    %244 = vector.load %arg23[%c0_151, %c0_152] : memref<800x256xf32, #tpu.memory_space<vmem>>, vector<128x256xf32>
    %245 = arith.truncf %244 : vector<128x256xf32> to vector<128x256xbf16>
    %c0_153 = arith.constant 0 : index
    %c0_154 = arith.constant 0 : index
    %246 = vector.load %arg20[%c0_153, %c0_154] : memref<32x128xbf16, #tpu.memory_space<vmem>>, vector<32x128xbf16>
    %cst_155 = arith.constant dense<0.000000e+00> : vector<32x256xf32>
    %247 = tpu.matmul %246, %245, %cst_155 {dimension_numbers = #tpu.dot_dimension_numbers<[1], [0], [0], [1], [0, 0, 1, 1], [], []>} : vector<32x128xbf16>, vector<128x256xbf16>, vector<32x256xf32> -> vector<32x256xf32>
    %c0_156 = arith.constant 0 : index
    %c0_157 = arith.constant 0 : index
    %c768 = arith.constant 768 : index
    %248 = vector.load %arg22[%c0_156, %c0_157, %c768] : memref<1x32x1024xf32, #tpu.memory_space<vmem>>, vector<1x32x256xf32>
    %249 = vector.shape_cast %248 : vector<1x32x256xf32> to vector<32x256xf32>
    %250 = vector.shape_cast %247 : vector<32x256xf32> to vector<1x32x256xf32>
    tpu.vector_store %arg22[%c0_156, %c0_157, %c768], %250 {strides = array<i32>} : memref<1x32x1024xf32, #tpu.memory_space<vmem>>, vector<1x32x256xf32>,
    %c0_158 = arith.constant 0 : index
    %c0_159 = arith.constant 0 : index
    %c0_160 = arith.constant 0 : index
    %251 = vector.load %arg22[%c0_158, %c0_159, %c0_160] : memref<1x32x1024xf32, #tpu.memory_space<vmem>>, vector<1x32x1024xf32>
    %252 = vector.shape_cast %251 : vector<1x32x1024xf32> to vector<32x1024xf32>
    %cst_161 = arith.constant dense<0.000000e+00> : vector<32xf32>
    %253 = vector.multi_reduction <add>, %252, %cst_161 [1] : vector<32x1024xf32> to vector<32xf32>
    %254 = vector.shape_cast %253 : vector<32xf32> to vector<32x1xf32>
    %cst_162 = arith.constant 1.024000e+03 : f32
    %255 = vector.broadcast %cst_162 : f32 to vector<32x1xf32>
    %256 = arith.divf %254, %255 : vector<32x1xf32>
    %257 = arith.mulf %252, %252 : vector<32x1024xf32>
    %cst_163 = arith.constant dense<0.000000e+00> : vector<32xf32>
    %258 = vector.multi_reduction <add>, %257, %cst_163 [1] : vector<32x1024xf32> to vector<32xf32>
    %259 = vector.shape_cast %258 : vector<32xf32> to vector<32x1xf32>
    %cst_164 = arith.constant 1.024000e+03 : f32
    %260 = vector.broadcast %cst_164 : f32 to vector<32x1xf32>
    %261 = arith.divf %259, %260 : vector<32x1xf32>
    %262 = arith.mulf %256, %256 : vector<32x1xf32>
    %263 = arith.subf %261, %262 : vector<32x1xf32>
    %cst_165 = arith.constant 0.000000e+00 : f32
    %264 = vector.broadcast %cst_165 : f32 to vector<32x1xf32>
    %265 = arith.maximumf %263, %264 : vector<32x1xf32>
    %266 = vector.broadcast %256 : vector<32x1xf32> to vector<32x1024xf32>
    %267 = arith.subf %252, %266 : vector<32x1024xf32>
    %cst_166 = arith.constant 9.99999974E-6 : f32
    %268 = vector.broadcast %cst_166 : f32 to vector<32x1xf32>
    %269 = arith.addf %265, %268 : vector<32x1xf32>
    %270 = math.rsqrt %269 : vector<32x1xf32>
    %271 = vector.broadcast %270 : vector<32x1xf32> to vector<32x1024xf32>
    %272 = arith.mulf %267, %271 : vector<32x1024xf32>
    %cst_167 = arith.constant 0.000000e+00 : f32
    %273 = vector.broadcast %cst_167 : f32 to vector<32x1024xf32>
    %274 = arith.maximumf %272, %273 : vector<32x1024xf32>
    %c0_168 = arith.constant 0 : index
    %c0_169 = arith.constant 0 : index
    %c0_170 = arith.constant 0 : index
    %275 = vector.load %arg22[%c0_168, %c0_169, %c0_170] : memref<1x32x1024xf32, #tpu.memory_space<vmem>>, vector<1x32x1024xf32>
    %276 = vector.shape_cast %275 : vector<1x32x1024xf32> to vector<32x1024xf32>
    %277 = vector.shape_cast %274 : vector<32x1024xf32> to vector<1x32x1024xf32>
    tpu.vector_store %arg22[%c0_168, %c0_169, %c0_170], %277 {strides = array<i32>} : memref<1x32x1024xf32, #tpu.memory_space<vmem>>, vector<1x32x1024xf32>,
    return
  }
  func.func @transform_0(%arg0: i32) -> (i32, i32, i32) {
    %c0_i32 = arith.constant 0 : i32
    %c0_i32_0 = arith.constant 0 : i32
    %c0_i32_1 = arith.constant 0 : i32
    return %arg0, %c0_i32, %c0_i32_0 : i32, i32, i32
  }
  func.func @transform_1(%arg0: i32) -> (i32, i32, i32) {
    %c0_i32 = arith.constant 0 : i32
    %c0_i32_0 = arith.constant 0 : i32
    %c0_i32_1 = arith.constant 0 : i32
    %c0_i32_2 = arith.constant 0 : i32
    return %c0_i32, %c0_i32_0, %c0_i32_1 : i32, i32, i32
  }
  func.func @transform_2(%arg0: i32) -> (i32, i32, i32) {
    %c0_i32 = arith.constant 0 : i32
    %c0_i32_0 = arith.constant 0 : i32
    %c0_i32_1 = arith.constant 0 : i32
    %c0_i32_2 = arith.constant 0 : i32
    return %c0_i32, %c0_i32_0, %c0_i32_1 : i32, i32, i32
  }
  func.func @transform_3(%arg0: i32) -> (i32, i32, i32) {
    %c0_i32 = arith.constant 0 : i32
    %c0_i32_0 = arith.constant 0 : i32
    %c0_i32_1 = arith.constant 0 : i32
    %c0_i32_2 = arith.constant 0 : i32
    return %c0_i32, %c0_i32_0, %c0_i32_1 : i32, i32, i32
  }
  func.func @transform_4(%arg0: i32) -> (i32, i32, i32) {
    %c0_i32 = arith.constant 0 : i32
    %c0_i32_0 = arith.constant 0 : i32
    %c0_i32_1 = arith.constant 0 : i32
    %c0_i32_2 = arith.constant 0 : i32
    return %c0_i32, %c0_i32_0, %c0_i32_1 : i32, i32, i32
  }
  func.func @transform_5(%arg0: i32) -> (i32, i32, i32) {
    %c0_i32 = arith.constant 0 : i32
    %c0_i32_0 = arith.constant 0 : i32
    %c0_i32_1 = arith.constant 0 : i32
    %c0_i32_2 = arith.constant 0 : i32
    return %c0_i32, %c0_i32_0, %c0_i32_1 : i32, i32, i32
  }
  func.func @transform_6(%arg0: i32) -> (i32, i32, i32) {
    %c0_i32 = arith.constant 0 : i32
    %c0_i32_0 = arith.constant 0 : i32
    %c0_i32_1 = arith.constant 0 : i32
    %c0_i32_2 = arith.constant 0 : i32
    return %c0_i32, %c0_i32_0, %c0_i32_1 : i32, i32, i32
  }
  func.func @transform_7(%arg0: i32) -> (i32, i32, i32) {
    %c0_i32 = arith.constant 0 : i32
    %c0_i32_0 = arith.constant 0 : i32
    %c0_i32_1 = arith.constant 0 : i32
    %c0_i32_2 = arith.constant 0 : i32
    return %c0_i32, %c0_i32_0, %c0_i32_1 : i32, i32, i32
  }
  func.func @transform_8(%arg0: i32) -> (i32, i32) {
    %c0_i32 = arith.constant 0 : i32
    %c0_i32_0 = arith.constant 0 : i32
    %c0_i32_1 = arith.constant 0 : i32
    return %c0_i32, %c0_i32_0 : i32, i32
  }
  func.func @transform_9(%arg0: i32) -> (i32, i32) {
    %c0_i32 = arith.constant 0 : i32
    %c0_i32_0 = arith.constant 0 : i32
    %c0_i32_1 = arith.constant 0 : i32
    return %c0_i32, %c0_i32_0 : i32, i32
  }
  func.func @transform_10(%arg0: i32) -> (i32, i32) {
    %c0_i32 = arith.constant 0 : i32
    %c0_i32_0 = arith.constant 0 : i32
    %c0_i32_1 = arith.constant 0 : i32
    return %c0_i32, %c0_i32_0 : i32, i32
  }
  func.func @transform_11(%arg0: i32) -> (i32, i32) {
    %c0_i32 = arith.constant 0 : i32
    %c0_i32_0 = arith.constant 0 : i32
    %c0_i32_1 = arith.constant 0 : i32
    return %c0_i32, %c0_i32_0 : i32, i32
  }
  func.func @transform_12(%arg0: i32) -> (i32, i32) {
    %c0_i32 = arith.constant 0 : i32
    %c0_i32_0 = arith.constant 0 : i32
    %c0_i32_1 = arith.constant 0 : i32
    return %c0_i32, %c0_i32_0 : i32, i32
  }
  func.func @transform_13(%arg0: i32) -> (i32, i32) {
    %c0_i32 = arith.constant 0 : i32
    %c0_i32_0 = arith.constant 0 : i32
    %c0_i32_1 = arith.constant 0 : i32
    return %c0_i32, %c0_i32_0 : i32, i32
  }
  func.func @transform_14(%arg0: i32) -> (i32, i32) {
    %c0_i32 = arith.constant 0 : i32
    %c0_i32_0 = arith.constant 0 : i32
    %c0_i32_1 = arith.constant 0 : i32
    return %c0_i32, %c0_i32_0 : i32, i32
  }
  func.func @transform_15(%arg0: i32) -> (i32, i32) {
    %c0_i32 = arith.constant 0 : i32
    %c0_i32_0 = arith.constant 0 : i32
    %c0_i32_1 = arith.constant 0 : i32
    return %c0_i32, %c0_i32_0 : i32, i32
  }
  func.func @transform_16(%arg0: i32) -> (i32, i32) {
    %c0_i32 = arith.constant 0 : i32
    %c0_i32_0 = arith.constant 0 : i32
    %c0_i32_1 = arith.constant 0 : i32
    return %c0_i32, %c0_i32_0 : i32, i32
  }
  func.func @transform_17(%arg0: i32) -> (i32, i32) {
    %c0_i32 = arith.constant 0 : i32
    %c0_i32_0 = arith.constant 0 : i32
    %c0_i32_1 = arith.constant 0 : i32
    return %c0_i32, %c0_i32_0 : i32, i32
  }
  func.func @transform_18(%arg0: i32) -> (i32, i32) {
    %c0_i32 = arith.constant 0 : i32
    %c0_i32_0 = arith.constant 0 : i32
    %c0_i32_1 = arith.constant 0 : i32
    return %c0_i32, %c0_i32_0 : i32, i32
  }
  func.func @transform_19(%arg0: i32) -> (i32, i32) {
    %c0_i32 = arith.constant 0 : i32
    %c0_i32_0 = arith.constant 0 : i32
    %c0_i32_1 = arith.constant 0 : i32
    return %c0_i32, %c0_i32_0 : i32, i32
  }
  func.func @transform_20(%arg0: i32) -> (i32, i32, i32) {
    %c0_i32 = arith.constant 0 : i32
    %c0_i32_0 = arith.constant 0 : i32
    %c0_i32_1 = arith.constant 0 : i32
    return %arg0, %c0_i32, %c0_i32_0 : i32, i32, i32
  }
  func.func @transform_21(%arg0: i32) -> (i32, i32, i32) {
    %c0_i32 = arith.constant 0 : i32
    %c0_i32_0 = arith.constant 0 : i32
    %c0_i32_1 = arith.constant 0 : i32
    return %arg0, %c0_i32, %c0_i32_0 : i32, i32, i32
  }
}

module attributes {stable_mosaic.version = 11 : i64} {
  func.func @_tail_kernel(%arg0: i32, %arg1: memref<1x288x1024xbf16, #tpu.memory_space<vmem>>, %arg2: memref<32x288xbf16, #tpu.memory_space<vmem>>, %arg3: memref<32x1xf32, #tpu.memory_space<vmem>>, %arg4: memref<32x32xbf16, #tpu.memory_space<vmem>>, %arg5: memref<32x1xf32, #tpu.memory_space<vmem>>, %arg6: memref<1x32xbf16, #tpu.memory_space<vmem>>, %arg7: memref<1x1xf32, #tpu.memory_space<vmem>>, %arg8: memref<1x1x1024xf32, #tpu.memory_space<vmem>>) attributes {dimension_semantics = [#tpu.dimension_semantics<parallel>], iteration_bounds = array<i64: 2>, scalar_prefetch = 0 : i64, scratch_operands = 0 : i64, tpu.core_type = #tpu.core_type<tc>, window_params = [{transform_indices = @transform_0, window_bounds = array<i64: 1, 288, 1024>}, {pipeline_mode = #tpu.pipeline_mode<synchronous>, transform_indices = @transform_1, window_bounds = array<i64: 32, 288>}, {pipeline_mode = #tpu.pipeline_mode<synchronous>, transform_indices = @transform_2, window_bounds = array<i64: 32, 1>}, {pipeline_mode = #tpu.pipeline_mode<synchronous>, transform_indices = @transform_3, window_bounds = array<i64: 32, 32>}, {pipeline_mode = #tpu.pipeline_mode<synchronous>, transform_indices = @transform_4, window_bounds = array<i64: 32, 1>}, {pipeline_mode = #tpu.pipeline_mode<synchronous>, transform_indices = @transform_5, window_bounds = array<i64: 1, 32>}, {pipeline_mode = #tpu.pipeline_mode<synchronous>, transform_indices = @transform_6, window_bounds = array<i64: 1, 1>}, {transform_indices = @transform_7, window_bounds = array<i64: 1, 1, 1024>}]} {
    %c0 = arith.constant 0 : index
    %c0_0 = arith.constant 0 : index
    %0 = vector.load %arg2[%c0, %c0_0] : memref<32x288xbf16, #tpu.memory_space<vmem>>, vector<32x288xbf16>
    %c0_1 = arith.constant 0 : index
    %c0_2 = arith.constant 0 : index
    %c0_3 = arith.constant 0 : index
    %1 = vector.load %arg1[%c0_1, %c0_2, %c0_3] : memref<1x288x1024xbf16, #tpu.memory_space<vmem>>, vector<1x288x1024xbf16>
    %2 = vector.shape_cast %1 : vector<1x288x1024xbf16> to vector<288x1024xbf16>
    %cst = arith.constant dense<0.000000e+00> : vector<32x1024xf32>
    %3 = tpu.matmul %0, %2, %cst {dimension_numbers = #tpu.dot_dimension_numbers<[1], [0], [0], [1], [0, 0, 1, 1], [], []>} : vector<32x288xbf16>, vector<288x1024xbf16>, vector<32x1024xf32> -> vector<32x1024xf32>
    %c0_4 = arith.constant 0 : index
    %c0_5 = arith.constant 0 : index
    %4 = vector.load %arg3[%c0_4, %c0_5] : memref<32x1xf32, #tpu.memory_space<vmem>>, vector<32x1xf32>
    %5 = vector.broadcast %4 : vector<32x1xf32> to vector<32x1024xf32>
    %6 = arith.addf %3, %5 : vector<32x1024xf32>
    %cst_6 = arith.constant 0.000000e+00 : f32
    %7 = vector.broadcast %cst_6 : f32 to vector<32x1024xf32>
    %8 = arith.maximumf %6, %7 : vector<32x1024xf32>
    %c0_7 = arith.constant 0 : index
    %c0_8 = arith.constant 0 : index
    %9 = vector.load %arg4[%c0_7, %c0_8] : memref<32x32xbf16, #tpu.memory_space<vmem>>, vector<32x32xbf16>
    %10 = arith.truncf %8 : vector<32x1024xf32> to vector<32x1024xbf16>
    %cst_9 = arith.constant dense<0.000000e+00> : vector<32x1024xf32>
    %11 = tpu.matmul %9, %10, %cst_9 {dimension_numbers = #tpu.dot_dimension_numbers<[1], [0], [0], [1], [0, 0, 1, 1], [], []>} : vector<32x32xbf16>, vector<32x1024xbf16>, vector<32x1024xf32> -> vector<32x1024xf32>
    %c0_10 = arith.constant 0 : index
    %c0_11 = arith.constant 0 : index
    %12 = vector.load %arg5[%c0_10, %c0_11] : memref<32x1xf32, #tpu.memory_space<vmem>>, vector<32x1xf32>
    %13 = vector.broadcast %12 : vector<32x1xf32> to vector<32x1024xf32>
    %14 = arith.addf %11, %13 : vector<32x1024xf32>
    %cst_12 = arith.constant 0.000000e+00 : f32
    %15 = vector.broadcast %cst_12 : f32 to vector<32x1024xf32>
    %16 = arith.maximumf %14, %15 : vector<32x1024xf32>
    %c0_13 = arith.constant 0 : index
    %c0_14 = arith.constant 0 : index
    %17 = vector.load %arg6[%c0_13, %c0_14] : memref<1x32xbf16, #tpu.memory_space<vmem>>, vector<1x32xbf16>
    %18 = arith.truncf %16 : vector<32x1024xf32> to vector<32x1024xbf16>
    %cst_15 = arith.constant dense<0.000000e+00> : vector<1x1024xf32>
    %19 = tpu.matmul %17, %18, %cst_15 {dimension_numbers = #tpu.dot_dimension_numbers<[1], [0], [0], [1], [0, 0, 1, 1], [], []>} : vector<1x32xbf16>, vector<32x1024xbf16>, vector<1x1024xf32> -> vector<1x1024xf32>
    %c0_16 = arith.constant 0 : index
    %c0_17 = arith.constant 0 : index
    %20 = vector.load %arg7[%c0_16, %c0_17] : memref<1x1xf32, #tpu.memory_space<vmem>>, vector<1x1xf32>
    %21 = vector.broadcast %20 : vector<1x1xf32> to vector<1x1024xf32>
    %22 = arith.addf %19, %21 : vector<1x1024xf32>
    %c0_18 = arith.constant 0 : index
    %c0_19 = arith.constant 0 : index
    %c0_20 = arith.constant 0 : index
    %23 = vector.load %arg8[%c0_18, %c0_19, %c0_20] : memref<1x1x1024xf32, #tpu.memory_space<vmem>>, vector<1x1x1024xf32>
    %24 = vector.shape_cast %23 : vector<1x1x1024xf32> to vector<1x1024xf32>
    %25 = vector.shape_cast %22 : vector<1x1024xf32> to vector<1x1x1024xf32>
    tpu.vector_store %arg8[%c0_18, %c0_19, %c0_20], %25 {strides = array<i32>} : memref<1x1x1024xf32, #tpu.memory_space<vmem>>, vector<1x1x1024xf32>,
    return
  }
  func.func @transform_0(%arg0: i32) -> (i32, i32, i32) {
    %c0_i32 = arith.constant 0 : i32
    %c0_i32_0 = arith.constant 0 : i32
    %c0_i32_1 = arith.constant 0 : i32
    return %arg0, %c0_i32, %c0_i32_0 : i32, i32, i32
  }
  func.func @transform_1(%arg0: i32) -> (i32, i32) {
    %c0_i32 = arith.constant 0 : i32
    %c0_i32_0 = arith.constant 0 : i32
    %c0_i32_1 = arith.constant 0 : i32
    return %c0_i32, %c0_i32_0 : i32, i32
  }
  func.func @transform_2(%arg0: i32) -> (i32, i32) {
    %c0_i32 = arith.constant 0 : i32
    %c0_i32_0 = arith.constant 0 : i32
    %c0_i32_1 = arith.constant 0 : i32
    return %c0_i32, %c0_i32_0 : i32, i32
  }
  func.func @transform_3(%arg0: i32) -> (i32, i32) {
    %c0_i32 = arith.constant 0 : i32
    %c0_i32_0 = arith.constant 0 : i32
    %c0_i32_1 = arith.constant 0 : i32
    return %c0_i32, %c0_i32_0 : i32, i32
  }
  func.func @transform_4(%arg0: i32) -> (i32, i32) {
    %c0_i32 = arith.constant 0 : i32
    %c0_i32_0 = arith.constant 0 : i32
    %c0_i32_1 = arith.constant 0 : i32
    return %c0_i32, %c0_i32_0 : i32, i32
  }
  func.func @transform_5(%arg0: i32) -> (i32, i32) {
    %c0_i32 = arith.constant 0 : i32
    %c0_i32_0 = arith.constant 0 : i32
    %c0_i32_1 = arith.constant 0 : i32
    return %c0_i32, %c0_i32_0 : i32, i32
  }
  func.func @transform_6(%arg0: i32) -> (i32, i32) {
    %c0_i32 = arith.constant 0 : i32
    %c0_i32_0 = arith.constant 0 : i32
    %c0_i32_1 = arith.constant 0 : i32
    return %c0_i32, %c0_i32_0 : i32, i32
  }
  func.func @transform_7(%arg0: i32) -> (i32, i32, i32) {
    %c0_i32 = arith.constant 0 : i32
    %c0_i32_0 = arith.constant 0 : i32
    %c0_i32_1 = arith.constant 0 : i32
    return %arg0, %c0_i32, %c0_i32_0 : i32, i32, i32
  }
}

</mosaic_0001>

<bundles_post_ra>
// kernel: autoencoder_forward.2
= control target key start
LH: loop header
LB: loop body
LE: loop exit
PB: predicated region body
PF: predicated region fallthrough
CT: control target
= control target key end

     0   :  { %s10033_s0 = inlined_call_operand.vmem [shape: bf16[2,25,256], index: 0, kind: input, shape index: {}]   ;;  %s10034_s1 = inlined_call_operand.vmem [shape: bf16[25,256,64], index: 1, kind: input, shape index: {}]   ;;  %s10035_s2 = inlined_call_operand.vmem [shape: bf16[25,64,16], index: 2, kind: input, shape index: {}]   ;;  %s10036_s3 = inlined_call_operand.vmem [shape: bf16[25,16,4], index: 3, kind: input, shape index: {}]   ;;  %s10037_s4 = inlined_call_operand.vmem [shape: bf16[25,4,16], index: 4, kind: input, shape index: {}]   ;;  %s10038_s5 = inlined_call_operand.vmem [shape: bf16[25,16,64], index: 5, kind: input, shape index: {}]   ;;  %s10039_s6 = inlined_call_operand.hbm [shape: bf16[25,64,256], index: 6, kind: input, shape index: {}]   ;;  %s10040_s7 = inlined_call_operand.vmem [shape: bf16[25,256,256], index: 7, kind: input, shape index: {}]   ;;  %s10041_s8 = inlined_call_operand.vmem [shape: bf16[32,25], index: 8, kind: input, shape index: {}]   ;;  %s10042_s9 = inlined_call_operand.vmem [shape: bf16[32,800], index: 9, kind: input, shape index: {}]   ;;  %s10043_s10 = inlined_call_operand.vmem [shape: bf16[32,800], index: 10, kind: input, shape index: {}]   ;;  %s10044_s11 = inlined_call_operand.vmem [shape: bf16[32,800], index: 11, kind: input, shape index: {}]   ;;  %s10045_s12 = inlined_call_operand.vmem [shape: bf16[8,32], index: 12, kind: input, shape index: {}]   ;;  %s10046_s13 = inlined_call_operand.vmem [shape: bf16[32,200], index: 13, kind: input, shape index: {}]   ;;  %s10047_s14 = inlined_call_operand.vmem [shape: bf16[32,800], index: 14, kind: input, shape index: {}]   ;;  %s10048_s15 = inlined_call_operand.vmem [shape: bf16[32,800], index: 15, kind: input, shape index: {}]   ;;  %s10049_s16 = inlined_call_operand.vmem [shape: bf16[32,288], index: 16, kind: input, shape index: {}]   ;;  %s10050_s17 = inlined_call_operand.vmem [shape: bf16[32,192], index: 17, kind: input, shape index: {}]   ;;  %s10051_s18 = inlined_call_operand.vmem [shape: bf16[32,192], index: 18, kind: input, shape index: {}]   ;;  %s10052_s19 = inlined_call_operand.vmem [shape: bf16[32,128], index: 19, kind: input, shape index: {}]   ;;  %s10053_s20 = inlined_call_operand.vmem [shape: s32[2,8,4], index: 20, kind: output, shape index: {0}]   ;;  %s10054_s21 = inlined_call_operand.vmem [shape: f32[2,32,1024], index: 21, kind: output, shape index: {1}]  }
   0x1   :  { %10055 = sst [smem:[#allocation6_spill]] %s10033_s0 }
   0x2   :  { %10056 = sst [smem:[#allocation7_spill]] %s10034_s1 }
   0x3   :  { %10057 = sst [smem:[#allocation8_spill]] %s10035_s2 }
   0x4   :  { %10058 = sst [smem:[#allocation9_spill]] %s10036_s3 }
   0x5   :  { %10059 = sst [smem:[#allocation10_spill]] %s10037_s4 }
   0x6   :  { %10060 = sst [smem:[#allocation11_spill]] %s10038_s5 }
   0x7   :  { %27 = vsyncpa [#allocation4], 0  ;;  %s8746_s2 = smov 0  }
   0x8 LB: > { %s6789_s25 = sadd.s32 4294967295, %s8584_s2   ;;  %p6791_p0 = scmp.ge.s32.totalorder %s8584_s2, 1  ;;  %s8584_s2 = sphi %s8746_s2, %s33_s2  }
   0x9   : > { %p515_p1 = scmp.lt.s32.totalorder %s8584_s2, 3  ;;  %s8626_s26 = smov [#allocation3]  }
   0xa   : > { %s542_s27 = sshll.u32 %s8626_s26, 4  ;;  %p7978_p3 = scmp.eq.s32.totalorder %s6789_s25, 0  ;;  %s543_s27 = int_to_ptr.vmem [resolvable:$true] %s542_s27 }
   0xb   : > { %p8754_p2 = pnand %p6791_p0, %p515_p1  ;;  %s8519_s28 = scalar_lea.vmem %s543_s27, 25600 }
   0xc   : > { %p8520_p7 = scmp.ne.s32.totalorder %s543_s27, %s8519_s28  ;;  %p8527_p10 = scmp.lt.s32.totalorder %s543_s27, %s543_s27 }
   0xd   : > { %p7974_p4 = pneg %p8754_p2  ;;  %p8528_p11 = scmp.lt.s32.totalorder %s8519_s28, %s8519_s28 }
   0xf   : > { %p7975_p5 = pnand %p7978_p3, %p7974_p4  ;;  %p8529_p12 = por %p8528_p11, %p8527_p10 }
  0x11   : > { %p8510_p6 = pneg %p7975_p5 }
  0x13   : > { %p8522_p8 = pnand %p8520_p7, %p8510_p6 }
  0x15   : > { %p8523_p9 = pneg %p8522_p8 }
  0x17   : > { %p8530_p13 = pnand %p8529_p12, %p8523_p9 }
  0x19   : > { %8533 = shalt.err (!%p8530_p13)
}
  0x1a   : > { %s8627_s29 = smov 128   ;;  %s8628_s0 = smov 8  }
  0x1b   : > { %7977 = dma.hbm_to_vmem [thread:$0]  (!%p7975_p5), %s10039_s6, 25600, %s543_s27, [#allocation4], %s8627_s29, %s8627_s29, %s8628_s0  }
  0x1c   : > { %605 = sbr.rel (%p8754_p2) target bundleno = 7081 (0x1ba9), region = 100 }
  0x21   : > { %8579 = dma.done.wait (%p7978_p3), [#allocation4], 25600  }
  0x22   : > { %8581 = vsyncadd (%p7978_p3), [#allocation4], 4294941696  ;;  %p669_p0 = scmp.lt.s32.totalorder %s6789_s25, 1  ;;  %vm727_vm0 = vcmask 1043456   ;;  %v8629_v0 = vmov 0   ;;  %vm728_vm1 = vcmask 1044480  }
  0x23   : > { %769 = vmatprep.mubr.bf16.mxu0 %v8629_v0  ;;  %779 = vmatprep.mubr.bf16.mxu1 %v8629_v0  ;;  %v8630_v1 = vmov 65535   ;;  %s10062_s24 = sld [smem:[#allocation6_spill]]  ;;  %v8084_v10 = vld [vmem:[%s10041_s8] sm:$0xff]   ;;  %v8085_v11 = vld [vmem:[%s10041_s8 + $0x8] sm:$0xff]   ;;  %vm720_vm2 = vcmask 203776   ;;  %s8846_s1 = smov 0  }
  0x24   : > { %s10070_s25 = smov (!%p669_p0, %s6789_s25), 1  ;;  %v729_v2 = vsel %vm727_vm0, 4294967295, %v8630_v1 }
  0x25   : > { %s7229_s5 = sshll.u32 %s10070_s25, 5  ;;  %s6798_s22 = sshll.u32 %s10070_s25, 3  ;;  %v730_v3 = vsel %vm728_vm1, %v729_v2, 0 }
  0x26   : > { %s8777_s28 = scalar_lea.vmem %s10053_s20, %s6798_s22  ;;  %s7230_s29 = sshll.u32 %s10070_s25, 8 }
  0x27   : > { %s8782_s30 = scalar_lea.vmem %s10054_s21, %s7230_s29 }
  0x29   : > { %s673_s26 = scalar_lea.vmem %s10062_s24, %s7229_s5 }
  0x2a   : > { %v8078_v4 = vld [vmem:[%s673_s26 + $0x14] ss:$8 sps:$4 sm:$0x1f]   ;;  %v8080_v5 = vld [vmem:[%s673_s26 + $0x10] ss:$8 sps:$4 sm:$0x1f]  }
  0x2b   : > { %v735_v6 = vand.u32 %v8078_v4, %v730_v3  ;;  %v8081_v7 = vld [vmem:[%s673_s26 + $0x4] ss:$8 sps:$4 sm:$0xff]   ;;  %v732_v8 = vand.u32 %v8080_v5, %v730_v3  ;;  %v8083_v9 = vld [vmem:[%s673_s26] ss:$8 sps:$4 sm:$0xff]  }
  0x2d   : > { %749 = vmatprep.subr.bf16.mxu0 %v735_v6  ;;  %7714 = vmatprep.subr.bf16.mxu1 %v735_v6 }
  0x2e   : > { %750 = vmatpush1.bf16.msra.mxu0 %v732_v8  ;;  %7716 = vmatpush1.bf16.msra.mxu1 %v732_v8 }
  0x2f   : > { %751 = vmatprep.subr.bf16.mxu0 %v8081_v7  ;;  %7715 = vmatprep.subr.bf16.mxu1 %v8081_v7 }
  0x32   : > { %752 = vmatpush1.bf16.msra.mxu0 %v8083_v9  ;;  %7717 = vmatpush1.bf16.msra.mxu1 %v8083_v9 }
  0x35   : > { %6807 = vmatmul.mubr.msk.bf16.vlgmr.msra.gmra.mxu0 %vm720_vm2, %v8084_v10  ;;  %6808 = vmatmul.mubr.msk.bf16.vlgmr.msra.gmra.mxu1 %vm720_vm2, %v8085_v11 }
  0xf5   : > { %v8790_v12 = vpop.f32.mrf.mxu0  ;;  %v8792_v13 = vpop.f32.mrf.mxu1 }
  0xf6   : > { %v807_v21 = vmul.f32 %v8790_v12, %v8790_v12  ;;  %v811_v33 = vmul.f32 %v8792_v13, %v8792_v13 }
  0xf7   : > { %v8794_v14 = vpop.f32.mrf.mxu0  ;;  %v8796_v15 = vpop.f32.mrf.mxu1 }
  0xf8   : > { %v796_v16 = vadd.f32 %v8796_v15, %v8792_v13  ;;  %v790_v17 = vadd.f32 %v8794_v14, %v8790_v12  ;;  %v808_v18 = vmul.f32 %v8794_v14, %v8794_v14  ;;  %v812_v31 = vmul.f32 %v8796_v15, %v8796_v15 }
  0xf9   : > { %v8804_v19 = vpop.f32.mrf.mxu0  ;;  %v8806_v20 = vpop.f32.mrf.mxu1 }
  0xfa   : > { %797 = vadd.xlane.f32.xlu1 %v796_v16  ;;  %791 = vadd.xlane.f32.xlu0 %v790_v17  ;;  %v815_v26 = vadd.f32 %v808_v18, %v807_v21  ;;  %v809_v27 = vmul.f32 %v8804_v19, %v8804_v19  ;;  %v813_v32 = vmul.f32 %v8806_v20, %v8806_v20 }
  0xfb   : > { %v8810_v22 = vpop.f32.mrf.mxu0  ;;  %v8812_v23 = vpop.f32.mrf.mxu1  ;;  %v821_v35 = vadd.f32 %v812_v31, %v811_v33 }
  0xfc   : > { %v810_v24 = vmul.f32 %v8810_v22, %v8810_v22  ;;  %v799_v25 = vadd.f32 %v8812_v23, %v8806_v20  ;;  %v814_v28 = vmul.f32 %v8812_v23, %v8812_v23  ;;  %v793_v30 = vadd.f32 %v8810_v22, %v8804_v19 }
  0xfe   : > { %800 = vadd.xlane.f32.xlu1 %v799_v25  ;;  %816 = vadd.xlane.f32.xlu0 %v815_v26  ;;  %v818_v29 = vadd.f32 %v810_v24, %v809_v27  ;;  %v824_v34 = vadd.f32 %v814_v28, %v813_v32 }
 0x102   : > { %819 = vadd.xlane.f32.xlu1 %v818_v29  ;;  %794 = vadd.xlane.f32.xlu0 %v793_v30 }
 0x106   : > { %825 = vadd.xlane.f32.xlu1 %v824_v34  ;;  %822 = vadd.xlane.f32.xlu0 %v821_v35 }
 0x183   : > { %v798_v36 = vpop.xlane.xlu1 %797  ;;  %v792_v37 = vpop.xlane.xlu0 %791 }
 0x184   : > { %v803_v38 = vmul.f32 0.00390625, %v792_v37  ;;  %v805_v44 = vmul.f32 0.00390625, %v798_v36 }
 0x186   : > { %v831_v41 = vmul.f32 %v803_v38, %v803_v38  ;;  %v833_v54 = vmul.f32 %v805_v44, %v805_v44  ;;  %v843_v6 = vsub.f32 %v8790_v12, %v803_v38  ;;  %v844_v7 = vsub.f32 %v8794_v14, %v803_v38 }
 0x187   : > { %v801_v39 = vpop.xlane.xlu1 %800  ;;  %v817_v40 = vpop.xlane.xlu0 %816  ;;  %v847_v26 = vsub.f32 %v8792_v13, %v805_v44  ;;  %v848_v12 = vsub.f32 %v8796_v15, %v805_v44 }
 0x188   : > { %v827_v42 = vmul.f32 0.00390625, %v817_v40  ;;  %v806_v47 = vmul.f32 0.00390625, %v801_v39 }
 0x18a   : > { %v835_v43 = vsub.f32 %v827_v42, %v831_v41  ;;  %v834_v57 = vmul.f32 %v806_v47, %v806_v47  ;;  %v849_v17 = vsub.f32 %v8806_v20, %v806_v47  ;;  %v850_v18 = vsub.f32 %v8812_v23, %v806_v47 }
 0x18b   : > { %v820_v45 = vpop.xlane.xlu1 %819  ;;  %v795_v46 = vpop.xlane.xlu0 %794 }
 0x18c   : > { %v839_v48 = vmax.f32 %v835_v43, 0.0  ;;  %v804_v49 = vmul.f32 0.00390625, %v795_v46  ;;  %v828_v51 = vmul.f32 0.00390625, %v820_v45 }
 0x18e   : > { %v851_v50 = vadd.f32 1e-05, %v839_v48  ;;  %v832_v52 = vmul.f32 %v804_v49, %v804_v49  ;;  %v845_v10 = vsub.f32 %v8804_v19, %v804_v49  ;;  %v846_v11 = vsub.f32 %v8810_v22, %v804_v49 }
 0x18f   : > { %v826_v53 = vpop.xlane.xlu1 %825  ;;  %v823_v55 = vpop.xlane.xlu0 %822 }
 0x190   : > { %v836_v56 = vsub.f32 %v828_v51, %v832_v52  ;;  %v830_v58 = vmul.f32 0.00390625, %v826_v53  ;;  %v829_v59 = vmul.f32 0.00390625, %v823_v55  ;;  %8086 = vrsqrt.f32 %v851_v50 }
 0x192   : > { %v840_v60 = vmax.f32 %v836_v56, 0.0  ;;  %v838_v61 = vsub.f32 %v830_v58, %v834_v57  ;;  %v837_v62 = vsub.f32 %v829_v59, %v833_v54 }
 0x194   : > { %v852_v63 = vadd.f32 1e-05, %v840_v60  ;;  %v842_v1 = vmax.f32 %v838_v61, 0.0  ;;  %v841_v2 = vmax.f32 %v837_v62, 0.0 }
 0x196   : > { %8088 = vrsqrt.f32 %v852_v63  ;;  %v854_v3 = vadd.f32 1e-05, %v842_v1  ;;  %v853_v4 = vadd.f32 1e-05, %v841_v2 }
 0x198   : > { %8090 = vrsqrt.f32 %v854_v3 }
 0x199   : > { %8092 = vrsqrt.f32 %v853_v4 }
 0x19d   : > { %v8087_v5 = vpop.eup %8086 }
 0x19e   : > { %v859_v8 = vmul.f32 %v8087_v5, %v843_v6  ;;  %v860_v9 = vmul.f32 %v8087_v5, %v844_v7 }
 0x1a0   : > { %v867_v27 = vmax.f32 %v859_v8, 0.0  ;;  %v868_v14 = vmax.f32 %v860_v9, 0.0 }
 0x1a3   : > { %v8089_v16 = vpop.eup %8088 }
 0x1a4   : > { %v861_v21 = vmul.f32 %v8089_v16, %v845_v10  ;;  %v862_v24 = vmul.f32 %v8089_v16, %v846_v11 }
 0x1a5   : > { %v8091_v25 = vpop.eup %8090 }
 0x1a6   : > { %v8093_v28 = vpop.eup %8092  ;;  %v869_v29 = vmax.f32 %v861_v21, 0.0  ;;  %v870_v30 = vmax.f32 %v862_v24, 0.0  ;;  %v865_v19 = vmul.f32 %v8091_v25, %v849_v17  ;;  %v866_v31 = vmul.f32 %v8091_v25, %v850_v18 }
 0x1a7   : > { %v863_v22 = vmul.f32 %v8093_v28, %v847_v26  ;;  %v864_v32 = vmul.f32 %v8093_v28, %v848_v12 }
 0x1a8   : > { %v8838_v33 = vpack.c.bf16 %v869_v29, %v867_v27  ;;  %v8840_v20 = vpack.c.bf16 %v870_v30, %v868_v14  ;;  %v873_v23 = vmax.f32 %v865_v19, 0.0  ;;  %v874_v34 = vmax.f32 %v866_v31, 0.0 }
 0x1a9   : > { %v871_v35 = vmax.f32 %v863_v22, 0.0  ;;  %v872_v36 = vmax.f32 %v864_v32, 0.0 }
 0x1ab   : > { %v8842_v13 = vpack.c.bf16 %v873_v23, %v871_v35  ;;  %v8844_v15 = vpack.c.bf16 %v874_v34, %v872_v36 }
 0x1ac LB: >> { %1048 = vmatprep.mubr.bf16.mxu0 %v8840_v20  ;;  %s7231_s24 = sshll.u32 %s8588_s1, 7  ;;  %s10063_s3 = sld [smem:[#allocation7_spill]]  ;;  %vm1070_vm3 = vcmask 523264   ;;  %s8588_s1 = sphi %s8846_s1, %s884_s1  }
 0x1ad   : >> { %1056 = vmatprep.mubr.bf16.mxu1 %v8844_v15  ;;  %s6809_s0 = sshll.u32 %s8588_s1, 5  ;;  %s884_s1 = sadd.s32 1, %s8588_s1  }
 0x1ae   : >> { %s1065_s4 = sshra.s32 %s6809_s0, 3  ;;  %p881_p1 = scmp.ge.s32.totalorder %s884_s1, 25  }
 0x1af   : >> { %s7232_s5 = sshll.u32 %s1065_s4, 4  ;;  %vm1311_vm4 = vcmask (%p881_p1), 261120   ;;  %s8955_s26 = smov (%p881_p1), 0  }
 0x1b0   : >> { %s1069_s25 = scalar_lea.vmem [#allocation2], %s7232_s5 }
 0x1b2   : >> { %s8857_s29 = scalar_lea.vmem %s10063_s3, %s7231_s24 }
 0x1b3   : >> { %v8094_v37 = vld [vmem:[%s8857_s29 + $0x78] sm:$0xff]   ;;  %v8096_v39 = vld [vmem:[%s8857_s29 + $0x70] sm:$0xff]   ;;  %v8098_v41 = vld [vmem:[%s8857_s29 + $0x68] sm:$0xff]  }
 0x1b4   : >> { %v8095_v38 = vld [vmem:[%s8857_s29 + $0x38] sm:$0xff]   ;;  %7247 = vmatprep.subr.bf16.mxu0 %v8094_v37  ;;  %7718 = vmatprep.subr.bf16.mxu1 %v8094_v37  ;;  %v8097_v40 = vld [vmem:[%s8857_s29 + $0x30] sm:$0xff]   ;;  %v8099_v42 = vld [vmem:[%s8857_s29 + $0x28] sm:$0xff]  }
 0x1b5   : >> { %7248 = vmatpush3.bf16.msra.mxu0 %v8095_v38  ;;  %7726 = vmatpush3.bf16.msra.mxu1 %v8095_v38  ;;  %v8100_v43 = vld [vmem:[%s8857_s29 + $0x60] sm:$0xff]   ;;  %v8102_v45 = vld [vmem:[%s8857_s29 + $0x58] sm:$0xff]   ;;  %v8104_v47 = vld [vmem:[%s8857_s29 + $0x50] sm:$0xff]  }
 0x1b6   : >> { %7249 = vmatprep.subr.bf16.mxu0 %v8096_v39  ;;  %7719 = vmatprep.subr.bf16.mxu1 %v8096_v39  ;;  %v8101_v44 = vld [vmem:[%s8857_s29 + $0x20] sm:$0xff]   ;;  %v8103_v46 = vld [vmem:[%s8857_s29 + $0x18] sm:$0xff]   ;;  %v8105_v48 = vld [vmem:[%s8857_s29 + $0x10] sm:$0xff]  }
 0x1b7   : >> { %v8106_v49 = vld [vmem:[%s8857_s29 + $0x48] sm:$0xff]   ;;  %v8108_v51 = vld [vmem:[%s8857_s29 + $0x40] sm:$0xff]  }
 0x1b8   : >> { %v8107_v50 = vld [vmem:[%s8857_s29 + $0x8] sm:$0xff]   ;;  %v8109_v52 = vld [vmem:[%s8857_s29] sm:$0xff]  }
 0x1b9   : >> { %7250 = vmatpush3.bf16.msra.mxu0 %v8097_v40  ;;  %7727 = vmatpush3.bf16.msra.mxu1 %v8097_v40 }
 0x1ba   : >> { %7251 = vmatprep.subr.bf16.mxu0 %v8098_v41  ;;  %7720 = vmatprep.subr.bf16.mxu1 %v8098_v41 }
 0x1bd   : >> { %7252 = vmatpush3.bf16.msra.mxu0 %v8099_v42  ;;  %7728 = vmatpush3.bf16.msra.mxu1 %v8099_v42 }
 0x1be   : >> { %7253 = vmatprep.subr.bf16.mxu0 %v8100_v43  ;;  %7721 = vmatprep.subr.bf16.mxu1 %v8100_v43 }
 0x1c1   : >> { %7254 = vmatpush3.bf16.msra.mxu0 %v8101_v44  ;;  %7729 = vmatpush3.bf16.msra.mxu1 %v8101_v44 }
 0x1c2   : >> { %7255 = vmatprep.subr.bf16.mxu0 %v8102_v45  ;;  %7722 = vmatprep.subr.bf16.mxu1 %v8102_v45 }
 0x1c5   : >> { %7256 = vmatpush3.bf16.msra.mxu0 %v8103_v46  ;;  %7730 = vmatpush3.bf16.msra.mxu1 %v8103_v46 }
 0x1c6   : >> { %7257 = vmatprep.subr.bf16.mxu0 %v8104_v47  ;;  %7723 = vmatprep.subr.bf16.mxu1 %v8104_v47 }
 0x1c9   : >> { %7258 = vmatpush3.bf16.msra.mxu0 %v8105_v48  ;;  %7731 = vmatpush3.bf16.msra.mxu1 %v8105_v48 }
 0x1ca   : >> { %7259 = vmatprep.subr.bf16.mxu0 %v8106_v49  ;;  %7724 = vmatprep.subr.bf16.mxu1 %v8106_v49 }
 0x1cd   : >> { %7260 = vmatpush3.bf16.msra.mxu0 %v8107_v50  ;;  %7732 = vmatpush3.bf16.msra.mxu1 %v8107_v50 }
 0x1ce   : >> { %7261 = vmatprep.subr.bf16.mxu0 %v8108_v51  ;;  %7725 = vmatprep.subr.bf16.mxu1 %v8108_v51 }
 0x1d1   : >> { %7262 = vmatpush3.bf16.msra.mxu0 %v8109_v52  ;;  %7733 = vmatpush3.bf16.msra.mxu1 %v8109_v52 }
 0x1d4   : >> { %1049 = vmatmul.mubr.bf16.vlgmr.msra.gmra.mxu0 %v8838_v33  ;;  %1057 = vmatmul.mubr.bf16.vlgmr.msra.gmra.mxu1 %v8842_v13 }
 0x294   : >> { %v7263_v53 = vpop.f32.mrf.mxu0  ;;  %v7269_v54 = vpop.f32.mrf.mxu1 }
 0x296   : >> { %v7264_v55 = vpop.f32.mrf.mxu0  ;;  %v7270_v56 = vpop.f32.mrf.mxu1 }
 0x297   : >> { %v7265_v57 = vadd.f32 %v7264_v55, %v7263_v53  ;;  %v7271_v58 = vadd.f32 %v7270_v56, %v7269_v54 }
 0x298   : >> { %v7266_v59 = vpop.f32.mrf.mxu0  ;;  %v7272_v60 = vpop.f32.mrf.mxu1 }
 0x299   : >> { %1071 = vst.msk [vmem:[%s1069_s25] sm:$0xff] %vm1070_vm3, %v7265_v57  ;;  %1073 = vst.msk [vmem:[%s1069_s25 + $0x20] sm:$0xff] %vm1070_vm3, %v7271_v58  ;;  %883 = sbr.rel (!%p881_p1) target bundleno = 428 (0x1ac), region = 237 }
 0x29a   : >> { %v7267_v61 = vpop.f32.mrf.mxu0  ;;  %v7273_v62 = vpop.f32.mrf.mxu1 }
 0x29b   : >> { %v7268_v63 = vadd.f32 %v7267_v61, %v7266_v59  ;;  %v7274_v1 = vadd.f32 %v7273_v62, %v7272_v60 }
 0x29d   : >> { %1072 = vst.msk [vmem:[%s1069_s25 + $0x10] sm:$0xff] %vm1070_vm3, %v7268_v63  ;;  %1074 = vst.msk [vmem:[%s1069_s25 + $0x30] sm:$0xff] %vm1070_vm3, %v7274_v1 }
 0x2a4   : > { %v1105_v2 = vld [vmem:[#allocation2 + $0x1e0] sm:$0xff]  ;;  %v1106_v3 = vld [vmem:[#allocation2 + $0x1f0] sm:$0xff] }
 0x2a5   : > { %v1137_v4 = vld [vmem:[#allocation2 + $0x3e0] sm:$0xff]  ;;  %v1190_v5 = vpack.c.bf16 %v1106_v3, %v1105_v2  ;;  %v1138_v6 = vld [vmem:[#allocation2 + $0x3f0] sm:$0xff] }
 0x2a6   : > { %v1089_v7 = vld [vmem:[#allocation2 + $0xe0] sm:$0xff]  ;;  %v1090_v8 = vld [vmem:[#allocation2 + $0xf0] sm:$0xff]  ;;  %v1206_v9 = vpack.c.bf16 %v1138_v6, %v1137_v4 }
 0x2a7   : > { %v1182_v10 = vpack.c.bf16 %v1090_v8, %v1089_v7  ;;  %v1121_v11 = vld [vmem:[#allocation2 + $0x2e0] sm:$0xff]  ;;  %v1122_v16 = vld [vmem:[#allocation2 + $0x2f0] sm:$0xff]  ;;  %7275 = vmatprep.subr.bf16.mxu0 %v1190_v5 }
 0x2a8   : > { %v1103_v17 = vld [vmem:[#allocation2 + $0x1c0] sm:$0xff]  ;;  %v1198_v18 = vpack.c.bf16 %v1122_v16, %v1121_v11  ;;  %v1104_v21 = vld [vmem:[#allocation2 + $0x1d0] sm:$0xff]  ;;  %7303 = vmatprep.subr.bf16.mxu1 %v1206_v9 }
 0x2a9   : > { %v1135_v24 = vld [vmem:[#allocation2 + $0x3c0] sm:$0xff]  ;;  %v1136_v25 = vld [vmem:[#allocation2 + $0x3d0] sm:$0xff]  ;;  %7276 = vmatpush3.bf16.msra.mxu0 %v1182_v10  ;;  %v1189_v26 = vpack.c.bf16 %v1104_v21, %v1103_v17 }
 0x2aa   : > { %v1205_v12 = vpack.c.bf16 %v1136_v25, %v1135_v24  ;;  %v1087_v27 = vld [vmem:[#allocation2 + $0xc0] sm:$0xff]  ;;  %v1088_v14 = vld [vmem:[#allocation2 + $0xd0] sm:$0xff]  ;;  %7304 = vmatpush3.bf16.msra.mxu1 %v1198_v18 }
 0x2ab   : > { %v1119_v28 = vld [vmem:[#allocation2 + $0x2c0] sm:$0xff]  ;;  %v1181_v29 = vpack.c.bf16 %v1088_v14, %v1087_v27  ;;  %v1120_v30 = vld [vmem:[#allocation2 + $0x2d0] sm:$0xff]  ;;  %7277 = vmatprep.subr.bf16.mxu0 %v1189_v26 }
 0x2ac   : > { %v1101_v19 = vld [vmem:[#allocation2 + $0x1a0] sm:$0xff]  ;;  %v1102_v31 = vld [vmem:[#allocation2 + $0x1b0] sm:$0xff]  ;;  %7305 = vmatprep.subr.bf16.mxu1 %v1205_v12  ;;  %v1197_v22 = vpack.c.bf16 %v1120_v30, %v1119_v28 }
 0x2ad   : > { %v1188_v32 = vpack.c.bf16 %v1102_v31, %v1101_v19  ;;  %v1133_v33 = vld [vmem:[#allocation2 + $0x3a0] sm:$0xff]  ;;  %v1134_v20 = vld [vmem:[#allocation2 + $0x3b0] sm:$0xff]  ;;  %7278 = vmatpush3.bf16.msra.mxu0 %v1181_v29  ;;  %v8115_v31 = vld [vmem:[%s10042_s9 + $0xc] ss:$28 sps:$4 sm:$0xff]  }
 0x2ae   : > { %v1085_v23 = vld [vmem:[#allocation2 + $0xa0] sm:$0xff]  ;;  %v1204_v34 = vpack.c.bf16 %v1134_v20, %v1133_v33  ;;  %v1086_v35 = vld [vmem:[#allocation2 + $0xb0] sm:$0xff]  ;;  %7306 = vmatpush3.bf16.msra.mxu1 %v1197_v22  ;;  %1399 = vmatprep.mubr.bf16.mxu1 %v8115_v31 }
 0x2af   : > { %v1117_v36 = vld [vmem:[#allocation2 + $0x2a0] sm:$0xff]  ;;  %v1118_v13 = vld [vmem:[#allocation2 + $0x2b0] sm:$0xff]  ;;  %v1180_v15 = vpack.c.bf16 %v1086_v35, %v1085_v23  ;;  %7279 = vmatprep.subr.bf16.mxu0 %v1188_v32 }
 0x2b0   : > { %v1099_v37 = vld [vmem:[#allocation2 + $0x180] sm:$0xff]  ;;  %v1100_v38 = vld [vmem:[#allocation2 + $0x190] sm:$0xff]  ;;  %v1196_v40 = vpack.c.bf16 %v1118_v13, %v1117_v36  ;;  %7307 = vmatprep.subr.bf16.mxu1 %v1204_v34 }
 0x2b1   : > { %v1131_v39 = vld [vmem:[#allocation2 + $0x380] sm:$0xff]  ;;  %v1187_v41 = vpack.c.bf16 %v1100_v38, %v1099_v37  ;;  %v1132_v42 = vld [vmem:[#allocation2 + $0x390] sm:$0xff]  ;;  %7280 = vmatpush3.bf16.msra.mxu0 %v1180_v15 }
 0x2b2   : > { %v1083_v43 = vld [vmem:[#allocation2 + $0x80] sm:$0xff]  ;;  %v1084_v44 = vld [vmem:[#allocation2 + $0x90] sm:$0xff]  ;;  %v1203_v45 = vpack.c.bf16 %v1132_v42, %v1131_v39  ;;  %7308 = vmatpush3.bf16.msra.mxu1 %v1196_v40 }
 0x2b3   : > { %v1115_v46 = vld [vmem:[#allocation2 + $0x280] sm:$0xff]  ;;  %v1116_v47 = vld [vmem:[#allocation2 + $0x290] sm:$0xff]  ;;  %v1179_v52 = vpack.c.bf16 %v1084_v44, %v1083_v43  ;;  %7281 = vmatprep.subr.bf16.mxu0 %v1187_v41 }
 0x2b4   : > { %v1097_v48 = vld [vmem:[#allocation2 + $0x160] sm:$0xff]  ;;  %v1098_v49 = vld [vmem:[#allocation2 + $0x170] sm:$0xff]  ;;  %v1195_v53 = vpack.c.bf16 %v1116_v47, %v1115_v46  ;;  %7309 = vmatprep.subr.bf16.mxu1 %v1203_v45 }
 0x2b5   : > { %v1129_v50 = vld [vmem:[#allocation2 + $0x360] sm:$0xff]  ;;  %v1130_v51 = vld [vmem:[#allocation2 + $0x370] sm:$0xff]  ;;  %v1186_v54 = vpack.c.bf16 %v1098_v49, %v1097_v48  ;;  %7282 = vmatpush3.bf16.msra.mxu0 %v1179_v52 }
 0x2b6   : > { %v1081_v55 = vld [vmem:[#allocation2 + $0x60] sm:$0xff]  ;;  %v1082_v56 = vld [vmem:[#allocation2 + $0x70] sm:$0xff]  ;;  %v1202_v58 = vpack.c.bf16 %v1130_v51, %v1129_v50  ;;  %7310 = vmatpush3.bf16.msra.mxu1 %v1195_v53  ;;  %v8116_v50 = vld [vmem:[%s10042_s9 + $0x3c] ss:$28 sps:$4 sm:$0xff]  }
 0x2b7   : > { %v1113_v57 = vld [vmem:[#allocation2 + $0x260] sm:$0xff]  ;;  %v1114_v59 = vld [vmem:[#allocation2 + $0x270] sm:$0xff]  ;;  %v1178_v1 = vpack.c.bf16 %v1082_v56, %v1081_v55  ;;  %7283 = vmatprep.subr.bf16.mxu0 %v1186_v54 }
 0x2b8   : > { %v1095_v60 = vld [vmem:[#allocation2 + $0x140] sm:$0xff]  ;;  %v1096_v61 = vld [vmem:[#allocation2 + $0x150] sm:$0xff]  ;;  %v1194_v3 = vpack.c.bf16 %v1114_v59, %v1113_v57  ;;  %7311 = vmatprep.subr.bf16.mxu1 %v1202_v58 }
 0x2b9   : > { %v1127_v62 = vld [vmem:[#allocation2 + $0x340] sm:$0xff]  ;;  %v1128_v63 = vld [vmem:[#allocation2 + $0x350] sm:$0xff]  ;;  %v1185_v4 = vpack.c.bf16 %v1096_v61, %v1095_v60  ;;  %7284 = vmatpush3.bf16.msra.mxu0 %v1178_v1 }
 0x2ba   : > { %v1079_v2 = vld [vmem:[#allocation2 + $0x40] sm:$0xff]  ;;  %v1080_v5 = vld [vmem:[#allocation2 + $0x50] sm:$0xff]  ;;  %v1201_v8 = vpack.c.bf16 %v1128_v63, %v1127_v62  ;;  %7312 = vmatpush3.bf16.msra.mxu1 %v1194_v3 }
 0x2bb   : > { %v1111_v6 = vld [vmem:[#allocation2 + $0x240] sm:$0xff]  ;;  %v1112_v7 = vld [vmem:[#allocation2 + $0x250] sm:$0xff]  ;;  %v1177_v21 = vpack.c.bf16 %v1080_v5, %v1079_v2  ;;  %7285 = vmatprep.subr.bf16.mxu0 %v1185_v4 }
 0x2bc   : > { %v1093_v9 = vld [vmem:[#allocation2 + $0x120] sm:$0xff]  ;;  %v1094_v10 = vld [vmem:[#allocation2 + $0x130] sm:$0xff]  ;;  %v1193_v12 = vpack.c.bf16 %v1112_v7, %v1111_v6  ;;  %7313 = vmatprep.subr.bf16.mxu1 %v1201_v8 }
 0x2bd   : > { %v1125_v11 = vld [vmem:[#allocation2 + $0x320] sm:$0xff]  ;;  %v1126_v16 = vld [vmem:[#allocation2 + $0x330] sm:$0xff]  ;;  %v1184_v27 = vpack.c.bf16 %v1094_v10, %v1093_v9  ;;  %7286 = vmatpush3.bf16.msra.mxu0 %v1177_v21 }
 0x2be   : > { %v1077_v17 = vld [vmem:[#allocation2 + $0x20] sm:$0xff]  ;;  %v1078_v18 = vld [vmem:[#allocation2 + $0x30] sm:$0xff]  ;;  %v1200_v28 = vpack.c.bf16 %v1126_v16, %v1125_v11  ;;  %7314 = vmatpush3.bf16.msra.mxu1 %v1193_v12 }
 0x2bf   : > { %v1109_v24 = vld [vmem:[#allocation2 + $0x220] sm:$0xff]  ;;  %v1110_v25 = vld [vmem:[#allocation2 + $0x230] sm:$0xff]  ;;  %v1176_v22 = vpack.c.bf16 %v1078_v18, %v1077_v17  ;;  %7287 = vmatprep.subr.bf16.mxu0 %v1184_v27 }
 0x2c0   : > { %v1091_v26 = vld [vmem:[#allocation2 + $0x100] sm:$0xff]  ;;  %v1092_v14 = vld [vmem:[#allocation2 + $0x110] sm:$0xff]  ;;  %v1192_v32 = vpack.c.bf16 %v1110_v25, %v1109_v24  ;;  %7315 = vmatprep.subr.bf16.mxu1 %v1200_v28 }
 0x2c1   : > { %v1123_v29 = vld [vmem:[#allocation2 + $0x300] sm:$0xff]  ;;  %v1124_v19 = vld [vmem:[#allocation2 + $0x310] sm:$0xff]  ;;  %v1183_v33 = vpack.c.bf16 %v1092_v14, %v1091_v26  ;;  %7288 = vmatpush3.bf16.msra.mxu0 %v1176_v22 }
 0x2c2   : > { %v8112_v30 = vld [vmem:[%s10042_s9 + $0x4] ss:$28 sps:$4 sm:$0xff]   ;;  %v1076_v23 = vld [vmem:[#allocation2 + $0x10] sm:$0xff]  ;;  %v1199_v35 = vpack.c.bf16 %v1124_v19, %v1123_v29  ;;  %7316 = vmatpush3.bf16.msra.mxu1 %v1192_v32 }
 0x2c3   : > { %1350 = vmatprep.mubr.bf16.mxu0 %v8112_v30  ;;  %v1075_v20 = vld [vmem:[#allocation2] sm:$0xff]  ;;  %v1108_v36 = vld [vmem:[#allocation2 + $0x210] sm:$0xff]  ;;  %7289 = vmatprep.subr.bf16.mxu0 %v1183_v33 }
 0x2c4   : > { %v1107_v34 = vld [vmem:[#allocation2 + $0x200] sm:$0xff]  ;;  %v1170_v15 = vld [vmem:[#allocation2 + $0x5f0] sm:$0xff]  ;;  %v1175_v37 = vpack.c.bf16 %v1076_v23, %v1075_v20  ;;  %7317 = vmatprep.subr.bf16.mxu1 %v1199_v35 }
 0x2c5   : > { %v1169_v13 = vld [vmem:[#allocation2 + $0x5e0] sm:$0xff]  ;;  %v1191_v38 = vpack.c.bf16 %v1108_v36, %v1107_v34  ;;  %v1154_v41 = vld [vmem:[#allocation2 + $0x4f0] sm:$0xff] }
 0x2c6   : > { %v1222_v39 = vpack.c.bf16 %v1170_v15, %v1169_v13  ;;  %v1153_v40 = vld [vmem:[#allocation2 + $0x4e0] sm:$0xff]  ;;  %v1168_v43 = vld [vmem:[#allocation2 + $0x5d0] sm:$0xff]  ;;  %7290 = vmatpush3.bf16.msra.mxu0 %v1175_v37 }
 0x2c7   : > { %v1167_v42 = vld [vmem:[#allocation2 + $0x5c0] sm:$0xff]  ;;  %v1214_v46 = vpack.c.bf16 %v1154_v41, %v1153_v40  ;;  %v1152_v48 = vld [vmem:[#allocation2 + $0x4d0] sm:$0xff]  ;;  %7318 = vmatpush3.bf16.msra.mxu1 %v1191_v38  ;;  %v8127_v38 = vld [vmem:[%s10042_s9 + $0x4c] ss:$28 sps:$4 sm:$0xff]  }
 0x2c8   : > { %v8110_v44 = vld [vmem:[%s10042_s9] ss:$28 sps:$4 sm:$0xff]   ;;  %v8113_v45 = vld [vmem:[%s10042_s9 + $0x8] ss:$28 sps:$4 sm:$0xff]   ;;  %7331 = vmatprep.subr.bf16.mxu0 %v1222_v39  ;;  %v1221_v49 = vpack.c.bf16 %v1168_v43, %v1167_v42  ;;  %v1174_v52 = vld [vmem:[#allocation2 + $0x630] sm:$0xff] }
 0x2c9   : > { %v1151_v47 = vld [vmem:[#allocation2 + $0x4c0] sm:$0xff]  ;;  %v1166_v54 = vld [vmem:[#allocation2 + $0x5b0] sm:$0xff]  ;;  %1351 = vmatmul.mubr.bf16.vlgmr.msra.gmra.mxu0 %v8110_v44 }
 0x2ca   : > { %v1173_v51 = vld [vmem:[#allocation2 + $0x620] sm:$0xff]  ;;  %1400 = vmatmul.mubr.bf16.vlgmr.msra.gmra.mxu1 %v8113_v45  ;;  %7332 = vmatpush3.bf16.msra.mxu0 %v1214_v46  ;;  %v1213_v57 = vpack.c.bf16 %v1152_v48, %v1151_v47  ;;  %v1150_v61 = vld [vmem:[#allocation2 + $0x4b0] sm:$0xff] }
 0x2cb   : > { %v1165_v53 = vld [vmem:[#allocation2 + $0x5a0] sm:$0xff]  ;;  %v1224_v56 = vpack.c.bf16 %v1174_v52, %v1173_v51  ;;  %7333 = vmatprep.subr.bf16.mxu0 %v1221_v49  ;;  %1358 = vmatprep.mubr.bf16.mxu0 %v8116_v50  ;;  %v1172_v62 = vld [vmem:[#allocation2 + $0x610] sm:$0xff] }
 0x2cc   : > { %v8118_v55 = vld [vmem:[%s10042_s9 + $0x44] ss:$28 sps:$4 sm:$0xff]   ;;  %v1220_v59 = vpack.c.bf16 %v1166_v54, %v1165_v53  ;;  %v1164_v1 = vld [vmem:[#allocation2 + $0x590] sm:$0xff] }
 0x2cd   : > { %v1171_v58 = vld [vmem:[#allocation2 + $0x600] sm:$0xff]  ;;  %1407 = vmatprep.mubr.bf16.mxu1 %v8118_v55  ;;  %7644 = vmatprep.subr.bf16.mxu1 %v1224_v56  ;;  %v1148_v4 = vld [vmem:[#allocation2 + $0x490] sm:$0xff] }
 0x2ce   : > { %v1149_v60 = vld [vmem:[#allocation2 + $0x4a0] sm:$0xff]  ;;  %v1223_v2 = vpack.c.bf16 %v1172_v62, %v1171_v58  ;;  %v8120_v5 = vld [vmem:[%s10042_s9 + $0x38] ss:$28 sps:$4 sm:$0xff]   ;;  %7645 = vmatpush3.bf16.msra.mxu1 %v1224_v56  ;;  %7334 = vmatpush3.bf16.msra.mxu0 %v1213_v57  ;;  %v8123_v27 = vld [vmem:[%s10042_s9 + $0x50] ss:$28 sps:$4 sm:$0xff]  }
 0x2cf   : > { %v1163_v63 = vld [vmem:[#allocation2 + $0x580] sm:$0xff]  ;;  %v1212_v6 = vpack.c.bf16 %v1150_v61, %v1149_v60  ;;  %7335 = vmatprep.subr.bf16.mxu0 %v1220_v59  ;;  %v1162_v10 = vld [vmem:[#allocation2 + $0x570] sm:$0xff] }
 0x2d0   : > { %v1147_v3 = vld [vmem:[#allocation2 + $0x480] sm:$0xff]  ;;  %7646 = vmatprep.subr.bf16.mxu1 %v1223_v2  ;;  %v1219_v9 = vpack.c.bf16 %v1164_v1, %v1163_v63  ;;  %v8122_v11 = vld [vmem:[%s10042_s9 + $0x18] ss:$28 sps:$4 sm:$0xff]   ;;  %v8124_v37 = vld [vmem:[%s10042_s9 + $0x10] ss:$28 sps:$4 sm:$0xff]  }
 0x2d1   : > { %v1161_v7 = vld [vmem:[#allocation2 + $0x560] sm:$0xff]  ;;  %v8126_v16 = vld [vmem:[%s10042_s9 + $0x14] ss:$28 sps:$4 sm:$0xff]   ;;  %1359 = vmatmul.mubr.bf16.gmra.mxu0 %v8120_v5  ;;  %v1211_v17 = vpack.c.bf16 %v1148_v4, %v1147_v3 }
 0x2d2   : > { %v8121_v8 = vld [vmem:[%s10042_s9 + $0x40] ss:$28 sps:$4 sm:$0xff]   ;;  %7647 = vmatpush3.bf16.msra.mxu1 %v1223_v2  ;;  %7336 = vmatpush3.bf16.msra.mxu0 %v1212_v6  ;;  %v1218_v18 = vpack.c.bf16 %v1162_v10, %v1161_v7  ;;  %v1146_v24 = vld [vmem:[#allocation2 + $0x470] sm:$0xff]  ;;  %v8129_v39 = vld [vmem:[%s10042_s9 + $0x48] ss:$28 sps:$4 sm:$0xff]  }
 0x2d3   : > { %1408 = vmatmul.mubr.bf16.gmra.mxu1 %v8121_v8  ;;  %7337 = vmatprep.subr.bf16.mxu0 %v1219_v9  ;;  %v1145_v21 = vld [vmem:[#allocation2 + $0x460] sm:$0xff]  ;;  %v1160_v26 = vld [vmem:[#allocation2 + $0x550] sm:$0xff] }
 0x2d4   : > { %7648 = vmatprep.mubr.msk.bf16.mxu1 %vm1311_vm4, %v8122_v11  ;;  %v1159_v25 = vld [vmem:[#allocation2 + $0x540] sm:$0xff]  ;;  %1448 = vmatprep.mubr.bf16.mxu0 %v8126_v16  ;;  %v1210_v12 = vpack.c.bf16 %v1146_v24, %v1145_v21  ;;  %v1144_v29 = vld [vmem:[#allocation2 + $0x450] sm:$0xff] }
 0x2d5   : > { %v1217_v14 = vpack.c.bf16 %v1160_v26, %v1159_v25  ;;  %v1143_v28 = vld [vmem:[#allocation2 + $0x440] sm:$0xff]  ;;  %v1158_v19 = vld [vmem:[#allocation2 + $0x530] sm:$0xff] }
 0x2d6   : > { %7338 = vmatpush3.bf16.msra.mxu0 %v1211_v17  ;;  %v1157_v30 = vld [vmem:[#allocation2 + $0x520] sm:$0xff]  ;;  %v1209_v31 = vpack.c.bf16 %v1144_v29, %v1143_v28  ;;  %v1142_v33 = vld [vmem:[#allocation2 + $0x430] sm:$0xff] }
 0x2d7   : > { %7339 = vmatprep.subr.bf16.mxu0 %v1218_v18  ;;  %v1216_v22 = vpack.c.bf16 %v1158_v19, %v1157_v30  ;;  %v1141_v32 = vld [vmem:[#allocation2 + $0x420] sm:$0xff]  ;;  %v1156_v23 = vld [vmem:[#allocation2 + $0x510] sm:$0xff] }
 0x2d8   : > { %v1155_v20 = vld [vmem:[#allocation2 + $0x500] sm:$0xff]  ;;  %v1208_v34 = vpack.c.bf16 %v1142_v33, %v1141_v32  ;;  %v1140_v13 = vld [vmem:[#allocation2 + $0x410] sm:$0xff] }
 0x2d9   : > { %v1215_v35 = vpack.c.bf16 %v1156_v23, %v1155_v20  ;;  %v1139_v36 = vld [vmem:[#allocation2 + $0x400] sm:$0xff] }
 0x2da   : > { %7340 = vmatpush3.bf16.msra.mxu0 %v1210_v12  ;;  %v1207_v15 = vpack.c.bf16 %v1140_v13, %v1139_v36 }
 0x2db   : > { %7649 = vmatmul.mubr.msk.bf16.vlgmr.msra.gmra.mxu1 %vm1311_vm4, %v8123_v27  ;;  %7341 = vmatprep.subr.bf16.mxu0 %v1217_v14 }
 0x2de   : > { %7342 = vmatpush3.bf16.msra.mxu0 %v1209_v31 }
 0x2df   : > { %7343 = vmatprep.subr.bf16.mxu0 %v1216_v22 }
 0x2e2   : > { %7344 = vmatpush3.bf16.msra.mxu0 %v1208_v34 }
 0x2e3   : > { %7345 = vmatprep.subr.bf16.mxu0 %v1215_v35 }
 0x2e6   : > { %7346 = vmatpush3.bf16.msra.mxu0 %v1207_v15 }
 0x2e9   : > { %1449 = vmatmul.mubr.bf16.vlgmr.msra.gmra.mxu0 %v8124_v37 }
 0x2ea   : > { %1456 = vmatprep.mubr.bf16.mxu0 %v8127_v38 }
 0x2f1   : > { %1457 = vmatmul.mubr.bf16.gmra.mxu0 %v8129_v39 }
 0x389   : > { %v7291_v41 = vpop.f32.mrf.mxu0 }
 0x38a   : > { %v7319_v40 = vpop.f32.mrf.mxu1 }
 0x38b   : > { %v7292_v43 = vpop.f32.mrf.mxu0 }
 0x38c   : > { %v7320_v42 = vpop.f32.mrf.mxu1  ;;  %v7293_v57 = vadd.f32 %v7292_v43, %v7291_v41 }
 0x38d   : > { %v7294_v45 = vpop.f32.mrf.mxu0  ;;  %v7321_v58 = vadd.f32 %v7320_v42, %v7319_v40 }
 0x38e   : > { %v7322_v44 = vpop.f32.mrf.mxu1 }
 0x38f   : > { %v7295_v47 = vpop.f32.mrf.mxu0  ;;  %v1402_v62 = vadd.f32 %v7321_v58, %v7293_v57 }
 0x390   : > { %v7323_v46 = vpop.f32.mrf.mxu1  ;;  %v7296_v63 = vadd.f32 %v7295_v47, %v7294_v45 }
 0x391   : > { %v7297_v49 = vpop.f32.mrf.mxu0  ;;  %v7324_v1 = vadd.f32 %v7323_v46, %v7322_v44 }
 0x393   : > { %v7325_v48 = vpop.f32.mrf.mxu1  ;;  %v7298_v51 = vpop.f32.mrf.mxu0  ;;  %v1405_v9 = vadd.f32 %v7324_v1, %v7296_v63 }
 0x394   : > { %v7299_v5 = vadd.f32 %v7298_v51, %v7297_v49 }
 0x395   : > { %v7326_v50 = vpop.f32.mrf.mxu1  ;;  %v7300_v53 = vpop.f32.mrf.mxu0 }
 0x396   : > { %v7327_v6 = vadd.f32 %v7326_v50, %v7325_v48 }
 0x397   : > { %v7328_v52 = vpop.f32.mrf.mxu1  ;;  %v7301_v55 = vpop.f32.mrf.mxu0 }
 0x398   : > { %v1410_v24 = vadd.f32 %v7327_v6, %v7299_v5  ;;  %v7302_v12 = vadd.f32 %v7301_v55, %v7300_v53 }
 0x399   : > { %v7329_v54 = vpop.f32.mrf.mxu1 }
 0x39a   : > { %v7330_v27 = vadd.f32 %v7329_v54, %v7328_v52 }
 0x39b   : > { %v7650_v56 = vpop.f32.mrf.mxu1 }
 0x39c   : > { %v1413_v32 = vadd.f32 %v7330_v27, %v7302_v12 }
 0x39d   : > { %v1499_v60 = vpop.f32.mrf.mxu1 }
 0x39f   : > { %v7651_v7 = vpop.f32.mrf.mxu1 }
 0x3a1   : > { %v1502_v25 = vpop.f32.mrf.mxu1 }
 0x3a9   : > { %v7347_v59 = vpop.f32.mrf.mxu0 }
 0x3ab   : > { %v7348_v61 = vpop.f32.mrf.mxu0 }
 0x3ac   : > { %v7349_v2 = vadd.f32 %v7348_v61, %v7347_v59 }
 0x3ad   : > { %v7350_v3 = vpop.f32.mrf.mxu0 }
 0x3ae   : > { %v1451_v4 = vadd.f32 %v7349_v2, %v1402_v62 }
 0x3af   : > { %v7351_v8 = vpop.f32.mrf.mxu0 }
 0x3b0   : > { %v7352_v10 = vadd.f32 %v7351_v8, %v7350_v3  ;;  %v8929_v11 = vadd.f32 %v1499_v60, %v1451_v4 }
 0x3b1   : > { %v7353_v16 = vpop.f32.mrf.mxu0 }
 0x3b2   : > { %v1454_v17 = vadd.f32 %v7352_v10, %v1405_v9  ;;  %v1515_v18 = vsel %vm1070_vm3, %v8929_v11, 0.0  ;;  %v1532_v21 = vmul.f32 %v8929_v11, %v8929_v11 }
 0x3b3   : > { %v7354_v26 = vpop.f32.mrf.mxu0  ;;  %1516 = vadd.xlane.f32.xlu0 %v1515_v18 }
 0x3b4   : > { %v8935_v14 = vadd.f32 %v1502_v25, %v1454_v17  ;;  %v7355_v28 = vadd.f32 %v7354_v26, %v7353_v16  ;;  %v1536_v19 = vsel %vm1070_vm3, %v1532_v21, 0.0 }
 0x3b5   : > { %v7356_v29 = vpop.f32.mrf.mxu0 }
 0x3b6   : > { %v1459_v30 = vadd.f32 %v7355_v28, %v1410_v24  ;;  %v1533_v31 = vmul.f32 %v8935_v14, %v8935_v14  ;;  %v1518_v35 = vsel %vm1070_vm3, %v8935_v14, 0.0 }
 0x3b7   : > { %v7357_v22 = vpop.f32.mrf.mxu0  ;;  %1537 = vadd.xlane.f32.xlu0 %v1536_v19 }
 0x3b8   : > { %v8940_v33 = vadd.f32 %v7650_v56, %v1459_v30  ;;  %v7358_v20 = vadd.f32 %v7357_v22, %v7356_v29  ;;  %v1539_v23 = vsel %vm1070_vm3, %v1533_v31, 0.0 }
 0x3b9   : > { %1540 = vadd.xlane.f32.xlu1 %v1539_v23 }
 0x3ba   : > { %v1462_v34 = vadd.f32 %v7358_v20, %v1413_v32  ;;  %v1534_v36 = vmul.f32 %v8940_v33, %v8940_v33  ;;  %v1521_v15 = vsel %vm1070_vm3, %v8940_v33, 0.0 }
 0x3bb   : > { %1519 = vadd.xlane.f32.xlu0 %v1518_v35 }
 0x3bc   : > { %v1511_v13 = vadd.f32 %v7651_v7, %v1462_v34  ;;  %v1542_v37 = vsel %vm1070_vm3, %v1534_v36, 0.0 }
 0x3bd   : > { %1522 = vadd.xlane.f32.xlu1 %v1521_v15 }
 0x3be   : > { %v1524_v38 = vsel %vm1070_vm3, %v1511_v13, 0.0  ;;  %v1535_v39 = vmul.f32 %v1511_v13, %v1511_v13 }
 0x3bf   : > { %1543 = vadd.xlane.f32.xlu0 %v1542_v37 }
 0x3c0   : > { %v1545_v40 = vsel %vm1070_vm3, %v1535_v39, 0.0 }
 0x3c1   : > { %1525 = vadd.xlane.f32.xlu1 %v1524_v38 }
 0x3c5   : > { %1546 = vadd.xlane.f32.xlu1 %v1545_v40 }
 0x43c   : > { %v1517_v41 = vpop.xlane.xlu0 %1516 }
 0x43d   : > { %v1528_v42 = vmul.f32 0.015625, %v1517_v41 }
 0x43f   : > { %v1552_v44 = vmul.f32 %v1528_v42, %v1528_v42  ;;  %v1564_v16 = vsub.f32 %v8929_v11, %v1528_v42 }
 0x440   : > { %v1538_v43 = vpop.xlane.xlu0 %1537 }
 0x441   : > { %v1548_v45 = vmul.f32 0.015625, %v1538_v43 }
 0x442   : > { %v1541_v46 = vpop.xlane.xlu1 %1540 }
 0x443   : > { %v1556_v47 = vsub.f32 %v1548_v45, %v1552_v44  ;;  %v1549_v53 = vmul.f32 0.015625, %v1541_v46 }
 0x444   : > { %v1520_v48 = vpop.xlane.xlu0 %1519 }
 0x445   : > { %v1560_v49 = vmax.f32 %v1556_v47, 0.0  ;;  %v1529_v50 = vmul.f32 0.015625, %v1520_v48 }
 0x446   : > { %v1523_v51 = vpop.xlane.xlu1 %1522 }
 0x447   : > { %v1568_v52 = vadd.f32 1e-05, %v1560_v49  ;;  %v1553_v54 = vmul.f32 %v1529_v50, %v1529_v50  ;;  %v1530_v55 = vmul.f32 0.015625, %v1523_v51  ;;  %v1565_v18 = vsub.f32 %v8935_v14, %v1529_v50 }
 0x448   : > { %v1544_v56 = vpop.xlane.xlu0 %1543 }
 0x449   : > { %v1557_v57 = vsub.f32 %v1549_v53, %v1553_v54  ;;  %v1554_v58 = vmul.f32 %v1530_v55, %v1530_v55  ;;  %v1550_v59 = vmul.f32 0.015625, %v1544_v56  ;;  %8130 = vrsqrt.f32 %v1568_v52 }
 0x44a   : > { %v1526_v60 = vpop.xlane.xlu1 %1525  ;;  %v1566_v28 = vsub.f32 %v8940_v33, %v1530_v55 }
 0x44b   : > { %v1561_v61 = vmax.f32 %v1557_v57, 0.0  ;;  %v1531_v62 = vmul.f32 0.015625, %v1526_v60  ;;  %v1558_v63 = vsub.f32 %v1550_v59, %v1554_v58 }
 0x44d   : > { %v1569_v1 = vadd.f32 1e-05, %v1561_v61  ;;  %v1562_v2 = vmax.f32 %v1558_v63, 0.0  ;;  %v1555_v4 = vmul.f32 %v1531_v62, %v1531_v62  ;;  %v1567_v30 = vsub.f32 %v1511_v13, %v1531_v62 }
 0x44e   : > { %v1547_v3 = vpop.xlane.xlu1 %1546 }
 0x44f   : > { %8132 = vrsqrt.f32 %v1569_v1  ;;  %v1551_v5 = vmul.f32 0.015625, %v1547_v3  ;;  %v1570_v6 = vadd.f32 1e-05, %v1562_v2 }
 0x451   : > { %v1559_v7 = vsub.f32 %v1551_v5, %v1555_v4  ;;  %8134 = vrsqrt.f32 %v1570_v6 }
 0x453   : > { %v1563_v8 = vmax.f32 %v1559_v7, 0.0 }
 0x455   : > { %v1571_v9 = vadd.f32 1e-05, %v1563_v8 }
 0x456   : > { %v8131_v10 = vpop.eup %8130 }
 0x457   : > { %8136 = vrsqrt.f32 %v1571_v9  ;;  %v1576_v17 = vmul.f32 %v8131_v10, %v1564_v16 }
 0x459   : > { %v1580_v25 = vmax.f32 %v1576_v17, 0.0 }
 0x45c   : > { %v8133_v21 = vpop.eup %8132 }
 0x45d   : > { %v1577_v24 = vmul.f32 %v8133_v21, %v1565_v18 }
 0x45e   : > { %v8135_v12 = vpop.eup %8134 }
 0x45f   : > { %v1581_v26 = vmax.f32 %v1577_v24, 0.0  ;;  %v1578_v29 = vmul.f32 %v8135_v12, %v1566_v28 }
 0x461   : > { %v1584_v27 = vpack.c.bf16 %v1581_v26, %v1580_v25  ;;  %v1582_v22 = vmax.f32 %v1578_v29, 0.0 }
 0x464   : > { %v8137_v19 = vpop.eup %8136 }
 0x465   : > { %v1579_v31 = vmul.f32 %v8137_v19, %v1567_v30 }
 0x467   : > { %v1583_v32 = vmax.f32 %v1579_v31, 0.0 }
 0x469   : > { %v1585_v20 = vpack.c.bf16 %v1583_v32, %v1582_v22 }
 0x46a LB: >> { %7660 = vmatprep.mubr.msk.bf16.mxu0 %vm1070_vm3, %v1584_v27  ;;  %s7233_s27 = sshll.u32 %s8592_s26, 5  ;;  %s10064_s0 = sld [smem:[#allocation8_spill]]  ;;  %vm1688_vm5 = vcmask 130048   ;;  %s8592_s26 = sphi %s8955_s26, %s1591_s26  }
 0x46b   : >> { %s1683_s5 = sshra.s32 %s7233_s27, 3  ;;  %s1591_s26 = sadd.s32 1, %s8592_s26  }
 0x46c   : >> { %s7234_s25 = sshll.u32 %s1683_s5, 4  ;;  %p1588_p2 = scmp.ge.s32.totalorder %s1591_s26, 25  }
 0x46d   : >> { %s1687_s22 = scalar_lea.vmem [#allocation2], %s7234_s25 }
 0x470   : >> { %s1594_s4 = scalar_lea.vmem %s10064_s0, %s7233_s27  ;;  %s8594_s27 = smov (%p1588_p2), 0  }
 0x471   : >> { %v8138_v11 = vld [vmem:[%s1594_s4 + $0x18] sm:$0xff]   ;;  %v8139_v14 = vld [vmem:[%s1594_s4 + $0x10] sm:$0xff]   ;;  %v8140_v33 = vld [vmem:[%s1594_s4 + $0x8] sm:$0xff]  }
 0x472   : >> { %7652 = vmatprep.subr.bf16.mxu0 %v8138_v11  ;;  %v8141_v23 = vld [vmem:[%s1594_s4] sm:$0xff]  }
 0x473   : >> { %7653 = vmatpush3.bf16.msra.mxu0 %v8138_v11 }
 0x474   : >> { %7654 = vmatprep.subr.bf16.mxu0 %v8139_v14 }
 0x477   : >> { %7655 = vmatpush3.bf16.msra.mxu0 %v8139_v14 }
 0x478   : >> { %7656 = vmatprep.subr.bf16.mxu0 %v8140_v33 }
 0x47b   : >> { %7657 = vmatpush3.bf16.msra.mxu0 %v8140_v33 }
 0x47c   : >> { %7658 = vmatprep.subr.bf16.mxu0 %v8141_v23 }
 0x47f   : >> { %7659 = vmatpush3.bf16.msra.mxu0 %v8141_v23 }
 0x482   : >> { %7661 = vmatmul.mubr.msk.bf16.vlgmr.msra.gmra.mxu0 %vm1070_vm3, %v1585_v20 }
 0x542   : >> { %v7662_v34 = vpop.f32.mrf.mxu0 }
 0x543   : >> { %1691 = vst.msk [vmem:[%s1687_s22 + $0x20] sm:$0xff] %vm1688_vm5, %v7662_v34 }
 0x544   : >> { %v1667_v35 = vpop.f32.mrf.mxu0 }
 0x545   : >> { %1689 = vst.msk [vmem:[%s1687_s22] sm:$0xff] %vm1688_vm5, %v1667_v35  ;;  %1590 = sbr.rel (!%p1588_p2) target bundleno = 1130 (0x46a), region = 248 }
 0x546   : >> { %v7663_v36 = vpop.f32.mrf.mxu0 }
 0x547   : >> { %1692 = vst.msk [vmem:[%s1687_s22 + $0x30] sm:$0xff] %vm1688_vm5, %v7663_v36 }
 0x548   : >> { %v1670_v13 = vpop.f32.mrf.mxu0 }
 0x549   : >> { %1690 = vst.msk [vmem:[%s1687_s22 + $0x10] sm:$0xff] %vm1688_vm5, %v1670_v13 }
 0x550   : > { %v1723_v15 = vld [vmem:[#allocation2 + $0x1e0] sm:$0xff]  ;;  %v1724_v37 = vld [vmem:[#allocation2 + $0x1f0] sm:$0xff] }
 0x551   : > { %v1755_v38 = vld [vmem:[#allocation2 + $0x3e0] sm:$0xff]  ;;  %v1808_v39 = vpack.c.bf16 %v1724_v37, %v1723_v15  ;;  %v1756_v40 = vld [vmem:[#allocation2 + $0x3f0] sm:$0xff] }
 0x552   : > { %v1707_v41 = vld [vmem:[#allocation2 + $0xe0] sm:$0xff]  ;;  %v1708_v42 = vld [vmem:[#allocation2 + $0xf0] sm:$0xff]  ;;  %v1824_v43 = vpack.c.bf16 %v1756_v40, %v1755_v38 }
 0x553   : > { %v1800_v44 = vpack.c.bf16 %v1708_v42, %v1707_v41  ;;  %v1739_v45 = vld [vmem:[#allocation2 + $0x2e0] sm:$0xff]  ;;  %v1740_v46 = vld [vmem:[#allocation2 + $0x2f0] sm:$0xff]  ;;  %7369 = vmatprep.subr.bf16.mxu0 %v1808_v39 }
 0x554   : > { %v1721_v47 = vld [vmem:[#allocation2 + $0x1c0] sm:$0xff]  ;;  %v1816_v48 = vpack.c.bf16 %v1740_v46, %v1739_v45  ;;  %v1722_v49 = vld [vmem:[#allocation2 + $0x1d0] sm:$0xff]  ;;  %7397 = vmatprep.subr.bf16.mxu1 %v1824_v43 }
 0x555   : > { %v1753_v50 = vld [vmem:[#allocation2 + $0x3c0] sm:$0xff]  ;;  %v1754_v51 = vld [vmem:[#allocation2 + $0x3d0] sm:$0xff]  ;;  %7370 = vmatpush3.bf16.msra.mxu0 %v1800_v44  ;;  %v1807_v52 = vpack.c.bf16 %v1722_v49, %v1721_v47 }
 0x556   : > { %v1823_v53 = vpack.c.bf16 %v1754_v51, %v1753_v50  ;;  %v1705_v54 = vld [vmem:[#allocation2 + $0xc0] sm:$0xff]  ;;  %v1706_v55 = vld [vmem:[#allocation2 + $0xd0] sm:$0xff]  ;;  %7398 = vmatpush3.bf16.msra.mxu1 %v1816_v48 }
 0x557   : > { %v1737_v56 = vld [vmem:[#allocation2 + $0x2c0] sm:$0xff]  ;;  %v1799_v57 = vpack.c.bf16 %v1706_v55, %v1705_v54  ;;  %v1738_v58 = vld [vmem:[#allocation2 + $0x2d0] sm:$0xff]  ;;  %7371 = vmatprep.subr.bf16.mxu0 %v1807_v52 }
 0x558   : > { %v1719_v59 = vld [vmem:[#allocation2 + $0x1a0] sm:$0xff]  ;;  %v1720_v60 = vld [vmem:[#allocation2 + $0x1b0] sm:$0xff]  ;;  %7399 = vmatprep.subr.bf16.mxu1 %v1823_v53  ;;  %v1815_v61 = vpack.c.bf16 %v1738_v58, %v1737_v56 }
 0x559   : > { %v1806_v62 = vpack.c.bf16 %v1720_v60, %v1719_v59  ;;  %v1751_v63 = vld [vmem:[#allocation2 + $0x3a0] sm:$0xff]  ;;  %v1752_v1 = vld [vmem:[#allocation2 + $0x3b0] sm:$0xff]  ;;  %7372 = vmatpush3.bf16.msra.mxu0 %v1799_v57  ;;  %v8147_v60 = vld [vmem:[%s10043_s10 + $0xc] ss:$28 sps:$4 sm:$0xff]  }
 0x55a   : > { %v1703_v2 = vld [vmem:[#allocation2 + $0xa0] sm:$0xff]  ;;  %v1822_v3 = vpack.c.bf16 %v1752_v1, %v1751_v63  ;;  %v1704_v4 = vld [vmem:[#allocation2 + $0xb0] sm:$0xff]  ;;  %7400 = vmatpush3.bf16.msra.mxu1 %v1815_v61  ;;  %2016 = vmatprep.mubr.bf16.mxu1 %v8147_v60 }
 0x55b   : > { %v1735_v5 = vld [vmem:[#allocation2 + $0x2a0] sm:$0xff]  ;;  %v1736_v6 = vld [vmem:[#allocation2 + $0x2b0] sm:$0xff]  ;;  %v1798_v7 = vpack.c.bf16 %v1704_v4, %v1703_v2  ;;  %7373 = vmatprep.subr.bf16.mxu0 %v1806_v62 }
 0x55c   : > { %v1717_v8 = vld [vmem:[#allocation2 + $0x180] sm:$0xff]  ;;  %v1718_v9 = vld [vmem:[#allocation2 + $0x190] sm:$0xff]  ;;  %v1814_v16 = vpack.c.bf16 %v1736_v6, %v1735_v5  ;;  %7401 = vmatprep.subr.bf16.mxu1 %v1822_v3 }
 0x55d   : > { %v1749_v10 = vld [vmem:[#allocation2 + $0x380] sm:$0xff]  ;;  %v1805_v17 = vpack.c.bf16 %v1718_v9, %v1717_v8  ;;  %v1750_v18 = vld [vmem:[#allocation2 + $0x390] sm:$0xff]  ;;  %7374 = vmatpush3.bf16.msra.mxu0 %v1798_v7 }
 0x55e   : > { %v1701_v21 = vld [vmem:[#allocation2 + $0x80] sm:$0xff]  ;;  %v1702_v24 = vld [vmem:[#allocation2 + $0x90] sm:$0xff]  ;;  %v1821_v25 = vpack.c.bf16 %v1750_v18, %v1749_v10  ;;  %7402 = vmatpush3.bf16.msra.mxu1 %v1814_v16 }
 0x55f   : > { %v1733_v26 = vld [vmem:[#allocation2 + $0x280] sm:$0xff]  ;;  %v1734_v12 = vld [vmem:[#allocation2 + $0x290] sm:$0xff]  ;;  %v1797_v19 = vpack.c.bf16 %v1702_v24, %v1701_v21  ;;  %7375 = vmatprep.subr.bf16.mxu0 %v1805_v17 }
 0x560   : > { %v1715_v27 = vld [vmem:[#allocation2 + $0x160] sm:$0xff]  ;;  %v1716_v28 = vld [vmem:[#allocation2 + $0x170] sm:$0xff]  ;;  %v1813_v31 = vpack.c.bf16 %v1734_v12, %v1733_v26  ;;  %7403 = vmatprep.subr.bf16.mxu1 %v1821_v25 }
 0x561   : > { %v1747_v29 = vld [vmem:[#allocation2 + $0x360] sm:$0xff]  ;;  %v1748_v30 = vld [vmem:[#allocation2 + $0x370] sm:$0xff]  ;;  %v1804_v22 = vpack.c.bf16 %v1716_v28, %v1715_v27  ;;  %7376 = vmatpush3.bf16.msra.mxu0 %v1797_v19 }
 0x562   : > { %v1699_v32 = vld [vmem:[#allocation2 + $0x60] sm:$0xff]  ;;  %v1700_v20 = vld [vmem:[#allocation2 + $0x70] sm:$0xff]  ;;  %v1820_v14 = vpack.c.bf16 %v1748_v30, %v1747_v29  ;;  %7404 = vmatpush3.bf16.msra.mxu1 %v1813_v31  ;;  %v8148_v29 = vld [vmem:[%s10043_s10 + $0x3c] ss:$28 sps:$4 sm:$0xff]  }
 0x563   : > { %v1731_v11 = vld [vmem:[#allocation2 + $0x260] sm:$0xff]  ;;  %v1732_v33 = vld [vmem:[#allocation2 + $0x270] sm:$0xff]  ;;  %v1796_v13 = vpack.c.bf16 %v1700_v20, %v1699_v32  ;;  %7377 = vmatprep.subr.bf16.mxu0 %v1804_v22 }
 0x564   : > { %v1713_v23 = vld [vmem:[#allocation2 + $0x140] sm:$0xff]  ;;  %v1714_v34 = vld [vmem:[#allocation2 + $0x150] sm:$0xff]  ;;  %v1812_v37 = vpack.c.bf16 %v1732_v33, %v1731_v11  ;;  %7405 = vmatprep.subr.bf16.mxu1 %v1820_v14 }
 0x565   : > { %v1745_v35 = vld [vmem:[#allocation2 + $0x340] sm:$0xff]  ;;  %v1746_v36 = vld [vmem:[#allocation2 + $0x350] sm:$0xff]  ;;  %v1803_v38 = vpack.c.bf16 %v1714_v34, %v1713_v23  ;;  %7378 = vmatpush3.bf16.msra.mxu0 %v1796_v13 }
 0x566   : > { %v1697_v15 = vld [vmem:[#allocation2 + $0x40] sm:$0xff]  ;;  %v1698_v39 = vld [vmem:[#allocation2 + $0x50] sm:$0xff]  ;;  %v1819_v42 = vpack.c.bf16 %v1746_v36, %v1745_v35  ;;  %7406 = vmatpush3.bf16.msra.mxu1 %v1812_v37 }
 0x567   : > { %v1729_v40 = vld [vmem:[#allocation2 + $0x240] sm:$0xff]  ;;  %v1730_v41 = vld [vmem:[#allocation2 + $0x250] sm:$0xff]  ;;  %v1795_v49 = vpack.c.bf16 %v1698_v39, %v1697_v15  ;;  %7379 = vmatprep.subr.bf16.mxu0 %v1803_v38 }
 0x568   : > { %v1711_v43 = vld [vmem:[#allocation2 + $0x120] sm:$0xff]  ;;  %v1712_v44 = vld [vmem:[#allocation2 + $0x130] sm:$0xff]  ;;  %v1811_v53 = vpack.c.bf16 %v1730_v41, %v1729_v40  ;;  %7407 = vmatprep.subr.bf16.mxu1 %v1819_v42 }
 0x569   : > { %v1743_v45 = vld [vmem:[#allocation2 + $0x320] sm:$0xff]  ;;  %v1744_v46 = vld [vmem:[#allocation2 + $0x330] sm:$0xff]  ;;  %v1802_v54 = vpack.c.bf16 %v1712_v44, %v1711_v43  ;;  %7380 = vmatpush3.bf16.msra.mxu0 %v1795_v49 }
 0x56a   : > { %v1695_v47 = vld [vmem:[#allocation2 + $0x20] sm:$0xff]  ;;  %v1696_v48 = vld [vmem:[#allocation2 + $0x30] sm:$0xff]  ;;  %v1818_v56 = vpack.c.bf16 %v1744_v46, %v1743_v45  ;;  %7408 = vmatpush3.bf16.msra.mxu1 %v1811_v53 }
 0x56b   : > { %v1727_v50 = vld [vmem:[#allocation2 + $0x220] sm:$0xff]  ;;  %v1728_v51 = vld [vmem:[#allocation2 + $0x230] sm:$0xff]  ;;  %v1794_v61 = vpack.c.bf16 %v1696_v48, %v1695_v47  ;;  %7381 = vmatprep.subr.bf16.mxu0 %v1802_v54 }
 0x56c   : > { %v1709_v52 = vld [vmem:[#allocation2 + $0x100] sm:$0xff]  ;;  %v1710_v55 = vld [vmem:[#allocation2 + $0x110] sm:$0xff]  ;;  %v1810_v62 = vpack.c.bf16 %v1728_v51, %v1727_v50  ;;  %7409 = vmatprep.subr.bf16.mxu1 %v1818_v56 }
 0x56d   : > { %v1741_v57 = vld [vmem:[#allocation2 + $0x300] sm:$0xff]  ;;  %v1742_v59 = vld [vmem:[#allocation2 + $0x310] sm:$0xff]  ;;  %v1801_v63 = vpack.c.bf16 %v1710_v55, %v1709_v52  ;;  %7382 = vmatpush3.bf16.msra.mxu0 %v1794_v61 }
 0x56e   : > { %v8144_v58 = vld [vmem:[%s10043_s10 + $0x4] ss:$28 sps:$4 sm:$0xff]   ;;  %v1694_v2 = vld [vmem:[#allocation2 + $0x10] sm:$0xff]  ;;  %v1817_v4 = vpack.c.bf16 %v1742_v59, %v1741_v57  ;;  %7410 = vmatpush3.bf16.msra.mxu1 %v1810_v62 }
 0x56f   : > { %1967 = vmatprep.mubr.bf16.mxu0 %v8144_v58  ;;  %v1693_v1 = vld [vmem:[#allocation2] sm:$0xff]  ;;  %v1726_v5 = vld [vmem:[#allocation2 + $0x210] sm:$0xff]  ;;  %7383 = vmatprep.subr.bf16.mxu0 %v1801_v63 }
 0x570   : > { %v1725_v3 = vld [vmem:[#allocation2 + $0x200] sm:$0xff]  ;;  %v1788_v7 = vld [vmem:[#allocation2 + $0x5f0] sm:$0xff]  ;;  %v1793_v8 = vpack.c.bf16 %v1694_v2, %v1693_v1  ;;  %7411 = vmatprep.subr.bf16.mxu1 %v1817_v4 }
 0x571   : > { %v1787_v6 = vld [vmem:[#allocation2 + $0x5e0] sm:$0xff]  ;;  %v1809_v9 = vpack.c.bf16 %v1726_v5, %v1725_v3  ;;  %v1772_v17 = vld [vmem:[#allocation2 + $0x4f0] sm:$0xff] }
 0x572   : > { %v1840_v10 = vpack.c.bf16 %v1788_v7, %v1787_v6  ;;  %v1771_v16 = vld [vmem:[#allocation2 + $0x4e0] sm:$0xff]  ;;  %v1786_v21 = vld [vmem:[#allocation2 + $0x5d0] sm:$0xff]  ;;  %7384 = vmatpush3.bf16.msra.mxu0 %v1793_v8 }
 0x573   : > { %v1785_v18 = vld [vmem:[#allocation2 + $0x5c0] sm:$0xff]  ;;  %v1832_v26 = vpack.c.bf16 %v1772_v17, %v1771_v16  ;;  %v1770_v27 = vld [vmem:[#allocation2 + $0x4d0] sm:$0xff]  ;;  %7412 = vmatpush3.bf16.msra.mxu1 %v1809_v9  ;;  %v8159_v9 = vld [vmem:[%s10043_s10 + $0x4c] ss:$28 sps:$4 sm:$0xff]  }
 0x574   : > { %v8142_v24 = vld [vmem:[%s10043_s10] ss:$28 sps:$4 sm:$0xff]   ;;  %v8145_v25 = vld [vmem:[%s10043_s10 + $0x8] ss:$28 sps:$4 sm:$0xff]   ;;  %7425 = vmatprep.subr.bf16.mxu0 %v1840_v10  ;;  %v1839_v28 = vpack.c.bf16 %v1786_v21, %v1785_v18  ;;  %v1792_v19 = vld [vmem:[#allocation2 + $0x630] sm:$0xff] }
 0x575   : > { %v1769_v12 = vld [vmem:[#allocation2 + $0x4c0] sm:$0xff]  ;;  %v1784_v22 = vld [vmem:[#allocation2 + $0x5b0] sm:$0xff]  ;;  %1968 = vmatmul.mubr.bf16.vlgmr.msra.gmra.mxu0 %v8142_v24 }
 0x576   : > { %v1791_v30 = vld [vmem:[#allocation2 + $0x620] sm:$0xff]  ;;  %2017 = vmatmul.mubr.bf16.vlgmr.msra.gmra.mxu1 %v8145_v25  ;;  %7426 = vmatpush3.bf16.msra.mxu0 %v1832_v26  ;;  %v1831_v11 = vpack.c.bf16 %v1770_v27, %v1769_v12  ;;  %v1768_v34 = vld [vmem:[#allocation2 + $0x4b0] sm:$0xff] }
 0x577   : > { %v1783_v31 = vld [vmem:[#allocation2 + $0x5a0] sm:$0xff]  ;;  %v1842_v20 = vpack.c.bf16 %v1792_v19, %v1791_v30  ;;  %7427 = vmatprep.subr.bf16.mxu0 %v1839_v28  ;;  %1975 = vmatprep.mubr.bf16.mxu0 %v8148_v29  ;;  %v1790_v35 = vld [vmem:[#allocation2 + $0x610] sm:$0xff] }
 0x578   : > { %v8150_v32 = vld [vmem:[%s10043_s10 + $0x44] ss:$28 sps:$4 sm:$0xff]   ;;  %v1838_v33 = vpack.c.bf16 %v1784_v22, %v1783_v31  ;;  %v1782_v13 = vld [vmem:[#allocation2 + $0x590] sm:$0xff] }
 0x579   : > { %v1789_v14 = vld [vmem:[#allocation2 + $0x600] sm:$0xff]  ;;  %2024 = vmatprep.mubr.bf16.mxu1 %v8150_v32  ;;  %7664 = vmatprep.subr.bf16.mxu1 %v1842_v20  ;;  %v1766_v38 = vld [vmem:[#allocation2 + $0x490] sm:$0xff] }
 0x57a   : > { %v1767_v23 = vld [vmem:[#allocation2 + $0x4a0] sm:$0xff]  ;;  %v1841_v15 = vpack.c.bf16 %v1790_v35, %v1789_v14  ;;  %v8152_v39 = vld [vmem:[%s10043_s10 + $0x38] ss:$28 sps:$4 sm:$0xff]   ;;  %7665 = vmatpush3.bf16.msra.mxu1 %v1842_v20  ;;  %7428 = vmatpush3.bf16.msra.mxu0 %v1831_v11  ;;  %v8155_v54 = vld [vmem:[%s10043_s10 + $0x50] ss:$28 sps:$4 sm:$0xff]  }
 0x57b   : > { %v1781_v36 = vld [vmem:[#allocation2 + $0x580] sm:$0xff]  ;;  %v1830_v40 = vpack.c.bf16 %v1768_v34, %v1767_v23  ;;  %7429 = vmatprep.subr.bf16.mxu0 %v1838_v33  ;;  %v1780_v44 = vld [vmem:[#allocation2 + $0x570] sm:$0xff] }
 0x57c   : > { %v1765_v37 = vld [vmem:[#allocation2 + $0x480] sm:$0xff]  ;;  %7666 = vmatprep.subr.bf16.mxu1 %v1841_v15  ;;  %v1837_v43 = vpack.c.bf16 %v1782_v13, %v1781_v36  ;;  %v8154_v45 = vld [vmem:[%s10043_s10 + $0x18] ss:$28 sps:$4 sm:$0xff]   ;;  %v8156_v8 = vld [vmem:[%s10043_s10 + $0x10] ss:$28 sps:$4 sm:$0xff]  }
 0x57d   : > { %v1779_v41 = vld [vmem:[#allocation2 + $0x560] sm:$0xff]  ;;  %v8158_v46 = vld [vmem:[%s10043_s10 + $0x14] ss:$28 sps:$4 sm:$0xff]   ;;  %1976 = vmatmul.mubr.bf16.gmra.mxu0 %v8152_v39  ;;  %v1829_v47 = vpack.c.bf16 %v1766_v38, %v1765_v37 }
 0x57e   : > { %v8153_v42 = vld [vmem:[%s10043_s10 + $0x40] ss:$28 sps:$4 sm:$0xff]   ;;  %7667 = vmatpush3.bf16.msra.mxu1 %v1841_v15  ;;  %7430 = vmatpush3.bf16.msra.mxu0 %v1830_v40  ;;  %v1836_v48 = vpack.c.bf16 %v1780_v44, %v1779_v41  ;;  %v1764_v50 = vld [vmem:[#allocation2 + $0x470] sm:$0xff]  ;;  %v8161_v10 = vld [vmem:[%s10043_s10 + $0x48] ss:$28 sps:$4 sm:$0xff]  }
 0x57f   : > { %2025 = vmatmul.mubr.bf16.gmra.mxu1 %v8153_v42  ;;  %7431 = vmatprep.subr.bf16.mxu0 %v1837_v43  ;;  %v1763_v49 = vld [vmem:[#allocation2 + $0x460] sm:$0xff]  ;;  %v1778_v52 = vld [vmem:[#allocation2 + $0x550] sm:$0xff] }
 0x580   : > { %7668 = vmatprep.mubr.msk.bf16.mxu1 %vm1311_vm4, %v8154_v45  ;;  %v1777_v51 = vld [vmem:[#allocation2 + $0x540] sm:$0xff]  ;;  %2065 = vmatprep.mubr.bf16.mxu0 %v8158_v46  ;;  %v1828_v53 = vpack.c.bf16 %v1764_v50, %v1763_v49  ;;  %v1762_v57 = vld [vmem:[#allocation2 + $0x450] sm:$0xff] }
 0x581   : > { %v1835_v55 = vpack.c.bf16 %v1778_v52, %v1777_v51  ;;  %v1761_v56 = vld [vmem:[#allocation2 + $0x440] sm:$0xff]  ;;  %v1776_v59 = vld [vmem:[#allocation2 + $0x530] sm:$0xff] }
 0x582   : > { %7432 = vmatpush3.bf16.msra.mxu0 %v1829_v47  ;;  %v1775_v58 = vld [vmem:[#allocation2 + $0x520] sm:$0xff]  ;;  %v1827_v60 = vpack.c.bf16 %v1762_v57, %v1761_v56  ;;  %v1760_v63 = vld [vmem:[#allocation2 + $0x430] sm:$0xff] }
 0x583   : > { %7433 = vmatprep.subr.bf16.mxu0 %v1836_v48  ;;  %v1834_v61 = vpack.c.bf16 %v1776_v59, %v1775_v58  ;;  %v1759_v62 = vld [vmem:[#allocation2 + $0x420] sm:$0xff]  ;;  %v1774_v2 = vld [vmem:[#allocation2 + $0x510] sm:$0xff] }
 0x584   : > { %v1773_v1 = vld [vmem:[#allocation2 + $0x500] sm:$0xff]  ;;  %v1826_v3 = vpack.c.bf16 %v1760_v63, %v1759_v62  ;;  %v1758_v6 = vld [vmem:[#allocation2 + $0x410] sm:$0xff] }
 0x585   : > { %v1833_v4 = vpack.c.bf16 %v1774_v2, %v1773_v1  ;;  %v1757_v5 = vld [vmem:[#allocation2 + $0x400] sm:$0xff] }
 0x586   : > { %7434 = vmatpush3.bf16.msra.mxu0 %v1828_v53  ;;  %v1825_v7 = vpack.c.bf16 %v1758_v6, %v1757_v5 }
 0x587   : > { %7669 = vmatmul.mubr.msk.bf16.vlgmr.msra.gmra.mxu1 %vm1311_vm4, %v8155_v54  ;;  %7435 = vmatprep.subr.bf16.mxu0 %v1835_v55 }
 0x58a   : > { %7436 = vmatpush3.bf16.msra.mxu0 %v1827_v60 }
 0x58b   : > { %7437 = vmatprep.subr.bf16.mxu0 %v1834_v61 }
 0x58e   : > { %7438 = vmatpush3.bf16.msra.mxu0 %v1826_v3 }
 0x58f   : > { %7439 = vmatprep.subr.bf16.mxu0 %v1833_v4 }
 0x592   : > { %7440 = vmatpush3.bf16.msra.mxu0 %v1825_v7 }
 0x595   : > { %2066 = vmatmul.mubr.bf16.vlgmr.msra.gmra.mxu0 %v8156_v8 }
 0x596   : > { %2073 = vmatprep.mubr.bf16.mxu0 %v8159_v9 }
 0x59d   : > { %2074 = vmatmul.mubr.bf16.gmra.mxu0 %v8161_v10 }
 0x635   : > { %v7385_v17 = vpop.f32.mrf.mxu0 }
 0x636   : > { %v7413_v16 = vpop.f32.mrf.mxu1 }
 0x637   : > { %v7386_v21 = vpop.f32.mrf.mxu0 }
 0x638   : > { %v7414_v18 = vpop.f32.mrf.mxu1  ;;  %v7387_v11 = vadd.f32 %v7386_v21, %v7385_v17 }
 0x639   : > { %v7388_v25 = vpop.f32.mrf.mxu0  ;;  %v7415_v14 = vadd.f32 %v7414_v18, %v7413_v16 }
 0x63a   : > { %v7416_v24 = vpop.f32.mrf.mxu1 }
 0x63b   : > { %v7389_v12 = vpop.f32.mrf.mxu0  ;;  %v2019_v35 = vadd.f32 %v7415_v14, %v7387_v11 }
 0x63c   : > { %v7417_v26 = vpop.f32.mrf.mxu1  ;;  %v7390_v36 = vadd.f32 %v7389_v12, %v7388_v25 }
 0x63d   : > { %v7391_v28 = vpop.f32.mrf.mxu0  ;;  %v7418_v13 = vadd.f32 %v7417_v26, %v7416_v24 }
 0x63f   : > { %v7419_v27 = vpop.f32.mrf.mxu1  ;;  %v7392_v30 = vpop.f32.mrf.mxu0  ;;  %v2022_v43 = vadd.f32 %v7418_v13, %v7390_v36 }
 0x640   : > { %v7393_v39 = vadd.f32 %v7392_v30, %v7391_v28 }
 0x641   : > { %v7420_v29 = vpop.f32.mrf.mxu1  ;;  %v7394_v31 = vpop.f32.mrf.mxu0 }
 0x642   : > { %v7421_v40 = vadd.f32 %v7420_v29, %v7419_v27 }
 0x643   : > { %v7422_v19 = vpop.f32.mrf.mxu1  ;;  %v7395_v32 = vpop.f32.mrf.mxu0 }
 0x644   : > { %v2027_v50 = vadd.f32 %v7421_v40, %v7393_v39  ;;  %v7396_v53 = vadd.f32 %v7395_v32, %v7394_v31 }
 0x645   : > { %v7423_v22 = vpop.f32.mrf.mxu1 }
 0x646   : > { %v7424_v54 = vadd.f32 %v7423_v22, %v7422_v19 }
 0x647   : > { %v7670_v20 = vpop.f32.mrf.mxu1 }
 0x648   : > { %v2030_v62 = vadd.f32 %v7424_v54, %v7396_v53 }
 0x649   : > { %v2116_v23 = vpop.f32.mrf.mxu1 }
 0x64b   : > { %v7671_v41 = vpop.f32.mrf.mxu1 }
 0x64d   : > { %v2119_v51 = vpop.f32.mrf.mxu1 }
 0x655   : > { %v7441_v33 = vpop.f32.mrf.mxu0 }
 0x657   : > { %v7442_v34 = vpop.f32.mrf.mxu0 }
 0x658   : > { %v7443_v15 = vadd.f32 %v7442_v34, %v7441_v33 }
 0x659   : > { %v7444_v37 = vpop.f32.mrf.mxu0 }
 0x65a   : > { %v2068_v38 = vadd.f32 %v7443_v15, %v2019_v35 }
 0x65b   : > { %v7445_v42 = vpop.f32.mrf.mxu0 }
 0x65c   : > { %v7446_v44 = vadd.f32 %v7445_v42, %v7444_v37  ;;  %v9017_v45 = vadd.f32 %v2116_v23, %v2068_v38 }
 0x65d   : > { %v7447_v46 = vpop.f32.mrf.mxu0 }
 0x65e   : > { %v2071_v47 = vadd.f32 %v7446_v44, %v2022_v43  ;;  %v2132_v48 = vsel %vm1688_vm5, %v9017_v45, 0.0  ;;  %v2149_v49 = vmul.f32 %v9017_v45, %v9017_v45 }
 0x65f   : > { %v7448_v52 = vpop.f32.mrf.mxu0  ;;  %2133 = vadd.xlane.f32.xlu0 %v2132_v48 }
 0x660   : > { %v9023_v55 = vadd.f32 %v2119_v51, %v2071_v47  ;;  %v7449_v56 = vadd.f32 %v7448_v52, %v7447_v46  ;;  %v2153_v59 = vsel %vm1688_vm5, %v2149_v49, 0.0 }
 0x661   : > { %v7450_v57 = vpop.f32.mrf.mxu0 }
 0x662   : > { %v2076_v58 = vadd.f32 %v7449_v56, %v2027_v50  ;;  %v2150_v60 = vmul.f32 %v9023_v55, %v9023_v55  ;;  %v2135_v4 = vsel %vm1688_vm5, %v9023_v55, 0.0 }
 0x663   : > { %v7451_v61 = vpop.f32.mrf.mxu0  ;;  %2154 = vadd.xlane.f32.xlu0 %v2153_v59 }
 0x664   : > { %v9028_v63 = vadd.f32 %v7670_v20, %v2076_v58  ;;  %v7452_v1 = vadd.f32 %v7451_v61, %v7450_v57  ;;  %v2156_v2 = vsel %vm1688_vm5, %v2150_v60, 0.0 }
 0x665   : > { %2157 = vadd.xlane.f32.xlu1 %v2156_v2 }
 0x666   : > { %v2079_v3 = vadd.f32 %v7452_v1, %v2030_v62  ;;  %v2151_v5 = vmul.f32 %v9028_v63, %v9028_v63  ;;  %v2138_v7 = vsel %vm1688_vm5, %v9028_v63, 0.0 }
 0x667   : > { %2136 = vadd.xlane.f32.xlu0 %v2135_v4 }
 0x668   : > { %v2128_v6 = vadd.f32 %v7671_v41, %v2079_v3  ;;  %v2159_v8 = vsel %vm1688_vm5, %v2151_v5, 0.0 }
 0x669   : > { %2139 = vadd.xlane.f32.xlu1 %v2138_v7 }
 0x66a   : > { %v2141_v9 = vsel %vm1688_vm5, %v2128_v6, 0.0  ;;  %v2152_v10 = vmul.f32 %v2128_v6, %v2128_v6 }
 0x66b   : > { %2160 = vadd.xlane.f32.xlu0 %v2159_v8 }
 0x66c   : > { %v2162_v16 = vsel %vm1688_vm5, %v2152_v10, 0.0 }
 0x66d   : > { %2142 = vadd.xlane.f32.xlu1 %v2141_v9 }
 0x671   : > { %2163 = vadd.xlane.f32.xlu1 %v2162_v16 }
 0x6e8   : > { %v2134_v17 = vpop.xlane.xlu0 %2133 }
 0x6e9   : > { %v2145_v18 = vmul.f32 0.0625, %v2134_v17 }
 0x6eb   : > { %v2169_v24 = vmul.f32 %v2145_v18, %v2145_v18  ;;  %v2181_v46 = vsub.f32 %v9017_v45, %v2145_v18 }
 0x6ec   : > { %v2155_v21 = vpop.xlane.xlu0 %2154 }
 0x6ed   : > { %v2165_v25 = vmul.f32 0.0625, %v2155_v21 }
 0x6ee   : > { %v2158_v26 = vpop.xlane.xlu1 %2157 }
 0x6ef   : > { %v2173_v12 = vsub.f32 %v2165_v25, %v2169_v24  ;;  %v2166_v31 = vmul.f32 0.0625, %v2158_v26 }
 0x6f0   : > { %v2137_v27 = vpop.xlane.xlu0 %2136 }
 0x6f1   : > { %v2177_v28 = vmax.f32 %v2173_v12, 0.0  ;;  %v2146_v29 = vmul.f32 0.0625, %v2137_v27 }
 0x6f2   : > { %v2140_v30 = vpop.xlane.xlu1 %2139 }
 0x6f3   : > { %v2185_v19 = vadd.f32 1e-05, %v2177_v28  ;;  %v2170_v22 = vmul.f32 %v2146_v29, %v2146_v29  ;;  %v2147_v32 = vmul.f32 0.0625, %v2140_v30  ;;  %v2182_v48 = vsub.f32 %v9023_v55, %v2146_v29 }
 0x6f4   : > { %v2161_v20 = vpop.xlane.xlu0 %2160 }
 0x6f5   : > { %v2174_v11 = vsub.f32 %v2166_v31, %v2170_v22  ;;  %v2171_v14 = vmul.f32 %v2147_v32, %v2147_v32  ;;  %v2167_v33 = vmul.f32 0.0625, %v2161_v20  ;;  %8162 = vrsqrt.f32 %v2185_v19 }
 0x6f6   : > { %v2143_v23 = vpop.xlane.xlu1 %2142  ;;  %v2183_v56 = vsub.f32 %v9028_v63, %v2147_v32 }
 0x6f7   : > { %v2178_v34 = vmax.f32 %v2174_v11, 0.0  ;;  %v2148_v35 = vmul.f32 0.0625, %v2143_v23  ;;  %v2175_v36 = vsub.f32 %v2167_v33, %v2171_v14 }
 0x6f9   : > { %v2186_v13 = vadd.f32 1e-05, %v2178_v34  ;;  %v2179_v15 = vmax.f32 %v2175_v36, 0.0  ;;  %v2172_v38 = vmul.f32 %v2148_v35, %v2148_v35  ;;  %v2184_v58 = vsub.f32 %v2128_v6, %v2148_v35 }
 0x6fa   : > { %v2164_v37 = vpop.xlane.xlu1 %2163 }
 0x6fb   : > { %8164 = vrsqrt.f32 %v2186_v13  ;;  %v2168_v39 = vmul.f32 0.0625, %v2164_v37  ;;  %v2187_v40 = vadd.f32 1e-05, %v2179_v15 }
 0x6fd   : > { %v2176_v41 = vsub.f32 %v2168_v39, %v2172_v38  ;;  %8166 = vrsqrt.f32 %v2187_v40 }
 0x6ff   : > { %v2180_v42 = vmax.f32 %v2176_v41, 0.0 }
 0x701   : > { %v2188_v43 = vadd.f32 1e-05, %v2180_v42 }
 0x702   : > { %v8163_v44 = vpop.eup %8162 }
 0x703   : > { %8168 = vrsqrt.f32 %v2188_v43  ;;  %v2193_v47 = vmul.f32 %v8163_v44, %v2181_v46 }
 0x705   : > { %v2197_v51 = vmax.f32 %v2193_v47, 0.0 }
 0x708   : > { %v8165_v49 = vpop.eup %8164 }
 0x709   : > { %v2194_v50 = vmul.f32 %v8165_v49, %v2182_v48 }
 0x70a   : > { %v8167_v53 = vpop.eup %8166 }
 0x70b   : > { %v2198_v52 = vmax.f32 %v2194_v50, 0.0  ;;  %v2195_v57 = vmul.f32 %v8167_v53, %v2183_v56 }
 0x70d   : > { %v2201_v54 = vpack.c.bf16 %v2198_v52, %v2197_v51  ;;  %v2199_v61 = vmax.f32 %v2195_v57, 0.0 }
 0x710   : > { %v8169_v59 = vpop.eup %8168 }
 0x711   : > { %v2196_v60 = vmul.f32 %v8169_v59, %v2184_v58 }
 0x713   : > { %v2200_v62 = vmax.f32 %v2196_v60, 0.0 }
 0x715   : > { %v2202_v1 = vpack.c.bf16 %v2200_v62, %v2199_v61 }
 0x716 LB: >> { %7674 = vmatprep.mubr.msk.bf16.mxu0 %vm1688_vm5, %v2201_v54  ;;  %s7235_s3 = sshll.u32 %s8596_s27, 3  ;;  %s10065_s4 = sld [smem:[#allocation9_spill]]  ;;  %vm2281_vm6 = vcmask 31744   ;;  %s8596_s27 = sphi %s8594_s27, %s2208_s27  }
 0x717   : >> { %s6877_s25 = sshll.u32 %s8596_s27, 5  ;;  %s2208_s27 = sadd.s32 1, %s8596_s27  }
 0x718   : >> { %s2276_s22 = sshra.s32 %s6877_s25, 3  ;;  %p2205_p3 = scmp.ge.s32.totalorder %s2208_s27, 25  }
 0x719   : >> { %s7236_s23 = sshll.u32 %s2276_s22, 4  ;;  %vm8632_vm7 = vmmov (%p2205_p3), 0  }
 0x71a   : >> { %s2280_s1 = scalar_lea.vmem [#allocation2], %s7236_s23 }
 0x71c   : >> { %s2211_s5 = scalar_lea.vmem %s10065_s4, %s7235_s3  ;;  %s8598_s4 = smov (%p2205_p3), 0  }
 0x71d   : >> { %v8170_v45 = vld [vmem:[%s2211_s5] sm:$0xff]  }
 0x71e   : >> { %7672 = vmatprep.subr.bf16.mxu0 %v8170_v45 }
 0x71f   : >> { %7673 = vmatpush3.bf16.msra.mxu0 %v8170_v45 }
 0x722   : >> { %7675 = vmatmul.mubr.msk.bf16.vlgmr.msra.gmra.mxu0 %vm1688_vm5, %v2202_v1 }
 0x7e2   : >> { %v7676_v55 = vpop.f32.mrf.mxu0 }
 0x7e3   : >> { %2284 = vst.msk [vmem:[%s2280_s1 + $0x20] sm:$0xff] %vm2281_vm6, %v7676_v55 }
 0x7e4   : >> { %v2260_v63 = vpop.f32.mrf.mxu0 }
 0x7e5   : >> { %2282 = vst.msk [vmem:[%s2280_s1] sm:$0xff] %vm2281_vm6, %v2260_v63  ;;  %2207 = sbr.rel (!%p2205_p3) target bundleno = 1814 (0x716), region = 259 }
 0x7e6   : >> { %v7677_v2 = vpop.f32.mrf.mxu0 }
 0x7e7   : >> { %2285 = vst.msk [vmem:[%s2280_s1 + $0x30] sm:$0xff] %vm2281_vm6, %v7677_v2 }
 0x7e8   : >> { %v2263_v3 = vpop.f32.mrf.mxu0 }
 0x7e9   : >> { %2283 = vst.msk [vmem:[%s2280_s1 + $0x10] sm:$0xff] %vm2281_vm6, %v2263_v3 }
 0x7f0   : > { %v2316_v4 = vld [vmem:[#allocation2 + $0x1e0] sm:$0xff]  ;;  %v2317_v5 = vld [vmem:[#allocation2 + $0x1f0] sm:$0xff] }
 0x7f1   : > { %v2348_v6 = vld [vmem:[#allocation2 + $0x3e0] sm:$0xff]  ;;  %v2401_v7 = vpack.c.bf16 %v2317_v5, %v2316_v4  ;;  %v2349_v8 = vld [vmem:[#allocation2 + $0x3f0] sm:$0xff] }
 0x7f2   : > { %v2300_v9 = vld [vmem:[#allocation2 + $0xe0] sm:$0xff]  ;;  %v2301_v10 = vld [vmem:[#allocation2 + $0xf0] sm:$0xff]  ;;  %v2417_v16 = vpack.c.bf16 %v2349_v8, %v2348_v6 }
 0x7f3   : > { %v2393_v17 = vpack.c.bf16 %v2301_v10, %v2300_v9  ;;  %v2332_v18 = vld [vmem:[#allocation2 + $0x2e0] sm:$0xff]  ;;  %v2333_v21 = vld [vmem:[#allocation2 + $0x2f0] sm:$0xff]  ;;  %7460 = vmatprep.subr.bf16.mxu0 %v2401_v7 }
 0x7f4   : > { %v2314_v24 = vld [vmem:[#allocation2 + $0x1c0] sm:$0xff]  ;;  %v2409_v25 = vpack.c.bf16 %v2333_v21, %v2332_v18  ;;  %v2315_v26 = vld [vmem:[#allocation2 + $0x1d0] sm:$0xff]  ;;  %7488 = vmatprep.subr.bf16.mxu1 %v2417_v16 }
 0x7f5   : > { %v2346_v12 = vld [vmem:[#allocation2 + $0x3c0] sm:$0xff]  ;;  %v2347_v27 = vld [vmem:[#allocation2 + $0x3d0] sm:$0xff]  ;;  %7461 = vmatpush3.bf16.msra.mxu0 %v2393_v17  ;;  %v2400_v28 = vpack.c.bf16 %v2315_v26, %v2314_v24 }
 0x7f6   : > { %v2416_v29 = vpack.c.bf16 %v2347_v27, %v2346_v12  ;;  %v2298_v30 = vld [vmem:[#allocation2 + $0xc0] sm:$0xff]  ;;  %v2299_v19 = vld [vmem:[#allocation2 + $0xd0] sm:$0xff]  ;;  %7489 = vmatpush3.bf16.msra.mxu1 %v2409_v25 }
 0x7f7   : > { %v2330_v31 = vld [vmem:[#allocation2 + $0x2c0] sm:$0xff]  ;;  %v2392_v22 = vpack.c.bf16 %v2299_v19, %v2298_v30  ;;  %v2331_v32 = vld [vmem:[#allocation2 + $0x2d0] sm:$0xff]  ;;  %7462 = vmatprep.subr.bf16.mxu0 %v2400_v28 }
 0x7f8   : > { %v2312_v20 = vld [vmem:[#allocation2 + $0x1a0] sm:$0xff]  ;;  %v2313_v11 = vld [vmem:[#allocation2 + $0x1b0] sm:$0xff]  ;;  %7490 = vmatprep.subr.bf16.mxu1 %v2416_v29  ;;  %v2408_v14 = vpack.c.bf16 %v2331_v32, %v2330_v31 }
 0x7f9   : > { %v2399_v33 = vpack.c.bf16 %v2313_v11, %v2312_v20  ;;  %v2344_v23 = vld [vmem:[#allocation2 + $0x3a0] sm:$0xff]  ;;  %v2345_v34 = vld [vmem:[#allocation2 + $0x3b0] sm:$0xff]  ;;  %7463 = vmatpush3.bf16.msra.mxu0 %v2392_v22  ;;  %v8176_v11 = vld [vmem:[%s10044_s11 + $0xc] ss:$28 sps:$4 sm:$0xff]  }
 0x7fa   : > { %v2296_v35 = vld [vmem:[#allocation2 + $0xa0] sm:$0xff]  ;;  %v2415_v36 = vpack.c.bf16 %v2345_v34, %v2344_v23  ;;  %v2297_v13 = vld [vmem:[#allocation2 + $0xb0] sm:$0xff]  ;;  %7491 = vmatpush3.bf16.msra.mxu1 %v2408_v14  ;;  %2609 = vmatprep.mubr.bf16.mxu1 %v8176_v11 }
 0x7fb   : > { %v2328_v15 = vld [vmem:[#allocation2 + $0x2a0] sm:$0xff]  ;;  %v2329_v37 = vld [vmem:[#allocation2 + $0x2b0] sm:$0xff]  ;;  %v2391_v38 = vpack.c.bf16 %v2297_v13, %v2296_v35  ;;  %7464 = vmatprep.subr.bf16.mxu0 %v2399_v33 }
 0x7fc   : > { %v2310_v39 = vld [vmem:[#allocation2 + $0x180] sm:$0xff]  ;;  %v2311_v40 = vld [vmem:[#allocation2 + $0x190] sm:$0xff]  ;;  %v2407_v42 = vpack.c.bf16 %v2329_v37, %v2328_v15  ;;  %7492 = vmatprep.subr.bf16.mxu1 %v2415_v36 }
 0x7fd   : > { %v2342_v41 = vld [vmem:[#allocation2 + $0x380] sm:$0xff]  ;;  %v2398_v43 = vpack.c.bf16 %v2311_v40, %v2310_v39  ;;  %v2343_v44 = vld [vmem:[#allocation2 + $0x390] sm:$0xff]  ;;  %7465 = vmatpush3.bf16.msra.mxu0 %v2391_v38 }
 0x7fe   : > { %v2294_v46 = vld [vmem:[#allocation2 + $0x80] sm:$0xff]  ;;  %v2295_v47 = vld [vmem:[#allocation2 + $0x90] sm:$0xff]  ;;  %v2414_v48 = vpack.c.bf16 %v2343_v44, %v2342_v41  ;;  %7493 = vmatpush3.bf16.msra.mxu1 %v2407_v42 }
 0x7ff   : > { %v2326_v49 = vld [vmem:[#allocation2 + $0x280] sm:$0xff]  ;;  %v2327_v50 = vld [vmem:[#allocation2 + $0x290] sm:$0xff]  ;;  %v2390_v56 = vpack.c.bf16 %v2295_v47, %v2294_v46  ;;  %7466 = vmatprep.subr.bf16.mxu0 %v2398_v43 }
 0x800   : > { %v2308_v51 = vld [vmem:[#allocation2 + $0x160] sm:$0xff]  ;;  %v2309_v52 = vld [vmem:[#allocation2 + $0x170] sm:$0xff]  ;;  %v2406_v57 = vpack.c.bf16 %v2327_v50, %v2326_v49  ;;  %7494 = vmatprep.subr.bf16.mxu1 %v2414_v48 }
 0x801   : > { %v2340_v53 = vld [vmem:[#allocation2 + $0x360] sm:$0xff]  ;;  %v2341_v54 = vld [vmem:[#allocation2 + $0x370] sm:$0xff]  ;;  %v2397_v58 = vpack.c.bf16 %v2309_v52, %v2308_v51  ;;  %7467 = vmatpush3.bf16.msra.mxu0 %v2390_v56 }
 0x802   : > { %v2292_v59 = vld [vmem:[#allocation2 + $0x60] sm:$0xff]  ;;  %v2293_v60 = vld [vmem:[#allocation2 + $0x70] sm:$0xff]  ;;  %v2413_v62 = vpack.c.bf16 %v2341_v54, %v2340_v53  ;;  %7495 = vmatpush3.bf16.msra.mxu1 %v2406_v57  ;;  %v8177_v53 = vld [vmem:[%s10044_s11 + $0x3c] ss:$28 sps:$4 sm:$0xff]  }
 0x803   : > { %v2324_v61 = vld [vmem:[#allocation2 + $0x260] sm:$0xff]  ;;  %v2325_v1 = vld [vmem:[#allocation2 + $0x270] sm:$0xff]  ;;  %v2389_v3 = vpack.c.bf16 %v2293_v60, %v2292_v59  ;;  %7468 = vmatprep.subr.bf16.mxu0 %v2397_v58 }
 0x804   : > { %v2306_v45 = vld [vmem:[#allocation2 + $0x140] sm:$0xff]  ;;  %v2307_v55 = vld [vmem:[#allocation2 + $0x150] sm:$0xff]  ;;  %v2405_v5 = vpack.c.bf16 %v2325_v1, %v2324_v61  ;;  %7496 = vmatprep.subr.bf16.mxu1 %v2413_v62 }
 0x805   : > { %v2338_v63 = vld [vmem:[#allocation2 + $0x340] sm:$0xff]  ;;  %v2339_v2 = vld [vmem:[#allocation2 + $0x350] sm:$0xff]  ;;  %v2396_v6 = vpack.c.bf16 %v2307_v55, %v2306_v45  ;;  %7469 = vmatpush3.bf16.msra.mxu0 %v2389_v3 }
 0x806   : > { %v2290_v4 = vld [vmem:[#allocation2 + $0x40] sm:$0xff]  ;;  %v2291_v7 = vld [vmem:[#allocation2 + $0x50] sm:$0xff]  ;;  %v2412_v10 = vpack.c.bf16 %v2339_v2, %v2338_v63  ;;  %7497 = vmatpush3.bf16.msra.mxu1 %v2405_v5 }
 0x807   : > { %v2322_v8 = vld [vmem:[#allocation2 + $0x240] sm:$0xff]  ;;  %v2323_v9 = vld [vmem:[#allocation2 + $0x250] sm:$0xff]  ;;  %v2388_v26 = vpack.c.bf16 %v2291_v7, %v2290_v4  ;;  %7470 = vmatprep.subr.bf16.mxu0 %v2396_v6 }
 0x808   : > { %v2304_v16 = vld [vmem:[#allocation2 + $0x120] sm:$0xff]  ;;  %v2305_v17 = vld [vmem:[#allocation2 + $0x130] sm:$0xff]  ;;  %v2404_v29 = vpack.c.bf16 %v2323_v9, %v2322_v8  ;;  %7498 = vmatprep.subr.bf16.mxu1 %v2412_v10 }
 0x809   : > { %v2336_v18 = vld [vmem:[#allocation2 + $0x320] sm:$0xff]  ;;  %v2337_v21 = vld [vmem:[#allocation2 + $0x330] sm:$0xff]  ;;  %v2395_v30 = vpack.c.bf16 %v2305_v17, %v2304_v16  ;;  %7471 = vmatpush3.bf16.msra.mxu0 %v2388_v26 }
 0x80a   : > { %v2288_v24 = vld [vmem:[#allocation2 + $0x20] sm:$0xff]  ;;  %v2289_v25 = vld [vmem:[#allocation2 + $0x30] sm:$0xff]  ;;  %v2411_v31 = vpack.c.bf16 %v2337_v21, %v2336_v18  ;;  %7499 = vmatpush3.bf16.msra.mxu1 %v2404_v29 }
 0x80b   : > { %v2320_v12 = vld [vmem:[#allocation2 + $0x220] sm:$0xff]  ;;  %v2321_v27 = vld [vmem:[#allocation2 + $0x230] sm:$0xff]  ;;  %v2387_v14 = vpack.c.bf16 %v2289_v25, %v2288_v24  ;;  %7472 = vmatprep.subr.bf16.mxu0 %v2395_v30 }
 0x80c   : > { %v2302_v28 = vld [vmem:[#allocation2 + $0x100] sm:$0xff]  ;;  %v2303_v19 = vld [vmem:[#allocation2 + $0x110] sm:$0xff]  ;;  %v2403_v33 = vpack.c.bf16 %v2321_v27, %v2320_v12  ;;  %7500 = vmatprep.subr.bf16.mxu1 %v2411_v31 }
 0x80d   : > { %v2334_v22 = vld [vmem:[#allocation2 + $0x300] sm:$0xff]  ;;  %v2335_v20 = vld [vmem:[#allocation2 + $0x310] sm:$0xff]  ;;  %v2394_v23 = vpack.c.bf16 %v2303_v19, %v2302_v28  ;;  %7473 = vmatpush3.bf16.msra.mxu0 %v2387_v14 }
 0x80e   : > { %v8173_v32 = vld [vmem:[%s10044_s11 + $0x4] ss:$28 sps:$4 sm:$0xff]   ;;  %v2287_v35 = vld [vmem:[#allocation2 + $0x10] sm:$0xff]  ;;  %v2410_v13 = vpack.c.bf16 %v2335_v20, %v2334_v22  ;;  %7501 = vmatpush3.bf16.msra.mxu1 %v2403_v33 }
 0x80f   : > { %2560 = vmatprep.mubr.bf16.mxu0 %v8173_v32  ;;  %v2286_v34 = vld [vmem:[#allocation2] sm:$0xff]  ;;  %v2319_v15 = vld [vmem:[#allocation2 + $0x210] sm:$0xff]  ;;  %7474 = vmatprep.subr.bf16.mxu0 %v2394_v23 }
 0x810   : > { %v2318_v36 = vld [vmem:[#allocation2 + $0x200] sm:$0xff]  ;;  %v2381_v38 = vld [vmem:[#allocation2 + $0x5f0] sm:$0xff]  ;;  %v2386_v39 = vpack.c.bf16 %v2287_v35, %v2286_v34  ;;  %7502 = vmatprep.subr.bf16.mxu1 %v2410_v13 }
 0x811   : > { %v2380_v37 = vld [vmem:[#allocation2 + $0x5e0] sm:$0xff]  ;;  %v2402_v40 = vpack.c.bf16 %v2319_v15, %v2318_v36  ;;  %v2365_v43 = vld [vmem:[#allocation2 + $0x4f0] sm:$0xff] }
 0x812   : > { %v2433_v41 = vpack.c.bf16 %v2381_v38, %v2380_v37  ;;  %v2364_v42 = vld [vmem:[#allocation2 + $0x4e0] sm:$0xff]  ;;  %v2379_v46 = vld [vmem:[#allocation2 + $0x5d0] sm:$0xff]  ;;  %7475 = vmatpush3.bf16.msra.mxu0 %v2386_v39 }
 0x813   : > { %v2378_v44 = vld [vmem:[#allocation2 + $0x5c0] sm:$0xff]  ;;  %v2425_v49 = vpack.c.bf16 %v2365_v43, %v2364_v42  ;;  %7503 = vmatpush3.bf16.msra.mxu1 %v2402_v40  ;;  %v2363_v52 = vld [vmem:[#allocation2 + $0x4d0] sm:$0xff]  ;;  %v8188_v40 = vld [vmem:[%s10044_s11 + $0x4c] ss:$28 sps:$4 sm:$0xff]  }
 0x814   : > { %v8171_v47 = vld [vmem:[%s10044_s11] ss:$28 sps:$4 sm:$0xff]   ;;  %v8174_v48 = vld [vmem:[%s10044_s11 + $0x8] ss:$28 sps:$4 sm:$0xff]   ;;  %7516 = vmatprep.subr.bf16.mxu0 %v2433_v41  ;;  %v2432_v50 = vpack.c.bf16 %v2379_v46, %v2378_v44  ;;  %v2377_v56 = vld [vmem:[#allocation2 + $0x5b0] sm:$0xff] }
 0x815   : > { %v2362_v51 = vld [vmem:[#allocation2 + $0x4c0] sm:$0xff]  ;;  %2561 = vmatmul.mubr.bf16.vlgmr.msra.gmra.mxu0 %v8171_v47  ;;  %v2361_v62 = vld [vmem:[#allocation2 + $0x4b0] sm:$0xff] }
 0x816   : > { %v2376_v54 = vld [vmem:[#allocation2 + $0x5a0] sm:$0xff]  ;;  %2610 = vmatmul.mubr.bf16.vlgmr.msra.gmra.mxu1 %v8174_v48  ;;  %7517 = vmatpush3.bf16.msra.mxu0 %v2425_v49  ;;  %v2424_v58 = vpack.c.bf16 %v2363_v52, %v2362_v51  ;;  %v2385_v45 = vld [vmem:[#allocation2 + $0x630] sm:$0xff] }
 0x817   : > { %v8179_v57 = vld [vmem:[%s10044_s11 + $0x44] ss:$28 sps:$4 sm:$0xff]   ;;  %7518 = vmatprep.subr.bf16.mxu0 %v2432_v50  ;;  %v2431_v61 = vpack.c.bf16 %v2377_v56, %v2376_v54  ;;  %2568 = vmatprep.mubr.bf16.mxu0 %v8177_v53  ;;  %v2375_v55 = vld [vmem:[#allocation2 + $0x590] sm:$0xff] }
 0x818   : > { %v2360_v59 = vld [vmem:[#allocation2 + $0x4a0] sm:$0xff]  ;;  %2617 = vmatprep.mubr.bf16.mxu1 %v8179_v57  ;;  %v2359_v3 = vld [vmem:[#allocation2 + $0x490] sm:$0xff] }
 0x819   : > { %v2384_v60 = vld [vmem:[#allocation2 + $0x620] sm:$0xff]  ;;  %v8181_v4 = vld [vmem:[%s10044_s11 + $0x38] ss:$28 sps:$4 sm:$0xff]   ;;  %v2423_v7 = vpack.c.bf16 %v2361_v62, %v2360_v59  ;;  %v8187_v30 = vld [vmem:[%s10044_s11 + $0x50] ss:$28 sps:$4 sm:$0xff]  }
 0x81a   : > { %v2374_v1 = vld [vmem:[#allocation2 + $0x580] sm:$0xff]  ;;  %v2435_v63 = vpack.c.bf16 %v2385_v45, %v2384_v60  ;;  %v2383_v6 = vld [vmem:[#allocation2 + $0x610] sm:$0xff]  ;;  %7519 = vmatpush3.bf16.msra.mxu0 %v2424_v58 }
 0x81b   : > { %v2358_v2 = vld [vmem:[#allocation2 + $0x480] sm:$0xff]  ;;  %v2373_v9 = vld [vmem:[#allocation2 + $0x570] sm:$0xff]  ;;  %7520 = vmatprep.subr.bf16.mxu0 %v2431_v61  ;;  %v2430_v17 = vpack.c.bf16 %v2375_v55, %v2374_v1 }
 0x81c   : > { %v2382_v5 = vld [vmem:[#allocation2 + $0x600] sm:$0xff]  ;;  %7678 = vmatprep.subr.bf16.mxu1 %v2435_v63  ;;  %v8185_v18 = vld [vmem:[%s10044_s11 + $0x14] ss:$28 sps:$4 sm:$0xff]   ;;  %v2422_v24 = vpack.c.bf16 %v2359_v3, %v2358_v2 }
 0x81d   : > { %v2372_v8 = vld [vmem:[#allocation2 + $0x560] sm:$0xff]  ;;  %v2434_v16 = vpack.c.bf16 %v2383_v6, %v2382_v5  ;;  %7679 = vmatpush3.bf16.msra.mxu1 %v2435_v63  ;;  %v8186_v21 = vld [vmem:[%s10044_s11 + $0x18] ss:$28 sps:$4 sm:$0xff]   ;;  %2569 = vmatmul.mubr.bf16.gmra.mxu0 %v8181_v4  ;;  %v8183_v39 = vld [vmem:[%s10044_s11 + $0x10] ss:$28 sps:$4 sm:$0xff]  }
 0x81e   : > { %v8182_v10 = vld [vmem:[%s10044_s11 + $0x40] ss:$28 sps:$4 sm:$0xff]   ;;  %7521 = vmatpush3.bf16.msra.mxu0 %v2423_v7  ;;  %v2429_v25 = vpack.c.bf16 %v2373_v9, %v2372_v8  ;;  %v2357_v12 = vld [vmem:[#allocation2 + $0x470] sm:$0xff]  ;;  %2658 = vmatprep.mubr.bf16.mxu0 %v8185_v18  ;;  %v8190_v41 = vld [vmem:[%s10044_s11 + $0x48] ss:$28 sps:$4 sm:$0xff]  }
 0x81f   : > { %7680 = vmatprep.subr.bf16.mxu1 %v2434_v16  ;;  %2618 = vmatmul.mubr.bf16.gmra.mxu1 %v8182_v10  ;;  %v2356_v26 = vld [vmem:[#allocation2 + $0x460] sm:$0xff]  ;;  %v2371_v28 = vld [vmem:[#allocation2 + $0x550] sm:$0xff] }
 0x820   : > { %7522 = vmatprep.subr.bf16.mxu0 %v2430_v17  ;;  %v2370_v27 = vld [vmem:[#allocation2 + $0x540] sm:$0xff]  ;;  %7682 = vmatprep.mubr.msk.bf16.mxu1 %vm1311_vm4, %v8186_v21  ;;  %v2421_v29 = vpack.c.bf16 %v2357_v12, %v2356_v26  ;;  %v2355_v22 = vld [vmem:[#allocation2 + $0x450] sm:$0xff] }
 0x821   : > { %7681 = vmatpush3.bf16.msra.mxu1 %v2434_v16  ;;  %v2428_v19 = vpack.c.bf16 %v2371_v28, %v2370_v27  ;;  %v2354_v31 = vld [vmem:[#allocation2 + $0x440] sm:$0xff]  ;;  %v2369_v20 = vld [vmem:[#allocation2 + $0x530] sm:$0xff] }
 0x822   : > { %7523 = vmatpush3.bf16.msra.mxu0 %v2422_v24  ;;  %v2368_v32 = vld [vmem:[#allocation2 + $0x520] sm:$0xff]  ;;  %v2420_v11 = vpack.c.bf16 %v2355_v22, %v2354_v31  ;;  %v2353_v23 = vld [vmem:[#allocation2 + $0x430] sm:$0xff] }
 0x823   : > { %7524 = vmatprep.subr.bf16.mxu0 %v2429_v25  ;;  %v2427_v14 = vpack.c.bf16 %v2369_v20, %v2368_v32  ;;  %v2352_v33 = vld [vmem:[#allocation2 + $0x420] sm:$0xff]  ;;  %v2367_v35 = vld [vmem:[#allocation2 + $0x510] sm:$0xff] }
 0x824   : > { %v2366_v34 = vld [vmem:[#allocation2 + $0x500] sm:$0xff]  ;;  %v2419_v36 = vpack.c.bf16 %v2353_v23, %v2352_v33  ;;  %v2351_v37 = vld [vmem:[#allocation2 + $0x410] sm:$0xff] }
 0x825   : > { %v2426_v13 = vpack.c.bf16 %v2367_v35, %v2366_v34  ;;  %v2350_v15 = vld [vmem:[#allocation2 + $0x400] sm:$0xff] }
 0x826   : > { %7525 = vmatpush3.bf16.msra.mxu0 %v2421_v29  ;;  %v2418_v38 = vpack.c.bf16 %v2351_v37, %v2350_v15 }
 0x827   : > { %7683 = vmatmul.mubr.msk.bf16.vlgmr.msra.gmra.mxu1 %vm1311_vm4, %v8187_v30  ;;  %7526 = vmatprep.subr.bf16.mxu0 %v2428_v19 }
 0x82a   : > { %7527 = vmatpush3.bf16.msra.mxu0 %v2420_v11 }
 0x82b   : > { %7528 = vmatprep.subr.bf16.mxu0 %v2427_v14 }
 0x82e   : > { %7529 = vmatpush3.bf16.msra.mxu0 %v2419_v36 }
 0x82f   : > { %7530 = vmatprep.subr.bf16.mxu0 %v2426_v13 }
 0x832   : > { %7531 = vmatpush3.bf16.msra.mxu0 %v2418_v38 }
 0x835   : > { %2659 = vmatmul.mubr.bf16.vlgmr.msra.gmra.mxu0 %v8183_v39 }
 0x836   : > { %2666 = vmatprep.mubr.bf16.mxu0 %v8188_v40 }
 0x83d   : > { %2667 = vmatmul.mubr.bf16.gmra.mxu0 %v8190_v41 }
 0x8d5   : > { %v7476_v42 = vpop.f32.mrf.mxu0 }
 0x8d6   : > { %v7504_v43 = vpop.f32.mrf.mxu1 }
 0x8d7   : > { %v7477_v44 = vpop.f32.mrf.mxu0 }
 0x8d8   : > { %v7505_v46 = vpop.f32.mrf.mxu1  ;;  %v7478_v6 = vadd.f32 %v7477_v44, %v7476_v42 }
 0x8d9   : > { %v7479_v47 = vpop.f32.mrf.mxu0  ;;  %v7506_v7 = vadd.f32 %v7505_v46, %v7504_v43  ;;  %v8631_v43 = vmov 0.0  }
 0x8da   : > { %v7507_v48 = vpop.f32.mrf.mxu1  ;;  %7686 = vmatprep.subr.bf16.mxu1 %v8631_v43  ;;  %7690 = vmatprep.mubr.msk.bf16.mxu1 %vm8632_vm7, %v8631_v43 }
 0x8db   : > { %v7480_v49 = vpop.f32.mrf.mxu0  ;;  %v2612_v27 = vadd.f32 %v7506_v7, %v7478_v6 }
 0x8dc   : > { %v7508_v51 = vpop.f32.mrf.mxu1  ;;  %v7481_v4 = vadd.f32 %v7480_v49, %v7479_v47 }
 0x8dd   : > { %v7482_v50 = vpop.f32.mrf.mxu0  ;;  %v7509_v5 = vadd.f32 %v7508_v51, %v7507_v48 }
 0x8df   : > { %v7510_v52 = vpop.f32.mrf.mxu1  ;;  %v7483_v53 = vpop.f32.mrf.mxu0  ;;  %v2615_v25 = vadd.f32 %v7509_v5, %v7481_v4 }
 0x8e0   : > { %v7484_v45 = vadd.f32 %v7483_v53, %v7482_v50 }
 0x8e1   : > { %v7511_v54 = vpop.f32.mrf.mxu1  ;;  %v7485_v56 = vpop.f32.mrf.mxu0 }
 0x8e2   : > { %v7512_v55 = vadd.f32 %v7511_v54, %v7510_v52 }
 0x8e3   : > { %v7513_v57 = vpop.f32.mrf.mxu1  ;;  %v7486_v58 = vpop.f32.mrf.mxu0 }
 0x8e4   : > { %v2620_v8 = vadd.f32 %v7512_v55, %v7484_v45  ;;  %v7487_v10 = vadd.f32 %v7486_v58, %v7485_v56 }
 0x8e5   : > { %v7514_v60 = vpop.f32.mrf.mxu1 }
 0x8e6   : > { %v7515_v16 = vadd.f32 %v7514_v60, %v7513_v57 }
 0x8e7   : > { %v7684_v1 = vpop.f32.mrf.mxu1 }
 0x8e8   : > { %v2623_v29 = vadd.f32 %v7515_v16, %v7487_v10 }
 0x8e9   : > { %v2709_v2 = vpop.f32.mrf.mxu1 }
 0x8eb   : > { %v7685_v21 = vpop.f32.mrf.mxu1 }
 0x8ed   : > { %v2712_v22 = vpop.f32.mrf.mxu1 }
 0x8f5   : > { %v7532_v59 = vpop.f32.mrf.mxu0 }
 0x8f7   : > { %v7533_v61 = vpop.f32.mrf.mxu0 }
 0x8f8   : > { %v7534_v26 = vadd.f32 %v7533_v61, %v7532_v59 }
 0x8f9   : > { %v7535_v62 = vpop.f32.mrf.mxu0 }
 0x8fa   : > { %v2661_v32 = vadd.f32 %v7534_v26, %v2612_v27 }
 0x8fb   : > { %v7536_v63 = vpop.f32.mrf.mxu0 }
 0x8fc   : > { %v7537_v17 = vadd.f32 %v7536_v63, %v7535_v62  ;;  %v9107_v35 = vadd.f32 %v2709_v2, %v2661_v32 }
 0x8fd   : > { %v7538_v3 = vpop.f32.mrf.mxu0 }
 0x8fe   : > { %v2664_v30 = vadd.f32 %v7537_v17, %v2615_v25  ;;  %v2725_v37 = vsel %vm2281_vm6, %v9107_v35, 0.0  ;;  %v2742_v38 = vmul.f32 %v9107_v35, %v9107_v35 }
 0x8ff   : > { %v7539_v9 = vpop.f32.mrf.mxu0 }
 0x900   : > { %v7540_v18 = vadd.f32 %v7539_v9, %v7538_v3  ;;  %v9102_v33 = vadd.f32 %v2712_v22, %v2664_v30  ;;  %v2746_v41 = vsel %vm2281_vm6, %v2742_v38, 0.0 }
 0x901   : > { %v7541_v24 = vpop.f32.mrf.mxu0 }
 0x902   : > { %v2669_v12 = vadd.f32 %v7540_v18, %v2620_v8  ;;  %v2728_v13 = vsel %vm2281_vm6, %v9102_v33, 0.0  ;;  %v2743_v40 = vmul.f32 %v9102_v33, %v9102_v33 }
 0x903   : > { %v7542_v28 = vpop.f32.mrf.mxu0 }
 0x904   : > { %v7543_v19 = vadd.f32 %v7542_v28, %v7541_v24  ;;  %v9096_v31 = vadd.f32 %v7684_v1, %v2669_v12  ;;  %v2749_v42 = vsel %vm2281_vm6, %v2743_v40, 0.0 }
 0x906   : > { %v2672_v20 = vadd.f32 %v7543_v19, %v2623_v29  ;;  %v2731_v11 = vsel %vm2281_vm6, %v9096_v31, 0.0  ;;  %v2744_v14 = vmul.f32 %v9096_v31, %v9096_v31 }
 0x907   : > { %2732 = vadd.xlane.f32.xlu0 %v2731_v11 }
 0x908   : > { %v9104_v23 = vadd.f32 %v7685_v21, %v2672_v20  ;;  %v2752_v34 = vsel %vm2281_vm6, %v2744_v14, 0.0 }
 0x909   : > { %2753 = vadd.xlane.f32.xlu1 %v2752_v34 }
 0x90a   : > { %v2734_v36 = vsel %vm2281_vm6, %v9104_v23, 0.0  ;;  %v2745_v15 = vmul.f32 %v9104_v23, %v9104_v23 }
 0x90b   : > { %2735 = vadd.xlane.f32.xlu0 %v2734_v36 }
 0x90c   : > { %v2755_v39 = vsel %vm2281_vm6, %v2745_v15, 0.0 }
 0x90d   : > { %2729 = vadd.xlane.f32.xlu1 %v2728_v13 }
 0x90f   : > { %2726 = vadd.xlane.f32.xlu0 %v2725_v37 }
 0x911   : > { %2756 = vadd.xlane.f32.xlu1 %v2755_v39 }
 0x913   : > { %2747 = vadd.xlane.f32.xlu0 %v2746_v41 }
 0x915   : > { %2750 = vadd.xlane.f32.xlu1 %v2749_v42 }
 0x990   : > { %v2733_v44 = vpop.xlane.xlu0 %2732 }
 0x991   : > { %v2740_v46 = vmul.f32 0.25, %v2733_v44 }
 0x992   : > { %v2754_v47 = vpop.xlane.xlu1 %2753 }
 0x993   : > { %v2764_v48 = vmul.f32 %v2740_v46, %v2740_v46  ;;  %v2760_v49 = vmul.f32 0.25, %v2754_v47  ;;  %v2776_v21 = vsub.f32 %v9096_v31, %v2740_v46 }
 0x994   : > { %v2736_v50 = vpop.xlane.xlu0 %2735 }
 0x995   : > { %v2768_v51 = vsub.f32 %v2760_v49, %v2764_v48  ;;  %v2741_v54 = vmul.f32 0.25, %v2736_v50 }
 0x996   : > { %v2730_v52 = vpop.xlane.xlu1 %2729 }
 0x997   : > { %v2772_v53 = vmax.f32 %v2768_v51, 0.0  ;;  %v2739_v58 = vmul.f32 0.25, %v2730_v52  ;;  %v2765_v61 = vmul.f32 %v2741_v54, %v2741_v54  ;;  %v2777_v24 = vsub.f32 %v9104_v23, %v2741_v54  ;;  %v2794_v23 = vld [vmem:[%s10045_s12] sm:$0xf] }
 0x998   : > { %v2727_v56 = vpop.xlane.xlu0 %2726 }
 0x999   : > { %v2738_v57 = vmul.f32 0.25, %v2727_v56  ;;  %v2780_v60 = vadd.f32 1e-05, %v2772_v53  ;;  %v2763_v2 = vmul.f32 %v2739_v58, %v2739_v58  ;;  %v2775_v29 = vsub.f32 %v9102_v33, %v2739_v58 }
 0x99a   : > { %v2757_v59 = vpop.xlane.xlu1 %2756 }
 0x99b   : > { %v2761_v62 = vmul.f32 0.25, %v2757_v59  ;;  %v2762_v45 = vmul.f32 %v2738_v57, %v2738_v57  ;;  %8191 = vrsqrt.f32 %v2780_v60  ;;  %v2774_v12 = vsub.f32 %v9107_v35, %v2738_v57 }
 0x99c   : > { %v2748_v1 = vpop.xlane.xlu0 %2747 }
 0x99d   : > { %v2769_v55 = vsub.f32 %v2761_v62, %v2765_v61  ;;  %v2758_v63 = vmul.f32 0.25, %v2748_v1 }
 0x99e   : > { %v2751_v3 = vpop.xlane.xlu1 %2750 }
 0x99f   : > { %v2773_v4 = vmax.f32 %v2769_v55, 0.0  ;;  %v2766_v5 = vsub.f32 %v2758_v63, %v2762_v45  ;;  %v2759_v6 = vmul.f32 0.25, %v2751_v3 }
 0x9a1   : > { %v2781_v7 = vadd.f32 1e-05, %v2773_v4  ;;  %v2770_v8 = vmax.f32 %v2766_v5, 0.0  ;;  %v2767_v9 = vsub.f32 %v2759_v6, %v2763_v2 }
 0x9a3   : > { %8193 = vrsqrt.f32 %v2781_v7  ;;  %v2778_v10 = vadd.f32 1e-05, %v2770_v8  ;;  %v2771_v16 = vmax.f32 %v2767_v9, 0.0 }
 0x9a5   : > { %8195 = vrsqrt.f32 %v2778_v10  ;;  %v2779_v17 = vadd.f32 1e-05, %v2771_v16 }
 0x9a7   : > { %8197 = vrsqrt.f32 %v2779_v17 }
 0x9a8   : > { %v8192_v18 = vpop.eup %8191 }
 0x9a9   : > { %v2788_v25 = vmul.f32 %v8192_v18, %v2776_v21 }
 0x9ab   : > { %v2792_v30 = vmax.f32 %v2788_v25, 0.0 }
 0x9b0   : > { %v8194_v26 = vpop.eup %8193 }
 0x9b1   : > { %v2789_v27 = vmul.f32 %v8194_v26, %v2777_v24 }
 0x9b2   : > { %v8196_v28 = vpop.eup %8195 }
 0x9b3   : > { %v2793_v19 = vmax.f32 %v2789_v27, 0.0  ;;  %v2786_v22 = vmul.f32 %v8196_v28, %v2774_v12 }
 0x9b4   : > { %v8198_v32 = vpop.eup %8197 }
 0x9b5   : > { %v2796_v20 = vpack.c.bf16 %v2793_v19, %v2792_v30  ;;  %v2787_v11 = vmul.f32 %v8198_v32, %v2775_v29  ;;  %v2790_v14 = vmax.f32 %v2786_v22, 0.0 }
 0x9b7   : > { %7687 = vmatpush3.bf16.msra.mxu1 %v2796_v20  ;;  %v2791_v34 = vmax.f32 %v2787_v11, 0.0 }
 0x9b8   : > { %7688 = vmatprep.subr.bf16.mxu1 %v8631_v43 }
 0x9b9   : > { %v2795_v31 = vpack.c.bf16 %v2791_v34, %v2790_v14 }
 0x9bb   : > { %7689 = vmatpush3.bf16.msra.mxu1 %v2795_v31 }
 0x9be   : > { %7691 = vmatmul.mubr.msk.bf16.vlgmr.msra.gmra.mxu1 %vm1311_vm4, %v2794_v23 }
 0xa7e   : > { %v2834_v35 = vpop.f32.mrf.mxu1 }
 0xa7f   : > { %v2840_v33 = vsub.f32 0.0, %v2834_v35 }
 0xa80   : > { %v7692_v36 = vpop.f32.mrf.mxu1 }
 0xa81   : > { %v2841_v13 = vmul.f32 1.442695, %v2840_v33 }
 0xa82   : > { %v2837_v15 = vpop.f32.mrf.mxu1 }
 0xa83   : > { %8199 = vpow2.f32 %v2841_v13 }
 0xa84   : > { %v7693_v37 = vpop.f32.mrf.mxu1 }
 0xa90   : > { %v8200_v38 = vpop.eup %8199 }
 0xa91   : > { %v2843_v39 = vadd.f32 1.0, %v8200_v38 }
 0xa93   : > { %8201 = vrcp.f32 %v2843_v39 }
 0xaa0   : > { %v8202_v40 = vpop.eup %8201 }
 0xaa1   : > { %v2846_v41 = vmul.f32 4.2, %v8202_v40 }
 0xaa3   : > { %v6897_v42 = vadd.f32 -2.1, %v2846_v41 }
 0xaa5   : > { %v7962_v43 = vcvt.f32.s32 %v6897_v42  ;;  %v7960_v46 = vand.u32 2147483647, %v6897_v42  ;;  %v7965_v48 = vand.u32 2147483648, %v6897_v42 }
 0xaa7   : > { %v7963_v44 = vcvt.s32.f32 %v7962_v43  ;;  %vm7961_vm8 = vcmp.lt.f32.partialorder %v7960_v46, 8388608.0 }
 0xaa9   : > { %v7964_v47 = vand.u32 2147483647, %v7963_v44 }
 0xaab   : > { %v7966_v49 = vor.u32 %v7965_v48, %v7964_v47 }
 0xaad   : > { %v7967_v50 = vsel %vm7961_vm8, %v7966_v49, %v6897_v42 }
 0xaae   : > { %v2849_v51 = vadd.f32 2.0, %v7967_v50  ;;  %v2852_v52 = vpack.c.bf16 %v7967_v50, %v7967_v50 }
 0xab0   : > { %v7968_v53 = vtrunc.f32 %v2849_v51 }
 0xab2   : > { %v7969_v54 = vcvt.f32.s32 %v7968_v53 }
 0xab4   : > { %2851 = vst.msk [vmem:[%s8777_s28] sm:$0xff] %vm2281_vm6, %v7969_v54 }
 0xab5 LB: >> { %v8633_v56 = vmov 0.0   ;;  %vm8634_vm9 = vmmov 0   ;;  %s6898_s5 = sshll.u32 %s8600_s4, 1  ;;  %vm2865_vm10 = vcmask 1041408   ;;  %s10066_s23 = sld [smem:[#allocation10_spill]]  ;;  %s8600_s4 = sphi %s8598_s4, %s2858_s4  }
 0xab6   : >> { %7694 = vmatprep.subr.bf16.mxu0 %v8633_v56  ;;  %7696 = vmatprep.mubr.msk.bf16.mxu0 %vm8634_vm9, %v8633_v56  ;;  %s6900_s28 = sshll.u32 %s8600_s4, 3  ;;  %s2858_s4 = sadd.s32 1, %s8600_s4  }
 0xab7   : >> { %s2910_s24 = sshra.s32 %s6900_s28, 3  ;;  %p2855_p4 = scmp.ge.s32.totalorder %s2858_s4, 25  }
 0xab8   : >> { %s7237_s26 = sshll.u32 %s2910_s24, 4  ;;  %7734 = vmatprep.subr.bf16.mxu1 (%p2855_p4), %v8629_v0  ;;  %v8205_v9 = vld [vmem:[%s10046_s13 + $0x4] ss:$8 sps:$4 sm:$0xff] (%p2855_p4)   ;;  %vm2976_vm11 = vcmask (%p2855_p4), 588800   ;;  %v8208_v10 = vld [vmem:[%s10046_s13 + $0x14] ss:$8 sps:$4 sm:$0xff] (%p2855_p4)  }
 0xab9   : >> { %s2914_s27 = scalar_lea.vmem [#allocation2], %s7237_s26  ;;  %6908 = vmatprep.mubr.msk.bf16.mxu1 (%p2855_p4), %vm2976_vm11, %v8208_v10  ;;  %v8203_v39 = vld [vmem:[%s10046_s13] ss:$8 sps:$4 sm:$0xff] (%p2855_p4)   ;;  %v8206_v40 = vld [vmem:[%s10046_s13 + $0x10] ss:$8 sps:$4 sm:$0xff] (%p2855_p4)  }
 0xabb   : >> { %s2860_s1 = scalar_lea.vmem %s10066_s23, %s6898_s5 }
 0xabc   : >> { %v2861_v57 = vld [vmem:[%s2860_s1] sm:$0x3]  ;;  %s8602_s1 = smov (%p2855_p4), 0  }
 0xabd   : >> { %v2867_v58 = vsel %vm2865_vm10, %v2861_v57, 0 }
 0xabe   : >> { %7695 = vmatpush3.bf16.msra.mxu0 %v2867_v58 }
 0xabf   : > { %2986 = vmatprep.subr.bf16.mxu0 (%p2855_p4), %v8629_v0 }
 0xac1   : >> { %7697 = vmatmul.mubr.msk.bf16.vlgmr.msra.gmra.mxu0 %vm2281_vm6, %v2852_v52 }
 0xac2   : > { %6907 = vmatprep.mubr.msk.bf16.mxu0 (%p2855_p4), %vm2976_vm11, %v8205_v9 }
 0xb81   : >> { %v2903_v59 = vpop.f32.mrf.mxu0 }
 0xb82   : >> { %2915 = vst.msk [vmem:[%s2914_s27] sm:$0xff] %vm1688_vm5, %v2903_v59 }
 0xb83   : >> { %v7698_v60 = vpop.f32.mrf.mxu0  ;;  %2857 = sbr.rel (!%p2855_p4) target bundleno = 2741 (0xab5), region = 270 }
 0xb85   : >> { %v2906_v61 = vpop.f32.mrf.mxu0 }
 0xb87   : >> { %v7699_v62 = vpop.f32.mrf.mxu0 }
 0xb89   : > { %v2930_v1 = vld [vmem:[#allocation2 + $0xe0] sm:$0xff]  ;;  %v2931_v45 = vld [vmem:[#allocation2 + $0xf0] sm:$0xff] }
 0xb8a   : > { %v2928_v55 = vld [vmem:[#allocation2 + $0xc0] sm:$0xff]  ;;  %v2948_v63 = vpack.c.bf16 %v2931_v45, %v2930_v1  ;;  %v2929_v2 = vld [vmem:[#allocation2 + $0xd0] sm:$0xff] }
 0xb8b   : > { %v2947_v3 = vpack.c.bf16 %v2929_v2, %v2928_v55  ;;  %v2926_v4 = vld [vmem:[#allocation2 + $0xa0] sm:$0xff]  ;;  %v2927_v5 = vld [vmem:[#allocation2 + $0xb0] sm:$0xff] }
 0xb8c   : > { %2987 = vmatpush1.bf16.msra.mxu0 %v2948_v63  ;;  %7747 = vmatpush1.bf16.msra.mxu1 %v2948_v63  ;;  %v2946_v6 = vpack.c.bf16 %v2927_v5, %v2926_v4  ;;  %v2924_v7 = vld [vmem:[#allocation2 + $0x80] sm:$0xff]  ;;  %v2925_v8 = vld [vmem:[#allocation2 + $0x90] sm:$0xff] }
 0xb8d   : > { %2988 = vmatprep.subr.bf16.mxu0 %v8629_v0  ;;  %7735 = vmatprep.subr.bf16.mxu1 %v8629_v0  ;;  %v2945_v16 = vpack.c.bf16 %v2925_v8, %v2924_v7  ;;  %v2922_v17 = vld [vmem:[#allocation2 + $0x60] sm:$0xff]  ;;  %v2923_v18 = vld [vmem:[#allocation2 + $0x70] sm:$0xff] }
 0xb8e   : > { %v2944_v21 = vpack.c.bf16 %v2923_v18, %v2922_v17  ;;  %v2920_v24 = vld [vmem:[#allocation2 + $0x40] sm:$0xff]  ;;  %v2921_v25 = vld [vmem:[#allocation2 + $0x50] sm:$0xff] }
 0xb8f   : > { %v2943_v26 = vpack.c.bf16 %v2921_v25, %v2920_v24  ;;  %v2918_v12 = vld [vmem:[#allocation2 + $0x20] sm:$0xff]  ;;  %v2919_v27 = vld [vmem:[#allocation2 + $0x30] sm:$0xff] }
 0xb90   : > { %2989 = vmatpush1.bf16.msra.mxu0 %v2947_v3  ;;  %7748 = vmatpush1.bf16.msra.mxu1 %v2947_v3  ;;  %v2942_v28 = vpack.c.bf16 %v2919_v27, %v2918_v12  ;;  %v2916_v29 = vld [vmem:[#allocation2] sm:$0xff]  ;;  %v2917_v30 = vld [vmem:[#allocation2 + $0x10] sm:$0xff] }
 0xb91   : > { %2990 = vmatprep.subr.bf16.mxu0 %v8629_v0  ;;  %7736 = vmatprep.subr.bf16.mxu1 %v8629_v0  ;;  %v2940_v19 = vld [vmem:[#allocation2 + $0x180] sm:$0xff]  ;;  %v2941_v22 = vpack.c.bf16 %v2917_v30, %v2916_v29  ;;  %v2939_v14 = vld [vmem:[#allocation2 + $0x170] sm:$0xff] }
 0xb92   : > { %v2953_v32 = vpack.c.bf16 %v2940_v19, %v2940_v19  ;;  %v2938_v11 = vld [vmem:[#allocation2 + $0x160] sm:$0xff]  ;;  %v2937_v23 = vld [vmem:[#allocation2 + $0x150] sm:$0xff] }
 0xb93   : > { %v2952_v34 = vpack.c.bf16 %v2939_v14, %v2938_v11  ;;  %v2936_v31 = vld [vmem:[#allocation2 + $0x140] sm:$0xff]  ;;  %v2935_v36 = vld [vmem:[#allocation2 + $0x130] sm:$0xff] }
 0xb94   : > { %2991 = vmatpush1.bf16.msra.mxu0 %v2946_v6  ;;  %7749 = vmatpush1.bf16.msra.mxu1 %v2946_v6  ;;  %v2984_v20 = vsel %vm727_vm0, %v2953_v32, 0  ;;  %v2951_v35 = vpack.c.bf16 %v2937_v23, %v2936_v31  ;;  %v2934_v33 = vld [vmem:[#allocation2 + $0x120] sm:$0xff]  ;;  %v2933_v37 = vld [vmem:[#allocation2 + $0x110] sm:$0xff] }
 0xb95   : > { %2992 = vmatprep.subr.bf16.mxu0 %v8629_v0  ;;  %7737 = vmatprep.subr.bf16.mxu1 %v8629_v0  ;;  %v2950_v13 = vpack.c.bf16 %v2935_v36, %v2934_v33  ;;  %v2932_v15 = vld [vmem:[#allocation2 + $0x100] sm:$0xff] }
 0xb96   : > { %v2949_v38 = vpack.c.bf16 %v2933_v37, %v2932_v15 }
 0xb98   : > { %2993 = vmatpush1.bf16.msra.mxu0 %v2945_v16  ;;  %7750 = vmatpush1.bf16.msra.mxu1 %v2945_v16 }
 0xb99   : > { %2994 = vmatprep.subr.bf16.mxu0 %v8629_v0  ;;  %7738 = vmatprep.subr.bf16.mxu1 %v8629_v0 }
 0xb9c   : > { %2995 = vmatpush1.bf16.msra.mxu0 %v2944_v21  ;;  %7751 = vmatpush1.bf16.msra.mxu1 %v2944_v21 }
 0xb9d   : > { %2996 = vmatprep.subr.bf16.mxu0 %v8629_v0  ;;  %7739 = vmatprep.subr.bf16.mxu1 %v8629_v0 }
 0xba0   : > { %2997 = vmatpush1.bf16.msra.mxu0 %v2943_v26  ;;  %7752 = vmatpush1.bf16.msra.mxu1 %v2943_v26 }
 0xba1   : > { %2998 = vmatprep.subr.bf16.mxu0 %v8629_v0  ;;  %7740 = vmatprep.subr.bf16.mxu1 %v8629_v0 }
 0xba4   : > { %2999 = vmatpush1.bf16.msra.mxu0 %v2942_v28  ;;  %7753 = vmatpush1.bf16.msra.mxu1 %v2942_v28 }
 0xba5   : > { %3000 = vmatprep.subr.bf16.mxu0 %v8629_v0  ;;  %7741 = vmatprep.subr.bf16.mxu1 %v8629_v0 }
 0xba8   : > { %3001 = vmatpush1.bf16.msra.mxu0 %v2941_v22  ;;  %7754 = vmatpush1.bf16.msra.mxu1 %v2941_v22 }
 0xba9   : > { %3008 = vmatprep.subr.bf16.mxu0 %v8629_v0  ;;  %7742 = vmatprep.subr.bf16.mxu1 %v8629_v0 }
 0xbac   : > { %3009 = vmatpush2.bf16.msra.mxu0 %v2984_v20  ;;  %7755 = vmatpush2.bf16.msra.mxu1 %v2984_v20 }
 0xbad   : > { %3010 = vmatprep.subr.bf16.mxu0 %v8629_v0  ;;  %7743 = vmatprep.subr.bf16.mxu1 %v8629_v0 }
 0xbb0   : > { %3011 = vmatpush2.bf16.msra.mxu0 %v2952_v34  ;;  %7756 = vmatpush2.bf16.msra.mxu1 %v2952_v34 }
 0xbb1   : > { %3012 = vmatprep.subr.bf16.mxu0 %v8629_v0  ;;  %7744 = vmatprep.subr.bf16.mxu1 %v8629_v0 }
 0xbb4   : > { %3013 = vmatpush2.bf16.msra.mxu0 %v2951_v35  ;;  %7757 = vmatpush2.bf16.msra.mxu1 %v2951_v35 }
 0xbb5   : > { %3014 = vmatprep.subr.bf16.mxu0 %v8629_v0  ;;  %7745 = vmatprep.subr.bf16.mxu1 %v8629_v0 }
 0xbb8   : > { %3015 = vmatpush2.bf16.msra.mxu0 %v2950_v13  ;;  %7758 = vmatpush2.bf16.msra.mxu1 %v2950_v13 }
 0xbb9   : > { %3016 = vmatprep.subr.bf16.mxu0 %v8629_v0  ;;  %7746 = vmatprep.subr.bf16.mxu1 %v8629_v0 }
 0xbbc   : > { %3017 = vmatpush2.bf16.msra.mxu0 %v2949_v38  ;;  %7759 = vmatpush2.bf16.msra.mxu1 %v2949_v38 }
 0xbbf   : > { %3019 = vmatmul.mubr.bf16.vlgmr.msra.gmra.mxu0 %v8203_v39  ;;  %3027 = vmatmul.mubr.bf16.vlgmr.msra.gmra.mxu1 %v8206_v40 }
 0xc7f   : > { %v9178_v41 = vpop.f32.mrf.mxu0  ;;  %v9180_v42 = vpop.f32.mrf.mxu1 }
 0xc80   : > { %v3041_v43 = vsel %vm1688_vm5, %v9180_v42, 0.0  ;;  %v3035_v44 = vsel %vm1688_vm5, %v9178_v41, 0.0  ;;  %v3051_v46 = vmul.f32 %v9178_v41, %v9178_v41  ;;  %v3053_v60 = vmul.f32 %v9180_v42, %v9180_v42 }
 0xc81   : > { %3042 = vadd.xlane.f32.xlu1 %v3041_v43  ;;  %v3030_v47 = vpop.f32.mrf.mxu1  ;;  %3036 = vadd.xlane.f32.xlu0 %v3035_v44  ;;  %v3022_v48 = vpop.f32.mrf.mxu0 }
 0xc82   : > { %v3055_v52 = vsel %vm1688_vm5, %v3051_v46, 0.0  ;;  %v3061_v62 = vsel %vm1688_vm5, %v3053_v60, 0.0 }
 0xc83   : > { %v3023_v49 = vpop.f32.mrf.mxu0  ;;  %v9188_v50 = vpop.f32.mrf.mxu1 }
 0xc84   : > { %v3044_v51 = vsel %vm1688_vm5, %v9188_v50, 0.0  ;;  %v3052_v53 = vmul.f32 %v3023_v49, %v3023_v49  ;;  %v3038_v58 = vsel %vm1688_vm5, %v3023_v49, 0.0  ;;  %v3054_v59 = vmul.f32 %v9188_v50, %v9188_v50 }
 0xc85   : > { %3045 = vadd.xlane.f32.xlu1 %v3044_v51  ;;  %v3033_v54 = vpop.f32.mrf.mxu1  ;;  %3056 = vadd.xlane.f32.xlu0 %v3055_v52  ;;  %v3025_v56 = vpop.f32.mrf.mxu0 }
 0xc86   : > { %v3058_v57 = vsel %vm1688_vm5, %v3052_v53, 0.0  ;;  %v3064_v61 = vsel %vm1688_vm5, %v3054_v59, 0.0 }
 0xc89   : > { %3059 = vadd.xlane.f32.xlu1 %v3058_v57  ;;  %3039 = vadd.xlane.f32.xlu0 %v3038_v58 }
 0xc8d   : > { %3065 = vadd.xlane.f32.xlu1 %v3064_v61  ;;  %3062 = vadd.xlane.f32.xlu0 %v3061_v62 }
 0xd0a   : > { %v3043_v1 = vpop.xlane.xlu1 %3042  ;;  %v3037_v45 = vpop.xlane.xlu0 %3036 }
 0xd0b   : > { %v3047_v55 = vmul.f32 0.0625, %v3037_v45  ;;  %v3049_v6 = vmul.f32 0.0625, %v3043_v1 }
 0xd0d   : > { %v3071_v3 = vmul.f32 %v3047_v55, %v3047_v55  ;;  %v3073_v24 = vmul.f32 %v3049_v6, %v3049_v6  ;;  %v3083_v23 = vsub.f32 %v9178_v41, %v3047_v55  ;;  %v3085_v38 = vsub.f32 %v9180_v42, %v3049_v6 }
 0xd0e   : > { %v3046_v63 = vpop.xlane.xlu1 %3045  ;;  %v3057_v2 = vpop.xlane.xlu0 %3056 }
 0xd0f   : > { %v3067_v4 = vmul.f32 0.0625, %v3057_v2  ;;  %v3050_v9 = vmul.f32 0.0625, %v3046_v63 }
 0xd11   : > { %v3075_v5 = vsub.f32 %v3067_v4, %v3071_v3  ;;  %v3074_v12 = vmul.f32 %v3050_v9, %v3050_v9  ;;  %v3086_v13 = vsub.f32 %v9188_v50, %v3050_v9 }
 0xd12   : > { %v3060_v7 = vpop.xlane.xlu1 %3059  ;;  %v3040_v8 = vpop.xlane.xlu0 %3039 }
 0xd13   : > { %v3079_v10 = vmax.f32 %v3075_v5, 0.0  ;;  %v3048_v16 = vmul.f32 0.0625, %v3040_v8  ;;  %v3068_v18 = vmul.f32 0.0625, %v3060_v7 }
 0xd15   : > { %v3087_v17 = vadd.f32 1e-05, %v3079_v10  ;;  %v3072_v21 = vmul.f32 %v3048_v16, %v3048_v16  ;;  %v3084_v33 = vsub.f32 %v3023_v49, %v3048_v16 }
 0xd16   : > { %v3066_v25 = vpop.xlane.xlu1 %3065  ;;  %v3063_v26 = vpop.xlane.xlu0 %3062 }
 0xd17   : > { %v3076_v27 = vsub.f32 %v3068_v18, %v3072_v21  ;;  %v3070_v28 = vmul.f32 0.0625, %v3066_v25  ;;  %v3069_v29 = vmul.f32 0.0625, %v3063_v26  ;;  %8209 = vrsqrt.f32 %v3087_v17 }
 0xd19   : > { %v3080_v30 = vmax.f32 %v3076_v27, 0.0  ;;  %v3078_v19 = vsub.f32 %v3070_v28, %v3074_v12  ;;  %v3077_v22 = vsub.f32 %v3069_v29, %v3073_v24 }
 0xd1b   : > { %v3088_v32 = vadd.f32 1e-05, %v3080_v30  ;;  %v3082_v20 = vmax.f32 %v3078_v19, 0.0  ;;  %v3081_v11 = vmax.f32 %v3077_v22, 0.0 }
 0xd1d   : > { %8211 = vrsqrt.f32 %v3088_v32  ;;  %v3090_v14 = vadd.f32 1e-05, %v3082_v20  ;;  %v3089_v34 = vadd.f32 1e-05, %v3081_v11 }
 0xd1f   : > { %8213 = vrsqrt.f32 %v3090_v14 }
 0xd20   : > { %8215 = vrsqrt.f32 %v3089_v34 }
 0xd24   : > { %v8210_v31 = vpop.eup %8209 }
 0xd25   : > { %v3095_v35 = vmul.f32 %v8210_v31, %v3083_v23 }
 0xd27   : > { %v3099_v40 = vmax.f32 %v3095_v35, 0.0 }
 0xd2a   : > { %v8212_v36 = vpop.eup %8211 }
 0xd2b   : > { %v3096_v15 = vmul.f32 %v8212_v36, %v3084_v33 }
 0xd2c   : > { %v8214_v37 = vpop.eup %8213 }
 0xd2d   : > { %v8216_v39 = vpop.eup %8215  ;;  %v3100_v43 = vmax.f32 %v3096_v15, 0.0  ;;  %v3098_v44 = vmul.f32 %v8214_v37, %v3086_v13 }
 0xd2e   : > { %v3097_v46 = vmul.f32 %v8216_v39, %v3085_v38 }
 0xd2f   : > { %v3103_v47 = vpack.c.bf16 %v3100_v43, %v3099_v40  ;;  %v3102_v48 = vmax.f32 %v3098_v44, 0.0 }
 0xd30   : > { %v3101_v51 = vmax.f32 %v3097_v46, 0.0 }
 0xd32   : > { %v3104_v52 = vpack.c.bf16 %v3102_v48, %v3101_v51 }
 0xd33 LB: >> { %7702 = vmatprep.mubr.msk.bf16.mxu0 %vm1688_vm5, %v3103_v47  ;;  %s7238_s28 = sshll.u32 %s8604_s1, 3  ;;  %s10067_s27 = sld [smem:[#allocation11_spill]]  ;;  %s8604_s1 = sphi %s8602_s1, %s3110_s1  }
 0xd34   : >> { %s6914_s29 = sshll.u32 %s8604_s1, 5  ;;  %s3110_s1 = sadd.s32 1, %s8604_s1  }
 0xd35   : >> { %s3178_s0 = sshra.s32 %s6914_s29, 3  ;;  %p3107_p5 = scmp.ge.s32.totalorder %s3110_s1, 25  }
 0xd36   : >> { %s7239_s4 = sshll.u32 %s3178_s0, 4  ;;  %s9285_s23 = smov (%p3107_p5), 0  }
 0xd37   : >> { %s3182_s5 = scalar_lea.vmem [#allocation2], %s7239_s4 }
 0xd39   : >> { %s3113_s3 = scalar_lea.vmem %s10067_s27, %s7238_s28 }
 0xd3a   : >> { %v8217_v41 = vld [vmem:[%s3113_s3] sm:$0xff]  }
 0xd3b   : >> { %7700 = vmatprep.subr.bf16.mxu0 %v8217_v41 }
 0xd3c   : >> { %7701 = vmatpush3.bf16.msra.mxu0 %v8217_v41 }
 0xd3f   : >> { %7703 = vmatmul.mubr.msk.bf16.vlgmr.msra.gmra.mxu0 %vm1688_vm5, %v3104_v52 }
 0xdff   : >> { %v7704_v42 = vpop.f32.mrf.mxu0 }
 0xe00   : >> { %3185 = vst.msk [vmem:[%s3182_s5 + $0x20] sm:$0xff] %vm1070_vm3, %v7704_v42 }
 0xe01   : >> { %v3162_v49 = vpop.f32.mrf.mxu0 }
 0xe02   : >> { %3183 = vst.msk [vmem:[%s3182_s5] sm:$0xff] %vm1070_vm3, %v3162_v49  ;;  %3109 = sbr.rel (!%p3107_p5) target bundleno = 3379 (0xd33), region = 281 }
 0xe03   : >> { %v7705_v50 = vpop.f32.mrf.mxu0 }
 0xe04   : >> { %3186 = vst.msk [vmem:[%s3182_s5 + $0x30] sm:$0xff] %vm1070_vm3, %v7705_v50 }
 0xe05   : >> { %v3165_v53 = vpop.f32.mrf.mxu0 }
 0xe06   : >> { %3184 = vst.msk [vmem:[%s3182_s5 + $0x10] sm:$0xff] %vm1070_vm3, %v3165_v53 }
 0xe0d   : > { %v3217_v54 = vld [vmem:[#allocation2 + $0x1e0] sm:$0xff]  ;;  %v3218_v56 = vld [vmem:[#allocation2 + $0x1f0] sm:$0xff] }
 0xe0e   : > { %v3249_v57 = vld [vmem:[#allocation2 + $0x3e0] sm:$0xff]  ;;  %v3302_v58 = vpack.c.bf16 %v3218_v56, %v3217_v54  ;;  %v3250_v59 = vld [vmem:[#allocation2 + $0x3f0] sm:$0xff] }
 0xe0f   : > { %v3201_v60 = vld [vmem:[#allocation2 + $0xe0] sm:$0xff]  ;;  %v3202_v61 = vld [vmem:[#allocation2 + $0xf0] sm:$0xff]  ;;  %v3318_v62 = vpack.c.bf16 %v3250_v59, %v3249_v57 }
 0xe10   : > { %v3294_v1 = vpack.c.bf16 %v3202_v61, %v3201_v60  ;;  %v3233_v45 = vld [vmem:[#allocation2 + $0x2e0] sm:$0xff]  ;;  %v3234_v55 = vld [vmem:[#allocation2 + $0x2f0] sm:$0xff]  ;;  %7556 = vmatprep.subr.bf16.mxu0 %v3302_v58 }
 0xe11   : > { %v3215_v63 = vld [vmem:[#allocation2 + $0x1c0] sm:$0xff]  ;;  %v3310_v2 = vpack.c.bf16 %v3234_v55, %v3233_v45  ;;  %v3216_v3 = vld [vmem:[#allocation2 + $0x1d0] sm:$0xff]  ;;  %7584 = vmatprep.subr.bf16.mxu1 %v3318_v62 }
 0xe12   : > { %v3247_v4 = vld [vmem:[#allocation2 + $0x3c0] sm:$0xff]  ;;  %v3248_v5 = vld [vmem:[#allocation2 + $0x3d0] sm:$0xff]  ;;  %7557 = vmatpush3.bf16.msra.mxu0 %v3294_v1  ;;  %v3301_v6 = vpack.c.bf16 %v3216_v3, %v3215_v63 }
 0xe13   : > { %v3317_v7 = vpack.c.bf16 %v3248_v5, %v3247_v4  ;;  %v3199_v8 = vld [vmem:[#allocation2 + $0xc0] sm:$0xff]  ;;  %v3200_v9 = vld [vmem:[#allocation2 + $0xd0] sm:$0xff]  ;;  %7585 = vmatpush3.bf16.msra.mxu1 %v3310_v2 }
 0xe14   : > { %v3231_v10 = vld [vmem:[#allocation2 + $0x2c0] sm:$0xff]  ;;  %v3293_v16 = vpack.c.bf16 %v3200_v9, %v3199_v8  ;;  %v3232_v17 = vld [vmem:[#allocation2 + $0x2d0] sm:$0xff]  ;;  %7558 = vmatprep.subr.bf16.mxu0 %v3301_v6 }
 0xe15   : > { %v3213_v18 = vld [vmem:[#allocation2 + $0x1a0] sm:$0xff]  ;;  %v3214_v21 = vld [vmem:[#allocation2 + $0x1b0] sm:$0xff]  ;;  %7586 = vmatprep.subr.bf16.mxu1 %v3317_v7  ;;  %v3309_v24 = vpack.c.bf16 %v3232_v17, %v3231_v10 }
 0xe16   : > { %v3300_v25 = vpack.c.bf16 %v3214_v21, %v3213_v18  ;;  %v3245_v26 = vld [vmem:[#allocation2 + $0x3a0] sm:$0xff]  ;;  %v3246_v12 = vld [vmem:[#allocation2 + $0x3b0] sm:$0xff]  ;;  %7559 = vmatpush3.bf16.msra.mxu0 %v3293_v16  ;;  %v8223_v21 = vld [vmem:[%s10047_s14 + $0xc] ss:$28 sps:$4 sm:$0xff]  }
 0xe17   : > { %v3197_v27 = vld [vmem:[#allocation2 + $0xa0] sm:$0xff]  ;;  %v3316_v28 = vpack.c.bf16 %v3246_v12, %v3245_v26  ;;  %v3198_v29 = vld [vmem:[#allocation2 + $0xb0] sm:$0xff]  ;;  %7587 = vmatpush3.bf16.msra.mxu1 %v3309_v24  ;;  %3510 = vmatprep.mubr.bf16.mxu1 %v8223_v21 }
 0xe18   : > { %v3229_v30 = vld [vmem:[#allocation2 + $0x2a0] sm:$0xff]  ;;  %v3230_v19 = vld [vmem:[#allocation2 + $0x2b0] sm:$0xff]  ;;  %v3292_v22 = vpack.c.bf16 %v3198_v29, %v3197_v27  ;;  %7560 = vmatprep.subr.bf16.mxu0 %v3300_v25 }
 0xe19   : > { %v3211_v32 = vld [vmem:[#allocation2 + $0x180] sm:$0xff]  ;;  %v3212_v20 = vld [vmem:[#allocation2 + $0x190] sm:$0xff]  ;;  %v3308_v14 = vpack.c.bf16 %v3230_v19, %v3229_v30  ;;  %7588 = vmatprep.subr.bf16.mxu1 %v3316_v28 }
 0xe1a   : > { %v3243_v11 = vld [vmem:[#allocation2 + $0x380] sm:$0xff]  ;;  %v3299_v34 = vpack.c.bf16 %v3212_v20, %v3211_v32  ;;  %v3244_v31 = vld [vmem:[#allocation2 + $0x390] sm:$0xff]  ;;  %7561 = vmatpush3.bf16.msra.mxu0 %v3292_v22 }
 0xe1b   : > { %v3195_v23 = vld [vmem:[#allocation2 + $0x80] sm:$0xff]  ;;  %v3196_v35 = vld [vmem:[#allocation2 + $0x90] sm:$0xff]  ;;  %v3315_v33 = vpack.c.bf16 %v3244_v31, %v3243_v11  ;;  %7589 = vmatpush3.bf16.msra.mxu1 %v3308_v14 }
 0xe1c   : > { %v3227_v36 = vld [vmem:[#allocation2 + $0x280] sm:$0xff]  ;;  %v3228_v13 = vld [vmem:[#allocation2 + $0x290] sm:$0xff]  ;;  %v3291_v40 = vpack.c.bf16 %v3196_v35, %v3195_v23  ;;  %7562 = vmatprep.subr.bf16.mxu0 %v3299_v34 }
 0xe1d   : > { %v3209_v15 = vld [vmem:[#allocation2 + $0x160] sm:$0xff]  ;;  %v3210_v37 = vld [vmem:[#allocation2 + $0x170] sm:$0xff]  ;;  %v3307_v43 = vpack.c.bf16 %v3228_v13, %v3227_v36  ;;  %7590 = vmatprep.subr.bf16.mxu1 %v3315_v33 }
 0xe1e   : > { %v3241_v38 = vld [vmem:[#allocation2 + $0x360] sm:$0xff]  ;;  %v3242_v39 = vld [vmem:[#allocation2 + $0x370] sm:$0xff]  ;;  %v3298_v44 = vpack.c.bf16 %v3210_v37, %v3209_v15  ;;  %7563 = vmatpush3.bf16.msra.mxu0 %v3291_v40 }
 0xe1f   : > { %v3193_v46 = vld [vmem:[#allocation2 + $0x60] sm:$0xff]  ;;  %v3194_v47 = vld [vmem:[#allocation2 + $0x70] sm:$0xff]  ;;  %v3314_v51 = vpack.c.bf16 %v3242_v39, %v3241_v38  ;;  %7591 = vmatpush3.bf16.msra.mxu1 %v3307_v43  ;;  %v8224_v38 = vld [vmem:[%s10047_s14 + $0x3c] ss:$28 sps:$4 sm:$0xff]  }
 0xe20   : > { %v3225_v48 = vld [vmem:[#allocation2 + $0x260] sm:$0xff]  ;;  %v3226_v52 = vld [vmem:[#allocation2 + $0x270] sm:$0xff]  ;;  %v3290_v53 = vpack.c.bf16 %v3194_v47, %v3193_v46  ;;  %7564 = vmatprep.subr.bf16.mxu0 %v3298_v44 }
 0xe21   : > { %v3207_v41 = vld [vmem:[#allocation2 + $0x140] sm:$0xff]  ;;  %v3208_v42 = vld [vmem:[#allocation2 + $0x150] sm:$0xff]  ;;  %v3306_v56 = vpack.c.bf16 %v3226_v52, %v3225_v48  ;;  %7592 = vmatprep.subr.bf16.mxu1 %v3314_v51 }
 0xe22   : > { %v3239_v49 = vld [vmem:[#allocation2 + $0x340] sm:$0xff]  ;;  %v3240_v50 = vld [vmem:[#allocation2 + $0x350] sm:$0xff]  ;;  %v3297_v57 = vpack.c.bf16 %v3208_v42, %v3207_v41  ;;  %7565 = vmatpush3.bf16.msra.mxu0 %v3290_v53 }
 0xe23   : > { %v3191_v54 = vld [vmem:[#allocation2 + $0x40] sm:$0xff]  ;;  %v3192_v58 = vld [vmem:[#allocation2 + $0x50] sm:$0xff]  ;;  %v3313_v61 = vpack.c.bf16 %v3240_v50, %v3239_v49  ;;  %7593 = vmatpush3.bf16.msra.mxu1 %v3306_v56 }
 0xe24   : > { %v3223_v59 = vld [vmem:[#allocation2 + $0x240] sm:$0xff]  ;;  %v3224_v60 = vld [vmem:[#allocation2 + $0x250] sm:$0xff]  ;;  %v3289_v3 = vpack.c.bf16 %v3192_v58, %v3191_v54  ;;  %7566 = vmatprep.subr.bf16.mxu0 %v3297_v57 }
 0xe25   : > { %v3205_v62 = vld [vmem:[#allocation2 + $0x120] sm:$0xff]  ;;  %v3206_v1 = vld [vmem:[#allocation2 + $0x130] sm:$0xff]  ;;  %v3305_v7 = vpack.c.bf16 %v3224_v60, %v3223_v59  ;;  %7594 = vmatprep.subr.bf16.mxu1 %v3313_v61 }
 0xe26   : > { %v3237_v45 = vld [vmem:[#allocation2 + $0x320] sm:$0xff]  ;;  %v3238_v55 = vld [vmem:[#allocation2 + $0x330] sm:$0xff]  ;;  %v3296_v8 = vpack.c.bf16 %v3206_v1, %v3205_v62  ;;  %7567 = vmatpush3.bf16.msra.mxu0 %v3289_v3 }
 0xe27   : > { %v3189_v63 = vld [vmem:[#allocation2 + $0x20] sm:$0xff]  ;;  %v3190_v2 = vld [vmem:[#allocation2 + $0x30] sm:$0xff]  ;;  %v3312_v10 = vpack.c.bf16 %v3238_v55, %v3237_v45  ;;  %7595 = vmatpush3.bf16.msra.mxu1 %v3305_v7 }
 0xe28   : > { %v3221_v4 = vld [vmem:[#allocation2 + $0x220] sm:$0xff]  ;;  %v3222_v5 = vld [vmem:[#allocation2 + $0x230] sm:$0xff]  ;;  %v3288_v24 = vpack.c.bf16 %v3190_v2, %v3189_v63  ;;  %7568 = vmatprep.subr.bf16.mxu0 %v3296_v8 }
 0xe29   : > { %v3203_v6 = vld [vmem:[#allocation2 + $0x100] sm:$0xff]  ;;  %v3204_v9 = vld [vmem:[#allocation2 + $0x110] sm:$0xff]  ;;  %v3304_v25 = vpack.c.bf16 %v3222_v5, %v3221_v4  ;;  %7596 = vmatprep.subr.bf16.mxu1 %v3312_v10 }
 0xe2a   : > { %v3235_v16 = vld [vmem:[#allocation2 + $0x300] sm:$0xff]  ;;  %v3236_v18 = vld [vmem:[#allocation2 + $0x310] sm:$0xff]  ;;  %v3295_v26 = vpack.c.bf16 %v3204_v9, %v3203_v6  ;;  %7569 = vmatpush3.bf16.msra.mxu0 %v3288_v24 }
 0xe2b   : > { %v8220_v17 = vld [vmem:[%s10047_s14 + $0x4] ss:$28 sps:$4 sm:$0xff]   ;;  %v3188_v27 = vld [vmem:[#allocation2 + $0x10] sm:$0xff]  ;;  %v3311_v29 = vpack.c.bf16 %v3236_v18, %v3235_v16  ;;  %7597 = vmatpush3.bf16.msra.mxu1 %v3304_v25 }
 0xe2c   : > { %3461 = vmatprep.mubr.bf16.mxu0 %v8220_v17  ;;  %v3187_v12 = vld [vmem:[#allocation2] sm:$0xff]  ;;  %v3220_v30 = vld [vmem:[#allocation2 + $0x210] sm:$0xff]  ;;  %7570 = vmatprep.subr.bf16.mxu0 %v3295_v26 }
 0xe2d   : > { %v3219_v28 = vld [vmem:[#allocation2 + $0x200] sm:$0xff]  ;;  %v3282_v22 = vld [vmem:[#allocation2 + $0x5f0] sm:$0xff]  ;;  %v3287_v32 = vpack.c.bf16 %v3188_v27, %v3187_v12  ;;  %7598 = vmatprep.subr.bf16.mxu1 %v3311_v29 }
 0xe2e   : > { %v3281_v19 = vld [vmem:[#allocation2 + $0x5e0] sm:$0xff]  ;;  %v3303_v20 = vpack.c.bf16 %v3220_v30, %v3219_v28  ;;  %v3266_v34 = vld [vmem:[#allocation2 + $0x4f0] sm:$0xff] }
 0xe2f   : > { %v3334_v11 = vpack.c.bf16 %v3282_v22, %v3281_v19  ;;  %v3265_v14 = vld [vmem:[#allocation2 + $0x4e0] sm:$0xff]  ;;  %v3280_v23 = vld [vmem:[#allocation2 + $0x5d0] sm:$0xff]  ;;  %7571 = vmatpush3.bf16.msra.mxu0 %v3287_v32 }
 0xe30   : > { %v3279_v31 = vld [vmem:[#allocation2 + $0x5c0] sm:$0xff]  ;;  %v3326_v36 = vpack.c.bf16 %v3266_v34, %v3265_v14  ;;  %v3264_v15 = vld [vmem:[#allocation2 + $0x4d0] sm:$0xff]  ;;  %7599 = vmatpush3.bf16.msra.mxu1 %v3303_v20  ;;  %v8235_v20 = vld [vmem:[%s10047_s14 + $0x4c] ss:$28 sps:$4 sm:$0xff]  }
 0xe31   : > { %v8218_v35 = vld [vmem:[%s10047_s14] ss:$28 sps:$4 sm:$0xff]   ;;  %v8221_v33 = vld [vmem:[%s10047_s14 + $0x8] ss:$28 sps:$4 sm:$0xff]   ;;  %7612 = vmatprep.subr.bf16.mxu0 %v3334_v11  ;;  %v3333_v37 = vpack.c.bf16 %v3280_v23, %v3279_v31  ;;  %v3286_v40 = vld [vmem:[#allocation2 + $0x630] sm:$0xff] }
 0xe32   : > { %v3263_v13 = vld [vmem:[#allocation2 + $0x4c0] sm:$0xff]  ;;  %v3278_v44 = vld [vmem:[#allocation2 + $0x5b0] sm:$0xff]  ;;  %3462 = vmatmul.mubr.bf16.vlgmr.msra.gmra.mxu0 %v8218_v35 }
 0xe33   : > { %v3285_v39 = vld [vmem:[#allocation2 + $0x620] sm:$0xff]  ;;  %3511 = vmatmul.mubr.bf16.vlgmr.msra.gmra.mxu1 %v8221_v33  ;;  %7613 = vmatpush3.bf16.msra.mxu0 %v3326_v36  ;;  %v3325_v48 = vpack.c.bf16 %v3264_v15, %v3263_v13  ;;  %v3262_v42 = vld [vmem:[#allocation2 + $0x4b0] sm:$0xff] }
 0xe34   : > { %v3277_v43 = vld [vmem:[#allocation2 + $0x5a0] sm:$0xff]  ;;  %v3336_v47 = vpack.c.bf16 %v3286_v40, %v3285_v39  ;;  %7614 = vmatprep.subr.bf16.mxu0 %v3333_v37  ;;  %3469 = vmatprep.mubr.bf16.mxu0 %v8224_v38  ;;  %v3284_v49 = vld [vmem:[#allocation2 + $0x610] sm:$0xff] }
 0xe35   : > { %v8226_v46 = vld [vmem:[%s10047_s14 + $0x44] ss:$28 sps:$4 sm:$0xff]   ;;  %v3332_v52 = vpack.c.bf16 %v3278_v44, %v3277_v43  ;;  %v3276_v53 = vld [vmem:[#allocation2 + $0x590] sm:$0xff] }
 0xe36   : > { %v3283_v51 = vld [vmem:[#allocation2 + $0x600] sm:$0xff]  ;;  %3518 = vmatprep.mubr.bf16.mxu1 %v8226_v46  ;;  %7706 = vmatprep.subr.bf16.mxu1 %v3336_v47  ;;  %v3260_v57 = vld [vmem:[#allocation2 + $0x490] sm:$0xff] }
 0xe37   : > { %v3261_v41 = vld [vmem:[#allocation2 + $0x4a0] sm:$0xff]  ;;  %v3335_v54 = vpack.c.bf16 %v3284_v49, %v3283_v51  ;;  %v8228_v58 = vld [vmem:[%s10047_s14 + $0x38] ss:$28 sps:$4 sm:$0xff]   ;;  %7707 = vmatpush3.bf16.msra.mxu1 %v3336_v47  ;;  %7615 = vmatpush3.bf16.msra.mxu0 %v3325_v48  ;;  %v8231_v8 = vld [vmem:[%s10047_s14 + $0x50] ss:$28 sps:$4 sm:$0xff]  }
 0xe38   : > { %v3275_v50 = vld [vmem:[#allocation2 + $0x580] sm:$0xff]  ;;  %v3324_v59 = vpack.c.bf16 %v3262_v42, %v3261_v41  ;;  %7616 = vmatprep.subr.bf16.mxu0 %v3332_v52  ;;  %v3274_v1 = vld [vmem:[#allocation2 + $0x570] sm:$0xff] }
 0xe39   : > { %v3259_v56 = vld [vmem:[#allocation2 + $0x480] sm:$0xff]  ;;  %7708 = vmatprep.subr.bf16.mxu1 %v3335_v54  ;;  %v3331_v62 = vpack.c.bf16 %v3276_v53, %v3275_v50  ;;  %v8230_v45 = vld [vmem:[%s10047_s14 + $0x18] ss:$28 sps:$4 sm:$0xff]   ;;  %v8232_v32 = vld [vmem:[%s10047_s14 + $0x10] ss:$28 sps:$4 sm:$0xff]  }
 0xe3a   : > { %v3273_v60 = vld [vmem:[#allocation2 + $0x560] sm:$0xff]  ;;  %v8234_v55 = vld [vmem:[%s10047_s14 + $0x14] ss:$28 sps:$4 sm:$0xff]   ;;  %3470 = vmatmul.mubr.bf16.gmra.mxu0 %v8228_v58  ;;  %v3323_v63 = vpack.c.bf16 %v3260_v57, %v3259_v56 }
 0xe3b   : > { %v8229_v61 = vld [vmem:[%s10047_s14 + $0x40] ss:$28 sps:$4 sm:$0xff]   ;;  %7709 = vmatpush3.bf16.msra.mxu1 %v3335_v54  ;;  %7617 = vmatpush3.bf16.msra.mxu0 %v3324_v59  ;;  %v3330_v2 = vpack.c.bf16 %v3274_v1, %v3273_v60  ;;  %v3258_v4 = vld [vmem:[#allocation2 + $0x470] sm:$0xff]  ;;  %v8237_v11 = vld [vmem:[%s10047_s14 + $0x48] ss:$28 sps:$4 sm:$0xff]  }
 0xe3c   : > { %3519 = vmatmul.mubr.bf16.gmra.mxu1 %v8229_v61  ;;  %7618 = vmatprep.subr.bf16.mxu0 %v3331_v62  ;;  %v3257_v3 = vld [vmem:[#allocation2 + $0x460] sm:$0xff]  ;;  %v3272_v6 = vld [vmem:[#allocation2 + $0x550] sm:$0xff] }
 0xe3d   : > { %7710 = vmatprep.mubr.msk.bf16.mxu1 %vm1311_vm4, %v8230_v45  ;;  %v3271_v5 = vld [vmem:[#allocation2 + $0x540] sm:$0xff]  ;;  %3559 = vmatprep.mubr.bf16.mxu0 %v8234_v55  ;;  %v3322_v7 = vpack.c.bf16 %v3258_v4, %v3257_v3  ;;  %v3256_v16 = vld [vmem:[#allocation2 + $0x450] sm:$0xff] }
 0xe3e   : > { %v3329_v9 = vpack.c.bf16 %v3272_v6, %v3271_v5  ;;  %v3255_v10 = vld [vmem:[#allocation2 + $0x440] sm:$0xff]  ;;  %v3270_v18 = vld [vmem:[#allocation2 + $0x530] sm:$0xff] }
 0xe3f   : > { %7619 = vmatpush3.bf16.msra.mxu0 %v3323_v63  ;;  %v3269_v17 = vld [vmem:[#allocation2 + $0x520] sm:$0xff]  ;;  %v3321_v21 = vpack.c.bf16 %v3256_v16, %v3255_v10  ;;  %v3254_v26 = vld [vmem:[#allocation2 + $0x430] sm:$0xff] }
 0xe40   : > { %7620 = vmatprep.subr.bf16.mxu0 %v3330_v2  ;;  %v3328_v24 = vpack.c.bf16 %v3270_v18, %v3269_v17  ;;  %v3253_v25 = vld [vmem:[#allocation2 + $0x420] sm:$0xff]  ;;  %v3268_v27 = vld [vmem:[#allocation2 + $0x510] sm:$0xff] }
 0xe41   : > { %v3267_v12 = vld [vmem:[#allocation2 + $0x500] sm:$0xff]  ;;  %v3320_v28 = vpack.c.bf16 %v3254_v26, %v3253_v25  ;;  %v3252_v19 = vld [vmem:[#allocation2 + $0x410] sm:$0xff] }
 0xe42   : > { %v3327_v29 = vpack.c.bf16 %v3268_v27, %v3267_v12  ;;  %v3251_v30 = vld [vmem:[#allocation2 + $0x400] sm:$0xff] }
 0xe43   : > { %7621 = vmatpush3.bf16.msra.mxu0 %v3322_v7  ;;  %v3319_v22 = vpack.c.bf16 %v3252_v19, %v3251_v30 }
 0xe44   : > { %7711 = vmatmul.mubr.msk.bf16.vlgmr.msra.gmra.mxu1 %vm1311_vm4, %v8231_v8  ;;  %7622 = vmatprep.subr.bf16.mxu0 %v3329_v9 }
 0xe47   : > { %7623 = vmatpush3.bf16.msra.mxu0 %v3321_v21 }
 0xe48   : > { %7624 = vmatprep.subr.bf16.mxu0 %v3328_v24 }
 0xe4b   : > { %7625 = vmatpush3.bf16.msra.mxu0 %v3320_v28 }
 0xe4c   : > { %7626 = vmatprep.subr.bf16.mxu0 %v3327_v29 }
 0xe4f   : > { %7627 = vmatpush3.bf16.msra.mxu0 %v3319_v22 }
 0xe52   : > { %3560 = vmatmul.mubr.bf16.vlgmr.msra.gmra.mxu0 %v8232_v32 }
 0xe53   : > { %3567 = vmatprep.mubr.bf16.mxu0 %v8235_v20 }
 0xe5a   : > { %3568 = vmatmul.mubr.bf16.gmra.mxu0 %v8237_v11 }
 0xef2   : > { %v7572_v34 = vpop.f32.mrf.mxu0 }
 0xef3   : > { %v7600_v14 = vpop.f32.mrf.mxu1 }
 0xef4   : > { %v7573_v23 = vpop.f32.mrf.mxu0 }
 0xef5   : > { %v7601_v31 = vpop.f32.mrf.mxu1  ;;  %v7574_v48 = vadd.f32 %v7573_v23, %v7572_v34 }
 0xef6   : > { %v7575_v33 = vpop.f32.mrf.mxu0  ;;  %v7602_v51 = vadd.f32 %v7601_v31, %v7600_v14 }
 0xef7   : > { %v7603_v35 = vpop.f32.mrf.mxu1 }
 0xef8   : > { %v7576_v13 = vpop.f32.mrf.mxu0  ;;  %v3513_v49 = vadd.f32 %v7602_v51, %v7574_v48 }
 0xef9   : > { %v7604_v36 = vpop.f32.mrf.mxu1  ;;  %v7577_v50 = vadd.f32 %v7576_v13, %v7575_v33 }
 0xefa   : > { %v7578_v37 = vpop.f32.mrf.mxu0  ;;  %v7605_v53 = vadd.f32 %v7604_v36, %v7603_v35 }
 0xefc   : > { %v7606_v15 = vpop.f32.mrf.mxu1  ;;  %v7579_v39 = vpop.f32.mrf.mxu0  ;;  %v3516_v62 = vadd.f32 %v7605_v53, %v7577_v50 }
 0xefd   : > { %v7580_v58 = vadd.f32 %v7579_v39, %v7578_v37 }
 0xefe   : > { %v7607_v38 = vpop.f32.mrf.mxu1  ;;  %v7581_v43 = vpop.f32.mrf.mxu0 }
 0xeff   : > { %v7608_v59 = vadd.f32 %v7607_v38, %v7606_v15 }
 0xf00   : > { %v7609_v40 = vpop.f32.mrf.mxu1  ;;  %v7582_v46 = vpop.f32.mrf.mxu0 }
 0xf01   : > { %v3521_v4 = vadd.f32 %v7608_v59, %v7580_v58  ;;  %v7583_v7 = vadd.f32 %v7582_v46, %v7581_v43 }
 0xf02   : > { %v7610_v44 = vpop.f32.mrf.mxu1 }
 0xf03   : > { %v7611_v8 = vadd.f32 %v7610_v44, %v7609_v40 }
 0xf04   : > { %v7712_v47 = vpop.f32.mrf.mxu1 }
 0xf05   : > { %v3524_v25 = vadd.f32 %v7611_v8, %v7583_v7 }
 0xf06   : > { %v3610_v41 = vpop.f32.mrf.mxu1 }
 0xf08   : > { %v7713_v60 = vpop.f32.mrf.mxu1 }
 0xf0a   : > { %v3613_v5 = vpop.f32.mrf.mxu1 }
 0xf12   : > { %v7628_v52 = vpop.f32.mrf.mxu0 }
 0xf14   : > { %v7629_v42 = vpop.f32.mrf.mxu0 }
 0xf15   : > { %v7630_v54 = vadd.f32 %v7629_v42, %v7628_v52 }
 0xf16   : > { %v7631_v56 = vpop.f32.mrf.mxu0 }
 0xf17   : > { %v3562_v57 = vadd.f32 %v7630_v54, %v3513_v49 }
 0xf18   : > { %v7632_v61 = vpop.f32.mrf.mxu0 }
 0xf19   : > { %v7633_v1 = vadd.f32 %v7632_v61, %v7631_v56  ;;  %v9257_v45 = vadd.f32 %v3610_v41, %v3562_v57 }
 0xf1a   : > { %v7634_v55 = vpop.f32.mrf.mxu0 }
 0xf1b   : > { %v3565_v63 = vadd.f32 %v7633_v1, %v3516_v62  ;;  %v3625_v2 = vsel %vm1070_vm3, %v9257_v45, 0.0  ;;  %v3641_v3 = vmul.f32 %v9257_v45, %v9257_v45 }
 0xf1c   : > { %v7635_v6 = vpop.f32.mrf.mxu0  ;;  %3626 = vadd.xlane.f32.xlu0 %v3625_v2 }
 0xf1d   : > { %v9263_v9 = vadd.f32 %v3613_v5, %v3565_v63  ;;  %v7636_v10 = vadd.f32 %v7635_v6, %v7634_v55  ;;  %v3645_v18 = vsel %vm1070_vm3, %v3641_v3, 0.0 }
 0xf1e   : > { %v7637_v16 = vpop.f32.mrf.mxu0 }
 0xf1f   : > { %v3570_v17 = vadd.f32 %v7636_v10, %v3521_v4  ;;  %v3642_v21 = vmul.f32 %v9263_v9, %v9263_v9  ;;  %v3628_v29 = vsel %vm1070_vm3, %v9263_v9, 0.0 }
 0xf20   : > { %v7638_v24 = vpop.f32.mrf.mxu0  ;;  %3646 = vadd.xlane.f32.xlu0 %v3645_v18 }
 0xf21   : > { %v9268_v26 = vadd.f32 %v7712_v47, %v3570_v17  ;;  %v7639_v12 = vadd.f32 %v7638_v24, %v7637_v16  ;;  %v3648_v27 = vsel %vm1070_vm3, %v3642_v21, 0.0 }
 0xf22   : > { %3649 = vadd.xlane.f32.xlu1 %v3648_v27 }
 0xf23   : > { %v3573_v28 = vadd.f32 %v7639_v12, %v3524_v25  ;;  %v3643_v30 = vmul.f32 %v9268_v26, %v9268_v26  ;;  %v3631_v22 = vsel %vm1070_vm3, %v9268_v26, 0.0 }
 0xf24   : > { %3629 = vadd.xlane.f32.xlu0 %v3628_v29 }
 0xf25   : > { %v3622_v19 = vadd.f32 %v7713_v60, %v3573_v28  ;;  %v3651_v32 = vsel %vm1070_vm3, %v3643_v30, 0.0 }
 0xf26   : > { %3632 = vadd.xlane.f32.xlu1 %v3631_v22 }
 0xf27   : > { %v3634_v20 = vsel %vm1070_vm3, %v3622_v19, 0.0  ;;  %v3644_v11 = vmul.f32 %v3622_v19, %v3622_v19 }
 0xf28   : > { %3652 = vadd.xlane.f32.xlu0 %v3651_v32 }
 0xf29   : > { %v3654_v14 = vsel %vm1070_vm3, %v3644_v11, 0.0 }
 0xf2a   : > { %3635 = vadd.xlane.f32.xlu1 %v3634_v20 }
 0xf2e   : > { %3655 = vadd.xlane.f32.xlu1 %v3654_v14 }
 0xfa5   : > { %v3627_v34 = vpop.xlane.xlu0 %3626 }
 0xfa6   : > { %v3637_v31 = vmul.f32 0.015625, %v3627_v34 }
 0xfa8   : > { %v3661_v35 = vmul.f32 %v3637_v31, %v3637_v31  ;;  %v3673_v55 = vsub.f32 %v9257_v45, %v3637_v31 }
 0xfa9   : > { %v3647_v23 = vpop.xlane.xlu0 %3646 }
 0xfaa   : > { %v3657_v33 = vmul.f32 0.015625, %v3647_v23 }
 0xfab   : > { %v3650_v36 = vpop.xlane.xlu1 %3649 }
 0xfac   : > { %v3665_v13 = vsub.f32 %v3657_v33, %v3661_v35  ;;  %v3658_v43 = vmul.f32 0.015625, %v3650_v36 }
 0xfad   : > { %v3630_v15 = vpop.xlane.xlu0 %3629 }
 0xfae   : > { %v3669_v37 = vmax.f32 %v3665_v13, 0.0  ;;  %v3638_v38 = vmul.f32 0.015625, %v3630_v15 }
 0xfaf   : > { %v3633_v39 = vpop.xlane.xlu1 %3632 }
 0xfb0   : > { %v3677_v40 = vadd.f32 1e-05, %v3669_v37  ;;  %v3662_v44 = vmul.f32 %v3638_v38, %v3638_v38  ;;  %v3639_v46 = vmul.f32 0.015625, %v3633_v39  ;;  %v3674_v2 = vsub.f32 %v9263_v9, %v3638_v38 }
 0xfb1   : > { %v3653_v47 = vpop.xlane.xlu0 %3652 }
 0xfb2   : > { %v3666_v48 = vsub.f32 %v3658_v43, %v3662_v44  ;;  %v3663_v51 = vmul.f32 %v3639_v46, %v3639_v46  ;;  %v3659_v52 = vmul.f32 0.015625, %v3653_v47  ;;  %8238 = vrsqrt.f32 %v3677_v40 }
 0xfb3   : > { %v3636_v41 = vpop.xlane.xlu1 %3635  ;;  %v3675_v10 = vsub.f32 %v9268_v26, %v3639_v46 }
 0xfb4   : > { %v3670_v42 = vmax.f32 %v3666_v48, 0.0  ;;  %v3640_v49 = vmul.f32 0.015625, %v3636_v41  ;;  %v3667_v50 = vsub.f32 %v3659_v52, %v3663_v51 }
 0xfb6   : > { %v3678_v53 = vadd.f32 1e-05, %v3670_v42  ;;  %v3671_v54 = vmax.f32 %v3667_v50, 0.0  ;;  %v3664_v57 = vmul.f32 %v3640_v49, %v3640_v49  ;;  %v3676_v17 = vsub.f32 %v3622_v19, %v3640_v49 }
 0xfb7   : > { %v3656_v56 = vpop.xlane.xlu1 %3655 }
 0xfb8   : > { %8240 = vrsqrt.f32 %v3678_v53  ;;  %v3660_v58 = vmul.f32 0.015625, %v3656_v56  ;;  %v3679_v59 = vadd.f32 1e-05, %v3671_v54 }
 0xfba   : > { %v3668_v60 = vsub.f32 %v3660_v58, %v3664_v57  ;;  %8242 = vrsqrt.f32 %v3679_v59 }
 0xfbc   : > { %v3672_v61 = vmax.f32 %v3668_v60, 0.0 }
 0xfbe   : > { %v3680_v62 = vadd.f32 1e-05, %v3672_v61 }
 0xfbf   : > { %v8239_v1 = vpop.eup %8238 }
 0xfc0   : > { %8244 = vrsqrt.f32 %v3680_v62  ;;  %v3685_v63 = vmul.f32 %v8239_v1, %v3673_v55 }
 0xfc2   : > { %v3689_v5 = vmax.f32 %v3685_v63, 0.0 }
 0xfc5   : > { %v8241_v3 = vpop.eup %8240 }
 0xfc6   : > { %v3686_v4 = vmul.f32 %v8241_v3, %v3674_v2 }
 0xfc7   : > { %v8243_v7 = vpop.eup %8242 }
 0xfc8   : > { %v3690_v6 = vmax.f32 %v3686_v4, 0.0  ;;  %v3687_v16 = vmul.f32 %v8243_v7, %v3675_v10 }
 0xfca   : > { %v9282_v8 = vpack.c.bf16 %v3690_v6, %v3689_v5  ;;  %v3691_v24 = vmax.f32 %v3687_v16, 0.0 }
 0xfcd   : > { %v8245_v18 = vpop.eup %8244 }
 0xfce   : > { %v3688_v21 = vmul.f32 %v8245_v18, %v3676_v17 }
 0xfd0   : > { %v3692_v25 = vmax.f32 %v3688_v21, 0.0 }
 0xfd2   : > { %v3694_v12 = vpack.c.bf16 %v3692_v25, %v3691_v24 }
 0xfd3 LB: >> { %v8635_v45 = vmov 0   ;;  %s7240_s1 = sshll.u32 %s8608_s23, 6  ;;  %s6945_s24 = sshll.u32 %s8608_s23, 5  ;;  %s8608_s23 = sphi %s9285_s23, %s3700_s23  }
 0xfd4   : >> { %3790 = vmatprep.mubr.bf16.mxu0 %v8635_v45  ;;  %3800 = vmatprep.mubr.bf16.mxu1 %v8635_v45  ;;  %s3703_s28 = scalar_lea.vmem [#allocation3], %s7240_s1  ;;  %s3812_s26 = sshra.s32 %s6945_s24, 3 }
 0xfd5   : >> { %v8246_v9 = vld [vmem:[%s3703_s28 + $0x34] ss:$8 sps:$4 sm:$0xff]   ;;  %v8248_v26 = vld [vmem:[%s3703_s28 + $0x30] ss:$8 sps:$4 sm:$0xff]   ;;  %v8249_v27 = vld [vmem:[%s3703_s28 + $0x24] ss:$8 sps:$4 sm:$0xff]  }
 0xfd6   : >> { %3766 = vmatprep.subr.bf16.mxu0 %v8246_v9  ;;  %7760 = vmatprep.subr.bf16.mxu1 %v8246_v9  ;;  %v8251_v28 = vld [vmem:[%s3703_s28 + $0x20] ss:$8 sps:$4 sm:$0xff]   ;;  %v8252_v29 = vld [vmem:[%s3703_s28 + $0x14] ss:$8 sps:$4 sm:$0xff]   ;;  %v8254_v30 = vld [vmem:[%s3703_s28 + $0x10] ss:$8 sps:$4 sm:$0xff]  }
 0xfd7   : >> { %3767 = vmatpush1.bf16.msra.mxu0 %v8248_v26  ;;  %7764 = vmatpush1.bf16.msra.mxu1 %v8248_v26  ;;  %v8255_v19 = vld [vmem:[%s3703_s28 + $0x4] ss:$8 sps:$4 sm:$0xff]   ;;  %v8257_v22 = vld [vmem:[%s3703_s28] ss:$8 sps:$4 sm:$0xff]   ;;  %s7241_s27 = sshll.u32 %s3812_s26, 4  ;;  %s3700_s23 = sadd.s32 1, %s8608_s23  }
 0xfd8   : >> { %3768 = vmatprep.subr.bf16.mxu0 %v8249_v27  ;;  %7761 = vmatprep.subr.bf16.mxu1 %v8249_v27  ;;  %s3816_s3 = scalar_lea.vmem [#allocation2], %s7241_s27  ;;  %p3697_p6 = scmp.ge.s32.totalorder %s3700_s23, 25  }
 0xfd9   : > { %s9400_s4 = smov (%p3697_p6), 0  }
 0xfdb   : >> { %3769 = vmatpush1.bf16.msra.mxu0 %v8251_v28  ;;  %7765 = vmatpush1.bf16.msra.mxu1 %v8251_v28 }
 0xfdc   : >> { %3770 = vmatprep.subr.bf16.mxu0 %v8252_v29  ;;  %7762 = vmatprep.subr.bf16.mxu1 %v8252_v29 }
 0xfdf   : >> { %3771 = vmatpush1.bf16.msra.mxu0 %v8254_v30  ;;  %7766 = vmatpush1.bf16.msra.mxu1 %v8254_v30 }
 0xfe0   : >> { %3772 = vmatprep.subr.bf16.mxu0 %v8255_v19  ;;  %7763 = vmatprep.subr.bf16.mxu1 %v8255_v19 }
 0xfe3   : >> { %3773 = vmatpush1.bf16.msra.mxu0 %v8257_v22  ;;  %7767 = vmatpush1.bf16.msra.mxu1 %v8257_v22 }
 0xfe6   : >> { %6943 = vmatmul.mubr.msk.bf16.vlgmr.msra.gmra.mxu0 %vm1070_vm3, %v9282_v8  ;;  %6944 = vmatmul.mubr.msk.bf16.vlgmr.msra.gmra.mxu1 %vm1070_vm3, %v3694_v12 }
0x10a6   : >> { %v3792_v32 = vpop.f32.mrf.mxu0  ;;  %v3802_v20 = vpop.f32.mrf.mxu1 }
0x10a7   : >> { %3817 = vst [vmem:[%s3816_s3] sm:$0xff] %v3792_v32  ;;  %3821 = vst [vmem:[%s3816_s3 + $0x20] sm:$0xff] %v3802_v20 }
0x10a8   : >> { %v3794_v11 = vpop.f32.mrf.mxu0  ;;  %v3804_v14 = vpop.f32.mrf.mxu1 }
0x10a9   : >> { %3818 = vst [vmem:[%s3816_s3 + $0x8] sm:$0xff] %v3794_v11  ;;  %3822 = vst [vmem:[%s3816_s3 + $0x28] sm:$0xff] %v3804_v14  ;;  %3699 = sbr.rel (!%p3697_p6) target bundleno = 4051 (0xfd3), region = 292 }
0x10aa   : >> { %v3796_v34 = vpop.f32.mrf.mxu0  ;;  %v3806_v31 = vpop.f32.mrf.mxu1 }
0x10ab   : >> { %3819 = vst [vmem:[%s3816_s3 + $0x10] sm:$0xff] %v3796_v34  ;;  %3823 = vst [vmem:[%s3816_s3 + $0x30] sm:$0xff] %v3806_v31 }
0x10ac   : >> { %v3798_v23 = vpop.f32.mrf.mxu0  ;;  %v3808_v35 = vpop.f32.mrf.mxu1 }
0x10ad   : >> { %3820 = vst [vmem:[%s3816_s3 + $0x18] sm:$0xff] %v3798_v23  ;;  %3824 = vst [vmem:[%s3816_s3 + $0x38] sm:$0xff] %v3808_v35 }
0x10b4   : > { %v3854_v33 = vld [vmem:[#allocation2 + $0xe8] sm:$0xff]  ;;  %v3856_v36 = vld [vmem:[#allocation2 + $0xf8] sm:$0xff]  ;;  %v3853_v38 = vld [vmem:[#allocation2 + $0xe0] sm:$0xff] }
0x10b5   : > { %v3918_v13 = vld [vmem:[#allocation2 + $0x2e8] sm:$0xff]  ;;  %v4040_v15 = vpack.c.bf16 %v3856_v36, %v3854_v33  ;;  %v3920_v37 = vld [vmem:[#allocation2 + $0x2f8] sm:$0xff]  ;;  %v3855_v39 = vld [vmem:[#allocation2 + $0xf0] sm:$0xff] }
0x10b6   : > { %v4072_v40 = vpack.c.bf16 %v3920_v37, %v3918_v13  ;;  %v4039_v43 = vpack.c.bf16 %v3855_v39, %v3853_v38  ;;  %v3917_v44 = vld [vmem:[#allocation2 + $0x2e0] sm:$0xff]  ;;  %v3919_v46 = vld [vmem:[#allocation2 + $0x2f0] sm:$0xff]  ;;  %v3850_v47 = vld [vmem:[#allocation2 + $0xc8] sm:$0xff] }
0x10b7   : > { %4217 = vmatprep.subr.bf16.mxu0 %v4040_v15  ;;  %v4071_v48 = vpack.c.bf16 %v3919_v46, %v3917_v44  ;;  %v3852_v51 = vld [vmem:[#allocation2 + $0xd8] sm:$0xff]  ;;  %v3914_v52 = vld [vmem:[#allocation2 + $0x2c8] sm:$0xff]  ;;  %v3849_v50 = vld [vmem:[#allocation2 + $0xc0] sm:$0xff] }
0x10b8   : > { %v3916_v41 = vld [vmem:[#allocation2 + $0x2d8] sm:$0xff]  ;;  %4270 = vmatprep.subr.bf16.mxu1 %v4072_v40  ;;  %4218 = vmatpush1.bf16.msra.mxu0 %v4039_v43  ;;  %v4038_v42 = vpack.c.bf16 %v3852_v51, %v3850_v47  ;;  %v3851_v53 = vld [vmem:[#allocation2 + $0xd0] sm:$0xff]  ;;  %v3913_v54 = vld [vmem:[#allocation2 + $0x2c0] sm:$0xff] }
0x10b9   : > { %v4070_v49 = vpack.c.bf16 %v3916_v41, %v3914_v52  ;;  %4271 = vmatpush1.bf16.msra.mxu1 %v4071_v48  ;;  %v4037_v56 = vpack.c.bf16 %v3851_v53, %v3849_v50  ;;  %v3915_v57 = vld [vmem:[#allocation2 + $0x2d0] sm:$0xff]  ;;  %v3846_v58 = vld [vmem:[#allocation2 + $0xa8] sm:$0xff]  ;;  %v3848_v59 = vld [vmem:[#allocation2 + $0xb8] sm:$0xff] }
0x10ba   : > { %4219 = vmatprep.subr.bf16.mxu0 %v4038_v42  ;;  %v4069_v60 = vpack.c.bf16 %v3915_v57, %v3913_v54  ;;  %v4036_v61 = vpack.c.bf16 %v3848_v59, %v3846_v58  ;;  %v3910_v62 = vld [vmem:[#allocation2 + $0x2a8] sm:$0xff]  ;;  %v3912_v1 = vld [vmem:[#allocation2 + $0x2b8] sm:$0xff]  ;;  %v3845_v55 = vld [vmem:[#allocation2 + $0xa0] sm:$0xff] }
0x10bb   : > { %4272 = vmatprep.subr.bf16.mxu1 %v4070_v49  ;;  %v4068_v63 = vpack.c.bf16 %v3912_v1, %v3910_v62  ;;  %v3847_v2 = vld [vmem:[#allocation2 + $0xb0] sm:$0xff]  ;;  %v3909_v3 = vld [vmem:[#allocation2 + $0x2a0] sm:$0xff]  ;;  %v3842_v6 = vld [vmem:[#allocation2 + $0x88] sm:$0xff] }
0x10bc   : > { %v3911_v4 = vld [vmem:[#allocation2 + $0x2b0] sm:$0xff]  ;;  %4220 = vmatpush1.bf16.msra.mxu0 %v4037_v56  ;;  %v4035_v5 = vpack.c.bf16 %v3847_v2, %v3845_v55  ;;  %v3844_v7 = vld [vmem:[#allocation2 + $0x98] sm:$0xff]  ;;  %v3906_v8 = vld [vmem:[#allocation2 + $0x288] sm:$0xff] }
0x10bd   : > { %4273 = vmatpush1.bf16.msra.mxu1 %v4069_v60  ;;  %4221 = vmatprep.subr.bf16.mxu0 %v4036_v61  ;;  %v4067_v10 = vpack.c.bf16 %v3911_v4, %v3909_v3  ;;  %v4034_v16 = vpack.c.bf16 %v3844_v7, %v3842_v6  ;;  %v3908_v17 = vld [vmem:[#allocation2 + $0x298] sm:$0xff]  ;;  %v3841_v18 = vld [vmem:[#allocation2 + $0x80] sm:$0xff]  ;;  %v3843_v21 = vld [vmem:[#allocation2 + $0x90] sm:$0xff] }
0x10be   : > { %4274 = vmatprep.subr.bf16.mxu1 %v4068_v63  ;;  %v4066_v24 = vpack.c.bf16 %v3908_v17, %v3906_v8  ;;  %v3905_v25 = vld [vmem:[#allocation2 + $0x280] sm:$0xff]  ;;  %v3907_v12 = vld [vmem:[#allocation2 + $0x290] sm:$0xff]  ;;  %v3838_v45 = vld [vmem:[#allocation2 + $0x68] sm:$0xff]  ;;  %v4033_v28 = vpack.c.bf16 %v3843_v21, %v3841_v18 }
0x10bf   : > { %v3840_v9 = vld [vmem:[#allocation2 + $0x78] sm:$0xff]  ;;  %v3902_v26 = vld [vmem:[#allocation2 + $0x268] sm:$0xff]  ;;  %v4065_v29 = vpack.c.bf16 %v3907_v12, %v3905_v25  ;;  %v3837_v19 = vld [vmem:[#allocation2 + $0x60] sm:$0xff] }
0x10c0   : > { %v3904_v27 = vld [vmem:[#allocation2 + $0x278] sm:$0xff]  ;;  %4222 = vmatpush1.bf16.msra.mxu0 %v4035_v5  ;;  %v4032_v30 = vpack.c.bf16 %v3840_v9, %v3838_v45  ;;  %v3839_v22 = vld [vmem:[#allocation2 + $0x70] sm:$0xff]  ;;  %v3901_v32 = vld [vmem:[#allocation2 + $0x260] sm:$0xff] }
0x10c1   : > { %4275 = vmatpush1.bf16.msra.mxu1 %v4067_v10  ;;  %4223 = vmatprep.subr.bf16.mxu0 %v4034_v16  ;;  %v4064_v20 = vpack.c.bf16 %v3904_v27, %v3902_v26  ;;  %v3903_v11 = vld [vmem:[#allocation2 + $0x270] sm:$0xff]  ;;  %v3834_v14 = vld [vmem:[#allocation2 + $0x48] sm:$0xff]  ;;  %v3836_v34 = vld [vmem:[#allocation2 + $0x58] sm:$0xff]  ;;  %v4031_v35 = vpack.c.bf16 %v3839_v22, %v3837_v19 }
0x10c2   : > { %4276 = vmatprep.subr.bf16.mxu1 %v4066_v24  ;;  %v3898_v31 = vld [vmem:[#allocation2 + $0x248] sm:$0xff]  ;;  %v3900_v23 = vld [vmem:[#allocation2 + $0x258] sm:$0xff]  ;;  %v4063_v33 = vpack.c.bf16 %v3903_v11, %v3901_v32  ;;  %v4030_v36 = vpack.c.bf16 %v3836_v34, %v3834_v14  ;;  %v3833_v13 = vld [vmem:[#allocation2 + $0x40] sm:$0xff] }
0x10c3   : > { %v3835_v15 = vld [vmem:[#allocation2 + $0x50] sm:$0xff]  ;;  %v3897_v37 = vld [vmem:[#allocation2 + $0x240] sm:$0xff]  ;;  %v4062_v38 = vpack.c.bf16 %v3900_v23, %v3898_v31  ;;  %v3830_v40 = vld [vmem:[#allocation2 + $0x28] sm:$0xff] }
0x10c4   : > { %4224 = vmatpush1.bf16.msra.mxu0 %v4033_v28  ;;  %v3899_v39 = vld [vmem:[#allocation2 + $0x250] sm:$0xff]  ;;  %v3832_v43 = vld [vmem:[#allocation2 + $0x38] sm:$0xff]  ;;  %v3894_v44 = vld [vmem:[#allocation2 + $0x228] sm:$0xff]  ;;  %v4029_v47 = vpack.c.bf16 %v3835_v15, %v3833_v13 }
0x10c5   : > { %4277 = vmatpush1.bf16.msra.mxu1 %v4065_v29  ;;  %4225 = vmatprep.subr.bf16.mxu0 %v4032_v30  ;;  %v3896_v46 = vld [vmem:[#allocation2 + $0x238] sm:$0xff]  ;;  %v4061_v48 = vpack.c.bf16 %v3899_v39, %v3897_v37  ;;  %v4028_v51 = vpack.c.bf16 %v3832_v43, %v3830_v40  ;;  %v3829_v52 = vld [vmem:[#allocation2 + $0x20] sm:$0xff]  ;;  %v3831_v41 = vld [vmem:[#allocation2 + $0x30] sm:$0xff] }
0x10c6   : > { %4278 = vmatprep.subr.bf16.mxu1 %v4064_v20  ;;  %v3893_v42 = vld [vmem:[#allocation2 + $0x220] sm:$0xff]  ;;  %v4060_v49 = vpack.c.bf16 %v3896_v46, %v3894_v44  ;;  %v3895_v50 = vld [vmem:[#allocation2 + $0x230] sm:$0xff]  ;;  %v3826_v53 = vld [vmem:[#allocation2 + $0x8] sm:$0xff]  ;;  %v4027_v58 = vpack.c.bf16 %v3831_v41, %v3829_v52 }
0x10c7   : > { %v3828_v54 = vld [vmem:[#allocation2 + $0x18] sm:$0xff]  ;;  %v3890_v56 = vld [vmem:[#allocation2 + $0x208] sm:$0xff]  ;;  %v4059_v59 = vpack.c.bf16 %v3895_v50, %v3893_v42  ;;  %v3825_v61 = vld [vmem:[#allocation2] sm:$0xff] }
0x10c8   : > { %4226 = vmatpush1.bf16.msra.mxu0 %v4031_v35  ;;  %v3892_v57 = vld [vmem:[#allocation2 + $0x218] sm:$0xff]  ;;  %v4026_v60 = vpack.c.bf16 %v3828_v54, %v3826_v53  ;;  %v3827_v62 = vld [vmem:[#allocation2 + $0x10] sm:$0xff]  ;;  %v3889_v1 = vld [vmem:[#allocation2 + $0x200] sm:$0xff] }
0x10c9   : > { %4279 = vmatpush1.bf16.msra.mxu1 %v4063_v33  ;;  %4227 = vmatprep.subr.bf16.mxu0 %v4030_v36  ;;  %v4058_v55 = vpack.c.bf16 %v3892_v57, %v3890_v56  ;;  %v3891_v63 = vld [vmem:[#allocation2 + $0x210] sm:$0xff]  ;;  %v3886_v2 = vld [vmem:[#allocation2 + $0x1e8] sm:$0xff]  ;;  %v3888_v3 = vld [vmem:[#allocation2 + $0x1f8] sm:$0xff]  ;;  %v4025_v6 = vpack.c.bf16 %v3827_v62, %v3825_v61 }
0x10ca   : > { %4280 = vmatprep.subr.bf16.mxu1 %v4062_v38  ;;  %v3950_v4 = vld [vmem:[#allocation2 + $0x3e8] sm:$0xff]  ;;  %v3952_v5 = vld [vmem:[#allocation2 + $0x3f8] sm:$0xff]  ;;  %v4057_v7 = vpack.c.bf16 %v3891_v63, %v3889_v1  ;;  %v4056_v8 = vpack.c.bf16 %v3888_v3, %v3886_v2  ;;  %v3885_v10 = vld [vmem:[#allocation2 + $0x1e0] sm:$0xff] }
0x10cb   : > { %v3887_v16 = vld [vmem:[#allocation2 + $0x1f0] sm:$0xff]  ;;  %v3949_v17 = vld [vmem:[#allocation2 + $0x3e0] sm:$0xff]  ;;  %v4088_v18 = vpack.c.bf16 %v3952_v5, %v3950_v4  ;;  %v3882_v24 = vld [vmem:[#allocation2 + $0x1c8] sm:$0xff] }
0x10cc   : > { %4228 = vmatpush1.bf16.msra.mxu0 %v4029_v47  ;;  %v3951_v21 = vld [vmem:[#allocation2 + $0x3f0] sm:$0xff]  ;;  %v3884_v25 = vld [vmem:[#allocation2 + $0x1d8] sm:$0xff]  ;;  %v3946_v12 = vld [vmem:[#allocation2 + $0x3c8] sm:$0xff]  ;;  %v4055_v9 = vpack.c.bf16 %v3887_v16, %v3885_v10 }
0x10cd   : > { %4281 = vmatpush1.bf16.msra.mxu1 %v4061_v48  ;;  %4229 = vmatprep.subr.bf16.mxu0 %v4028_v51  ;;  %v3948_v45 = vld [vmem:[#allocation2 + $0x3d8] sm:$0xff]  ;;  %v4087_v26 = vpack.c.bf16 %v3951_v21, %v3949_v17  ;;  %v4054_v27 = vpack.c.bf16 %v3884_v25, %v3882_v24  ;;  %v3881_v28 = vld [vmem:[#allocation2 + $0x1c0] sm:$0xff]  ;;  %v3883_v29 = vld [vmem:[#allocation2 + $0x1d0] sm:$0xff] }
0x10ce   : > { %4282 = vmatprep.subr.bf16.mxu1 %v4060_v49  ;;  %v3945_v30 = vld [vmem:[#allocation2 + $0x3c0] sm:$0xff]  ;;  %v4086_v19 = vpack.c.bf16 %v3948_v45, %v3946_v12  ;;  %v3947_v22 = vld [vmem:[#allocation2 + $0x3d0] sm:$0xff]  ;;  %v3878_v32 = vld [vmem:[#allocation2 + $0x1a8] sm:$0xff]  ;;  %v4053_v34 = vpack.c.bf16 %v3883_v29, %v3881_v28 }
0x10cf   : > { %v3880_v20 = vld [vmem:[#allocation2 + $0x1b8] sm:$0xff]  ;;  %v3942_v11 = vld [vmem:[#allocation2 + $0x3a8] sm:$0xff]  ;;  %v4085_v31 = vpack.c.bf16 %v3947_v22, %v3945_v30  ;;  %v3877_v35 = vld [vmem:[#allocation2 + $0x1a0] sm:$0xff] }
0x10d0   : > { %4230 = vmatpush1.bf16.msra.mxu0 %v4027_v58  ;;  %v3944_v14 = vld [vmem:[#allocation2 + $0x3b8] sm:$0xff]  ;;  %v4052_v23 = vpack.c.bf16 %v3880_v20, %v3878_v32  ;;  %v3879_v33 = vld [vmem:[#allocation2 + $0x1b0] sm:$0xff]  ;;  %v3941_v36 = vld [vmem:[#allocation2 + $0x3a0] sm:$0xff] }
0x10d1   : > { %4283 = vmatpush1.bf16.msra.mxu1 %v4059_v59  ;;  %4231 = vmatprep.subr.bf16.mxu0 %v4026_v60  ;;  %v4084_v13 = vpack.c.bf16 %v3944_v14, %v3942_v11  ;;  %v3943_v15 = vld [vmem:[#allocation2 + $0x3b0] sm:$0xff]  ;;  %v3874_v37 = vld [vmem:[#allocation2 + $0x188] sm:$0xff]  ;;  %v3876_v38 = vld [vmem:[#allocation2 + $0x198] sm:$0xff]  ;;  %v4051_v43 = vpack.c.bf16 %v3879_v33, %v3877_v35 }
0x10d2   : > { %4284 = vmatprep.subr.bf16.mxu1 %v4058_v55  ;;  %v3938_v39 = vld [vmem:[#allocation2 + $0x388] sm:$0xff]  ;;  %v3940_v40 = vld [vmem:[#allocation2 + $0x398] sm:$0xff]  ;;  %v3873_v44 = vld [vmem:[#allocation2 + $0x180] sm:$0xff]  ;;  %v4083_v47 = vpack.c.bf16 %v3943_v15, %v3941_v36  ;;  %v4050_v48 = vpack.c.bf16 %v3876_v38, %v3874_v37 }
0x10d3   : > { %v3875_v46 = vld [vmem:[#allocation2 + $0x190] sm:$0xff]  ;;  %v3937_v51 = vld [vmem:[#allocation2 + $0x380] sm:$0xff]  ;;  %v3870_v41 = vld [vmem:[#allocation2 + $0x168] sm:$0xff]  ;;  %v4082_v42 = vpack.c.bf16 %v3940_v40, %v3938_v39 }
0x10d4   : > { %4232 = vmatpush1.bf16.msra.mxu0 %v4025_v6  ;;  %v3939_v52 = vld [vmem:[#allocation2 + $0x390] sm:$0xff]  ;;  %v3872_v49 = vld [vmem:[#allocation2 + $0x178] sm:$0xff]  ;;  %v3934_v50 = vld [vmem:[#allocation2 + $0x368] sm:$0xff]  ;;  %v4049_v56 = vpack.c.bf16 %v3875_v46, %v3873_v44 }
0x10d5   : > { %4285 = vmatpush1.bf16.msra.mxu1 %v4057_v7  ;;  %4233 = vmatprep.subr.bf16.mxu0 %v4056_v8  ;;  %v3936_v53 = vld [vmem:[#allocation2 + $0x378] sm:$0xff]  ;;  %v8260_v54 = vld [vmem:[%s10048_s15 + $0x4] ss:$28 sps:$4 sm:$0xff]   ;;  %v4081_v58 = vpack.c.bf16 %v3939_v52, %v3937_v51  ;;  %v4048_v59 = vpack.c.bf16 %v3872_v49, %v3870_v41  ;;  %v3871_v60 = vld [vmem:[#allocation2 + $0x170] sm:$0xff] }
0x10d6   : > { %4286 = vmatprep.subr.bf16.mxu1 %v4088_v18  ;;  %v3869_v57 = vld [vmem:[#allocation2 + $0x160] sm:$0xff]  ;;  %v8263_v62 = vld [vmem:[%s10048_s15 + $0xc] ss:$28 sps:$4 sm:$0xff]   ;;  %v4080_v1 = vpack.c.bf16 %v3936_v53, %v3934_v50  ;;  %v3935_v55 = vld [vmem:[#allocation2 + $0x370] sm:$0xff]  ;;  %4249 = vmatprep.mubr.bf16.mxu0 %v8260_v54 }
0x10d7   : > { %v3933_v61 = vld [vmem:[#allocation2 + $0x360] sm:$0xff]  ;;  %v3866_v63 = vld [vmem:[#allocation2 + $0x148] sm:$0xff]  ;;  %v3868_v2 = vld [vmem:[#allocation2 + $0x158] sm:$0xff]  ;;  %4302 = vmatprep.mubr.bf16.mxu1 %v8263_v62  ;;  %v4047_v5 = vpack.c.bf16 %v3871_v60, %v3869_v57 }
0x10d8   : > { %4234 = vmatpush2.bf16.msra.mxu0 %v4055_v9  ;;  %v3930_v3 = vld [vmem:[#allocation2 + $0x348] sm:$0xff]  ;;  %v3932_v4 = vld [vmem:[#allocation2 + $0x358] sm:$0xff]  ;;  %v4079_v6 = vpack.c.bf16 %v3935_v55, %v3933_v61  ;;  %v4046_v7 = vpack.c.bf16 %v3868_v2, %v3866_v63  ;;  %v3865_v8 = vld [vmem:[#allocation2 + $0x140] sm:$0xff] }
0x10d9   : > { %4287 = vmatpush2.bf16.msra.mxu1 %v4087_v26  ;;  %4235 = vmatprep.subr.bf16.mxu0 %v4054_v27  ;;  %v3867_v10 = vld [vmem:[#allocation2 + $0x150] sm:$0xff]  ;;  %v3929_v16 = vld [vmem:[#allocation2 + $0x340] sm:$0xff]  ;;  %v4078_v17 = vpack.c.bf16 %v3932_v4, %v3930_v3  ;;  %v3862_v21 = vld [vmem:[#allocation2 + $0x128] sm:$0xff] }
0x10da   : > { %4288 = vmatprep.subr.bf16.mxu1 %v4086_v19  ;;  %v3931_v18 = vld [vmem:[#allocation2 + $0x350] sm:$0xff]  ;;  %v3864_v24 = vld [vmem:[#allocation2 + $0x138] sm:$0xff]  ;;  %v3926_v25 = vld [vmem:[#allocation2 + $0x328] sm:$0xff]  ;;  %v4045_v45 = vpack.c.bf16 %v3867_v10, %v3865_v8 }
0x10db   : > { %v3928_v12 = vld [vmem:[#allocation2 + $0x338] sm:$0xff]  ;;  %v4077_v9 = vpack.c.bf16 %v3931_v18, %v3929_v16  ;;  %v4044_v26 = vpack.c.bf16 %v3864_v24, %v3862_v21  ;;  %v3861_v27 = vld [vmem:[#allocation2 + $0x120] sm:$0xff]  ;;  %v3863_v28 = vld [vmem:[#allocation2 + $0x130] sm:$0xff] }
0x10dc   : > { %4236 = vmatpush2.bf16.msra.mxu0 %v4053_v34  ;;  %v3925_v29 = vld [vmem:[#allocation2 + $0x320] sm:$0xff]  ;;  %v4076_v30 = vpack.c.bf16 %v3928_v12, %v3926_v25  ;;  %v3927_v19 = vld [vmem:[#allocation2 + $0x330] sm:$0xff]  ;;  %v3858_v22 = vld [vmem:[#allocation2 + $0x108] sm:$0xff]  ;;  %v4043_v14 = vpack.c.bf16 %v3863_v28, %v3861_v27 }
0x10dd   : > { %4289 = vmatpush2.bf16.msra.mxu1 %v4085_v31  ;;  %4237 = vmatprep.subr.bf16.mxu0 %v4052_v23  ;;  %v3860_v32 = vld [vmem:[#allocation2 + $0x118] sm:$0xff]  ;;  %v3922_v20 = vld [vmem:[#allocation2 + $0x308] sm:$0xff]  ;;  %v4075_v34 = vpack.c.bf16 %v3927_v19, %v3925_v29  ;;  %v3857_v23 = vld [vmem:[#allocation2 + $0x100] sm:$0xff] }
0x10de   : > { %4290 = vmatprep.subr.bf16.mxu1 %v4084_v13  ;;  %v3924_v11 = vld [vmem:[#allocation2 + $0x318] sm:$0xff]  ;;  %v4042_v31 = vpack.c.bf16 %v3860_v32, %v3858_v22  ;;  %v3859_v35 = vld [vmem:[#allocation2 + $0x110] sm:$0xff]  ;;  %v3921_v33 = vld [vmem:[#allocation2 + $0x300] sm:$0xff] }
0x10df   : > { %v4074_v36 = vpack.c.bf16 %v3924_v11, %v3922_v20  ;;  %v3923_v13 = vld [vmem:[#allocation2 + $0x310] sm:$0xff]  ;;  %v3982_v15 = vld [vmem:[#allocation2 + $0x4e8] sm:$0xff]  ;;  %v3984_v37 = vld [vmem:[#allocation2 + $0x4f8] sm:$0xff]  ;;  %v4041_v38 = vpack.c.bf16 %v3859_v35, %v3857_v23 }
0x10e0   : > { %4238 = vmatpush2.bf16.msra.mxu0 %v4051_v43  ;;  %v4073_v39 = vpack.c.bf16 %v3923_v13, %v3921_v33  ;;  %v8258_v40 = vld [vmem:[%s10048_s15] ss:$28 sps:$4 sm:$0xff]   ;;  %v4104_v43 = vpack.c.bf16 %v3984_v37, %v3982_v15  ;;  %v3983_v46 = vld [vmem:[#allocation2 + $0x4f0] sm:$0xff]  ;;  %v3974_v49 = vld [vmem:[#allocation2 + $0x4a8] sm:$0xff] }
0x10e1   : > { %4291 = vmatpush2.bf16.msra.mxu1 %v4083_v47  ;;  %4239 = vmatprep.subr.bf16.mxu0 %v4050_v48  ;;  %v3981_v44 = vld [vmem:[#allocation2 + $0x4e0] sm:$0xff]  ;;  %v3978_v47 = vld [vmem:[#allocation2 + $0x4c8] sm:$0xff]  ;;  %v3980_v51 = vld [vmem:[#allocation2 + $0x4d8] sm:$0xff] }
0x10e2   : > { %4292 = vmatprep.subr.bf16.mxu1 %v4082_v42  ;;  %v8261_v48 = vld [vmem:[%s10048_s15 + $0x8] ss:$28 sps:$4 sm:$0xff]   ;;  %v4103_v41 = vpack.c.bf16 %v3983_v46, %v3981_v44  ;;  %v3979_v42 = vld [vmem:[#allocation2 + $0x4d0] sm:$0xff]  ;;  %v4102_v53 = vpack.c.bf16 %v3980_v51, %v3978_v47  ;;  %v3976_v54 = vld [vmem:[#allocation2 + $0x4b8] sm:$0xff] }
0x10e3   : > { %v3977_v52 = vld [vmem:[#allocation2 + $0x4c0] sm:$0xff]  ;;  %v4022_v50 = vld [vmem:[#allocation2 + $0x628] sm:$0xff]  ;;  %v4024_v57 = vld [vmem:[#allocation2 + $0x638] sm:$0xff]  ;;  %v4100_v2 = vpack.c.bf16 %v3976_v54, %v3974_v49 }
0x10e4   : > { %4240 = vmatpush2.bf16.msra.mxu0 %v4049_v56  ;;  %v8264_v56 = vld [vmem:[%s10048_s15 + $0x3c] ss:$28 sps:$4 sm:$0xff]   ;;  %v4021_v60 = vld [vmem:[#allocation2 + $0x620] sm:$0xff]  ;;  %v4023_v61 = vld [vmem:[#allocation2 + $0x630] sm:$0xff] }
0x10e5   : > { %4293 = vmatpush2.bf16.msra.mxu1 %v4081_v58  ;;  %4241 = vmatprep.subr.bf16.mxu0 %v4048_v59  ;;  %v8266_v58 = vld [vmem:[%s10048_s15 + $0x44] ss:$28 sps:$4 sm:$0xff]   ;;  %v4124_v59 = vpack.c.bf16 %v4024_v57, %v4022_v50  ;;  %v4123_v62 = vpack.c.bf16 %v4023_v61, %v4021_v60  ;;  %v4018_v63 = vld [vmem:[#allocation2 + $0x608] sm:$0xff]  ;;  %v3975_v3 = vld [vmem:[#allocation2 + $0x4b0] sm:$0xff] }
0x10e6   : > { %4294 = vmatprep.subr.bf16.mxu1 %v4080_v1  ;;  %v4101_v1 = vpack.c.bf16 %v3979_v42, %v3977_v52  ;;  %v3973_v55 = vld [vmem:[#allocation2 + $0x4a0] sm:$0xff]  ;;  %v3970_v4 = vld [vmem:[#allocation2 + $0x488] sm:$0xff]  ;;  %v4019_v10 = vld [vmem:[#allocation2 + $0x610] sm:$0xff] }
0x10e7   : > { %v4017_v8 = vld [vmem:[#allocation2 + $0x600] sm:$0xff]  ;;  %v4099_v21 = vpack.c.bf16 %v3975_v3, %v3973_v55  ;;  %v3971_v24 = vld [vmem:[#allocation2 + $0x490] sm:$0xff]  ;;  %v3966_v25 = vld [vmem:[#allocation2 + $0x468] sm:$0xff] }
0x10e8   : > { %4242 = vmatpush2.bf16.msra.mxu0 %v4047_v5  ;;  %v4020_v5 = vld [vmem:[#allocation2 + $0x618] sm:$0xff]  ;;  %v3969_v16 = vld [vmem:[#allocation2 + $0x480] sm:$0xff]  ;;  %v4121_v18 = vpack.c.bf16 %v4019_v10, %v4017_v8  ;;  %v3962_v19 = vld [vmem:[#allocation2 + $0x448] sm:$0xff] }
0x10e9   : > { %4295 = vmatpush2.bf16.msra.mxu1 %v4079_v6  ;;  %4243 = vmatprep.subr.bf16.mxu0 %v4046_v7  ;;  %v3972_v6 = vld [vmem:[#allocation2 + $0x498] sm:$0xff]  ;;  %v4122_v7 = vpack.c.bf16 %v4020_v5, %v4018_v63  ;;  %v4097_v27 = vpack.c.bf16 %v3971_v24, %v3969_v16  ;;  %v3965_v29 = vld [vmem:[#allocation2 + $0x460] sm:$0xff]  ;;  %v3959_v13 = vld [vmem:[#allocation2 + $0x430] sm:$0xff] }
0x10ea   : > { %4296 = vmatprep.subr.bf16.mxu1 %v4078_v17  ;;  %v8268_v17 = vld [vmem:[%s10048_s15 + $0x38] ss:$28 sps:$4 sm:$0xff]   ;;  %v8269_v12 = vld [vmem:[%s10048_s15 + $0x40] ss:$28 sps:$4 sm:$0xff]   ;;  %v3954_v15 = vld [vmem:[#allocation2 + $0x408] sm:$0xff] }
0x10eb   : > { %v3964_v22 = vld [vmem:[#allocation2 + $0x458] sm:$0xff]  ;;  %v3955_v44 = vld [vmem:[#allocation2 + $0x410] sm:$0xff]  ;;  %v4014_v46 = vld [vmem:[#allocation2 + $0x5e8] sm:$0xff] }
0x10ec   : > { %4244 = vmatpush2.bf16.msra.mxu0 %v4045_v45  ;;  %v4098_v45 = vpack.c.bf16 %v3972_v6, %v3970_v4  ;;  %v8270_v20 = vld [vmem:[%s10048_s15 + $0x18] ss:$28 sps:$4 sm:$0xff]   ;;  %v4094_v11 = vpack.c.bf16 %v3964_v22, %v3962_v19  ;;  %v4013_v52 = vld [vmem:[#allocation2 + $0x5e0] sm:$0xff]  ;;  %v4010_v42 = vld [vmem:[#allocation2 + $0x5c8] sm:$0xff] }
0x10ed   : > { %4297 = vmatpush2.bf16.msra.mxu1 %v4077_v9  ;;  %4245 = vmatprep.subr.bf16.mxu0 %v4044_v26  ;;  %v3968_v9 = vld [vmem:[#allocation2 + $0x478] sm:$0xff]  ;;  %v8273_v26 = vld [vmem:[%s10048_s15 + $0x14] ss:$28 sps:$4 sm:$0xff]   ;;  %v4009_v54 = vld [vmem:[#allocation2 + $0x5c0] sm:$0xff] }
0x10ee   : > { %4298 = vmatprep.subr.bf16.mxu1 %v4076_v30  ;;  %v4096_v28 = vpack.c.bf16 %v3968_v9, %v3966_v25  ;;  %v3967_v30 = vld [vmem:[#allocation2 + $0x470] sm:$0xff]  ;;  %v3960_v23 = vld [vmem:[#allocation2 + $0x438] sm:$0xff]  ;;  %v4006_v57 = vld [vmem:[#allocation2 + $0x5a8] sm:$0xff] }
0x10ef   : > { %v4095_v32 = vpack.c.bf16 %v3967_v30, %v3965_v29  ;;  %v3956_v37 = vld [vmem:[#allocation2 + $0x418] sm:$0xff]  ;;  %v4005_v61 = vld [vmem:[#allocation2 + $0x5a0] sm:$0xff]  ;;  %v4003_v4 = vld [vmem:[#allocation2 + $0x590] sm:$0xff] }
0x10f0   : > { %4246 = vmatpush2.bf16.msra.mxu0 %v4043_v14  ;;  %v3961_v14 = vld [vmem:[#allocation2 + $0x440] sm:$0xff]  ;;  %v4016_v47 = vld [vmem:[#allocation2 + $0x5f8] sm:$0xff]  ;;  %v3998_v5 = vld [vmem:[#allocation2 + $0x568] sm:$0xff] }
0x10f1   : > { %4299 = vmatpush2.bf16.msra.mxu1 %v4075_v34  ;;  %4247 = vmatprep.subr.bf16.mxu0 %v4042_v31  ;;  %v3963_v34 = vld [vmem:[#allocation2 + $0x450] sm:$0xff]  ;;  %v3958_v31 = vld [vmem:[#allocation2 + $0x428] sm:$0xff]  ;;  %v4120_v51 = vpack.c.bf16 %v4016_v47, %v4014_v46  ;;  %v4012_v49 = vld [vmem:[#allocation2 + $0x5d8] sm:$0xff] }
0x10f2   : > { %4300 = vmatprep.subr.bf16.mxu1 %v4074_v36  ;;  %v4093_v35 = vpack.c.bf16 %v3963_v34, %v3961_v14  ;;  %v4092_v33 = vpack.c.bf16 %v3960_v23, %v3958_v31  ;;  %v3957_v36 = vld [vmem:[#allocation2 + $0x420] sm:$0xff]  ;;  %v4004_v55 = vld [vmem:[#allocation2 + $0x598] sm:$0xff]  ;;  %v3999_v16 = vld [vmem:[#allocation2 + $0x570] sm:$0xff] }
0x10f3   : > { %v4001_v3 = vld [vmem:[#allocation2 + $0x580] sm:$0xff]  ;;  %v4000_v6 = vld [vmem:[#allocation2 + $0x578] sm:$0xff]  ;;  %v3991_v29 = vld [vmem:[#allocation2 + $0x530] sm:$0xff] }
0x10f4   : > { %4248 = vmatpush2.bf16.msra.mxu0 %v4041_v38  ;;  %v4091_v38 = vpack.c.bf16 %v3959_v13, %v3957_v36  ;;  %v4112_v8 = vpack.c.bf16 %v4000_v6, %v3998_v5  ;;  %v3997_v10 = vld [vmem:[#allocation2 + $0x560] sm:$0xff]  ;;  %v3992_v9 = vld [vmem:[#allocation2 + $0x538] sm:$0xff]  ;;  %v3986_v30 = vld [vmem:[#allocation2 + $0x508] sm:$0xff] }
0x10f5   : > { %4301 = vmatpush2.bf16.msra.mxu1 %v4073_v39  ;;  %4323 = vmatprep.subr.bf16.mxu0 %v4104_v43  ;;  %v8274_v39 = vld [vmem:[%s10048_s15 + $0x50] ss:$28 sps:$4 sm:$0xff]   ;;  %v3953_v43 = vld [vmem:[#allocation2 + $0x400] sm:$0xff]  ;;  %v3988_v19 = vld [vmem:[#allocation2 + $0x518] sm:$0xff] }
0x10f6   : > { %4388 = vmatprep.subr.bf16.mxu1 %v4124_v59  ;;  %v3993_v25 = vld [vmem:[#allocation2 + $0x540] sm:$0xff]  ;;  %v8271_v34 = vld [vmem:[%s10048_s15 + $0x10] ss:$28 sps:$4 sm:$0xff]  }
0x10f7   : > { %4250 = vmatmul.mubr.bf16.vlgmr.msra.gmra.mxu0 %v8258_v40  ;;  %v4090_v40 = vpack.c.bf16 %v3956_v37, %v3954_v15  ;;  %v8275_v31 = vld [vmem:[%s10048_s15 + $0x4c] ss:$28 sps:$4 sm:$0xff]  }
0x10f8   : > { %4303 = vmatmul.mubr.bf16.vlgmr.msra.gmra.mxu1 %v8261_v48  ;;  %4324 = vmatpush1.bf16.msra.mxu0 %v4103_v41  ;;  %v4089_v48 = vpack.c.bf16 %v3955_v44, %v3953_v43  ;;  %v4015_v41 = vld [vmem:[#allocation2 + $0x5f0] sm:$0xff]  ;;  %v8277_v23 = vld [vmem:[%s10048_s15 + $0x48] ss:$28 sps:$4 sm:$0xff]  }
0x10f9   : > { %4325 = vmatprep.subr.bf16.mxu0 %v4102_v53  ;;  %4259 = vmatprep.mubr.bf16.mxu0 %v8264_v56  ;;  %v4119_v50 = vpack.c.bf16 %v4015_v41, %v4013_v52  ;;  %v4118_v53 = vpack.c.bf16 %v4012_v49, %v4010_v42  ;;  %v4011_v56 = vld [vmem:[#allocation2 + $0x5d0] sm:$0xff] }
0x10fa   : > { %4312 = vmatprep.mubr.bf16.mxu1 %v8266_v58  ;;  %4389 = vmatpush1.bf16.msra.mxu1 %v4123_v62  ;;  %v4008_v58 = vld [vmem:[#allocation2 + $0x5b8] sm:$0xff]  ;;  %v4117_v59 = vpack.c.bf16 %v4011_v56, %v4009_v54  ;;  %v4007_v62 = vld [vmem:[#allocation2 + $0x5b0] sm:$0xff] }
0x10fb   : > { %4390 = vmatprep.subr.bf16.mxu1 %v4122_v7  ;;  %v4116_v60 = vpack.c.bf16 %v4008_v58, %v4006_v57  ;;  %v4115_v63 = vpack.c.bf16 %v4007_v62, %v4005_v61  ;;  %v4113_v7 = vpack.c.bf16 %v4003_v4, %v4001_v3 }
0x10fc   : > { %4326 = vmatpush1.bf16.msra.mxu0 %v4101_v1  ;;  %v4002_v1 = vld [vmem:[#allocation2 + $0x588] sm:$0xff] }
0x10fd   : > { %4327 = vmatprep.subr.bf16.mxu0 %v4100_v2  ;;  %v4114_v2 = vpack.c.bf16 %v4004_v55, %v4002_v1 }
0x10fe   : > { %4391 = vmatpush1.bf16.msra.mxu1 %v4121_v18  ;;  %v3996_v18 = vld [vmem:[#allocation2 + $0x558] sm:$0xff] }
0x10ff   : > { %4260 = vmatmul.mubr.bf16.gmra.mxu0 %v8268_v17  ;;  %v3994_v17 = vld [vmem:[#allocation2 + $0x548] sm:$0xff] }
0x1100   : > { %4328 = vmatpush1.bf16.msra.mxu0 %v4099_v21  ;;  %4313 = vmatmul.mubr.bf16.gmra.mxu1 %v8269_v12  ;;  %v4111_v21 = vpack.c.bf16 %v3999_v16, %v3997_v10  ;;  %v4110_v24 = vpack.c.bf16 %v3996_v18, %v3994_v17  ;;  %v3995_v12 = vld [vmem:[#allocation2 + $0x550] sm:$0xff] }
0x1101   : > { %4329 = vmatprep.subr.bf16.mxu0 %v4098_v45  ;;  %4408 = vmatprep.mubr.bf16.mxu1 %v8629_v0  ;;  %v3990_v45 = vld [vmem:[#allocation2 + $0x528] sm:$0xff] }
0x1102   : > { %4355 = vmatprep.mubr.bf16.mxu0 %v8273_v26  ;;  %v4109_v26 = vpack.c.bf16 %v3995_v12, %v3993_v25 }
0x1104   : > { %4330 = vmatpush1.bf16.msra.mxu0 %v4097_v27  ;;  %v4108_v27 = vpack.c.bf16 %v3992_v9, %v3990_v45 }
0x1105   : > { %4331 = vmatprep.subr.bf16.mxu0 %v4096_v28  ;;  %v3989_v28 = vld [vmem:[#allocation2 + $0x520] sm:$0xff] }
0x1106   : > { %v4107_v22 = vpack.c.bf16 %v3991_v29, %v3989_v28 }
0x1108   : > { %4332 = vmatpush1.bf16.msra.mxu0 %v4095_v32  ;;  %6962 = vmatmul.mubr.msk.bf16.vlgmr.msra.gmra.mxu1 %vm1311_vm4, %v8270_v20  ;;  %v4106_v32 = vpack.c.bf16 %v3988_v19, %v3986_v30  ;;  %v3985_v20 = vld [vmem:[#allocation2 + $0x500] sm:$0xff] }
0x1109   : > { %4333 = vmatprep.subr.bf16.mxu0 %v4094_v11  ;;  %4418 = vmatprep.mubr.bf16.mxu1 %v8629_v0  ;;  %v3987_v11 = vld [vmem:[#allocation2 + $0x510] sm:$0xff] }
0x110a   : > { %v4105_v14 = vpack.c.bf16 %v3987_v11, %v3985_v20 }
0x110c   : > { %4334 = vmatpush1.bf16.msra.mxu0 %v4093_v35 }
0x110d   : > { %4335 = vmatprep.subr.bf16.mxu0 %v4092_v33 }
0x1110   : > { %4336 = vmatpush1.bf16.msra.mxu0 %v4091_v38  ;;  %6963 = vmatmul.mubr.msk.bf16.gmra.mxu1 %vm1311_vm4, %v8274_v39 }
0x1111   : > { %4337 = vmatprep.subr.bf16.mxu0 %v4090_v40 }
0x1114   : > { %4338 = vmatpush1.bf16.msra.mxu0 %v4089_v48 }
0x1115   : > { %4339 = vmatprep.subr.bf16.mxu0 %v4120_v51 }
0x1118   : > { %4340 = vmatpush2.bf16.msra.mxu0 %v4119_v50 }
0x1119   : > { %4341 = vmatprep.subr.bf16.mxu0 %v4118_v53 }
0x111c   : > { %4342 = vmatpush2.bf16.msra.mxu0 %v4117_v59 }
0x111d   : > { %4343 = vmatprep.subr.bf16.mxu0 %v4116_v60 }
0x1120   : > { %4344 = vmatpush2.bf16.msra.mxu0 %v4115_v63 }
0x1121   : > { %4345 = vmatprep.subr.bf16.mxu0 %v4114_v2 }
0x1124   : > { %4346 = vmatpush2.bf16.msra.mxu0 %v4113_v7 }
0x1125   : > { %4347 = vmatprep.subr.bf16.mxu0 %v4112_v8 }
0x1128   : > { %4348 = vmatpush2.bf16.msra.mxu0 %v4111_v21 }
0x1129   : > { %4349 = vmatprep.subr.bf16.mxu0 %v4110_v24 }
0x112c   : > { %4350 = vmatpush2.bf16.msra.mxu0 %v4109_v26 }
0x112d   : > { %4351 = vmatprep.subr.bf16.mxu0 %v4108_v27 }
0x1130   : > { %4352 = vmatpush2.bf16.msra.mxu0 %v4107_v22 }
0x1131   : > { %4353 = vmatprep.subr.bf16.mxu0 %v4106_v32 }
0x1134   : > { %4354 = vmatpush2.bf16.msra.mxu0 %v4105_v14 }
0x1137   : > { %4356 = vmatmul.mubr.bf16.vlgmr.msra.gmra.mxu0 %v8271_v34 }
0x1138   : > { %4365 = vmatprep.mubr.bf16.mxu0 %v8275_v31 }
0x113f   : > { %4366 = vmatmul.mubr.bf16.gmra.mxu0 %v8277_v23 }
0x11b7   : > { %v4251_v13 = vpop.f32.mrf.mxu0 }
0x11b8   : > { %v4304_v35 = vpop.f32.mrf.mxu1 }
0x11b9   : > { %v4253_v37 = vpop.f32.mrf.mxu0  ;;  %v4305_v50 = vadd.f32 %v4304_v35, %v4251_v13 }
0x11ba   : > { %v4306_v33 = vpop.f32.mrf.mxu1 }
0x11bb   : > { %v4255_v39 = vpop.f32.mrf.mxu0  ;;  %v4307_v54 = vadd.f32 %v4306_v33, %v4253_v37 }
0x11bc   : > { %v4308_v36 = vpop.f32.mrf.mxu1 }
0x11bd   : > { %v4257_v43 = vpop.f32.mrf.mxu0  ;;  %v4309_v59 = vadd.f32 %v4308_v36, %v4255_v39 }
0x11be   : > { %v4310_v15 = vpop.f32.mrf.mxu1 }
0x11bf   : > { %v4261_v46 = vpop.f32.mrf.mxu0  ;;  %v4311_v1 = vadd.f32 %v4310_v15, %v4257_v43 }
0x11c0   : > { %v4314_v38 = vpop.f32.mrf.mxu1 }
0x11c1   : > { %v4263_v48 = vpop.f32.mrf.mxu0  ;;  %v4315_v3 = vadd.f32 %v4314_v38, %v4261_v46 }
0x11c2   : > { %v4316_v40 = vpop.f32.mrf.mxu1 }
0x11c3   : > { %v4265_v52 = vpop.f32.mrf.mxu0  ;;  %v4317_v17 = vadd.f32 %v4316_v40, %v4263_v48 }
0x11c4   : > { %v4318_v44 = vpop.f32.mrf.mxu1 }
0x11c5   : > { %v4267_v42 = vpop.f32.mrf.mxu0  ;;  %v4319_v27 = vadd.f32 %v4318_v44, %v4265_v52 }
0x11c6   : > { %v4320_v47 = vpop.f32.mrf.mxu1 }
0x11c7   : > { %v4321_v30 = vadd.f32 %v4320_v47, %v4267_v42 }
0x11c8   : > { %v4410_v51 = vpop.f32.mrf.mxu1 }
0x11ca   : > { %v4412_v41 = vpop.f32.mrf.mxu1 }
0x11cc   : > { %v4414_v49 = vpop.f32.mrf.mxu1 }
0x11ce   : > { %v4416_v58 = vpop.f32.mrf.mxu1 }
0x11d0   : > { %v4420_v62 = vpop.f32.mrf.mxu1 }
0x11d2   : > { %v4422_v16 = vpop.f32.mrf.mxu1 }
0x11d4   : > { %v4424_v28 = vpop.f32.mrf.mxu1 }
0x11d6   : > { %v4426_v23 = vpop.f32.mrf.mxu1 }
0x11f7   : > { %v4357_v53 = vpop.f32.mrf.mxu0 }
0x11f8   : > { %v4358_v56 = vadd.f32 %v4357_v53, %v4305_v50 }
0x11f9   : > { %v4359_v57 = vpop.f32.mrf.mxu0 }
0x11fa   : > { %v4360_v60 = vadd.f32 %v4359_v57, %v4307_v54  ;;  %v9344_v55 = vadd.f32 %v4410_v51, %v4358_v56 }
0x11fb   : > { %v4361_v61 = vpop.f32.mrf.mxu0 }
0x11fc   : > { %v9346_v63 = vadd.f32 %v4412_v41, %v4360_v60  ;;  %v4362_v2 = vadd.f32 %v4361_v61, %v4309_v59  ;;  %v4445_v24 = vmul.f32 %v9344_v55, %v9344_v55 }
0x11fd   : > { %v4363_v4 = vpop.f32.mrf.mxu0 }
0x11fe   : > { %v9348_v5 = vadd.f32 %v4414_v49, %v4362_v2  ;;  %v4364_v6 = vadd.f32 %v4363_v4, %v4311_v1  ;;  %v4429_v7 = vadd.f32 %v9346_v63, %v9344_v55  ;;  %v4446_v8 = vmul.f32 %v9346_v63, %v9346_v63 }
0x11ff   : > { %v4367_v10 = vpop.f32.mrf.mxu0 }
0x1200   : > { %v9354_v18 = vadd.f32 %v4416_v58, %v4364_v6  ;;  %v4368_v21 = vadd.f32 %v4367_v10, %v4315_v3  ;;  %4430 = vadd.xlane.f32.xlu0 %v4429_v7  ;;  %v4453_v45 = vadd.f32 %v4446_v8, %v4445_v24  ;;  %v4447_v9 = vmul.f32 %v9348_v5, %v9348_v5 }
0x1201   : > { %v4369_v25 = vpop.f32.mrf.mxu0 }
0x1202   : > { %v4370_v12 = vadd.f32 %v4369_v25, %v4317_v17  ;;  %v4448_v26 = vmul.f32 %v9354_v18, %v9354_v18  ;;  %v9362_v19 = vadd.f32 %v4420_v62, %v4368_v21  ;;  %v4432_v34 = vadd.f32 %v9354_v18, %v9348_v5 }
0x1203   : > { %v4371_v29 = vpop.f32.mrf.mxu0 }
0x1204   : > { %v9364_v22 = vadd.f32 %v4422_v16, %v4370_v12  ;;  %4454 = vadd.xlane.f32.xlu0 %v4453_v45  ;;  %v4456_v32 = vadd.f32 %v4448_v26, %v4447_v9  ;;  %v4372_v11 = vadd.f32 %v4371_v29, %v4319_v27  ;;  %v4449_v36 = vmul.f32 %v9362_v19, %v9362_v19 }
0x1205   : > { %v4373_v20 = vpop.f32.mrf.mxu0 }
0x1206   : > { %v4374_v14 = vadd.f32 %v4373_v20, %v4321_v30  ;;  %4457 = vadd.xlane.f32.xlu1 %v4456_v32  ;;  %v4450_v31 = vmul.f32 %v9364_v22, %v9364_v22  ;;  %v4435_v33 = vadd.f32 %v9364_v22, %v9362_v19  ;;  %v9376_v13 = vadd.f32 %v4424_v28, %v4372_v11 }
0x1208   : > { %v9370_v35 = vadd.f32 %v4426_v23, %v4374_v14  ;;  %4433 = vadd.xlane.f32.xlu0 %v4432_v34  ;;  %v4459_v15 = vadd.f32 %v4450_v31, %v4449_v36  ;;  %v4451_v39 = vmul.f32 %v9376_v13, %v9376_v13 }
0x120a   : > { %4436 = vadd.xlane.f32.xlu1 %v4435_v33  ;;  %v4438_v37 = vadd.f32 %v9370_v35, %v9376_v13  ;;  %v4452_v38 = vmul.f32 %v9370_v35, %v9370_v35 }
0x120c   : > { %4460 = vadd.xlane.f32.xlu0 %v4459_v15  ;;  %v4462_v40 = vadd.f32 %v4452_v38, %v4451_v39 }
0x120e   : > { %4439 = vadd.xlane.f32.xlu1 %v4438_v37 }
0x1212   : > { %4463 = vadd.xlane.f32.xlu1 %v4462_v40 }
0x1289   : > { %v4431_v43 = vpop.xlane.xlu0 %4430 }
0x128a   : > { %v4441_v44 = vmul.f32 0.00390625, %v4431_v43 }
0x128c   : > { %v4469_v47 = vmul.f32 %v4441_v44, %v4441_v44  ;;  %v4481_v12 = vsub.f32 %v9344_v55, %v4441_v44  ;;  %v4482_v45 = vsub.f32 %v9346_v63, %v4441_v44 }
0x128d   : > { %v4455_v46 = vpop.xlane.xlu0 %4454 }
0x128e   : > { %v4465_v48 = vmul.f32 0.00390625, %v4455_v46 }
0x128f   : > { %v4458_v51 = vpop.xlane.xlu1 %4457 }
0x1290   : > { %v4473_v52 = vsub.f32 %v4465_v48, %v4469_v47  ;;  %v4466_v54 = vmul.f32 0.00390625, %v4458_v51 }
0x1291   : > { %v4434_v41 = vpop.xlane.xlu0 %4433 }
0x1292   : > { %v4477_v42 = vmax.f32 %v4473_v52, 0.0  ;;  %v4442_v49 = vmul.f32 0.00390625, %v4434_v41 }
0x1293   : > { %v4437_v50 = vpop.xlane.xlu1 %4436 }
0x1294   : > { %v4489_v53 = vadd.f32 1e-05, %v4477_v42  ;;  %v4470_v56 = vmul.f32 %v4442_v49, %v4442_v49  ;;  %v4443_v57 = vmul.f32 0.00390625, %v4437_v50  ;;  %v4483_v27 = vsub.f32 %v9348_v5, %v4442_v49 }
0x1295   : > { %v4461_v58 = vpop.xlane.xlu0 %4460  ;;  %v4484_v28 = vsub.f32 %v9354_v18, %v4442_v49 }
0x1296   : > { %v4474_v59 = vsub.f32 %v4466_v54, %v4470_v56  ;;  %v4467_v60 = vmul.f32 0.00390625, %v4461_v58  ;;  %v4471_v61 = vmul.f32 %v4443_v57, %v4443_v57  ;;  %8278 = vrsqrt.f32 %v4489_v53 }
0x1297   : > { %v4440_v62 = vpop.xlane.xlu1 %4439  ;;  %v4485_v55 = vsub.f32 %v9362_v19, %v4443_v57  ;;  %v4486_v63 = vsub.f32 %v9364_v22, %v4443_v57 }
0x1298   : > { %v4478_v1 = vmax.f32 %v4474_v59, 0.0  ;;  %v4444_v2 = vmul.f32 0.00390625, %v4440_v62  ;;  %v4475_v3 = vsub.f32 %v4467_v60, %v4471_v61 }
0x129a   : > { %v4490_v4 = vadd.f32 1e-05, %v4478_v1  ;;  %v4479_v6 = vmax.f32 %v4475_v3, 0.0  ;;  %v4472_v8 = vmul.f32 %v4444_v2, %v4444_v2  ;;  %v4487_v18 = vsub.f32 %v9376_v13, %v4444_v2 }
0x129b   : > { %v4464_v7 = vpop.xlane.xlu1 %4463  ;;  %v4488_v15 = vsub.f32 %v9370_v35, %v4444_v2 }
0x129c   : > { %8280 = vrsqrt.f32 %v4490_v4  ;;  %v4468_v10 = vmul.f32 0.00390625, %v4464_v7  ;;  %v4491_v16 = vadd.f32 1e-05, %v4479_v6 }
0x129e   : > { %v4476_v17 = vsub.f32 %v4468_v10, %v4472_v8  ;;  %8282 = vrsqrt.f32 %v4491_v16 }
0x12a0   : > { %v4480_v21 = vmax.f32 %v4476_v17, 0.0 }
0x12a2   : > { %v4492_v24 = vadd.f32 1e-05, %v4480_v21 }
0x12a3   : > { %v8279_v25 = vpop.eup %8278 }
0x12a4   : > { %8284 = vrsqrt.f32 %v4492_v24  ;;  %v4497_v9 = vmul.f32 %v8279_v25, %v4481_v12  ;;  %v4498_v26 = vmul.f32 %v8279_v25, %v4482_v45 }
0x12a6   : > { %v4505_v20 = vmax.f32 %v4497_v9, 0.0  ;;  %v4506_v11 = vmax.f32 %v4498_v26, 0.0 }
0x12a9   : > { %v8281_v29 = vpop.eup %8280 }
0x12aa   : > { %v4499_v30 = vmul.f32 %v8281_v29, %v4483_v27  ;;  %v4500_v32 = vmul.f32 %v8281_v29, %v4484_v28 }
0x12ab   : > { %v8283_v31 = vpop.eup %8282 }
0x12ac   : > { %v4507_v14 = vmax.f32 %v4499_v30, 0.0  ;;  %v4508_v34 = vmax.f32 %v4500_v32, 0.0  ;;  %v4501_v36 = vmul.f32 %v8283_v31, %v4485_v55  ;;  %v4502_v5 = vmul.f32 %v8283_v31, %v4486_v63 }
0x12ae   : > { %v9388_v23 = vpack.c.bf16 %v4507_v14, %v4505_v20  ;;  %v9390_v33 = vpack.c.bf16 %v4508_v34, %v4506_v11  ;;  %v4509_v40 = vmax.f32 %v4501_v36, 0.0  ;;  %v4510_v43 = vmax.f32 %v4502_v5, 0.0 }
0x12b1   : > { %v8285_v37 = vpop.eup %8284 }
0x12b2   : > { %v4503_v38 = vmul.f32 %v8285_v37, %v4487_v18  ;;  %v4504_v39 = vmul.f32 %v8285_v37, %v4488_v15 }
0x12b4   : > { %v4511_v44 = vmax.f32 %v4503_v38, 0.0  ;;  %v4512_v46 = vmax.f32 %v4504_v39, 0.0 }
0x12b6   : > { %v9396_v47 = vpack.c.bf16 %v4511_v44, %v4509_v40  ;;  %v9398_v48 = vpack.c.bf16 %v4512_v46, %v4510_v43 }
0x12b7 LB: >> { %4750 = vmatprep.mubr.bf16.mxu0 %v9390_v33  ;;  %s7242_s5 = sshll.u32 %s8612_s4, 8  ;;  %s6998_s1 = sshll.u32 %s8612_s4, 5  ;;  %s8612_s4 = sphi %s9400_s4, %s4522_s4  }
0x12b8   : >> { %4760 = vmatprep.mubr.bf16.mxu1 %v9398_v48  ;;  %s9411_s23 = scalar_lea.vmem %s10040_s7, %s7242_s5  ;;  %s4772_s28 = sshra.s32 %s6998_s1, 3 }
0x12b9   : >> { %v8286_v19 = vld [vmem:[%s9411_s23 + $0x74] ss:$8 sps:$4 sm:$0xff]   ;;  %v8288_v22 = vld [vmem:[%s9411_s23 + $0x70] ss:$8 sps:$4 sm:$0xff]   ;;  %v8289_v35 = vld [vmem:[%s9411_s23 + $0x64] ss:$8 sps:$4 sm:$0xff]  }
0x12ba   : >> { %4718 = vmatprep.subr.bf16.mxu0 %v8286_v19  ;;  %7768 = vmatprep.subr.bf16.mxu1 %v8286_v19  ;;  %v8291_v13 = vld [vmem:[%s9411_s23 + $0x60] ss:$8 sps:$4 sm:$0xff]   ;;  %v8292_v51 = vld [vmem:[%s9411_s23 + $0x54] ss:$8 sps:$4 sm:$0xff]   ;;  %v8294_v52 = vld [vmem:[%s9411_s23 + $0x50] ss:$8 sps:$4 sm:$0xff]  }
0x12bb   : >> { %4719 = vmatpush1.bf16.msra.mxu0 %v8288_v22  ;;  %7784 = vmatpush1.bf16.msra.mxu1 %v8288_v22  ;;  %v8295_v41 = vld [vmem:[%s9411_s23 + $0x44] ss:$8 sps:$4 sm:$0xff]   ;;  %v8297_v42 = vld [vmem:[%s9411_s23 + $0x40] ss:$8 sps:$4 sm:$0xff]   ;;  %v8298_v49 = vld [vmem:[%s9411_s23 + $0x34] ss:$8 sps:$4 sm:$0xff]  }
0x12bc   : >> { %4720 = vmatprep.subr.bf16.mxu0 %v8289_v35  ;;  %7769 = vmatprep.subr.bf16.mxu1 %v8289_v35  ;;  %v8300_v50 = vld [vmem:[%s9411_s23 + $0x30] ss:$8 sps:$4 sm:$0xff]   ;;  %v8301_v53 = vld [vmem:[%s9411_s23 + $0x24] ss:$8 sps:$4 sm:$0xff]   ;;  %v8303_v54 = vld [vmem:[%s9411_s23 + $0x20] ss:$8 sps:$4 sm:$0xff]  }
0x12bd   : >> { %v8304_v56 = vld [vmem:[%s9411_s23 + $0x14] ss:$8 sps:$4 sm:$0xff]   ;;  %v8306_v57 = vld [vmem:[%s9411_s23 + $0x10] ss:$8 sps:$4 sm:$0xff]   ;;  %v8307_v58 = vld [vmem:[%s9411_s23 + $0x4] ss:$8 sps:$4 sm:$0xff]  }
0x12be   : >> { %v8309_v59 = vld [vmem:[%s9411_s23] ss:$8 sps:$4 sm:$0xff]   ;;  %v8310_v60 = vld [vmem:[%s9411_s23 + $0xf4] ss:$8 sps:$4 sm:$0xff]   ;;  %v8312_v61 = vld [vmem:[%s9411_s23 + $0xf0] ss:$8 sps:$4 sm:$0xff]  }
0x12bf   : >> { %4721 = vmatpush1.bf16.msra.mxu0 %v8291_v13  ;;  %7785 = vmatpush1.bf16.msra.mxu1 %v8291_v13  ;;  %v8313_v62 = vld [vmem:[%s9411_s23 + $0xe4] ss:$8 sps:$4 sm:$0xff]   ;;  %v8315_v1 = vld [vmem:[%s9411_s23 + $0xe0] ss:$8 sps:$4 sm:$0xff]   ;;  %v8316_v2 = vld [vmem:[%s9411_s23 + $0xd4] ss:$8 sps:$4 sm:$0xff]  }
0x12c0   : >> { %4722 = vmatprep.subr.bf16.mxu0 %v8292_v51  ;;  %7770 = vmatprep.subr.bf16.mxu1 %v8292_v51  ;;  %v8318_v3 = vld [vmem:[%s9411_s23 + $0xd0] ss:$8 sps:$4 sm:$0xff]   ;;  %v8319_v4 = vld [vmem:[%s9411_s23 + $0xc4] ss:$8 sps:$4 sm:$0xff]   ;;  %v8321_v6 = vld [vmem:[%s9411_s23 + $0xc0] ss:$8 sps:$4 sm:$0xff]  }
0x12c1   : >> { %v8322_v7 = vld [vmem:[%s9411_s23 + $0xb4] ss:$8 sps:$4 sm:$0xff]   ;;  %v8324_v8 = vld [vmem:[%s9411_s23 + $0xb0] ss:$8 sps:$4 sm:$0xff]   ;;  %v8325_v10 = vld [vmem:[%s9411_s23 + $0xa4] ss:$8 sps:$4 sm:$0xff]  }
0x12c2   : >> { %v8327_v16 = vld [vmem:[%s9411_s23 + $0xa0] ss:$8 sps:$4 sm:$0xff]   ;;  %v8328_v17 = vld [vmem:[%s9411_s23 + $0x94] ss:$8 sps:$4 sm:$0xff]   ;;  %v8330_v21 = vld [vmem:[%s9411_s23 + $0x90] ss:$8 sps:$4 sm:$0xff]  }
0x12c3   : >> { %4723 = vmatpush1.bf16.msra.mxu0 %v8294_v52  ;;  %7786 = vmatpush1.bf16.msra.mxu1 %v8294_v52  ;;  %v8331_v24 = vld [vmem:[%s9411_s23 + $0x84] ss:$8 sps:$4 sm:$0xff]   ;;  %v8333_v25 = vld [vmem:[%s9411_s23 + $0x80] ss:$8 sps:$4 sm:$0xff]   ;;  %s7243_s24 = sshll.u32 %s4772_s28, 4  ;;  %s4522_s4 = sadd.s32 1, %s8612_s4  }
0x12c4   : >> { %4724 = vmatprep.subr.bf16.mxu0 %v8295_v41  ;;  %7771 = vmatprep.subr.bf16.mxu1 %v8295_v41  ;;  %s4776_s26 = scalar_lea.vmem [#allocation2], %s7243_s24  ;;  %p4519_p7 = scmp.ge.s32.totalorder %s4522_s4, 9  }
0x12c7   : >> { %4725 = vmatpush1.bf16.msra.mxu0 %v8297_v42  ;;  %7787 = vmatpush1.bf16.msra.mxu1 %v8297_v42 }
0x12c8   : >> { %4726 = vmatprep.subr.bf16.mxu0 %v8298_v49  ;;  %7772 = vmatprep.subr.bf16.mxu1 %v8298_v49 }
0x12cb   : >> { %4727 = vmatpush1.bf16.msra.mxu0 %v8300_v50  ;;  %7788 = vmatpush1.bf16.msra.mxu1 %v8300_v50 }
0x12cc   : >> { %4728 = vmatprep.subr.bf16.mxu0 %v8301_v53  ;;  %7773 = vmatprep.subr.bf16.mxu1 %v8301_v53 }
0x12cf   : >> { %4729 = vmatpush1.bf16.msra.mxu0 %v8303_v54  ;;  %7789 = vmatpush1.bf16.msra.mxu1 %v8303_v54 }
0x12d0   : >> { %4730 = vmatprep.subr.bf16.mxu0 %v8304_v56  ;;  %7774 = vmatprep.subr.bf16.mxu1 %v8304_v56 }
0x12d3   : >> { %4731 = vmatpush1.bf16.msra.mxu0 %v8306_v57  ;;  %7790 = vmatpush1.bf16.msra.mxu1 %v8306_v57 }
0x12d4   : >> { %4732 = vmatprep.subr.bf16.mxu0 %v8307_v58  ;;  %7775 = vmatprep.subr.bf16.mxu1 %v8307_v58 }
0x12d7   : >> { %4733 = vmatpush1.bf16.msra.mxu0 %v8309_v59  ;;  %7791 = vmatpush1.bf16.msra.mxu1 %v8309_v59 }
0x12d8   : >> { %4734 = vmatprep.subr.bf16.mxu0 %v8310_v60  ;;  %7776 = vmatprep.subr.bf16.mxu1 %v8310_v60 }
0x12db   : >> { %4735 = vmatpush2.bf16.msra.mxu0 %v8312_v61  ;;  %7792 = vmatpush2.bf16.msra.mxu1 %v8312_v61 }
0x12dc   : >> { %4736 = vmatprep.subr.bf16.mxu0 %v8313_v62  ;;  %7777 = vmatprep.subr.bf16.mxu1 %v8313_v62 }
0x12df   : >> { %4737 = vmatpush2.bf16.msra.mxu0 %v8315_v1  ;;  %7793 = vmatpush2.bf16.msra.mxu1 %v8315_v1 }
0x12e0   : >> { %4738 = vmatprep.subr.bf16.mxu0 %v8316_v2  ;;  %7778 = vmatprep.subr.bf16.mxu1 %v8316_v2 }
0x12e3   : >> { %4739 = vmatpush2.bf16.msra.mxu0 %v8318_v3  ;;  %7794 = vmatpush2.bf16.msra.mxu1 %v8318_v3 }
0x12e4   : >> { %4740 = vmatprep.subr.bf16.mxu0 %v8319_v4  ;;  %7779 = vmatprep.subr.bf16.mxu1 %v8319_v4 }
0x12e7   : >> { %4741 = vmatpush2.bf16.msra.mxu0 %v8321_v6  ;;  %7795 = vmatpush2.bf16.msra.mxu1 %v8321_v6 }
0x12e8   : >> { %4742 = vmatprep.subr.bf16.mxu0 %v8322_v7  ;;  %7780 = vmatprep.subr.bf16.mxu1 %v8322_v7 }
0x12eb   : >> { %4743 = vmatpush2.bf16.msra.mxu0 %v8324_v8  ;;  %7796 = vmatpush2.bf16.msra.mxu1 %v8324_v8 }
0x12ec   : >> { %4744 = vmatprep.subr.bf16.mxu0 %v8325_v10  ;;  %7781 = vmatprep.subr.bf16.mxu1 %v8325_v10 }
0x12ef   : >> { %4745 = vmatpush2.bf16.msra.mxu0 %v8327_v16  ;;  %7797 = vmatpush2.bf16.msra.mxu1 %v8327_v16 }
0x12f0   : >> { %4746 = vmatprep.subr.bf16.mxu0 %v8328_v17  ;;  %7782 = vmatprep.subr.bf16.mxu1 %v8328_v17 }
0x12f3   : >> { %4747 = vmatpush2.bf16.msra.mxu0 %v8330_v21  ;;  %7798 = vmatpush2.bf16.msra.mxu1 %v8330_v21 }
0x12f4   : >> { %4748 = vmatprep.subr.bf16.mxu0 %v8331_v24  ;;  %7783 = vmatprep.subr.bf16.mxu1 %v8331_v24 }
0x12f7   : >> { %4749 = vmatpush2.bf16.msra.mxu0 %v8333_v25  ;;  %7799 = vmatpush2.bf16.msra.mxu1 %v8333_v25 }
0x12fa   : >> { %4751 = vmatmul.mubr.bf16.vlgmr.msra.gmra.mxu0 %v9388_v23  ;;  %4761 = vmatmul.mubr.bf16.vlgmr.msra.gmra.mxu1 %v9396_v47 }
0x12fb   : > { %5022 = vmatprep.mubr.bf16.mxu1 (%p4519_p7), %v8629_v0 }
0x13ba   : >> { %v4752_v12 = vpop.f32.mrf.mxu0  ;;  %v4762_v45 = vpop.f32.mrf.mxu1 }
0x13bb   : >> { %4777 = vst [vmem:[%s4776_s26] sm:$0xff] %v4752_v12  ;;  %4781 = vst [vmem:[%s4776_s26 + $0x20] sm:$0xff] %v4762_v45 }
0x13bc   : >> { %v4754_v9 = vpop.f32.mrf.mxu0  ;;  %v4764_v26 = vpop.f32.mrf.mxu1 }
0x13bd   : >> { %4778 = vst [vmem:[%s4776_s26 + $0x8] sm:$0xff] %v4754_v9  ;;  %4782 = vst [vmem:[%s4776_s26 + $0x28] sm:$0xff] %v4764_v26  ;;  %4521 = sbr.rel (!%p4519_p7) target bundleno = 4791 (0x12b7), region = 303 }
0x13be   : >> { %v4756_v27 = vpop.f32.mrf.mxu0  ;;  %v4766_v28 = vpop.f32.mrf.mxu1 }
0x13bf   : >> { %4779 = vst [vmem:[%s4776_s26 + $0x10] sm:$0xff] %v4756_v27  ;;  %4783 = vst [vmem:[%s4776_s26 + $0x30] sm:$0xff] %v4766_v28 }
0x13c0   : >> { %v4758_v29 = vpop.f32.mrf.mxu0  ;;  %v4768_v30 = vpop.f32.mrf.mxu1 }
0x13c1   : >> { %4780 = vst [vmem:[%s4776_s26 + $0x18] sm:$0xff] %v4758_v29  ;;  %4784 = vst [vmem:[%s4776_s26 + $0x38] sm:$0xff] %v4768_v30  ;;  %s9481_s26 = smov (%p4519_p7), 0  }
0x13c8   : > { %v4814_v32 = vld [vmem:[#allocation2 + $0xe8] sm:$0xff]  ;;  %v4816_v20 = vld [vmem:[#allocation2 + $0xf8] sm:$0xff]  ;;  %v4813_v11 = vld [vmem:[#allocation2 + $0xe0] sm:$0xff] }
0x13c9   : > { %v4872_v14 = vpack.c.bf16 %v4816_v20, %v4814_v32  ;;  %v4815_v34 = vld [vmem:[#allocation2 + $0xf0] sm:$0xff]  ;;  %v4810_v31 = vld [vmem:[#allocation2 + $0xc8] sm:$0xff]  ;;  %v4812_v55 = vld [vmem:[#allocation2 + $0xd8] sm:$0xff] }
0x13ca   : > { %v4871_v63 = vpack.c.bf16 %v4815_v34, %v4813_v11  ;;  %v4870_v36 = vpack.c.bf16 %v4812_v55, %v4810_v31  ;;  %v4809_v5 = vld [vmem:[#allocation2 + $0xc0] sm:$0xff]  ;;  %v4811_v18 = vld [vmem:[#allocation2 + $0xd0] sm:$0xff]  ;;  %v4806_v15 = vld [vmem:[#allocation2 + $0xa8] sm:$0xff] }
0x13cb   : > { %4937 = vmatprep.subr.bf16.mxu0 %v4872_v14  ;;  %v4808_v37 = vld [vmem:[#allocation2 + $0xb8] sm:$0xff]  ;;  %v4869_v38 = vpack.c.bf16 %v4811_v18, %v4809_v5  ;;  %v4805_v40 = vld [vmem:[#allocation2 + $0xa0] sm:$0xff]  ;;  %v4807_v43 = vld [vmem:[#allocation2 + $0xb0] sm:$0xff] }
0x13cc   : > { %4938 = vmatpush1.bf16.msra.mxu0 %v4871_v63  ;;  %v4868_v39 = vpack.c.bf16 %v4808_v37, %v4806_v15  ;;  %v4802_v44 = vld [vmem:[#allocation2 + $0x88] sm:$0xff]  ;;  %v4804_v46 = vld [vmem:[#allocation2 + $0x98] sm:$0xff]  ;;  %v4867_v19 = vpack.c.bf16 %v4807_v43, %v4805_v40  ;;  %v4801_v35 = vld [vmem:[#allocation2 + $0x80] sm:$0xff] }
0x13cd   : > { %4939 = vmatprep.subr.bf16.mxu0 %v4870_v36  ;;  %v4866_v22 = vpack.c.bf16 %v4804_v46, %v4802_v44  ;;  %v4803_v13 = vld [vmem:[#allocation2 + $0x90] sm:$0xff]  ;;  %v4798_v51 = vld [vmem:[#allocation2 + $0x68] sm:$0xff]  ;;  %v4800_v52 = vld [vmem:[#allocation2 + $0x78] sm:$0xff] }
0x13ce   : > { %v4865_v41 = vpack.c.bf16 %v4803_v13, %v4801_v35  ;;  %v4864_v42 = vpack.c.bf16 %v4800_v52, %v4798_v51  ;;  %v4797_v49 = vld [vmem:[#allocation2 + $0x60] sm:$0xff]  ;;  %v4799_v50 = vld [vmem:[#allocation2 + $0x70] sm:$0xff]  ;;  %v4794_v53 = vld [vmem:[#allocation2 + $0x48] sm:$0xff] }
0x13cf   : > { %v4796_v54 = vld [vmem:[#allocation2 + $0x58] sm:$0xff]  ;;  %v4863_v56 = vpack.c.bf16 %v4799_v50, %v4797_v49  ;;  %v4793_v57 = vld [vmem:[#allocation2 + $0x40] sm:$0xff]  ;;  %v4795_v58 = vld [vmem:[#allocation2 + $0x50] sm:$0xff] }
0x13d0   : > { %4940 = vmatpush1.bf16.msra.mxu0 %v4869_v38  ;;  %v4862_v59 = vpack.c.bf16 %v4796_v54, %v4794_v53  ;;  %v4790_v60 = vld [vmem:[#allocation2 + $0x28] sm:$0xff]  ;;  %v4856_v62 = vld [vmem:[#allocation2 + $0x238] sm:$0xff]  ;;  %v4853_v3 = vld [vmem:[#allocation2 + $0x220] sm:$0xff]  ;;  %v4861_v7 = vpack.c.bf16 %v4795_v58, %v4793_v57 }
0x13d1   : > { %4941 = vmatprep.subr.bf16.mxu0 %v4868_v39  ;;  %v4854_v61 = vld [vmem:[#allocation2 + $0x228] sm:$0xff]  ;;  %v4792_v1 = vld [vmem:[#allocation2 + $0x38] sm:$0xff]  ;;  %v4855_v4 = vld [vmem:[#allocation2 + $0x230] sm:$0xff] }
0x13d2   : > { %v4892_v2 = vpack.c.bf16 %v4856_v62, %v4854_v61  ;;  %v4891_v6 = vpack.c.bf16 %v4855_v4, %v4853_v3  ;;  %v4850_v8 = vld [vmem:[#allocation2 + $0x208] sm:$0xff]  ;;  %v4852_v10 = vld [vmem:[#allocation2 + $0x218] sm:$0xff]  ;;  %v4849_v16 = vld [vmem:[#allocation2 + $0x200] sm:$0xff]  ;;  %v4860_v17 = vpack.c.bf16 %v4792_v1, %v4790_v60 }
0x13d3   : > { %v4789_v21 = vld [vmem:[#allocation2 + $0x20] sm:$0xff]  ;;  %v4791_v24 = vld [vmem:[#allocation2 + $0x30] sm:$0xff]  ;;  %v4890_v25 = vpack.c.bf16 %v4852_v10, %v4850_v8  ;;  %v4786_v45 = vld [vmem:[#allocation2 + $0x8] sm:$0xff] }
0x13d4   : > { %4942 = vmatpush1.bf16.msra.mxu0 %v4867_v19  ;;  %5002 = vmatprep.subr.bf16.mxu1 %v4892_v2  ;;  %v4851_v12 = vld [vmem:[#allocation2 + $0x210] sm:$0xff]  ;;  %v4788_v9 = vld [vmem:[#allocation2 + $0x18] sm:$0xff]  ;;  %v4785_v27 = vld [vmem:[#allocation2] sm:$0xff]  ;;  %v4859_v28 = vpack.c.bf16 %v4791_v24, %v4789_v21 }
0x13d5   : > { %4943 = vmatprep.subr.bf16.mxu0 %v4866_v22  ;;  %5003 = vmatpush1.bf16.msra.mxu1 %v4891_v6  ;;  %v4889_v26 = vpack.c.bf16 %v4851_v12, %v4849_v16  ;;  %v4787_v29 = vld [vmem:[#allocation2 + $0x10] sm:$0xff]  ;;  %v4846_v30 = vld [vmem:[#allocation2 + $0x1e8] sm:$0xff]  ;;  %v4858_v20 = vpack.c.bf16 %v4788_v9, %v4786_v45  ;;  %v4848_v11 = vld [vmem:[#allocation2 + $0x1f8] sm:$0xff] }
0x13d6   : > { %5004 = vmatprep.subr.bf16.mxu1 %v4890_v25  ;;  %v8334_v32 = vld [vmem:[%s10049_s16 + $0x8] ss:$12 sps:$4 sm:$0xff]   ;;  %v8337_v14 = vld [vmem:[%s10049_s16 + $0x4] ss:$12 sps:$4 sm:$0xff]   ;;  %v4857_v34 = vpack.c.bf16 %v4787_v29, %v4785_v27  ;;  %v4888_v31 = vpack.c.bf16 %v4848_v11, %v4846_v30  ;;  %v4844_v5 = vld [vmem:[#allocation2 + $0x1d8] sm:$0xff] }
0x13d7   : > { %v4845_v55 = vld [vmem:[#allocation2 + $0x1e0] sm:$0xff]  ;;  %v4847_v63 = vld [vmem:[#allocation2 + $0x1f0] sm:$0xff]  ;;  %4969 = vmatprep.mubr.bf16.mxu0 %v8337_v14  ;;  %v4842_v36 = vld [vmem:[#allocation2 + $0x1c8] sm:$0xff] }
0x13d8   : > { %4944 = vmatpush1.bf16.msra.mxu0 %v4865_v41  ;;  %v4887_v18 = vpack.c.bf16 %v4847_v63, %v4845_v55  ;;  %v8338_v15 = vld [vmem:[%s10049_s16 + $0x20] ss:$12 sps:$4 sm:$0xff]   ;;  %v4886_v37 = vpack.c.bf16 %v4844_v5, %v4842_v36  ;;  %v4843_v39 = vld [vmem:[#allocation2 + $0x1d0] sm:$0xff]  ;;  %v4840_v43 = vld [vmem:[#allocation2 + $0x1b8] sm:$0xff] }
0x13d9   : > { %4945 = vmatprep.subr.bf16.mxu0 %v4864_v42  ;;  %5005 = vmatpush1.bf16.msra.mxu1 %v4889_v26  ;;  %v4841_v38 = vld [vmem:[#allocation2 + $0x1c0] sm:$0xff]  ;;  %v4838_v40 = vld [vmem:[#allocation2 + $0x1a8] sm:$0xff]  ;;  %v4839_v22 = vld [vmem:[#allocation2 + $0x1b0] sm:$0xff] }
0x13da   : > { %v4885_v44 = vpack.c.bf16 %v4843_v39, %v4841_v38  ;;  %v4884_v46 = vpack.c.bf16 %v4840_v43, %v4838_v40  ;;  %v4837_v19 = vld [vmem:[#allocation2 + $0x1a0] sm:$0xff]  ;;  %v4834_v35 = vld [vmem:[#allocation2 + $0x188] sm:$0xff]  ;;  %v4836_v13 = vld [vmem:[#allocation2 + $0x198] sm:$0xff] }
0x13db   : > { %v4883_v51 = vpack.c.bf16 %v4839_v22, %v4837_v19  ;;  %v4882_v52 = vpack.c.bf16 %v4836_v13, %v4834_v35  ;;  %v4833_v41 = vld [vmem:[#allocation2 + $0x180] sm:$0xff]  ;;  %v4835_v42 = vld [vmem:[#allocation2 + $0x190] sm:$0xff]  ;;  %v4830_v49 = vld [vmem:[#allocation2 + $0x168] sm:$0xff] }
0x13dc   : > { %4946 = vmatpush1.bf16.msra.mxu0 %v4863_v56  ;;  %7007 = vmatmul.mubr.msk.bf16.vlgmr.msra.gmra.mxu1 %vm1311_vm4, %v8334_v32  ;;  %v4832_v50 = vld [vmem:[#allocation2 + $0x178] sm:$0xff]  ;;  %v4881_v53 = vpack.c.bf16 %v4835_v42, %v4833_v41  ;;  %v4829_v56 = vld [vmem:[#allocation2 + $0x160] sm:$0xff]  ;;  %v4831_v57 = vld [vmem:[#allocation2 + $0x170] sm:$0xff] }
0x13dd   : > { %4947 = vmatprep.subr.bf16.mxu0 %v4862_v59  ;;  %5032 = vmatprep.mubr.bf16.mxu1 %v8629_v0  ;;  %v4880_v54 = vpack.c.bf16 %v4832_v50, %v4830_v49  ;;  %v4826_v58 = vld [vmem:[#allocation2 + $0x148] sm:$0xff]  ;;  %v4828_v59 = vld [vmem:[#allocation2 + $0x158] sm:$0xff]  ;;  %v4879_v60 = vpack.c.bf16 %v4831_v57, %v4829_v56  ;;  %v4825_v62 = vld [vmem:[#allocation2 + $0x140] sm:$0xff] }
0x13de   : > { %v4878_v61 = vpack.c.bf16 %v4828_v59, %v4826_v58  ;;  %v4827_v1 = vld [vmem:[#allocation2 + $0x150] sm:$0xff]  ;;  %v4822_v2 = vld [vmem:[#allocation2 + $0x128] sm:$0xff]  ;;  %v4824_v3 = vld [vmem:[#allocation2 + $0x138] sm:$0xff] }
0x13df   : > { %v4877_v4 = vpack.c.bf16 %v4827_v1, %v4825_v62  ;;  %v4876_v6 = vpack.c.bf16 %v4824_v3, %v4822_v2  ;;  %v4823_v8 = vld [vmem:[#allocation2 + $0x130] sm:$0xff]  ;;  %v4818_v10 = vld [vmem:[#allocation2 + $0x108] sm:$0xff]  ;;  %v4820_v16 = vld [vmem:[#allocation2 + $0x118] sm:$0xff] }
0x13e0   : > { %4948 = vmatpush1.bf16.msra.mxu0 %v4861_v7  ;;  %v4821_v7 = vld [vmem:[#allocation2 + $0x120] sm:$0xff]  ;;  %v4874_v21 = vpack.c.bf16 %v4820_v16, %v4818_v10  ;;  %v4819_v25 = vld [vmem:[#allocation2 + $0x110] sm:$0xff]  ;;  %v8339_v9 = vld [vmem:[%s10049_s16 + $0x1c] ss:$12 sps:$4 sm:$0xff]  }
0x13e1   : > { %4949 = vmatprep.subr.bf16.mxu0 %v4860_v17  ;;  %v4875_v17 = vpack.c.bf16 %v4823_v8, %v4821_v7  ;;  %v4817_v24 = vld [vmem:[#allocation2 + $0x100] sm:$0xff] }
0x13e2   : > { %v4873_v12 = vpack.c.bf16 %v4819_v25, %v4817_v24  ;;  %v8335_v45 = vld [vmem:[%s10049_s16] ss:$12 sps:$4 sm:$0xff]   ;;  %v8341_v26 = vld [vmem:[%s10049_s16 + $0x18] ss:$12 sps:$4 sm:$0xff]  }
0x13e4   : > { %4950 = vmatpush1.bf16.msra.mxu0 %v4859_v28  ;;  %7008 = vmatmul.mubr.msk.bf16.gmra.mxu1 %vm1311_vm4, %v8338_v15 }
0x13e5   : > { %4951 = vmatprep.subr.bf16.mxu0 %v4858_v20 }
0x13e8   : > { %4952 = vmatpush1.bf16.msra.mxu0 %v4857_v34 }
0x13e9   : > { %4953 = vmatprep.subr.bf16.mxu0 %v4888_v31 }
0x13ec   : > { %4954 = vmatpush2.bf16.msra.mxu0 %v4887_v18 }
0x13ed   : > { %4955 = vmatprep.subr.bf16.mxu0 %v4886_v37 }
0x13f0   : > { %4956 = vmatpush2.bf16.msra.mxu0 %v4885_v44 }
0x13f1   : > { %4957 = vmatprep.subr.bf16.mxu0 %v4884_v46 }
0x13f4   : > { %4958 = vmatpush2.bf16.msra.mxu0 %v4883_v51 }
0x13f5   : > { %4959 = vmatprep.subr.bf16.mxu0 %v4882_v52 }
0x13f8   : > { %4960 = vmatpush2.bf16.msra.mxu0 %v4881_v53 }
0x13f9   : > { %4961 = vmatprep.subr.bf16.mxu0 %v4880_v54 }
0x13fc   : > { %4962 = vmatpush2.bf16.msra.mxu0 %v4879_v60 }
0x13fd   : > { %4963 = vmatprep.subr.bf16.mxu0 %v4878_v61 }
0x1400   : > { %4964 = vmatpush2.bf16.msra.mxu0 %v4877_v4 }
0x1401   : > { %4965 = vmatprep.subr.bf16.mxu0 %v4876_v6 }
0x1404   : > { %4966 = vmatpush2.bf16.msra.mxu0 %v4875_v17 }
0x1405   : > { %4967 = vmatprep.subr.bf16.mxu0 %v4874_v21 }
0x1408   : > { %4968 = vmatpush2.bf16.msra.mxu0 %v4873_v12 }
0x140b   : > { %4970 = vmatmul.mubr.bf16.vlgmr.msra.gmra.mxu0 %v8335_v45 }
0x140c   : > { %4979 = vmatprep.mubr.bf16.mxu0 %v8339_v9 }
0x1413   : > { %4980 = vmatmul.mubr.bf16.gmra.mxu0 %v8341_v26 }
0x149c   : > { %v5024_v27 = vpop.f32.mrf.mxu1 }
0x149e   : > { %v5026_v28 = vpop.f32.mrf.mxu1 }
0x14a0   : > { %v5028_v29 = vpop.f32.mrf.mxu1 }
0x14a2   : > { %v5030_v30 = vpop.f32.mrf.mxu1 }
0x14a4   : > { %v5034_v14 = vpop.f32.mrf.mxu1 }
0x14a6   : > { %v5036_v63 = vpop.f32.mrf.mxu1 }
0x14a8   : > { %v5038_v37 = vpop.f32.mrf.mxu1 }
0x14aa   : > { %v5040_v44 = vpop.f32.mrf.mxu1 }
0x14cb   : > { %v4971_v32 = vpop.f32.mrf.mxu0 }
0x14cc   : > { %v5025_v20 = vadd.f32 %v5024_v27, %v4971_v32 }
0x14cd   : > { %v4973_v11 = vpop.f32.mrf.mxu0 }
0x14ce   : > { %5043 = vst [vmem:[%s8782_s30] sm:$0xff] %v5025_v20  ;;  %v5027_v34 = vadd.f32 %v5026_v28, %v4973_v11 }
0x14cf   : > { %v4975_v31 = vpop.f32.mrf.mxu0 }
0x14d0   : > { %5044 = vst [vmem:[%s8782_s30 + $0x8] sm:$0xff] %v5027_v34  ;;  %v5029_v55 = vadd.f32 %v5028_v29, %v4975_v31 }
0x14d1   : > { %v4977_v36 = vpop.f32.mrf.mxu0 }
0x14d2   : > { %5045 = vst [vmem:[%s8782_s30 + $0x40] sm:$0xff] %v5029_v55  ;;  %v5031_v5 = vadd.f32 %v5030_v30, %v4977_v36 }
0x14d3   : > { %v4981_v18 = vpop.f32.mrf.mxu0 }
0x14d4   : > { %5046 = vst [vmem:[%s8782_s30 + $0x48] sm:$0xff] %v5031_v5  ;;  %v5035_v15 = vadd.f32 %v5034_v14, %v4981_v18 }
0x14d5   : > { %v4983_v38 = vpop.f32.mrf.mxu0 }
0x14d6   : > { %5047 = vst [vmem:[%s8782_s30 + $0x80] sm:$0xff] %v5035_v15  ;;  %v5037_v39 = vadd.f32 %v5036_v63, %v4983_v38 }
0x14d7   : > { %v4985_v40 = vpop.f32.mrf.mxu0 }
0x14d8   : > { %5048 = vst [vmem:[%s8782_s30 + $0x88] sm:$0xff] %v5037_v39  ;;  %v5039_v43 = vadd.f32 %v5038_v37, %v4985_v40 }
0x14d9   : > { %v4987_v46 = vpop.f32.mrf.mxu0 }
0x14da   : > { %5049 = vst [vmem:[%s8782_s30 + $0xc0] sm:$0xff] %v5039_v43  ;;  %v5041_v19 = vadd.f32 %v5040_v44, %v4987_v46 }
0x14dc   : > { %5050 = vst [vmem:[%s8782_s30 + $0xc8] sm:$0xff] %v5041_v19 }
0x14dd LB: >> { %5285 = vmatprep.mubr.bf16.mxu0 %v9390_v33  ;;  %5295 = vmatprep.mubr.bf16.mxu1 %v9398_v48  ;;  %s7009_s27 = sshll.u32 %s8616_s26, 8  ;;  %s7074_s4 = sshll.u32 %s8616_s26, 5  ;;  %s8616_s26 = sphi %s9481_s26, %s5056_s26  }
0x14de   : >> { %s9492_s0 = scalar_lea.vmem %s10040_s7, %s7009_s27  ;;  %s5307_s5 = sshra.s32 %s7074_s4, 3 }
0x14df   : >> { %v8342_v22 = vld [vmem:[%s9492_s0 + $0x974] ss:$8 sps:$4 sm:$0xff]   ;;  %v8344_v35 = vld [vmem:[%s9492_s0 + $0x970] ss:$8 sps:$4 sm:$0xff]   ;;  %v8345_v13 = vld [vmem:[%s9492_s0 + $0x964] ss:$8 sps:$4 sm:$0xff]  }
0x14e0   : >> { %5253 = vmatprep.subr.bf16.mxu0 %v8342_v22  ;;  %7800 = vmatprep.subr.bf16.mxu1 %v8342_v22  ;;  %v8347_v51 = vld [vmem:[%s9492_s0 + $0x960] ss:$8 sps:$4 sm:$0xff]   ;;  %v8348_v52 = vld [vmem:[%s9492_s0 + $0x954] ss:$8 sps:$4 sm:$0xff]   ;;  %v8350_v41 = vld [vmem:[%s9492_s0 + $0x950] ss:$8 sps:$4 sm:$0xff]  }
0x14e1   : >> { %5254 = vmatpush1.bf16.msra.mxu0 %v8344_v35  ;;  %7816 = vmatpush1.bf16.msra.mxu1 %v8344_v35  ;;  %v8351_v42 = vld [vmem:[%s9492_s0 + $0x944] ss:$8 sps:$4 sm:$0xff]   ;;  %v8353_v49 = vld [vmem:[%s9492_s0 + $0x940] ss:$8 sps:$4 sm:$0xff]   ;;  %v8354_v50 = vld [vmem:[%s9492_s0 + $0x934] ss:$8 sps:$4 sm:$0xff]  }
0x14e2   : >> { %5255 = vmatprep.subr.bf16.mxu0 %v8345_v13  ;;  %7801 = vmatprep.subr.bf16.mxu1 %v8345_v13  ;;  %v8356_v53 = vld [vmem:[%s9492_s0 + $0x930] ss:$8 sps:$4 sm:$0xff]   ;;  %v8357_v54 = vld [vmem:[%s9492_s0 + $0x924] ss:$8 sps:$4 sm:$0xff]   ;;  %v8359_v56 = vld [vmem:[%s9492_s0 + $0x920] ss:$8 sps:$4 sm:$0xff]  }
0x14e3   : >> { %v8360_v57 = vld [vmem:[%s9492_s0 + $0x914] ss:$8 sps:$4 sm:$0xff]   ;;  %v8362_v58 = vld [vmem:[%s9492_s0 + $0x910] ss:$8 sps:$4 sm:$0xff]   ;;  %v8363_v59 = vld [vmem:[%s9492_s0 + $0x904] ss:$8 sps:$4 sm:$0xff]  }
0x14e4   : >> { %v8365_v60 = vld [vmem:[%s9492_s0 + $0x900] ss:$8 sps:$4 sm:$0xff]   ;;  %v8366_v61 = vld [vmem:[%s9492_s0 + $0x9f4] ss:$8 sps:$4 sm:$0xff]   ;;  %v8368_v62 = vld [vmem:[%s9492_s0 + $0x9f0] ss:$8 sps:$4 sm:$0xff]  }
0x14e5   : >> { %5256 = vmatpush1.bf16.msra.mxu0 %v8347_v51  ;;  %7817 = vmatpush1.bf16.msra.mxu1 %v8347_v51  ;;  %v8369_v1 = vld [vmem:[%s9492_s0 + $0x9e4] ss:$8 sps:$4 sm:$0xff]   ;;  %v8371_v2 = vld [vmem:[%s9492_s0 + $0x9e0] ss:$8 sps:$4 sm:$0xff]   ;;  %v8372_v3 = vld [vmem:[%s9492_s0 + $0x9d4] ss:$8 sps:$4 sm:$0xff]  }
0x14e6   : >> { %5257 = vmatprep.subr.bf16.mxu0 %v8348_v52  ;;  %7802 = vmatprep.subr.bf16.mxu1 %v8348_v52  ;;  %v8374_v4 = vld [vmem:[%s9492_s0 + $0x9d0] ss:$8 sps:$4 sm:$0xff]   ;;  %v8375_v6 = vld [vmem:[%s9492_s0 + $0x9c4] ss:$8 sps:$4 sm:$0xff]   ;;  %v8377_v7 = vld [vmem:[%s9492_s0 + $0x9c0] ss:$8 sps:$4 sm:$0xff]  }
0x14e7   : >> { %v8378_v8 = vld [vmem:[%s9492_s0 + $0x9b4] ss:$8 sps:$4 sm:$0xff]   ;;  %v8380_v10 = vld [vmem:[%s9492_s0 + $0x9b0] ss:$8 sps:$4 sm:$0xff]   ;;  %v8381_v16 = vld [vmem:[%s9492_s0 + $0x9a4] ss:$8 sps:$4 sm:$0xff]  }
0x14e8   : >> { %v8383_v17 = vld [vmem:[%s9492_s0 + $0x9a0] ss:$8 sps:$4 sm:$0xff]   ;;  %v8384_v21 = vld [vmem:[%s9492_s0 + $0x994] ss:$8 sps:$4 sm:$0xff]   ;;  %v8386_v24 = vld [vmem:[%s9492_s0 + $0x990] ss:$8 sps:$4 sm:$0xff]  }
0x14e9   : >> { %5258 = vmatpush1.bf16.msra.mxu0 %v8350_v41  ;;  %7818 = vmatpush1.bf16.msra.mxu1 %v8350_v41  ;;  %v8387_v25 = vld [vmem:[%s9492_s0 + $0x984] ss:$8 sps:$4 sm:$0xff]   ;;  %v8389_v12 = vld [vmem:[%s9492_s0 + $0x980] ss:$8 sps:$4 sm:$0xff]   ;;  %s7244_s25 = sshll.u32 %s5307_s5, 4  ;;  %s5056_s26 = sadd.s32 1, %s8616_s26  }
0x14ea   : >> { %5259 = vmatprep.subr.bf16.mxu0 %v8351_v42  ;;  %7803 = vmatprep.subr.bf16.mxu1 %v8351_v42  ;;  %s5311_s22 = scalar_lea.vmem [#allocation2], %s7244_s25  ;;  %p5053_p8 = scmp.ge.s32.totalorder %s5056_s26, 6  }
0x14eb   : > { %s9554_s0 = smov (%p5053_p8), 0  }
0x14ed   : >> { %5260 = vmatpush1.bf16.msra.mxu0 %v8353_v49  ;;  %7819 = vmatpush1.bf16.msra.mxu1 %v8353_v49 }
0x14ee   : >> { %5261 = vmatprep.subr.bf16.mxu0 %v8354_v50  ;;  %7804 = vmatprep.subr.bf16.mxu1 %v8354_v50 }
0x14f1   : >> { %5262 = vmatpush1.bf16.msra.mxu0 %v8356_v53  ;;  %7820 = vmatpush1.bf16.msra.mxu1 %v8356_v53 }
0x14f2   : >> { %5263 = vmatprep.subr.bf16.mxu0 %v8357_v54  ;;  %7805 = vmatprep.subr.bf16.mxu1 %v8357_v54 }
0x14f5   : >> { %5264 = vmatpush1.bf16.msra.mxu0 %v8359_v56  ;;  %7821 = vmatpush1.bf16.msra.mxu1 %v8359_v56 }
0x14f6   : >> { %5265 = vmatprep.subr.bf16.mxu0 %v8360_v57  ;;  %7806 = vmatprep.subr.bf16.mxu1 %v8360_v57 }
0x14f9   : >> { %5266 = vmatpush1.bf16.msra.mxu0 %v8362_v58  ;;  %7822 = vmatpush1.bf16.msra.mxu1 %v8362_v58 }
0x14fa   : >> { %5267 = vmatprep.subr.bf16.mxu0 %v8363_v59  ;;  %7807 = vmatprep.subr.bf16.mxu1 %v8363_v59 }
0x14fd   : >> { %5268 = vmatpush1.bf16.msra.mxu0 %v8365_v60  ;;  %7823 = vmatpush1.bf16.msra.mxu1 %v8365_v60 }
0x14fe   : >> { %5269 = vmatprep.subr.bf16.mxu0 %v8366_v61  ;;  %7808 = vmatprep.subr.bf16.mxu1 %v8366_v61  ;;  %v8392_v61 = vld [vmem:[%s10050_s17 + $0x4] ss:$8 sps:$4 sm:$0xff] (%p5053_p8)  }
0x1501   : >> { %5270 = vmatpush2.bf16.msra.mxu0 %v8368_v62  ;;  %7824 = vmatpush2.bf16.msra.mxu1 %v8368_v62 }
0x1502   : >> { %5271 = vmatprep.subr.bf16.mxu0 %v8369_v1  ;;  %7809 = vmatprep.subr.bf16.mxu1 %v8369_v1 }
0x1505   : >> { %5272 = vmatpush2.bf16.msra.mxu0 %v8371_v2  ;;  %7825 = vmatpush2.bf16.msra.mxu1 %v8371_v2  ;;  %v8395_v2 = vld [vmem:[%s10050_s17 + $0x14] ss:$8 sps:$4 sm:$0xff] (%p5053_p8)  }
0x1506   : >> { %5273 = vmatprep.subr.bf16.mxu0 %v8372_v3  ;;  %7810 = vmatprep.subr.bf16.mxu1 %v8372_v3 }
0x1509   : >> { %5274 = vmatpush2.bf16.msra.mxu0 %v8374_v4  ;;  %7826 = vmatpush2.bf16.msra.mxu1 %v8374_v4 }
0x150a   : >> { %5275 = vmatprep.subr.bf16.mxu0 %v8375_v6  ;;  %7811 = vmatprep.subr.bf16.mxu1 %v8375_v6 }
0x150d   : >> { %5276 = vmatpush2.bf16.msra.mxu0 %v8377_v7  ;;  %7827 = vmatpush2.bf16.msra.mxu1 %v8377_v7 }
0x150e   : >> { %5277 = vmatprep.subr.bf16.mxu0 %v8378_v8  ;;  %7812 = vmatprep.subr.bf16.mxu1 %v8378_v8 }
0x1511   : >> { %5278 = vmatpush2.bf16.msra.mxu0 %v8380_v10  ;;  %7828 = vmatpush2.bf16.msra.mxu1 %v8380_v10 }
0x1512   : >> { %5279 = vmatprep.subr.bf16.mxu0 %v8381_v16  ;;  %7813 = vmatprep.subr.bf16.mxu1 %v8381_v16 }
0x1515   : >> { %5280 = vmatpush2.bf16.msra.mxu0 %v8383_v17  ;;  %7829 = vmatpush2.bf16.msra.mxu1 %v8383_v17 }
0x1516   : >> { %5281 = vmatprep.subr.bf16.mxu0 %v8384_v21  ;;  %7814 = vmatprep.subr.bf16.mxu1 %v8384_v21 }
0x1519   : >> { %5282 = vmatpush2.bf16.msra.mxu0 %v8386_v24  ;;  %7830 = vmatpush2.bf16.msra.mxu1 %v8386_v24 }
0x151a   : >> { %5283 = vmatprep.subr.bf16.mxu0 %v8387_v25  ;;  %7815 = vmatprep.subr.bf16.mxu1 %v8387_v25 }
0x151d   : >> { %5284 = vmatpush2.bf16.msra.mxu0 %v8389_v12  ;;  %7831 = vmatpush2.bf16.msra.mxu1 %v8389_v12 }
0x1520   : >> { %5286 = vmatmul.mubr.bf16.vlgmr.msra.gmra.mxu0 %v9388_v23  ;;  %5296 = vmatmul.mubr.bf16.vlgmr.msra.gmra.mxu1 %v9396_v47 }
0x1521   : > { %7081 = vmatprep.mubr.msk.bf16.mxu0 (%p5053_p8), %vm1070_vm3, %v8392_v61  ;;  %7082 = vmatprep.mubr.msk.bf16.mxu1 (%p5053_p8), %vm1070_vm3, %v8395_v2 }
0x15e0   : >> { %v5287_v45 = vpop.f32.mrf.mxu0  ;;  %v5297_v9 = vpop.f32.mrf.mxu1 }
0x15e1   : >> { %5312 = vst [vmem:[%s5311_s22] sm:$0xff] %v5287_v45  ;;  %5316 = vst [vmem:[%s5311_s22 + $0x20] sm:$0xff] %v5297_v9 }
0x15e2   : >> { %v5289_v26 = vpop.f32.mrf.mxu0  ;;  %v5299_v27 = vpop.f32.mrf.mxu1 }
0x15e3   : >> { %5313 = vst [vmem:[%s5311_s22 + $0x8] sm:$0xff] %v5289_v26  ;;  %5317 = vst [vmem:[%s5311_s22 + $0x28] sm:$0xff] %v5299_v27  ;;  %5055 = sbr.rel (!%p5053_p8) target bundleno = 5341 (0x14dd), region = 314 }
0x15e4   : >> { %v5291_v28 = vpop.f32.mrf.mxu0  ;;  %v5301_v29 = vpop.f32.mrf.mxu1 }
0x15e5   : >> { %5314 = vst [vmem:[%s5311_s22 + $0x10] sm:$0xff] %v5291_v28  ;;  %5318 = vst [vmem:[%s5311_s22 + $0x30] sm:$0xff] %v5301_v29 }
0x15e6   : >> { %v5293_v30 = vpop.f32.mrf.mxu0  ;;  %v5303_v32 = vpop.f32.mrf.mxu1 }
0x15e7   : >> { %5315 = vst [vmem:[%s5311_s22 + $0x18] sm:$0xff] %v5293_v30  ;;  %5319 = vst [vmem:[%s5311_s22 + $0x38] sm:$0xff] %v5303_v32 }
0x15ee   : > { %v5349_v20 = vld [vmem:[#allocation2 + $0xe8] sm:$0xff]  ;;  %v5351_v11 = vld [vmem:[#allocation2 + $0xf8] sm:$0xff]  ;;  %v5348_v14 = vld [vmem:[#allocation2 + $0xe0] sm:$0xff] }
0x15ef   : > { %v5383_v34 = vpack.c.bf16 %v5351_v11, %v5349_v20  ;;  %v5350_v31 = vld [vmem:[#allocation2 + $0xf0] sm:$0xff]  ;;  %v5345_v55 = vld [vmem:[#allocation2 + $0xc8] sm:$0xff]  ;;  %v5347_v63 = vld [vmem:[#allocation2 + $0xd8] sm:$0xff] }
0x15f0   : > { %v5382_v36 = vpack.c.bf16 %v5350_v31, %v5348_v14  ;;  %v5381_v5 = vpack.c.bf16 %v5347_v63, %v5345_v55  ;;  %v5344_v18 = vld [vmem:[#allocation2 + $0xc0] sm:$0xff]  ;;  %v5346_v15 = vld [vmem:[#allocation2 + $0xd0] sm:$0xff]  ;;  %v5341_v37 = vld [vmem:[#allocation2 + $0xa8] sm:$0xff] }
0x15f1   : > { %5420 = vmatprep.subr.bf16.mxu0 %v5383_v34  ;;  %7832 = vmatprep.subr.bf16.mxu1 %v5383_v34  ;;  %v5343_v38 = vld [vmem:[#allocation2 + $0xb8] sm:$0xff]  ;;  %v5380_v39 = vpack.c.bf16 %v5346_v15, %v5344_v18  ;;  %v5340_v43 = vld [vmem:[#allocation2 + $0xa0] sm:$0xff]  ;;  %v5342_v44 = vld [vmem:[#allocation2 + $0xb0] sm:$0xff] }
0x15f2   : > { %5421 = vmatpush1.bf16.msra.mxu0 %v5382_v36  ;;  %7844 = vmatpush1.bf16.msra.mxu1 %v5382_v36  ;;  %v5379_v40 = vpack.c.bf16 %v5343_v38, %v5341_v37  ;;  %v5337_v46 = vld [vmem:[#allocation2 + $0x88] sm:$0xff]  ;;  %v5339_v19 = vld [vmem:[#allocation2 + $0x98] sm:$0xff]  ;;  %v5378_v22 = vpack.c.bf16 %v5342_v44, %v5340_v43  ;;  %v5336_v13 = vld [vmem:[#allocation2 + $0x80] sm:$0xff] }
0x15f3   : > { %5422 = vmatprep.subr.bf16.mxu0 %v5381_v5  ;;  %7833 = vmatprep.subr.bf16.mxu1 %v5381_v5  ;;  %v5377_v35 = vpack.c.bf16 %v5339_v19, %v5337_v46  ;;  %v5338_v51 = vld [vmem:[#allocation2 + $0x90] sm:$0xff]  ;;  %v5333_v52 = vld [vmem:[#allocation2 + $0x68] sm:$0xff]  ;;  %v5335_v41 = vld [vmem:[#allocation2 + $0x78] sm:$0xff] }
0x15f4   : > { %v5376_v42 = vpack.c.bf16 %v5338_v51, %v5336_v13  ;;  %v5375_v49 = vpack.c.bf16 %v5335_v41, %v5333_v52  ;;  %v5332_v50 = vld [vmem:[#allocation2 + $0x60] sm:$0xff]  ;;  %v5334_v53 = vld [vmem:[#allocation2 + $0x70] sm:$0xff]  ;;  %v5329_v54 = vld [vmem:[#allocation2 + $0x48] sm:$0xff] }
0x15f5   : > { %v5331_v56 = vld [vmem:[#allocation2 + $0x58] sm:$0xff]  ;;  %v5328_v57 = vld [vmem:[#allocation2 + $0x40] sm:$0xff]  ;;  %v5374_v58 = vpack.c.bf16 %v5334_v53, %v5332_v50  ;;  %v5330_v59 = vld [vmem:[#allocation2 + $0x50] sm:$0xff] }
0x15f6   : > { %5423 = vmatpush1.bf16.msra.mxu0 %v5380_v39  ;;  %7845 = vmatpush1.bf16.msra.mxu1 %v5380_v39  ;;  %v5373_v60 = vpack.c.bf16 %v5331_v56, %v5329_v54  ;;  %v5325_v62 = vld [vmem:[#allocation2 + $0x28] sm:$0xff]  ;;  %v5327_v1 = vld [vmem:[#allocation2 + $0x38] sm:$0xff]  ;;  %v5372_v3 = vpack.c.bf16 %v5330_v59, %v5328_v57  ;;  %v5324_v6 = vld [vmem:[#allocation2 + $0x20] sm:$0xff] }
0x15f7   : > { %5424 = vmatprep.subr.bf16.mxu0 %v5379_v40  ;;  %7834 = vmatprep.subr.bf16.mxu1 %v5379_v40  ;;  %v5371_v4 = vpack.c.bf16 %v5327_v1, %v5325_v62  ;;  %v5326_v7 = vld [vmem:[#allocation2 + $0x30] sm:$0xff]  ;;  %v5321_v8 = vld [vmem:[#allocation2 + $0x8] sm:$0xff]  ;;  %v5323_v10 = vld [vmem:[#allocation2 + $0x18] sm:$0xff] }
0x15f8   : > { %v5370_v16 = vpack.c.bf16 %v5326_v7, %v5324_v6  ;;  %v5369_v17 = vpack.c.bf16 %v5323_v10, %v5321_v8  ;;  %v5320_v21 = vld [vmem:[#allocation2] sm:$0xff]  ;;  %v5322_v24 = vld [vmem:[#allocation2 + $0x10] sm:$0xff]  ;;  %v5365_v25 = vld [vmem:[#allocation2 + $0x168] sm:$0xff] }
0x15f9   : > { %v5367_v12 = vld [vmem:[#allocation2 + $0x178] sm:$0xff]  ;;  %v5368_v45 = vpack.c.bf16 %v5322_v24, %v5320_v21  ;;  %v5364_v26 = vld [vmem:[#allocation2 + $0x160] sm:$0xff]  ;;  %v5366_v27 = vld [vmem:[#allocation2 + $0x170] sm:$0xff] }
0x15fa   : > { %5425 = vmatpush1.bf16.msra.mxu0 %v5378_v22  ;;  %7846 = vmatpush1.bf16.msra.mxu1 %v5378_v22  ;;  %v5391_v9 = vpack.c.bf16 %v5367_v12, %v5365_v25  ;;  %v5361_v28 = vld [vmem:[#allocation2 + $0x148] sm:$0xff]  ;;  %v5363_v29 = vld [vmem:[#allocation2 + $0x158] sm:$0xff]  ;;  %v5390_v30 = vpack.c.bf16 %v5366_v27, %v5364_v26  ;;  %v5360_v20 = vld [vmem:[#allocation2 + $0x140] sm:$0xff] }
0x15fb   : > { %5426 = vmatprep.subr.bf16.mxu0 %v5377_v35  ;;  %7835 = vmatprep.subr.bf16.mxu1 %v5377_v35  ;;  %v5389_v32 = vpack.c.bf16 %v5363_v29, %v5361_v28  ;;  %v5362_v11 = vld [vmem:[#allocation2 + $0x150] sm:$0xff]  ;;  %v5357_v14 = vld [vmem:[#allocation2 + $0x128] sm:$0xff]  ;;  %v5359_v34 = vld [vmem:[#allocation2 + $0x138] sm:$0xff] }
0x15fc   : > { %v5388_v31 = vpack.c.bf16 %v5362_v11, %v5360_v20  ;;  %v5387_v55 = vpack.c.bf16 %v5359_v34, %v5357_v14  ;;  %v5356_v63 = vld [vmem:[#allocation2 + $0x120] sm:$0xff]  ;;  %v5358_v36 = vld [vmem:[#allocation2 + $0x130] sm:$0xff]  ;;  %v5353_v5 = vld [vmem:[#allocation2 + $0x108] sm:$0xff] }
0x15fd   : > { %v5355_v18 = vld [vmem:[#allocation2 + $0x118] sm:$0xff]  ;;  %v5386_v15 = vpack.c.bf16 %v5358_v36, %v5356_v63  ;;  %v5352_v38 = vld [vmem:[#allocation2 + $0x100] sm:$0xff]  ;;  %v5354_v39 = vld [vmem:[#allocation2 + $0x110] sm:$0xff] }
0x15fe   : > { %5427 = vmatpush1.bf16.msra.mxu0 %v5376_v42  ;;  %7847 = vmatpush1.bf16.msra.mxu1 %v5376_v42  ;;  %v5385_v37 = vpack.c.bf16 %v5355_v18, %v5353_v5  ;;  %v5384_v40 = vpack.c.bf16 %v5354_v39, %v5352_v38  ;;  %v8390_v43 = vld [vmem:[%s10050_s17] ss:$8 sps:$4 sm:$0xff]   ;;  %v8393_v44 = vld [vmem:[%s10050_s17 + $0x10] ss:$8 sps:$4 sm:$0xff]  }
0x15ff   : > { %5428 = vmatprep.subr.bf16.mxu0 %v5375_v49  ;;  %7836 = vmatprep.subr.bf16.mxu1 %v5375_v49 }
0x1602   : > { %5429 = vmatpush1.bf16.msra.mxu0 %v5374_v58  ;;  %7848 = vmatpush1.bf16.msra.mxu1 %v5374_v58 }
0x1603   : > { %5430 = vmatprep.subr.bf16.mxu0 %v5373_v60  ;;  %7837 = vmatprep.subr.bf16.mxu1 %v5373_v60 }
0x1606   : > { %5431 = vmatpush1.bf16.msra.mxu0 %v5372_v3  ;;  %7849 = vmatpush1.bf16.msra.mxu1 %v5372_v3 }
0x1607   : > { %5432 = vmatprep.subr.bf16.mxu0 %v5371_v4  ;;  %7838 = vmatprep.subr.bf16.mxu1 %v5371_v4 }
0x160a   : > { %5433 = vmatpush1.bf16.msra.mxu0 %v5370_v16  ;;  %7850 = vmatpush1.bf16.msra.mxu1 %v5370_v16 }
0x160b   : > { %5434 = vmatprep.subr.bf16.mxu0 %v5369_v17  ;;  %7839 = vmatprep.subr.bf16.mxu1 %v5369_v17 }
0x160e   : > { %5435 = vmatpush1.bf16.msra.mxu0 %v5368_v45  ;;  %7851 = vmatpush1.bf16.msra.mxu1 %v5368_v45 }
0x160f   : > { %5444 = vmatprep.subr.bf16.mxu0 %v5391_v9  ;;  %7840 = vmatprep.subr.bf16.mxu1 %v5391_v9 }
0x1612   : > { %5445 = vmatpush2.bf16.msra.mxu0 %v5390_v30  ;;  %7852 = vmatpush2.bf16.msra.mxu1 %v5390_v30 }
0x1613   : > { %5446 = vmatprep.subr.bf16.mxu0 %v5389_v32  ;;  %7841 = vmatprep.subr.bf16.mxu1 %v5389_v32 }
0x1616   : > { %5447 = vmatpush2.bf16.msra.mxu0 %v5388_v31  ;;  %7853 = vmatpush2.bf16.msra.mxu1 %v5388_v31 }
0x1617   : > { %5448 = vmatprep.subr.bf16.mxu0 %v5387_v55  ;;  %7842 = vmatprep.subr.bf16.mxu1 %v5387_v55 }
0x161a   : > { %5449 = vmatpush2.bf16.msra.mxu0 %v5386_v15  ;;  %7854 = vmatpush2.bf16.msra.mxu1 %v5386_v15 }
0x161b   : > { %5450 = vmatprep.subr.bf16.mxu0 %v5385_v37  ;;  %7843 = vmatprep.subr.bf16.mxu1 %v5385_v37 }
0x161e   : > { %5451 = vmatpush2.bf16.msra.mxu0 %v5384_v40  ;;  %7855 = vmatpush2.bf16.msra.mxu1 %v5384_v40 }
0x1621   : > { %5453 = vmatmul.mubr.bf16.vlgmr.msra.gmra.mxu0 %v8390_v43  ;;  %5463 = vmatmul.mubr.bf16.vlgmr.msra.gmra.mxu1 %v8393_v44 }
0x16e1   : > { %v5454_v46 = vpop.f32.mrf.mxu0  ;;  %v5464_v19 = vpop.f32.mrf.mxu1 }
0x16e2   : > { %5473 = vst [vmem:[%s8782_s30 + $0x10] sm:$0xff] %v5454_v46  ;;  %5477 = vst [vmem:[%s8782_s30 + $0x90] sm:$0xff] %v5464_v19 }
0x16e3   : > { %v5456_v22 = vpop.f32.mrf.mxu0  ;;  %v5466_v35 = vpop.f32.mrf.mxu1 }
0x16e4   : > { %5474 = vst [vmem:[%s8782_s30 + $0x18] sm:$0xff] %v5456_v22  ;;  %5478 = vst [vmem:[%s8782_s30 + $0x98] sm:$0xff] %v5466_v35 }
0x16e5   : > { %v5458_v13 = vpop.f32.mrf.mxu0  ;;  %v5468_v51 = vpop.f32.mrf.mxu1 }
0x16e6   : > { %5475 = vst [vmem:[%s8782_s30 + $0x50] sm:$0xff] %v5458_v13  ;;  %5479 = vst [vmem:[%s8782_s30 + $0xd0] sm:$0xff] %v5468_v51 }
0x16e7   : > { %v5460_v52 = vpop.f32.mrf.mxu0  ;;  %v5470_v41 = vpop.f32.mrf.mxu1 }
0x16e8   : > { %5476 = vst [vmem:[%s8782_s30 + $0x58] sm:$0xff] %v5460_v52  ;;  %5480 = vst [vmem:[%s8782_s30 + $0xd8] sm:$0xff] %v5470_v41 }
0x16e9 LB: >> { %5715 = vmatprep.mubr.bf16.mxu0 %v9390_v33  ;;  %5725 = vmatprep.mubr.bf16.mxu1 %v9398_v48  ;;  %s7083_s4 = sshll.u32 %s8620_s0, 8  ;;  %s7148_s23 = sshll.u32 %s8620_s0, 5  ;;  %s8620_s0 = sphi %s9554_s0, %s5486_s0  }
0x16ea   : >> { %s9565_s22 = scalar_lea.vmem %s10040_s7, %s7083_s4  ;;  %s5737_s1 = sshra.s32 %s7148_s23, 3 }
0x16eb   : >> { %v8396_v42 = vld [vmem:[%s9565_s22 + $0xf74] ss:$8 sps:$4 sm:$0xff]   ;;  %v8398_v49 = vld [vmem:[%s9565_s22 + $0xf70] ss:$8 sps:$4 sm:$0xff]   ;;  %v8399_v50 = vld [vmem:[%s9565_s22 + $0xf64] ss:$8 sps:$4 sm:$0xff]  }
0x16ec   : >> { %5683 = vmatprep.subr.bf16.mxu0 %v8396_v42  ;;  %7856 = vmatprep.subr.bf16.mxu1 %v8396_v42  ;;  %v8401_v53 = vld [vmem:[%s9565_s22 + $0xf60] ss:$8 sps:$4 sm:$0xff]   ;;  %v8402_v54 = vld [vmem:[%s9565_s22 + $0xf54] ss:$8 sps:$4 sm:$0xff]   ;;  %v8404_v56 = vld [vmem:[%s9565_s22 + $0xf50] ss:$8 sps:$4 sm:$0xff]  }
0x16ed   : >> { %5684 = vmatpush1.bf16.msra.mxu0 %v8398_v49  ;;  %7872 = vmatpush1.bf16.msra.mxu1 %v8398_v49  ;;  %v8405_v57 = vld [vmem:[%s9565_s22 + $0xf44] ss:$8 sps:$4 sm:$0xff]   ;;  %v8407_v58 = vld [vmem:[%s9565_s22 + $0xf40] ss:$8 sps:$4 sm:$0xff]   ;;  %v8408_v59 = vld [vmem:[%s9565_s22 + $0xf34] ss:$8 sps:$4 sm:$0xff]  }
0x16ee   : >> { %5685 = vmatprep.subr.bf16.mxu0 %v8399_v50  ;;  %7857 = vmatprep.subr.bf16.mxu1 %v8399_v50  ;;  %v8410_v60 = vld [vmem:[%s9565_s22 + $0xf30] ss:$8 sps:$4 sm:$0xff]   ;;  %v8411_v61 = vld [vmem:[%s9565_s22 + $0xf24] ss:$8 sps:$4 sm:$0xff]   ;;  %v8413_v62 = vld [vmem:[%s9565_s22 + $0xf20] ss:$8 sps:$4 sm:$0xff]  }
0x16ef   : >> { %v8414_v1 = vld [vmem:[%s9565_s22 + $0xf14] ss:$8 sps:$4 sm:$0xff]   ;;  %v8416_v2 = vld [vmem:[%s9565_s22 + $0xf10] ss:$8 sps:$4 sm:$0xff]   ;;  %v8417_v3 = vld [vmem:[%s9565_s22 + $0xf04] ss:$8 sps:$4 sm:$0xff]  }
0x16f0   : >> { %v8419_v4 = vld [vmem:[%s9565_s22 + $0xf00] ss:$8 sps:$4 sm:$0xff]   ;;  %v8420_v6 = vld [vmem:[%s9565_s22 + $0xff4] ss:$8 sps:$4 sm:$0xff]   ;;  %v8422_v7 = vld [vmem:[%s9565_s22 + $0xff0] ss:$8 sps:$4 sm:$0xff]  }
0x16f1   : >> { %5686 = vmatpush1.bf16.msra.mxu0 %v8401_v53  ;;  %7873 = vmatpush1.bf16.msra.mxu1 %v8401_v53  ;;  %v8423_v8 = vld [vmem:[%s9565_s22 + $0xfe4] ss:$8 sps:$4 sm:$0xff]   ;;  %v8425_v10 = vld [vmem:[%s9565_s22 + $0xfe0] ss:$8 sps:$4 sm:$0xff]   ;;  %v8426_v16 = vld [vmem:[%s9565_s22 + $0xfd4] ss:$8 sps:$4 sm:$0xff]  }
0x16f2   : >> { %5687 = vmatprep.subr.bf16.mxu0 %v8402_v54  ;;  %7858 = vmatprep.subr.bf16.mxu1 %v8402_v54  ;;  %v8428_v17 = vld [vmem:[%s9565_s22 + $0xfd0] ss:$8 sps:$4 sm:$0xff]   ;;  %v8429_v21 = vld [vmem:[%s9565_s22 + $0xfc4] ss:$8 sps:$4 sm:$0xff]   ;;  %v8431_v24 = vld [vmem:[%s9565_s22 + $0xfc0] ss:$8 sps:$4 sm:$0xff]  }
0x16f3   : >> { %v8432_v25 = vld [vmem:[%s9565_s22 + $0xfb4] ss:$8 sps:$4 sm:$0xff]   ;;  %v8434_v12 = vld [vmem:[%s9565_s22 + $0xfb0] ss:$8 sps:$4 sm:$0xff]   ;;  %v8435_v45 = vld [vmem:[%s9565_s22 + $0xfa4] ss:$8 sps:$4 sm:$0xff]  }
0x16f4   : >> { %v8437_v9 = vld [vmem:[%s9565_s22 + $0xfa0] ss:$8 sps:$4 sm:$0xff]   ;;  %v8438_v26 = vld [vmem:[%s9565_s22 + $0xf94] ss:$8 sps:$4 sm:$0xff]   ;;  %v8440_v27 = vld [vmem:[%s9565_s22 + $0xf90] ss:$8 sps:$4 sm:$0xff]  }
0x16f5   : >> { %5688 = vmatpush1.bf16.msra.mxu0 %v8404_v56  ;;  %7874 = vmatpush1.bf16.msra.mxu1 %v8404_v56  ;;  %v8441_v28 = vld [vmem:[%s9565_s22 + $0xf84] ss:$8 sps:$4 sm:$0xff]   ;;  %v8443_v29 = vld [vmem:[%s9565_s22 + $0xf80] ss:$8 sps:$4 sm:$0xff]   ;;  %s7245_s28 = sshll.u32 %s5737_s1, 4  ;;  %s5486_s0 = sadd.s32 1, %s8620_s0  }
0x16f6   : >> { %5689 = vmatprep.subr.bf16.mxu0 %v8405_v57  ;;  %7859 = vmatprep.subr.bf16.mxu1 %v8405_v57  ;;  %s5741_s24 = scalar_lea.vmem [#allocation2], %s7245_s28  ;;  %p5483_p9 = scmp.ge.s32.totalorder %s5486_s0, 6  }
0x16f7   : > { %s9627_s22 = smov (%p5483_p9), 0  }
0x16f9   : >> { %5690 = vmatpush1.bf16.msra.mxu0 %v8407_v58  ;;  %7875 = vmatpush1.bf16.msra.mxu1 %v8407_v58 }
0x16fa   : >> { %5691 = vmatprep.subr.bf16.mxu0 %v8408_v59  ;;  %7860 = vmatprep.subr.bf16.mxu1 %v8408_v59 }
0x16fd   : >> { %5692 = vmatpush1.bf16.msra.mxu0 %v8410_v60  ;;  %7876 = vmatpush1.bf16.msra.mxu1 %v8410_v60 }
0x16fe   : >> { %5693 = vmatprep.subr.bf16.mxu0 %v8411_v61  ;;  %7861 = vmatprep.subr.bf16.mxu1 %v8411_v61 }
0x1701   : >> { %5694 = vmatpush1.bf16.msra.mxu0 %v8413_v62  ;;  %7877 = vmatpush1.bf16.msra.mxu1 %v8413_v62 }
0x1702   : >> { %5695 = vmatprep.subr.bf16.mxu0 %v8414_v1  ;;  %7862 = vmatprep.subr.bf16.mxu1 %v8414_v1 }
0x1705   : >> { %5696 = vmatpush1.bf16.msra.mxu0 %v8416_v2  ;;  %7878 = vmatpush1.bf16.msra.mxu1 %v8416_v2 }
0x1706   : >> { %5697 = vmatprep.subr.bf16.mxu0 %v8417_v3  ;;  %7863 = vmatprep.subr.bf16.mxu1 %v8417_v3 }
0x1709   : >> { %5698 = vmatpush1.bf16.msra.mxu0 %v8419_v4  ;;  %7879 = vmatpush1.bf16.msra.mxu1 %v8419_v4 }
0x170a   : >> { %5699 = vmatprep.subr.bf16.mxu0 %v8420_v6  ;;  %7864 = vmatprep.subr.bf16.mxu1 %v8420_v6  ;;  %v8446_v6 = vld [vmem:[%s10051_s18 + $0x4] ss:$8 sps:$4 sm:$0xff] (%p5483_p9)  }
0x170d   : >> { %5700 = vmatpush2.bf16.msra.mxu0 %v8422_v7  ;;  %7880 = vmatpush2.bf16.msra.mxu1 %v8422_v7 }
0x170e   : >> { %5701 = vmatprep.subr.bf16.mxu0 %v8423_v8  ;;  %7865 = vmatprep.subr.bf16.mxu1 %v8423_v8 }
0x1711   : >> { %5702 = vmatpush2.bf16.msra.mxu0 %v8425_v10  ;;  %7881 = vmatpush2.bf16.msra.mxu1 %v8425_v10  ;;  %v8449_v10 = vld [vmem:[%s10051_s18 + $0x14] ss:$8 sps:$4 sm:$0xff] (%p5483_p9)  }
0x1712   : >> { %5703 = vmatprep.subr.bf16.mxu0 %v8426_v16  ;;  %7866 = vmatprep.subr.bf16.mxu1 %v8426_v16 }
0x1715   : >> { %5704 = vmatpush2.bf16.msra.mxu0 %v8428_v17  ;;  %7882 = vmatpush2.bf16.msra.mxu1 %v8428_v17 }
0x1716   : >> { %5705 = vmatprep.subr.bf16.mxu0 %v8429_v21  ;;  %7867 = vmatprep.subr.bf16.mxu1 %v8429_v21 }
0x1719   : >> { %5706 = vmatpush2.bf16.msra.mxu0 %v8431_v24  ;;  %7883 = vmatpush2.bf16.msra.mxu1 %v8431_v24 }
0x171a   : >> { %5707 = vmatprep.subr.bf16.mxu0 %v8432_v25  ;;  %7868 = vmatprep.subr.bf16.mxu1 %v8432_v25 }
0x171d   : >> { %5708 = vmatpush2.bf16.msra.mxu0 %v8434_v12  ;;  %7884 = vmatpush2.bf16.msra.mxu1 %v8434_v12 }
0x171e   : >> { %5709 = vmatprep.subr.bf16.mxu0 %v8435_v45  ;;  %7869 = vmatprep.subr.bf16.mxu1 %v8435_v45 }
0x1721   : >> { %5710 = vmatpush2.bf16.msra.mxu0 %v8437_v9  ;;  %7885 = vmatpush2.bf16.msra.mxu1 %v8437_v9 }
0x1722   : >> { %5711 = vmatprep.subr.bf16.mxu0 %v8438_v26  ;;  %7870 = vmatprep.subr.bf16.mxu1 %v8438_v26 }
0x1725   : >> { %5712 = vmatpush2.bf16.msra.mxu0 %v8440_v27  ;;  %7886 = vmatpush2.bf16.msra.mxu1 %v8440_v27 }
0x1726   : >> { %5713 = vmatprep.subr.bf16.mxu0 %v8441_v28  ;;  %7871 = vmatprep.subr.bf16.mxu1 %v8441_v28 }
0x1729   : >> { %5714 = vmatpush2.bf16.msra.mxu0 %v8443_v29  ;;  %7887 = vmatpush2.bf16.msra.mxu1 %v8443_v29 }
0x172c   : >> { %5716 = vmatmul.mubr.bf16.vlgmr.msra.gmra.mxu0 %v9388_v23  ;;  %5726 = vmatmul.mubr.bf16.vlgmr.msra.gmra.mxu1 %v9396_v47 }
0x172d   : > { %7155 = vmatprep.mubr.msk.bf16.mxu0 (%p5483_p9), %vm1070_vm3, %v8446_v6  ;;  %7156 = vmatprep.mubr.msk.bf16.mxu1 (%p5483_p9), %vm1070_vm3, %v8449_v10 }
0x17ec   : >> { %v5717_v30 = vpop.f32.mrf.mxu0  ;;  %v5727_v32 = vpop.f32.mrf.mxu1 }
0x17ed   : >> { %5742 = vst [vmem:[%s5741_s24] sm:$0xff] %v5717_v30  ;;  %5746 = vst [vmem:[%s5741_s24 + $0x20] sm:$0xff] %v5727_v32 }
0x17ee   : >> { %v5719_v20 = vpop.f32.mrf.mxu0  ;;  %v5729_v11 = vpop.f32.mrf.mxu1 }
0x17ef   : >> { %5743 = vst [vmem:[%s5741_s24 + $0x8] sm:$0xff] %v5719_v20  ;;  %5747 = vst [vmem:[%s5741_s24 + $0x28] sm:$0xff] %v5729_v11  ;;  %5485 = sbr.rel (!%p5483_p9) target bundleno = 5865 (0x16e9), region = 325 }
0x17f0   : >> { %v5721_v14 = vpop.f32.mrf.mxu0  ;;  %v5731_v34 = vpop.f32.mrf.mxu1 }
0x17f1   : >> { %5744 = vst [vmem:[%s5741_s24 + $0x10] sm:$0xff] %v5721_v14  ;;  %5748 = vst [vmem:[%s5741_s24 + $0x30] sm:$0xff] %v5731_v34 }
0x17f2   : >> { %v5723_v31 = vpop.f32.mrf.mxu0  ;;  %v5733_v55 = vpop.f32.mrf.mxu1 }
0x17f3   : >> { %5745 = vst [vmem:[%s5741_s24 + $0x18] sm:$0xff] %v5723_v31  ;;  %5749 = vst [vmem:[%s5741_s24 + $0x38] sm:$0xff] %v5733_v55 }
0x17fa   : > { %v5779_v63 = vld [vmem:[#allocation2 + $0xe8] sm:$0xff]  ;;  %v5781_v36 = vld [vmem:[#allocation2 + $0xf8] sm:$0xff]  ;;  %v5778_v5 = vld [vmem:[#allocation2 + $0xe0] sm:$0xff] }
0x17fb   : > { %v5813_v18 = vpack.c.bf16 %v5781_v36, %v5779_v63  ;;  %v5780_v15 = vld [vmem:[#allocation2 + $0xf0] sm:$0xff]  ;;  %v5775_v37 = vld [vmem:[#allocation2 + $0xc8] sm:$0xff]  ;;  %v5777_v38 = vld [vmem:[#allocation2 + $0xd8] sm:$0xff] }
0x17fc   : > { %v5812_v39 = vpack.c.bf16 %v5780_v15, %v5778_v5  ;;  %v5811_v40 = vpack.c.bf16 %v5777_v38, %v5775_v37  ;;  %v5774_v43 = vld [vmem:[#allocation2 + $0xc0] sm:$0xff]  ;;  %v5776_v44 = vld [vmem:[#allocation2 + $0xd0] sm:$0xff]  ;;  %v5771_v46 = vld [vmem:[#allocation2 + $0xa8] sm:$0xff] }
0x17fd   : > { %5850 = vmatprep.subr.bf16.mxu0 %v5813_v18  ;;  %7888 = vmatprep.subr.bf16.mxu1 %v5813_v18  ;;  %v5773_v19 = vld [vmem:[#allocation2 + $0xb8] sm:$0xff]  ;;  %v5810_v22 = vpack.c.bf16 %v5776_v44, %v5774_v43  ;;  %v5770_v13 = vld [vmem:[#allocation2 + $0xa0] sm:$0xff]  ;;  %v5772_v51 = vld [vmem:[#allocation2 + $0xb0] sm:$0xff] }
0x17fe   : > { %5851 = vmatpush1.bf16.msra.mxu0 %v5812_v39  ;;  %7900 = vmatpush1.bf16.msra.mxu1 %v5812_v39  ;;  %v5809_v35 = vpack.c.bf16 %v5773_v19, %v5771_v46  ;;  %v5767_v52 = vld [vmem:[#allocation2 + $0x88] sm:$0xff]  ;;  %v5769_v41 = vld [vmem:[#allocation2 + $0x98] sm:$0xff]  ;;  %v5808_v42 = vpack.c.bf16 %v5772_v51, %v5770_v13  ;;  %v5766_v50 = vld [vmem:[#allocation2 + $0x80] sm:$0xff] }
0x17ff   : > { %5852 = vmatprep.subr.bf16.mxu0 %v5811_v40  ;;  %7889 = vmatprep.subr.bf16.mxu1 %v5811_v40  ;;  %v5807_v49 = vpack.c.bf16 %v5769_v41, %v5767_v52  ;;  %v5768_v53 = vld [vmem:[#allocation2 + $0x90] sm:$0xff]  ;;  %v5763_v54 = vld [vmem:[#allocation2 + $0x68] sm:$0xff]  ;;  %v5765_v56 = vld [vmem:[#allocation2 + $0x78] sm:$0xff] }
0x1800   : > { %v5806_v57 = vpack.c.bf16 %v5768_v53, %v5766_v50  ;;  %v5805_v58 = vpack.c.bf16 %v5765_v56, %v5763_v54  ;;  %v5762_v59 = vld [vmem:[#allocation2 + $0x60] sm:$0xff]  ;;  %v5764_v60 = vld [vmem:[#allocation2 + $0x70] sm:$0xff]  ;;  %v5759_v61 = vld [vmem:[#allocation2 + $0x48] sm:$0xff] }
0x1801   : > { %v5761_v62 = vld [vmem:[#allocation2 + $0x58] sm:$0xff]  ;;  %v5758_v1 = vld [vmem:[#allocation2 + $0x40] sm:$0xff]  ;;  %v5804_v2 = vpack.c.bf16 %v5764_v60, %v5762_v59  ;;  %v5760_v3 = vld [vmem:[#allocation2 + $0x50] sm:$0xff] }
0x1802   : > { %5853 = vmatpush1.bf16.msra.mxu0 %v5810_v22  ;;  %7901 = vmatpush1.bf16.msra.mxu1 %v5810_v22  ;;  %v5803_v4 = vpack.c.bf16 %v5761_v62, %v5759_v61  ;;  %v5755_v7 = vld [vmem:[#allocation2 + $0x28] sm:$0xff]  ;;  %v5757_v8 = vld [vmem:[#allocation2 + $0x38] sm:$0xff]  ;;  %v5802_v16 = vpack.c.bf16 %v5760_v3, %v5758_v1  ;;  %v5754_v21 = vld [vmem:[#allocation2 + $0x20] sm:$0xff] }
0x1803   : > { %5854 = vmatprep.subr.bf16.mxu0 %v5809_v35  ;;  %7890 = vmatprep.subr.bf16.mxu1 %v5809_v35  ;;  %v5801_v17 = vpack.c.bf16 %v5757_v8, %v5755_v7  ;;  %v5756_v24 = vld [vmem:[#allocation2 + $0x30] sm:$0xff]  ;;  %v5751_v25 = vld [vmem:[#allocation2 + $0x8] sm:$0xff]  ;;  %v5753_v12 = vld [vmem:[#allocation2 + $0x18] sm:$0xff] }
0x1804   : > { %v5800_v45 = vpack.c.bf16 %v5756_v24, %v5754_v21  ;;  %v5799_v9 = vpack.c.bf16 %v5753_v12, %v5751_v25  ;;  %v5750_v26 = vld [vmem:[#allocation2] sm:$0xff]  ;;  %v5752_v27 = vld [vmem:[#allocation2 + $0x10] sm:$0xff]  ;;  %v5795_v28 = vld [vmem:[#allocation2 + $0x168] sm:$0xff] }
0x1805   : > { %v5797_v29 = vld [vmem:[#allocation2 + $0x178] sm:$0xff]  ;;  %v5798_v30 = vpack.c.bf16 %v5752_v27, %v5750_v26  ;;  %v5794_v20 = vld [vmem:[#allocation2 + $0x160] sm:$0xff]  ;;  %v5796_v11 = vld [vmem:[#allocation2 + $0x170] sm:$0xff] }
0x1806   : > { %5855 = vmatpush1.bf16.msra.mxu0 %v5808_v42  ;;  %7902 = vmatpush1.bf16.msra.mxu1 %v5808_v42  ;;  %v5821_v32 = vpack.c.bf16 %v5797_v29, %v5795_v28  ;;  %v5791_v14 = vld [vmem:[#allocation2 + $0x148] sm:$0xff]  ;;  %v5793_v34 = vld [vmem:[#allocation2 + $0x158] sm:$0xff]  ;;  %v5820_v31 = vpack.c.bf16 %v5796_v11, %v5794_v20  ;;  %v5790_v63 = vld [vmem:[#allocation2 + $0x140] sm:$0xff] }
0x1807   : > { %5856 = vmatprep.subr.bf16.mxu0 %v5807_v49  ;;  %7891 = vmatprep.subr.bf16.mxu1 %v5807_v49  ;;  %v5819_v55 = vpack.c.bf16 %v5793_v34, %v5791_v14  ;;  %v5792_v36 = vld [vmem:[#allocation2 + $0x150] sm:$0xff]  ;;  %v5787_v5 = vld [vmem:[#allocation2 + $0x128] sm:$0xff]  ;;  %v5789_v18 = vld [vmem:[#allocation2 + $0x138] sm:$0xff] }
0x1808   : > { %v5818_v15 = vpack.c.bf16 %v5792_v36, %v5790_v63  ;;  %v5817_v37 = vpack.c.bf16 %v5789_v18, %v5787_v5  ;;  %v5786_v38 = vld [vmem:[#allocation2 + $0x120] sm:$0xff]  ;;  %v5788_v39 = vld [vmem:[#allocation2 + $0x130] sm:$0xff]  ;;  %v5783_v40 = vld [vmem:[#allocation2 + $0x108] sm:$0xff] }
0x1809   : > { %v5785_v43 = vld [vmem:[#allocation2 + $0x118] sm:$0xff]  ;;  %v5816_v44 = vpack.c.bf16 %v5788_v39, %v5786_v38  ;;  %v5782_v19 = vld [vmem:[#allocation2 + $0x100] sm:$0xff]  ;;  %v5784_v22 = vld [vmem:[#allocation2 + $0x110] sm:$0xff] }
0x180a   : > { %5857 = vmatpush1.bf16.msra.mxu0 %v5806_v57  ;;  %7903 = vmatpush1.bf16.msra.mxu1 %v5806_v57  ;;  %v5815_v46 = vpack.c.bf16 %v5785_v43, %v5783_v40  ;;  %v5814_v35 = vpack.c.bf16 %v5784_v22, %v5782_v19  ;;  %v8444_v13 = vld [vmem:[%s10051_s18] ss:$8 sps:$4 sm:$0xff]   ;;  %v8447_v51 = vld [vmem:[%s10051_s18 + $0x10] ss:$8 sps:$4 sm:$0xff]  }
0x180b   : > { %5858 = vmatprep.subr.bf16.mxu0 %v5805_v58  ;;  %7892 = vmatprep.subr.bf16.mxu1 %v5805_v58 }
0x180e   : > { %5859 = vmatpush1.bf16.msra.mxu0 %v5804_v2  ;;  %7904 = vmatpush1.bf16.msra.mxu1 %v5804_v2 }
0x180f   : > { %5860 = vmatprep.subr.bf16.mxu0 %v5803_v4  ;;  %7893 = vmatprep.subr.bf16.mxu1 %v5803_v4 }
0x1812   : > { %5861 = vmatpush1.bf16.msra.mxu0 %v5802_v16  ;;  %7905 = vmatpush1.bf16.msra.mxu1 %v5802_v16 }
0x1813   : > { %5862 = vmatprep.subr.bf16.mxu0 %v5801_v17  ;;  %7894 = vmatprep.subr.bf16.mxu1 %v5801_v17 }
0x1816   : > { %5863 = vmatpush1.bf16.msra.mxu0 %v5800_v45  ;;  %7906 = vmatpush1.bf16.msra.mxu1 %v5800_v45 }
0x1817   : > { %5864 = vmatprep.subr.bf16.mxu0 %v5799_v9  ;;  %7895 = vmatprep.subr.bf16.mxu1 %v5799_v9 }
0x181a   : > { %5865 = vmatpush1.bf16.msra.mxu0 %v5798_v30  ;;  %7907 = vmatpush1.bf16.msra.mxu1 %v5798_v30 }
0x181b   : > { %5874 = vmatprep.subr.bf16.mxu0 %v5821_v32  ;;  %7896 = vmatprep.subr.bf16.mxu1 %v5821_v32 }
0x181e   : > { %5875 = vmatpush2.bf16.msra.mxu0 %v5820_v31  ;;  %7908 = vmatpush2.bf16.msra.mxu1 %v5820_v31 }
0x181f   : > { %5876 = vmatprep.subr.bf16.mxu0 %v5819_v55  ;;  %7897 = vmatprep.subr.bf16.mxu1 %v5819_v55 }
0x1822   : > { %5877 = vmatpush2.bf16.msra.mxu0 %v5818_v15  ;;  %7909 = vmatpush2.bf16.msra.mxu1 %v5818_v15 }
0x1823   : > { %5878 = vmatprep.subr.bf16.mxu0 %v5817_v37  ;;  %7898 = vmatprep.subr.bf16.mxu1 %v5817_v37 }
0x1826   : > { %5879 = vmatpush2.bf16.msra.mxu0 %v5816_v44  ;;  %7910 = vmatpush2.bf16.msra.mxu1 %v5816_v44 }
0x1827   : > { %5880 = vmatprep.subr.bf16.mxu0 %v5815_v46  ;;  %7899 = vmatprep.subr.bf16.mxu1 %v5815_v46 }
0x182a   : > { %5881 = vmatpush2.bf16.msra.mxu0 %v5814_v35  ;;  %7911 = vmatpush2.bf16.msra.mxu1 %v5814_v35 }
0x182d   : > { %5883 = vmatmul.mubr.bf16.vlgmr.msra.gmra.mxu0 %v8444_v13  ;;  %5893 = vmatmul.mubr.bf16.vlgmr.msra.gmra.mxu1 %v8447_v51 }
0x18ed   : > { %v5884_v52 = vpop.f32.mrf.mxu0  ;;  %v5894_v41 = vpop.f32.mrf.mxu1 }
0x18ee   : > { %5903 = vst [vmem:[%s8782_s30 + $0x20] sm:$0xff] %v5884_v52  ;;  %5907 = vst [vmem:[%s8782_s30 + $0xa0] sm:$0xff] %v5894_v41 }
0x18ef   : > { %v5886_v42 = vpop.f32.mrf.mxu0  ;;  %v5896_v49 = vpop.f32.mrf.mxu1 }
0x18f0   : > { %5904 = vst [vmem:[%s8782_s30 + $0x28] sm:$0xff] %v5886_v42  ;;  %5908 = vst [vmem:[%s8782_s30 + $0xa8] sm:$0xff] %v5896_v49 }
0x18f1   : > { %v5888_v50 = vpop.f32.mrf.mxu0  ;;  %v5898_v53 = vpop.f32.mrf.mxu1 }
0x18f2   : > { %5905 = vst [vmem:[%s8782_s30 + $0x60] sm:$0xff] %v5888_v50  ;;  %5909 = vst [vmem:[%s8782_s30 + $0xe0] sm:$0xff] %v5898_v53 }
0x18f3   : > { %v5890_v54 = vpop.f32.mrf.mxu0  ;;  %v5900_v56 = vpop.f32.mrf.mxu1 }
0x18f4   : > { %5906 = vst [vmem:[%s8782_s30 + $0x68] sm:$0xff] %v5890_v54  ;;  %5910 = vst [vmem:[%s8782_s30 + $0xe8] sm:$0xff] %v5900_v56 }
0x18f5 LB: >> { %6145 = vmatprep.mubr.bf16.mxu0 %v9390_v33  ;;  %6155 = vmatprep.mubr.bf16.mxu1 %v9398_v48  ;;  %s7157_s23 = sshll.u32 %s8624_s22, 8  ;;  %s7222_s26 = sshll.u32 %s8624_s22, 5  ;;  %s8624_s22 = sphi %s9627_s22, %s5916_s22  }
0x18f6   : >> { %s9638_s24 = scalar_lea.vmem %s10040_s7, %s7157_s23  ;;  %s6167_s27 = sshra.s32 %s7222_s26, 3 }
0x18f7   : >> { %v8450_v57 = vld [vmem:[%s9638_s24 + $0x1574] ss:$8 sps:$4 sm:$0xff]   ;;  %v8452_v58 = vld [vmem:[%s9638_s24 + $0x1570] ss:$8 sps:$4 sm:$0xff]   ;;  %v8453_v59 = vld [vmem:[%s9638_s24 + $0x1564] ss:$8 sps:$4 sm:$0xff]  }
0x18f8   : >> { %6113 = vmatprep.subr.bf16.mxu0 %v8450_v57  ;;  %7912 = vmatprep.subr.bf16.mxu1 %v8450_v57  ;;  %v8455_v60 = vld [vmem:[%s9638_s24 + $0x1560] ss:$8 sps:$4 sm:$0xff]   ;;  %v8456_v61 = vld [vmem:[%s9638_s24 + $0x1554] ss:$8 sps:$4 sm:$0xff]   ;;  %v8458_v62 = vld [vmem:[%s9638_s24 + $0x1550] ss:$8 sps:$4 sm:$0xff]  }
0x18f9   : >> { %6114 = vmatpush1.bf16.msra.mxu0 %v8452_v58  ;;  %7928 = vmatpush1.bf16.msra.mxu1 %v8452_v58  ;;  %v8459_v1 = vld [vmem:[%s9638_s24 + $0x1544] ss:$8 sps:$4 sm:$0xff]   ;;  %v8461_v2 = vld [vmem:[%s9638_s24 + $0x1540] ss:$8 sps:$4 sm:$0xff]   ;;  %v8462_v3 = vld [vmem:[%s9638_s24 + $0x1534] ss:$8 sps:$4 sm:$0xff]  }
0x18fa   : >> { %6115 = vmatprep.subr.bf16.mxu0 %v8453_v59  ;;  %7913 = vmatprep.subr.bf16.mxu1 %v8453_v59  ;;  %v8464_v4 = vld [vmem:[%s9638_s24 + $0x1530] ss:$8 sps:$4 sm:$0xff]   ;;  %v8465_v6 = vld [vmem:[%s9638_s24 + $0x1524] ss:$8 sps:$4 sm:$0xff]   ;;  %v8467_v7 = vld [vmem:[%s9638_s24 + $0x1520] ss:$8 sps:$4 sm:$0xff]  }
0x18fb   : >> { %v8468_v8 = vld [vmem:[%s9638_s24 + $0x1514] ss:$8 sps:$4 sm:$0xff]   ;;  %v8470_v10 = vld [vmem:[%s9638_s24 + $0x1510] ss:$8 sps:$4 sm:$0xff]   ;;  %v8471_v16 = vld [vmem:[%s9638_s24 + $0x1504] ss:$8 sps:$4 sm:$0xff]  }
0x18fc   : >> { %v8473_v17 = vld [vmem:[%s9638_s24 + $0x1500] ss:$8 sps:$4 sm:$0xff]   ;;  %v8474_v21 = vld [vmem:[%s9638_s24 + $0x15f4] ss:$8 sps:$4 sm:$0xff]   ;;  %v8476_v24 = vld [vmem:[%s9638_s24 + $0x15f0] ss:$8 sps:$4 sm:$0xff]  }
0x18fd   : >> { %6116 = vmatpush1.bf16.msra.mxu0 %v8455_v60  ;;  %7929 = vmatpush1.bf16.msra.mxu1 %v8455_v60  ;;  %v8477_v25 = vld [vmem:[%s9638_s24 + $0x15e4] ss:$8 sps:$4 sm:$0xff]   ;;  %v8479_v12 = vld [vmem:[%s9638_s24 + $0x15e0] ss:$8 sps:$4 sm:$0xff]   ;;  %v8480_v45 = vld [vmem:[%s9638_s24 + $0x15d4] ss:$8 sps:$4 sm:$0xff]  }
0x18fe   : >> { %6117 = vmatprep.subr.bf16.mxu0 %v8456_v61  ;;  %7914 = vmatprep.subr.bf16.mxu1 %v8456_v61  ;;  %v8482_v9 = vld [vmem:[%s9638_s24 + $0x15d0] ss:$8 sps:$4 sm:$0xff]   ;;  %v8483_v26 = vld [vmem:[%s9638_s24 + $0x15c4] ss:$8 sps:$4 sm:$0xff]   ;;  %v8485_v27 = vld [vmem:[%s9638_s24 + $0x15c0] ss:$8 sps:$4 sm:$0xff]  }
0x18ff   : >> { %v8486_v28 = vld [vmem:[%s9638_s24 + $0x15b4] ss:$8 sps:$4 sm:$0xff]   ;;  %v8488_v29 = vld [vmem:[%s9638_s24 + $0x15b0] ss:$8 sps:$4 sm:$0xff]   ;;  %v8489_v30 = vld [vmem:[%s9638_s24 + $0x15a4] ss:$8 sps:$4 sm:$0xff]  }
0x1900   : >> { %v8491_v32 = vld [vmem:[%s9638_s24 + $0x15a0] ss:$8 sps:$4 sm:$0xff]   ;;  %v8492_v20 = vld [vmem:[%s9638_s24 + $0x1594] ss:$8 sps:$4 sm:$0xff]   ;;  %v8494_v11 = vld [vmem:[%s9638_s24 + $0x1590] ss:$8 sps:$4 sm:$0xff]  }
0x1901   : >> { %6118 = vmatpush1.bf16.msra.mxu0 %v8458_v62  ;;  %7930 = vmatpush1.bf16.msra.mxu1 %v8458_v62  ;;  %v8495_v14 = vld [vmem:[%s9638_s24 + $0x1584] ss:$8 sps:$4 sm:$0xff]   ;;  %v8497_v34 = vld [vmem:[%s9638_s24 + $0x1580] ss:$8 sps:$4 sm:$0xff]   ;;  %s7246_s3 = sshll.u32 %s6167_s27, 4  ;;  %s5916_s22 = sadd.s32 1, %s8624_s22  }
0x1902   : >> { %6119 = vmatprep.subr.bf16.mxu0 %v8459_v1  ;;  %7915 = vmatprep.subr.bf16.mxu1 %v8459_v1  ;;  %s6171_s29 = scalar_lea.vmem [#allocation2], %s7246_s3  ;;  %p5913_p10 = scmp.ge.s32.totalorder %s5916_s22, 4  }
0x1905   : >> { %6120 = vmatpush1.bf16.msra.mxu0 %v8461_v2  ;;  %7931 = vmatpush1.bf16.msra.mxu1 %v8461_v2 }
0x1906   : >> { %6121 = vmatprep.subr.bf16.mxu0 %v8462_v3  ;;  %7916 = vmatprep.subr.bf16.mxu1 %v8462_v3 }
0x1909   : >> { %6122 = vmatpush1.bf16.msra.mxu0 %v8464_v4  ;;  %7932 = vmatpush1.bf16.msra.mxu1 %v8464_v4 }
0x190a   : >> { %6123 = vmatprep.subr.bf16.mxu0 %v8465_v6  ;;  %7917 = vmatprep.subr.bf16.mxu1 %v8465_v6 }
0x190d   : >> { %6124 = vmatpush1.bf16.msra.mxu0 %v8467_v7  ;;  %7933 = vmatpush1.bf16.msra.mxu1 %v8467_v7 }
0x190e   : >> { %6125 = vmatprep.subr.bf16.mxu0 %v8468_v8  ;;  %7918 = vmatprep.subr.bf16.mxu1 %v8468_v8 }
0x1911   : >> { %6126 = vmatpush1.bf16.msra.mxu0 %v8470_v10  ;;  %7934 = vmatpush1.bf16.msra.mxu1 %v8470_v10 }
0x1912   : >> { %6127 = vmatprep.subr.bf16.mxu0 %v8471_v16  ;;  %7919 = vmatprep.subr.bf16.mxu1 %v8471_v16 }
0x1915   : >> { %6128 = vmatpush1.bf16.msra.mxu0 %v8473_v17  ;;  %7935 = vmatpush1.bf16.msra.mxu1 %v8473_v17 }
0x1916   : >> { %6129 = vmatprep.subr.bf16.mxu0 %v8474_v21  ;;  %7920 = vmatprep.subr.bf16.mxu1 %v8474_v21 }
0x1919   : >> { %6130 = vmatpush2.bf16.msra.mxu0 %v8476_v24  ;;  %7936 = vmatpush2.bf16.msra.mxu1 %v8476_v24 }
0x191a   : >> { %6131 = vmatprep.subr.bf16.mxu0 %v8477_v25  ;;  %7921 = vmatprep.subr.bf16.mxu1 %v8477_v25 }
0x191d   : >> { %6132 = vmatpush2.bf16.msra.mxu0 %v8479_v12  ;;  %7937 = vmatpush2.bf16.msra.mxu1 %v8479_v12 }
0x191e   : >> { %6133 = vmatprep.subr.bf16.mxu0 %v8480_v45  ;;  %7922 = vmatprep.subr.bf16.mxu1 %v8480_v45 }
0x1921   : >> { %6134 = vmatpush2.bf16.msra.mxu0 %v8482_v9  ;;  %7938 = vmatpush2.bf16.msra.mxu1 %v8482_v9 }
0x1922   : >> { %6135 = vmatprep.subr.bf16.mxu0 %v8483_v26  ;;  %7923 = vmatprep.subr.bf16.mxu1 %v8483_v26 }
0x1925   : >> { %6136 = vmatpush2.bf16.msra.mxu0 %v8485_v27  ;;  %7939 = vmatpush2.bf16.msra.mxu1 %v8485_v27 }
0x1926   : >> { %6137 = vmatprep.subr.bf16.mxu0 %v8486_v28  ;;  %7924 = vmatprep.subr.bf16.mxu1 %v8486_v28  ;;  %v8498_v28 = vld [vmem:[%s10052_s19] sm:$0xff] (%p5913_p10)  }
0x1929   : >> { %6138 = vmatpush2.bf16.msra.mxu0 %v8488_v29  ;;  %7940 = vmatpush2.bf16.msra.mxu1 %v8488_v29  ;;  %v8499_v29 = vld [vmem:[%s10052_s19 + $0x8] sm:$0xff] (%p5913_p10)  }
0x192a   : >> { %6139 = vmatprep.subr.bf16.mxu0 %v8489_v30  ;;  %7925 = vmatprep.subr.bf16.mxu1 %v8489_v30  ;;  %v9687_v30 = vld [vmem:[%s8782_s30] sm:$0xff] (%p5913_p10) }
0x192d   : >> { %6140 = vmatpush2.bf16.msra.mxu0 %v8491_v32  ;;  %7941 = vmatpush2.bf16.msra.mxu1 %v8491_v32  ;;  %v9690_v32 = vld [vmem:[%s8782_s30 + $0x8] sm:$0xff] (%p5913_p10) }
0x192e   : >> { %6141 = vmatprep.subr.bf16.mxu0 %v8492_v20  ;;  %7926 = vmatprep.subr.bf16.mxu1 %v8492_v20  ;;  %v9693_v20 = vld [vmem:[%s8782_s30 + $0x80] sm:$0xff] (%p5913_p10) }
0x1931   : >> { %6142 = vmatpush2.bf16.msra.mxu0 %v8494_v11  ;;  %7942 = vmatpush2.bf16.msra.mxu1 %v8494_v11  ;;  %v9696_v11 = vld [vmem:[%s8782_s30 + $0x88] sm:$0xff] (%p5913_p10) }
0x1932   : >> { %6143 = vmatprep.subr.bf16.mxu0 %v8495_v14  ;;  %7927 = vmatprep.subr.bf16.mxu1 %v8495_v14  ;;  %v6378_v14 = vmul.f32 (%p5913_p10), %v9687_v30, %v9687_v30 }
0x1935   : >> { %6144 = vmatpush2.bf16.msra.mxu0 %v8497_v34  ;;  %7943 = vmatpush2.bf16.msra.mxu1 %v8497_v34  ;;  %v6379_v34 = vmul.f32 (%p5913_p10), %v9690_v32, %v9690_v32 }
0x1938   : >> { %6146 = vmatmul.mubr.bf16.vlgmr.msra.gmra.mxu0 %v9388_v23  ;;  %6156 = vmatmul.mubr.bf16.vlgmr.msra.gmra.mxu1 %v9396_v47 }
0x1939   : > { %6276 = vmatprep.mubr.bf16.mxu0 (%p5913_p10), %v8629_v0  ;;  %6286 = vmatprep.mubr.bf16.mxu1 (%p5913_p10), %v8629_v0 }
0x19f8   : >> { %v6147_v31 = vpop.f32.mrf.mxu0  ;;  %v6157_v55 = vpop.f32.mrf.mxu1 }
0x19f9   : >> { %6172 = vst [vmem:[%s6171_s29] sm:$0xff] %v6147_v31  ;;  %6176 = vst [vmem:[%s6171_s29 + $0x20] sm:$0xff] %v6157_v55  ;;  %v9703_v31 = vld [vmem:[%s8782_s30 + $0x40] sm:$0xff] (%p5913_p10)  ;;  %v9706_v55 = vld [vmem:[%s8782_s30 + $0x48] sm:$0xff] (%p5913_p10) }
0x19fa   : >> { %v6149_v63 = vpop.f32.mrf.mxu0  ;;  %v6159_v36 = vpop.f32.mrf.mxu1 }
0x19fb   : >> { %6173 = vst [vmem:[%s6171_s29 + $0x8] sm:$0xff] %v6149_v63  ;;  %6177 = vst [vmem:[%s6171_s29 + $0x28] sm:$0xff] %v6159_v36  ;;  %5915 = sbr.rel (!%p5913_p10) target bundleno = 6389 (0x18f5), region = 336  ;;  %v6355_v63 = vadd.f32 (%p5913_p10), %v9696_v11, %v9693_v20  ;;  %v9711_v36 = vld [vmem:[%s8782_s30 + $0x10] sm:$0xff] (%p5913_p10) }
0x19fc   : >> { %v6151_v5 = vpop.f32.mrf.mxu0  ;;  %v6161_v18 = vpop.f32.mrf.mxu1 }
0x19fd   : >> { %6174 = vst [vmem:[%s6171_s29 + $0x10] sm:$0xff] %v6151_v5  ;;  %6178 = vst [vmem:[%s6171_s29 + $0x30] sm:$0xff] %v6161_v18  ;;  %v9714_v5 = vld [vmem:[%s8782_s30 + $0x90] sm:$0xff] (%p5913_p10)  ;;  %v6337_v18 = vadd.f32 (%p5913_p10), %v9690_v32, %v9687_v30 }
0x19fe   : >> { %v6153_v15 = vpop.f32.mrf.mxu0  ;;  %v6163_v37 = vpop.f32.mrf.mxu1 }
0x19ff   : >> { %6175 = vst [vmem:[%s6171_s29 + $0x18] sm:$0xff] %v6153_v15  ;;  %6179 = vst [vmem:[%s6171_s29 + $0x38] sm:$0xff] %v6163_v37  ;;  %v9719_v15 = vld [vmem:[%s8782_s30 + $0xc0] sm:$0xff] (%p5913_p10)  ;;  %v9722_v37 = vld [vmem:[%s8782_s30 + $0xc8] sm:$0xff] (%p5913_p10) }
0x1a06   : > { %v6209_v38 = vld [vmem:[#allocation2 + $0xe8] sm:$0xff]  ;;  %v6211_v39 = vld [vmem:[#allocation2 + $0xf8] sm:$0xff]  ;;  %v6208_v40 = vld [vmem:[#allocation2 + $0xe0] sm:$0xff] }
0x1a07   : > { %v6227_v43 = vpack.c.bf16 %v6211_v39, %v6209_v38  ;;  %v6210_v44 = vld [vmem:[#allocation2 + $0xf0] sm:$0xff]  ;;  %v6205_v46 = vld [vmem:[#allocation2 + $0xc8] sm:$0xff]  ;;  %v6207_v19 = vld [vmem:[#allocation2 + $0xd8] sm:$0xff]  ;;  %v6386_v38 = vmul.f32 %v9703_v31, %v9703_v31  ;;  %v6387_v39 = vmul.f32 %v9706_v55, %v9706_v55 }
0x1a08   : > { %v6226_v22 = vpack.c.bf16 %v6210_v44, %v6208_v40  ;;  %v6225_v35 = vpack.c.bf16 %v6207_v19, %v6205_v46  ;;  %v6204_v13 = vld [vmem:[#allocation2 + $0xc0] sm:$0xff]  ;;  %v6206_v51 = vld [vmem:[#allocation2 + $0xd0] sm:$0xff]  ;;  %v6201_v52 = vld [vmem:[#allocation2 + $0xa8] sm:$0xff]  ;;  %v6380_v40 = vmul.f32 %v9711_v36, %v9711_v36  ;;  %v6356_v46 = vadd.f32 %v6355_v63, %v9714_v5 }
0x1a09   : > { %6244 = vmatprep.subr.bf16.mxu0 %v6227_v43  ;;  %7944 = vmatprep.subr.bf16.mxu1 %v6227_v43  ;;  %v6203_v41 = vld [vmem:[#allocation2 + $0xb8] sm:$0xff]  ;;  %v6224_v23 = vpack.c.bf16 %v6206_v51, %v6204_v13  ;;  %v6200_v47 = vld [vmem:[#allocation2 + $0xa0] sm:$0xff]  ;;  %v6202_v0 = vld [vmem:[#allocation2 + $0xb0] sm:$0xff]  ;;  %v6410_v43 = vadd.f32 %v6379_v34, %v6378_v14  ;;  %v6338_v13 = vadd.f32 %v6337_v18, %v9711_v36 }
0x1a0a   : > { %6245 = vmatpush1.bf16.msra.mxu0 %v6226_v22  ;;  %7952 = vmatpush1.bf16.msra.mxu1 %v6226_v22  ;;  %v6223_v33 = vpack.c.bf16 %v6203_v41, %v6201_v52  ;;  %v6197_v48 = vld [vmem:[#allocation2 + $0x88] sm:$0xff]  ;;  %v6199_v42 = vld [vmem:[#allocation2 + $0x98] sm:$0xff]  ;;  %v6222_v49 = vpack.c.bf16 %v6202_v0, %v6200_v47  ;;  %v6196_v53 = vld [vmem:[#allocation2 + $0x80] sm:$0xff]  ;;  %v6364_v22 = vadd.f32 %v9722_v37, %v9719_v15 }
0x1a0b   : > { %6246 = vmatprep.subr.bf16.mxu0 %v6225_v35  ;;  %7945 = vmatprep.subr.bf16.mxu1 %v6225_v35  ;;  %v6221_v50 = vpack.c.bf16 %v6199_v42, %v6197_v48  ;;  %v6198_v54 = vld [vmem:[#allocation2 + $0x90] sm:$0xff]  ;;  %v6193_v56 = vld [vmem:[#allocation2 + $0x68] sm:$0xff]  ;;  %v6195_v57 = vld [vmem:[#allocation2 + $0x78] sm:$0xff]  ;;  %v6402_v52 = vmul.f32 %v9719_v15, %v9719_v15  ;;  %v6403_v41 = vmul.f32 %v9722_v37, %v9722_v37 }
0x1a0c   : > { %v6220_v58 = vpack.c.bf16 %v6198_v54, %v6196_v53  ;;  %v6219_v59 = vpack.c.bf16 %v6195_v57, %v6193_v56  ;;  %v6192_v60 = vld [vmem:[#allocation2 + $0x60] sm:$0xff]  ;;  %v6194_v61 = vld [vmem:[#allocation2 + $0x70] sm:$0xff]  ;;  %v6189_v62 = vld [vmem:[#allocation2 + $0x48] sm:$0xff]  ;;  %v6419_v47 = vadd.f32 %v6387_v39, %v6386_v38  ;;  %v6346_v0 = vadd.f32 %v9706_v55, %v9703_v31 }
0x1a0d   : > { %v6191_v1 = vld [vmem:[#allocation2 + $0x58] sm:$0xff]  ;;  %v6218_v2 = vpack.c.bf16 %v6194_v61, %v6192_v60  ;;  %v6188_v4 = vld [vmem:[#allocation2 + $0x40] sm:$0xff]  ;;  %v6190_v6 = vld [vmem:[#allocation2 + $0x50] sm:$0xff]  ;;  %v6395_v48 = vmul.f32 %v9696_v11, %v9696_v11  ;;  %v6437_v61 = vadd.f32 %v6403_v41, %v6402_v52 }
0x1a0e   : > { %6247 = vmatpush1.bf16.msra.mxu0 %v6224_v23  ;;  %7953 = vmatpush1.bf16.msra.mxu1 %v6224_v23  ;;  %v6217_v3 = vpack.c.bf16 %v6191_v1, %v6189_v62  ;;  %v6185_v7 = vld [vmem:[#allocation2 + $0x28] sm:$0xff]  ;;  %v6187_v8 = vld [vmem:[#allocation2 + $0x38] sm:$0xff]  ;;  %v6216_v10 = vpack.c.bf16 %v6190_v6, %v6188_v4  ;;  %v6184_v17 = vld [vmem:[#allocation2 + $0x20] sm:$0xff]  ;;  %v6394_v23 = vmul.f32 %v9693_v20, %v9693_v20 }
0x1a0f   : > { %6248 = vmatprep.subr.bf16.mxu0 %v6223_v33  ;;  %7946 = vmatprep.subr.bf16.mxu1 %v6223_v33  ;;  %v6215_v16 = vpack.c.bf16 %v6187_v8, %v6185_v7  ;;  %v6186_v21 = vld [vmem:[#allocation2 + $0x30] sm:$0xff]  ;;  %v6181_v24 = vld [vmem:[#allocation2 + $0x8] sm:$0xff]  ;;  %v6183_v25 = vld [vmem:[#allocation2 + $0x18] sm:$0xff]  ;;  %v6396_v62 = vmul.f32 %v9714_v5, %v9714_v5 }
0x1a10   : > { %v6214_v12 = vpack.c.bf16 %v6186_v21, %v6184_v17  ;;  %v6213_v45 = vpack.c.bf16 %v6183_v25, %v6181_v24  ;;  %v6180_v9 = vld [vmem:[#allocation2] sm:$0xff]  ;;  %v6182_v26 = vld [vmem:[#allocation2 + $0x10] sm:$0xff]  ;;  %v9735_v19 = vld [vmem:[%s8782_s30 + $0x18] sm:$0xff]  ;;  %v6428_v6 = vadd.f32 %v6395_v48, %v6394_v23 }
0x1a11   : > { %v6212_v27 = vpack.c.bf16 %v6182_v26, %v6180_v9  ;;  %v9731_v44 = vld [vmem:[%s8782_s30 + $0x50] sm:$0xff]  ;;  %v9740_v35 = vld [vmem:[%s8782_s30 + $0x98] sm:$0xff]  ;;  %v6381_v42 = vmul.f32 %v9735_v19, %v9735_v19  ;;  %v9765_v54 = vld [vmem:[%s8782_s30 + $0x20] sm:$0xff] }
0x1a12   : > { %6249 = vmatpush1.bf16.msra.mxu0 %v6222_v49  ;;  %7954 = vmatpush1.bf16.msra.mxu1 %v6222_v49  ;;  %v9744_v51 = vld [vmem:[%s8782_s30 + $0xd0] sm:$0xff]  ;;  %v6388_v33 = vmul.f32 %v9731_v44, %v9731_v44  ;;  %v6411_v49 = vadd.f32 %v6410_v43, %v6380_v40  ;;  %v6357_v53 = vadd.f32 %v6356_v46, %v9740_v35  ;;  %v9769_v57 = vld [vmem:[%s8782_s30 + $0xa0] sm:$0xff]  ;;  %v9793_v21 = vld [vmem:[%s8782_s30 + $0xa8] sm:$0xff] }
0x1a13   : > { %6250 = vmatprep.subr.bf16.mxu0 %v6221_v50  ;;  %7947 = vmatprep.subr.bf16.mxu1 %v6221_v50  ;;  %v9761_v50 = vld [vmem:[%s8782_s30 + $0x58] sm:$0xff]  ;;  %v6365_v56 = vadd.f32 %v6364_v22, %v9744_v51  ;;  %v6404_v60 = vmul.f32 %v9744_v51, %v9744_v51  ;;  %v9780_v1 = vld [vmem:[%s8782_s30 + $0x60] sm:$0xff]  ;;  %v6347_v4 = vadd.f32 %v6346_v0, %v9731_v44  ;;  %v9804_v26 = vld [vmem:[%s8782_s30 + $0x68] sm:$0xff] }
0x1a14   : > { %v6382_v7 = vmul.f32 %v9765_v54, %v9765_v54  ;;  %v6412_v8 = vadd.f32 %v6411_v49, %v6381_v42  ;;  %v9797_v25 = vld [vmem:[%s8782_s30 + $0xe0] sm:$0xff]  ;;  %v6429_v14 = vadd.f32 %v6428_v6, %v6396_v62  ;;  %v9815_v40 = vld [vmem:[%s8782_s30 + $0xe8] sm:$0xff]  ;;  %v6391_v43 = vmul.f32 %v9804_v26, %v9804_v26 }
0x1a15   : > { %v6438_v9 = vadd.f32 %v6437_v61, %v6404_v60  ;;  %v6406_v46 = vmul.f32 %v9797_v25, %v9797_v25  ;;  %v6398_v41 = vmul.f32 %v9769_v57, %v9769_v57  ;;  %v6407_v42 = vmul.f32 %v9815_v40, %v9815_v40 }
0x1a16   : > { %6251 = vmatpush1.bf16.msra.mxu0 %v6220_v58  ;;  %7955 = vmatpush1.bf16.msra.mxu1 %v6220_v58  ;;  %v6339_v58 = vadd.f32 %v6338_v13, %v9735_v19  ;;  %v6413_v63 = vadd.f32 %v6412_v8, %v6382_v7 }
0x1a17   : > { %6252 = vmatprep.subr.bf16.mxu0 %v6219_v59  ;;  %7948 = vmatprep.subr.bf16.mxu1 %v6219_v59  ;;  %v9773_v59 = vld [vmem:[%s8782_s30 + $0xd8] sm:$0xff] }
0x1a18   : > { %v6366_v17 = vadd.f32 %v6365_v56, %v9773_v59  ;;  %v6340_v24 = vadd.f32 %v6339_v58, %v9765_v54 }
0x1a1a   : > { %6253 = vmatpush1.bf16.msra.mxu0 %v6218_v2  ;;  %7956 = vmatpush1.bf16.msra.mxu1 %v6218_v2  ;;  %v6389_v2 = vmul.f32 %v9761_v50, %v9761_v50  ;;  %v6367_v38 = vadd.f32 %v6366_v17, %v9797_v25 }
0x1a1b   : > { %6254 = vmatprep.subr.bf16.mxu0 %v6217_v3  ;;  %7949 = vmatprep.subr.bf16.mxu1 %v6217_v3  ;;  %v6420_v3 = vadd.f32 %v6419_v47, %v6388_v33 }
0x1a1c   : > { %v6368_v48 = vadd.f32 %v6367_v38, %v9815_v40 }
0x1a1e   : > { %6255 = vmatpush1.bf16.msra.mxu0 %v6216_v10  ;;  %7957 = vmatpush1.bf16.msra.mxu1 %v6216_v10  ;;  %v6358_v10 = vadd.f32 %v6357_v53, %v9769_v57 }
0x1a1f   : > { %6256 = vmatprep.subr.bf16.mxu0 %v6215_v16  ;;  %7950 = vmatprep.subr.bf16.mxu1 %v6215_v16  ;;  %v9789_v16 = vld [vmem:[%s8782_s30 + $0x28] sm:$0xff] }
0x1a20   : > { %v6383_v34 = vmul.f32 %v9789_v16, %v9789_v16  ;;  %v6359_v18 = vadd.f32 %v6358_v10, %v9793_v21  ;;  %v6341_v39 = vadd.f32 %v6340_v24, %v9789_v16 }
0x1a22   : > { %6257 = vmatpush1.bf16.msra.mxu0 %v6214_v12  ;;  %7958 = vmatpush1.bf16.msra.mxu1 %v6214_v12  ;;  %v6390_v12 = vmul.f32 %v9780_v1, %v9780_v1  ;;  %v6414_v33 = vadd.f32 %v6413_v63, %v6383_v34 }
0x1a23   : > { %6258 = vmatprep.subr.bf16.mxu0 %v6213_v45  ;;  %7951 = vmatprep.subr.bf16.mxu1 %v6213_v45  ;;  %v6405_v45 = vmul.f32 %v9773_v59, %v9773_v59 }
0x1a25   : > { %v6439_v22 = vadd.f32 %v6438_v9, %v6405_v45 }
0x1a26   : > { %6259 = vmatpush1.bf16.msra.mxu0 %v6212_v27  ;;  %7959 = vmatpush1.bf16.msra.mxu1 %v6212_v27  ;;  %v6421_v27 = vadd.f32 %v6420_v3, %v6389_v2  ;;  %v6399_v3 = vmul.f32 %v9793_v21, %v9793_v21 }
0x1a27   : > { %v6440_v58 = vadd.f32 %v6439_v22, %v6406_v46 }
0x1a28   : > { %v6422_v13 = vadd.f32 %v6421_v27, %v6390_v12 }
0x1a29   : > { %6277 = vmatmul.mubr.bf16.vlgmr.msra.gmra.mxu0 %v8498_v28  ;;  %6287 = vmatmul.mubr.bf16.vlgmr.msra.gmra.mxu1 %v8499_v29  ;;  %v6348_v28 = vadd.f32 %v6347_v4, %v9761_v50  ;;  %v6397_v29 = vmul.f32 %v9740_v35, %v9740_v35  ;;  %v6441_v9 = vadd.f32 %v6440_v58, %v6407_v42 }
0x1a2a   : > { %v6423_v62 = vadd.f32 %v6422_v13, %v6391_v43 }
0x1a2b   : > { %v6349_v52 = vadd.f32 %v6348_v28, %v9780_v1  ;;  %v6430_v23 = vadd.f32 %v6429_v14, %v6397_v29 }
0x1a2d   : > { %v6350_v2 = vadd.f32 %v6349_v52, %v9804_v26  ;;  %v6431_v4 = vadd.f32 %v6430_v23, %v6398_v41 }
0x1a2f   : > { %v6432_v63 = vadd.f32 %v6431_v4, %v6399_v3 }
0x1ae9   : > { %v9824_v47 = vpop.f32.mrf.mxu0  ;;  %v9826_v0 = vpop.f32.mrf.mxu1 }
0x1aea   : > { %v6360_v49 = vadd.f32 %v6359_v18, %v9826_v0  ;;  %v6342_v53 = vadd.f32 %v6341_v39, %v9824_v47  ;;  %v6384_v56 = vmul.f32 %v9824_v47, %v9824_v47  ;;  %v6400_v34 = vmul.f32 %v9826_v0, %v9826_v0 }
0x1aeb   : > { %v9835_v60 = vpop.f32.mrf.mxu0  ;;  %v9837_v61 = vpop.f32.mrf.mxu1 }
0x1aec   : > { %v6361_v6 = vadd.f32 %v6360_v49, %v9837_v61  ;;  %v6343_v7 = vadd.f32 %v6342_v53, %v9835_v60  ;;  %v6385_v8 = vmul.f32 %v9835_v60, %v9835_v60  ;;  %v6415_v10 = vadd.f32 %v6414_v33, %v6384_v56 }
0x1aed   : > { %v9846_v17 = vpop.f32.mrf.mxu0  ;;  %v9848_v24 = vpop.f32.mrf.mxu1  ;;  %v6401_v46 = vmul.f32 %v9837_v61, %v9837_v61  ;;  %v6433_v22 = vadd.f32 %v6432_v63, %v6400_v34 }
0x1aee   : > { %6362 = vadd.xlane.f32.xlu1 %v6361_v6  ;;  %6344 = vadd.xlane.f32.xlu0 %v6343_v7  ;;  %v6369_v12 = vadd.f32 %v6368_v48, %v9848_v24  ;;  %v6392_v45 = vmul.f32 %v9846_v17, %v9846_v17  ;;  %v6416_v29 = vadd.f32 %v6415_v10, %v6385_v8 }
0x1aef   : > { %v9853_v27 = vpop.f32.mrf.mxu0  ;;  %v9855_v28 = vpop.f32.mrf.mxu1  ;;  %v6351_v14 = vadd.f32 %v6350_v2, %v9846_v17  ;;  %v6408_v43 = vmul.f32 %v9848_v24, %v9848_v24  ;;  %v6434_v48 = vadd.f32 %v6433_v22, %v6401_v46 }
0x1af0   : > { %v6370_v18 = vadd.f32 %v6369_v12, %v9855_v28  ;;  %v6393_v38 = vmul.f32 %v9853_v27, %v9853_v27  ;;  %v6424_v39 = vadd.f32 %v6423_v62, %v6392_v45  ;;  %v6409_v41 = vmul.f32 %v9855_v28, %v9855_v28 }
0x1af1   : > { %v6352_v52 = vadd.f32 %v6351_v14, %v9853_v27  ;;  %v6442_v23 = vadd.f32 %v6441_v9, %v6408_v43 }
0x1af2   : > { %6371 = vadd.xlane.f32.xlu1 %v6370_v18  ;;  %6417 = vadd.xlane.f32.xlu0 %v6416_v29  ;;  %v6425_v13 = vadd.f32 %v6424_v39, %v6393_v38 }
0x1af3   : > { %v6443_v33 = vadd.f32 %v6442_v23, %v6409_v41 }
0x1af6   : > { %6426 = vadd.xlane.f32.xlu1 %v6425_v13  ;;  %6353 = vadd.xlane.f32.xlu0 %v6352_v52 }
0x1afa   : > { %6444 = vadd.xlane.f32.xlu1 %v6443_v33  ;;  %6435 = vadd.xlane.f32.xlu0 %v6434_v48 }
0x1b77   : > { %v6363_v42 = vpop.xlane.xlu1 %6362  ;;  %v6345_v49 = vpop.xlane.xlu0 %6344 }
0x1b78   : > { %v9870_v58 = vmul.f32 0.0009765625, %v6345_v49  ;;  %v9876_v8 = vmul.f32 0.0009765625, %v6363_v42 }
0x1b7a   : > { %v6450_v4 = vmul.f32 %v9870_v58, %v9870_v58  ;;  %v6452_v39 = vmul.f32 %v9876_v8, %v9876_v8  ;;  %v6478_v33 = vsub.f32 %v9693_v20, %v9876_v8  ;;  %v6479_v48 = vsub.f32 %v9696_v11, %v9876_v8 }
0x1b7b   : > { %v6372_v53 = vpop.xlane.xlu1 %6371  ;;  %v6418_v56 = vpop.xlane.xlu0 %6417  ;;  %v6480_v42 = vsub.f32 %v9714_v5, %v9876_v8 }
0x1b7c   : > { %v6446_v62 = vmul.f32 0.0009765625, %v6418_v56  ;;  %v9878_v10 = vmul.f32 0.0009765625, %v6372_v53  ;;  %v6481_v53 = vsub.f32 %v9740_v35, %v9876_v8  ;;  %v6482_v56 = vsub.f32 %v9769_v57, %v9876_v8 }
0x1b7d   : > { %v10068_v35 = vsub.f32 %v9837_v61, %v9876_v8 }
0x1b7e   : > { %v6454_v6 = vsub.f32 %v6446_v62, %v6450_v4  ;;  %v6453_v18 = vmul.f32 %v9878_v10, %v9878_v10  ;;  %v6483_v62 = vsub.f32 %v9793_v21, %v9876_v8 }
0x1b7f   : > { %v6427_v2 = vpop.xlane.xlu1 %6426  ;;  %v6354_v3 = vpop.xlane.xlu0 %6353 }
0x1b80   : > { %v9874_v7 = vmul.f32 0.0009765625, %v6354_v3  ;;  %v6458_v12 = vmax.f32 %v6454_v6, 0.0  ;;  %v6447_v45 = vmul.f32 0.0009765625, %v6427_v2  ;;  %v6484_v3 = vsub.f32 %v9826_v0, %v9876_v8 }
0x1b81   : > { %v6462_v6 = vsub.f32 %v9687_v30, %v9870_v58  ;;  %v6469_v30 = vsub.f32 %v9835_v60, %v9870_v58  ;;  %v6492_v60 = vsub.f32 %v9848_v24, %v9878_v10 }
0x1b82   : > { %v6451_v9 = vmul.f32 %v9874_v7, %v9874_v7  ;;  %v6494_v34 = vadd.f32 1e-05, %v6458_v12  ;;  %v6463_v12 = vsub.f32 %v9690_v32, %v9870_v58  ;;  %v6486_v32 = vsub.f32 %v9719_v15, %v9878_v10 }
0x1b83   : > { %v6445_v29 = vpop.xlane.xlu1 %6444  ;;  %v6436_v14 = vpop.xlane.xlu0 %6435 }
0x1b84   : > { %v6455_v63 = vsub.f32 %v6447_v45, %v6451_v9  ;;  %v6449_v38 = vmul.f32 0.0009765625, %v6445_v29  ;;  %v6448_v43 = vmul.f32 0.0009765625, %v6436_v14  ;;  %8500 = vrsqrt.f32 %v6494_v34 }
0x1b85   : > { %v6464_v45 = vsub.f32 %v9711_v36, %v9870_v58  ;;  %v6465_v9 = vsub.f32 %v9735_v19, %v9870_v58  ;;  %v6466_v29 = vsub.f32 %v9765_v54, %v9870_v58  ;;  %v6467_v14 = vsub.f32 %v9789_v16, %v9870_v58 }
0x1b86   : > { %v6459_v46 = vmax.f32 %v6455_v63, 0.0  ;;  %v6457_v22 = vsub.f32 %v6449_v38, %v6453_v18  ;;  %v6456_v13 = vsub.f32 %v6448_v43, %v6452_v39  ;;  %v6468_v34 = vsub.f32 %v9824_v47, %v9870_v58 }
0x1b87   : > { %v6487_v36 = vsub.f32 %v9722_v37, %v9878_v10  ;;  %v6488_v19 = vsub.f32 %v9744_v51, %v9878_v10  ;;  %v6489_v54 = vsub.f32 %v9773_v59, %v9878_v10  ;;  %v6490_v16 = vsub.f32 %v9797_v25, %v9878_v10 }
0x1b88   : > { %v6495_v52 = vadd.f32 1e-05, %v6459_v46  ;;  %v6461_v41 = vmax.f32 %v6457_v22, 0.0  ;;  %v6460_v23 = vmax.f32 %v6456_v13, 0.0  ;;  %v6491_v47 = vsub.f32 %v9815_v40, %v9878_v10 }
0x1b89   : > { %v6493_v58 = vsub.f32 %v9855_v28, %v9878_v10  ;;  %v6470_v63 = vsub.f32 %v9703_v31, %v9874_v7  ;;  %v6471_v18 = vsub.f32 %v9706_v55, %v9874_v7  ;;  %v6472_v38 = vsub.f32 %v9731_v44, %v9874_v7 }
0x1b8a   : > { %8502 = vrsqrt.f32 %v6495_v52  ;;  %v6497_v49 = vadd.f32 1e-05, %v6461_v41  ;;  %v6496_v2 = vadd.f32 1e-05, %v6460_v23  ;;  %v6473_v39 = vsub.f32 %v9761_v50, %v9874_v7 }
0x1b8b   : > { %v6474_v46 = vsub.f32 %v9780_v1, %v9874_v7  ;;  %v6475_v22 = vsub.f32 %v9804_v26, %v9874_v7  ;;  %v6476_v13 = vsub.f32 %v9846_v17, %v9874_v7  ;;  %v6477_v31 = vsub.f32 %v9853_v27, %v9874_v7 }
0x1b8c   : > { %8504 = vrsqrt.f32 %v6497_v49 }
0x1b8d   : > { %8506 = vrsqrt.f32 %v6496_v2 }
0x1b91   : > { %v8501_v43 = vpop.eup %8500 }
0x1b92   : > { %v6502_v55 = vmul.f32 %v8501_v43, %v6462_v6  ;;  %v6503_v52 = vmul.f32 %v8501_v43, %v6463_v12  ;;  %v6504_v44 = vmul.f32 %v8501_v43, %v6464_v45  ;;  %v6505_v41 = vmul.f32 %v8501_v43, %v6465_v9 }
0x1b93   : > { %v6506_v50 = vmul.f32 %v8501_v43, %v6466_v29  ;;  %v6507_v23 = vmul.f32 %v8501_v43, %v6467_v14  ;;  %v6508_v1 = vmul.f32 %v8501_v43, %v6468_v34  ;;  %v6509_v49 = vmul.f32 %v8501_v43, %v6469_v30 }
0x1b94   : > { %v6534_v2 = vmax.f32 %v6502_v55, 0.0  ;;  %v6535_v26 = vmax.f32 %v6503_v52, 0.0  ;;  %v6536_v4 = vmax.f32 %v6504_v44, 0.0  ;;  %v6537_v17 = vmax.f32 %v6505_v41, 0.0 }
0x1b95   : > { %v6538_v7 = vmax.f32 %v6506_v50, 0.0  ;;  %v6539_v6 = vmax.f32 %v6507_v23, 0.0  ;;  %v6540_v12 = vmax.f32 %v6508_v1, 0.0  ;;  %v6541_v45 = vmax.f32 %v6509_v49, 0.0 }
0x1b96   : > { %6566 = vst [vmem:[%s8782_s30] sm:$0xff] %v6534_v2  ;;  %6567 = vst [vmem:[%s8782_s30 + $0x8] sm:$0xff] %v6535_v26 }
0x1b97   : > { %v8503_v27 = vpop.eup %8502  ;;  %6568 = vst [vmem:[%s8782_s30 + $0x10] sm:$0xff] %v6536_v4  ;;  %6569 = vst [vmem:[%s8782_s30 + $0x18] sm:$0xff] %v6537_v17 }
0x1b98   : > { %v6510_v9 = vmul.f32 %v8503_v27, %v6470_v63  ;;  %v6511_v29 = vmul.f32 %v8503_v27, %v6471_v18  ;;  %v6512_v14 = vmul.f32 %v8503_v27, %v6472_v38  ;;  %v6513_v34 = vmul.f32 %v8503_v27, %v6473_v39  ;;  %6570 = vst [vmem:[%s8782_s30 + $0x20] sm:$0xff] %v6538_v7 }
0x1b99   : > { %6571 = vst [vmem:[%s8782_s30 + $0x28] sm:$0xff] %v6539_v6  ;;  %6572 = vst [vmem:[%s8782_s30 + $0x30] sm:$0xff] %v6540_v12  ;;  %v6514_v30 = vmul.f32 %v8503_v27, %v6474_v46  ;;  %v6515_v43 = vmul.f32 %v8503_v27, %v6475_v22  ;;  %v6516_v55 = vmul.f32 %v8503_v27, %v6476_v13  ;;  %v8505_v44 = vpop.eup %8504 }
0x1b9a   : > { %6573 = vst [vmem:[%s8782_s30 + $0x38] sm:$0xff] %v6541_v45  ;;  %v6517_v52 = vmul.f32 %v8503_v27, %v6477_v31  ;;  %v6542_v41 = vmax.f32 %v6510_v9, 0.0  ;;  %v6543_v4 = vmax.f32 %v6511_v29, 0.0  ;;  %v6544_v63 = vmax.f32 %v6512_v14, 0.0  ;;  %v8507_v1 = vpop.eup %8506 }
0x1b9b   : > { %v6545_v18 = vmax.f32 %v6513_v34, 0.0  ;;  %v6546_v38 = vmax.f32 %v6514_v30, 0.0  ;;  %v6547_v39 = vmax.f32 %v6515_v43, 0.0  ;;  %v6548_v50 = vmax.f32 %v6516_v55, 0.0 }
0x1b9c   : > { %v6549_v23 = vmax.f32 %v6517_v52, 0.0  ;;  %6574 = vst [vmem:[%s8782_s30 + $0x40] sm:$0xff] %v6542_v41  ;;  %6575 = vst [vmem:[%s8782_s30 + $0x48] sm:$0xff] %v6543_v4  ;;  %v6526_v46 = vmul.f32 %v8505_v44, %v6486_v32  ;;  %v6527_v22 = vmul.f32 %v8505_v44, %v6487_v36  ;;  %v6528_v13 = vmul.f32 %v8505_v44, %v6488_v19 }
0x1b9d   : > { %6576 = vst [vmem:[%s8782_s30 + $0x50] sm:$0xff] %v6544_v63  ;;  %6577 = vst [vmem:[%s8782_s30 + $0x58] sm:$0xff] %v6545_v18  ;;  %v6529_v31 = vmul.f32 %v8505_v44, %v6489_v54  ;;  %v6530_v15 = vmul.f32 %v8505_v44, %v6490_v16  ;;  %v6531_v37 = vmul.f32 %v8505_v44, %v6491_v47 }
0x1b9e   : > { %6578 = vst [vmem:[%s8782_s30 + $0x60] sm:$0xff] %v6546_v38  ;;  %6579 = vst [vmem:[%s8782_s30 + $0x68] sm:$0xff] %v6547_v39  ;;  %v6532_v51 = vmul.f32 %v8505_v44, %v6492_v60  ;;  %v6533_v59 = vmul.f32 %v8505_v44, %v6493_v58  ;;  %v6558_v32 = vmax.f32 %v6526_v46, 0.0  ;;  %v6559_v36 = vmax.f32 %v6527_v22, 0.0 }
0x1b9f   : > { %6580 = vst [vmem:[%s8782_s30 + $0x70] sm:$0xff] %v6548_v50  ;;  %6581 = vst [vmem:[%s8782_s30 + $0x78] sm:$0xff] %v6549_v23  ;;  %v6560_v19 = vmax.f32 %v6528_v13, 0.0  ;;  %v6561_v25 = vmax.f32 %v6529_v31, 0.0  ;;  %v6562_v54 = vmax.f32 %v6530_v15, 0.0  ;;  %v6563_v16 = vmax.f32 %v6531_v37, 0.0 }
0x1ba0   : > { %v6564_v40 = vmax.f32 %v6532_v51, 0.0  ;;  %v6565_v47 = vmax.f32 %v6533_v59, 0.0  ;;  %6590 = vst [vmem:[%s8782_s30 + $0xc0] sm:$0xff] %v6558_v32  ;;  %6591 = vst [vmem:[%s8782_s30 + $0xc8] sm:$0xff] %v6559_v36  ;;  %v6518_v24 = vmul.f32 %v8507_v1, %v6478_v33  ;;  %v6519_v28 = vmul.f32 %v8507_v1, %v6479_v48 }
0x1ba1   : > { %6592 = vst [vmem:[%s8782_s30 + $0xd0] sm:$0xff] %v6560_v19  ;;  %6593 = vst [vmem:[%s8782_s30 + $0xd8] sm:$0xff] %v6561_v25  ;;  %v6520_v10 = vmul.f32 %v8507_v1, %v6480_v42  ;;  %v6521_v60 = vmul.f32 %v8507_v1, %v6481_v53  ;;  %v6522_v20 = vmul.f32 %v8507_v1, %v6482_v56 }
0x1ba2   : > { %6594 = vst [vmem:[%s8782_s30 + $0xe0] sm:$0xff] %v6562_v54  ;;  %6595 = vst [vmem:[%s8782_s30 + $0xe8] sm:$0xff] %v6563_v16  ;;  %v6523_v11 = vmul.f32 %v8507_v1, %v6483_v62  ;;  %v6524_v5 = vmul.f32 %v8507_v1, %v6484_v3  ;;  %v6525_v33 = vmul.f32 %v8507_v1, %v10068_v35  ;;  %v6550_v48 = vmax.f32 %v6518_v24, 0.0 }
0x1ba3   : > { %6596 = vst [vmem:[%s8782_s30 + $0xf0] sm:$0xff] %v6564_v40  ;;  %6597 = vst [vmem:[%s8782_s30 + $0xf8] sm:$0xff] %v6565_v47  ;;  %v6551_v57 = vmax.f32 %v6519_v28, 0.0  ;;  %v6552_v42 = vmax.f32 %v6520_v10, 0.0  ;;  %v6553_v53 = vmax.f32 %v6521_v60, 0.0  ;;  %v6554_v56 = vmax.f32 %v6522_v20, 0.0 }
0x1ba4   : > { %v6555_v58 = vmax.f32 %v6523_v11, 0.0  ;;  %v6556_v21 = vmax.f32 %v6524_v5, 0.0  ;;  %v6557_v49 = vmax.f32 %v6525_v33, 0.0  ;;  %6582 = vst [vmem:[%s8782_s30 + $0x80] sm:$0xff] %v6550_v48 }
0x1ba5   : > { %6583 = vst [vmem:[%s8782_s30 + $0x88] sm:$0xff] %v6551_v57  ;;  %6584 = vst [vmem:[%s8782_s30 + $0x90] sm:$0xff] %v6552_v42 }
0x1ba6   : > { %6585 = vst [vmem:[%s8782_s30 + $0x98] sm:$0xff] %v6553_v53  ;;  %6586 = vst [vmem:[%s8782_s30 + $0xa0] sm:$0xff] %v6554_v56 }
0x1ba7   : > { %6587 = vst [vmem:[%s8782_s30 + $0xa8] sm:$0xff] %v6555_v58  ;;  %6588 = vst [vmem:[%s8782_s30 + $0xb0] sm:$0xff] %v6556_v21 }
0x1ba8   : > { %6589 = vst [vmem:[%s8782_s30 + $0xb8] sm:$0xff] %v6557_v49 }
0x1ba9 PF: > { %s33_s2 = sadd.s32 1, %s8584_s2  }
0x1baa   : > { %p30_p11 = scmp.ge.s32.totalorder %s33_s2, 4  }
0x1bac   :  { %32 = sbr.rel (!%p30_p11) target bundleno = 8 (0x8), region = 347 }
0x1bb1   :  { %6633 = vsyncpa [#allocation4], 1 }
0x1bb2   :  { %6635 = vsyncpa [#allocation4 + $0x1], 1 }

// kernel: autoencoder_forward.3
= control target key start
LH: loop header
LB: loop body
LE: loop exit
PB: predicated region body
PF: predicated region fallthrough
CT: control target
= control target key end

     0   :  { %s2536_s26 = smov 0   ;;  %s2930_s0 = inlined_call_operand.vmem [shape: bf16[2,288,1024], index: 0, kind: input, shape index: {}]   ;;  %s2931_s1 = inlined_call_operand.vmem [shape: bf16[32,288], index: 1, kind: input, shape index: {}]   ;;  %s2932_s2 = inlined_call_operand.vmem [shape: f32[32,1], index: 2, kind: input, shape index: {}]   ;;  %s2933_s3 = inlined_call_operand.vmem [shape: bf16[32,32], index: 3, kind: input, shape index: {}]   ;;  %s2934_s4 = inlined_call_operand.vmem [shape: f32[32,1], index: 4, kind: input, shape index: {}]   ;;  %s2935_s5 = inlined_call_operand.vmem [shape: bf16[1,32], index: 5, kind: input, shape index: {}]   ;;  %s2936_s6 = inlined_call_operand.<no memory space> [shape: f32[1,1], index: 6, kind: input, shape index: {}]   ;;  %s2937_s7 = inlined_call_operand.vmem [shape: f32[2,1,1024], index: 7, kind: output, shape index: {}]  }
   0x1   :  { %v12_v0 = vstv %s2936_s6 }
   0x2   :  { %13 = vst [vmem:[#allocation2] sm:$0x1] %v12_v0 }
   0x3 LB: > { %s2279_s27 = sadd.s32 4294967295, %s2489_s26   ;;  %p2283_p0 = scmp.ge.s32.totalorder %s2489_s26, 1  ;;  %s2489_s26 = sphi %s2536_s26, %s19_s26  }
   0x4   : > { %p239_p1 = scmp.lt.s32.totalorder %s2489_s26, 3 }
   0x6   : > { %p240_p2 = pnand %p2283_p0, %p239_p1 }
   0x7   : > { %p270_p3 = scmp.lt.s32.totalorder (!%p240_p2), %s2279_s27, 1 }
   0x8   : > { %243 = sbr.rel (%p240_p2) target bundleno = 833 (0x341), region = 48 }
   0xd   : > { %v2491_v1 = vmov 0   ;;  %s2939_s27 = smov (!%p270_p3, %s2279_s27), 1  ;;  %v2551_v2 = vld [vmem:[%s2931_s1 + $0x4] ss:$12 sps:$4 sm:$0xff]   ;;  %v2580_v30 = vld [vmem:[%s2931_s1 + $0x8] ss:$12 sps:$4 sm:$0xff]  }
   0xe   : > { %1298 = vmatprep.mubr.bf16.mxu1 %v2491_v1  ;;  %2472 = vset.pattern.permute.xlu1 %v2491_v1  ;;  %s2460_s29 = smul.u32 1152, %s2939_s27  ;;  %vm1206_vm0 = vcmask 261120   ;;  %v2600_v54 = vld [vmem:[%s2931_s1 + $0x20] ss:$12 sps:$4 sm:$0xff]   ;;  %s2285_s20 = sshll.u32 %s2939_s27, 3 }
   0xf   : > { %2471 = vset.pattern.permute.xlu0 %v2491_v1  ;;  %1245 = vmatprep.mubr.bf16.mxu0 %v2551_v2  ;;  %s278_s23 = scalar_lea.vmem %s2937_s7, %s2285_s20 }
  0x10   : > { %s2559_s9 = scalar_lea.vmem %s2930_s0, %s2460_s29 }
  0x11   : > { %v344_v3 = vld [vmem:[%s2559_s9 + $0x1c0] sm:$0xff]  ;;  %v345_v19 = vld [vmem:[%s2559_s9 + $0x1c8] sm:$0xff] }
  0x12   : > { %v348_v4 = vld [vmem:[%s2559_s9 + $0x1e0] sm:$0xff]  ;;  %v349_v20 = vld [vmem:[%s2559_s9 + $0x1e8] sm:$0xff] }
  0x13   : > { %v424_v5 = vld [vmem:[%s2559_s9 + $0x440] sm:$0xff]  ;;  %v2349_v6 = vcombine.high %v344_v3, %v348_v4  ;;  %v2348_v8 = vcombine.low %v344_v3, %v348_v4  ;;  %v2351_v24 = vcombine.high %v345_v19, %v349_v20  ;;  %v337_v27 = vld [vmem:[%s2559_s9 + $0x188] sm:$0xff]  ;;  %v2350_v31 = vcombine.low %v345_v19, %v349_v20 }
  0x14   : > { %v428_v7 = vld [vmem:[%s2559_s9 + $0x460] sm:$0xff]  ;;  %v341_v28 = vld [vmem:[%s2559_s9 + $0x1a8] sm:$0xff] }
  0x15   : > { %v336_v9 = vld [vmem:[%s2559_s9 + $0x180] sm:$0xff]  ;;  %v2429_v11 = vcombine.high %v424_v5, %v428_v7  ;;  %v2428_v12 = vcombine.low %v424_v5, %v428_v7  ;;  %1213 = vmatprep.subr.bf16.mxu0 %v2349_v6  ;;  %v2343_v33 = vcombine.high %v337_v27, %v341_v28  ;;  %v329_v36 = vld [vmem:[%s2559_s9 + $0x148] sm:$0xff]  ;;  %v2342_v39 = vcombine.low %v337_v27, %v341_v28 }
  0x16   : > { %v340_v10 = vld [vmem:[%s2559_s9 + $0x1a0] sm:$0xff]  ;;  %1214 = vmatpush1.bf16.msra.mxu0 %v2348_v8  ;;  %v333_v37 = vld [vmem:[%s2559_s9 + $0x168] sm:$0xff] }
  0x17   : > { %v2341_v13 = vcombine.high %v336_v9, %v340_v10  ;;  %v416_v14 = vld [vmem:[%s2559_s9 + $0x400] sm:$0xff]  ;;  %1278 = vmatprep.subr.bf16.mxu1 %v2429_v11  ;;  %v2340_v21 = vcombine.low %v336_v9, %v340_v10  ;;  %v2335_v41 = vcombine.high %v329_v36, %v333_v37  ;;  %v321_v44 = vld [vmem:[%s2559_s9 + $0x108] sm:$0xff]  ;;  %v2334_v47 = vcombine.low %v329_v36, %v333_v37 }
  0x18   : > { %v420_v15 = vld [vmem:[%s2559_s9 + $0x420] sm:$0xff]  ;;  %1279 = vmatpush1.bf16.msra.mxu1 %v2428_v12  ;;  %v325_v45 = vld [vmem:[%s2559_s9 + $0x128] sm:$0xff] }
  0x19   : > { %v328_v16 = vld [vmem:[%s2559_s9 + $0x140] sm:$0xff]  ;;  %v2421_v17 = vcombine.high %v416_v14, %v420_v15  ;;  %1215 = vmatprep.subr.bf16.mxu0 %v2341_v13  ;;  %v2420_v22 = vcombine.low %v416_v14, %v420_v15  ;;  %v2327_v49 = vcombine.high %v321_v44, %v325_v45  ;;  %v313_v52 = vld [vmem:[%s2559_s9 + $0xc8] sm:$0xff]  ;;  %v2326_v56 = vcombine.low %v321_v44, %v325_v45  ;;  %v434_v45 = vld [vmem:[%s2932_s2 + $0x10] sm:$0xff] }
  0x1a   : > { %v332_v18 = vld [vmem:[%s2559_s9 + $0x160] sm:$0xff]  ;;  %1216 = vmatpush1.bf16.msra.mxu0 %v2340_v21  ;;  %v317_v53 = vld [vmem:[%s2559_s9 + $0xe8] sm:$0xff]  ;;  %448 = vperm.xlu0 %2471, %v434_v45   ;;  %v330_v45 = vld [vmem:[%s2559_s9 + $0x150] sm:$0xff] }
  0x1b   : > { %v2333_v23 = vcombine.high %v328_v16, %v332_v18  ;;  %1280 = vmatprep.subr.bf16.mxu1 %v2421_v17  ;;  %v320_v25 = vld [vmem:[%s2559_s9 + $0x100] sm:$0xff]  ;;  %v2332_v29 = vcombine.low %v328_v16, %v332_v18  ;;  %v2319_v58 = vcombine.high %v313_v52, %v317_v53  ;;  %v305_v61 = vld [vmem:[%s2559_s9 + $0x88] sm:$0xff]  ;;  %v2318_v0 = vcombine.low %v313_v52, %v317_v53  ;;  %v435_v53 = vld [vmem:[%s2932_s2 + $0x18] sm:$0xff] }
  0x1c   : > { %v324_v26 = vld [vmem:[%s2559_s9 + $0x120] sm:$0xff]  ;;  %1281 = vmatpush1.bf16.msra.mxu1 %v2420_v22  ;;  %v309_v62 = vld [vmem:[%s2559_s9 + $0xa8] sm:$0xff] }
  0x1d   : > { %1217 = vmatprep.subr.bf16.mxu0 %v2333_v23  ;;  %v2325_v32 = vcombine.high %v320_v25, %v324_v26  ;;  %1319 = vmatprep.subr.bf16.mxu1 %v2351_v24  ;;  %v312_v34 = vld [vmem:[%s2559_s9 + $0xc0] sm:$0xff]  ;;  %v2324_v38 = vcombine.low %v320_v25, %v324_v26  ;;  %v2311_v4 = vcombine.high %v305_v61, %v309_v62  ;;  %v297_v7 = vld [vmem:[%s2559_s9 + $0x48] sm:$0xff] }
  0x1e   : > { %v316_v35 = vld [vmem:[%s2559_s9 + $0xe0] sm:$0xff]  ;;  %1218 = vmatpush1.bf16.msra.mxu0 %v2332_v29  ;;  %v301_v8 = vld [vmem:[%s2559_s9 + $0x68] sm:$0xff]  ;;  %v2310_v10 = vcombine.low %v305_v61, %v309_v62  ;;  %453 = vperm.xlu0 %2471, %v435_v53  }
  0x1f   : > { %2436 = vmatmul.mubr.msk.bf16.vlgmr.msra.gmra.mxu1 %vm1206_vm0, %v2580_v30  ;;  %1219 = vmatprep.subr.bf16.mxu0 %v2325_v32  ;;  %v2317_v40 = vcombine.high %v312_v34, %v316_v35  ;;  %v304_v42 = vld [vmem:[%s2559_s9 + $0x80] sm:$0xff]  ;;  %v2316_v46 = vcombine.low %v312_v34, %v316_v35  ;;  %v2303_v12 = vcombine.high %v297_v7, %v301_v8  ;;  %v289_v15 = vld [vmem:[%s2559_s9 + $0x8] sm:$0xff] }
  0x20   : > { %1320 = vmatpush1.bf16.msra.mxu1 %v2350_v31  ;;  %v308_v43 = vld [vmem:[%s2559_s9 + $0xa0] sm:$0xff]  ;;  %1308 = vmatprep.mubr.bf16.mxu1 %v2491_v1  ;;  %v293_v16 = vld [vmem:[%s2559_s9 + $0x28] sm:$0xff]  ;;  %v2302_v18 = vcombine.low %v297_v7, %v301_v8 }
  0x21   : > { %1321 = vmatprep.subr.bf16.mxu1 %v2343_v33  ;;  %v2309_v48 = vcombine.high %v304_v42, %v308_v43  ;;  %v296_v50 = vld [vmem:[%s2559_s9 + $0x40] sm:$0xff]  ;;  %v2308_v55 = vcombine.low %v304_v42, %v308_v43  ;;  %v2295_v20 = vcombine.high %v289_v15, %v293_v16  ;;  %v409_v23 = vld [vmem:[%s2559_s9 + $0x3c8] sm:$0xff]  ;;  %v2294_v26 = vcombine.low %v289_v15, %v293_v16 }
  0x22   : > { %1220 = vmatpush1.bf16.msra.mxu0 %v2324_v38  ;;  %v300_v51 = vld [vmem:[%s2559_s9 + $0x60] sm:$0xff]  ;;  %v413_v24 = vld [vmem:[%s2559_s9 + $0x3e8] sm:$0xff] }
  0x23   : > { %1221 = vmatprep.subr.bf16.mxu0 %v2317_v40  ;;  %v2301_v57 = vcombine.high %v296_v50, %v300_v51  ;;  %v288_v59 = vld [vmem:[%s2559_s9] sm:$0xff]  ;;  %v2300_v63 = vcombine.low %v296_v50, %v300_v51  ;;  %v2415_v28 = vcombine.high %v409_v23, %v413_v24  ;;  %v401_v32 = vld [vmem:[%s2559_s9 + $0x388] sm:$0xff]  ;;  %v2414_v35 = vcombine.low %v409_v23, %v413_v24 }
  0x24   : > { %1322 = vmatpush1.bf16.msra.mxu1 %v2342_v39  ;;  %v292_v60 = vld [vmem:[%s2559_s9 + $0x20] sm:$0xff]  ;;  %v405_v33 = vld [vmem:[%s2559_s9 + $0x3a8] sm:$0xff] }
  0x25   : > { %1323 = vmatprep.subr.bf16.mxu1 %v2335_v41  ;;  %v2293_v3 = vcombine.high %v288_v59, %v292_v60  ;;  %v408_v5 = vld [vmem:[%s2559_s9 + $0x3c0] sm:$0xff]  ;;  %v2292_v9 = vcombine.low %v288_v59, %v292_v60  ;;  %v2407_v37 = vcombine.high %v401_v32, %v405_v33  ;;  %v393_v41 = vld [vmem:[%s2559_s9 + $0x348] sm:$0xff] }
  0x26   : > { %1222 = vmatpush1.bf16.msra.mxu0 %v2316_v46  ;;  %v412_v6 = vld [vmem:[%s2559_s9 + $0x3e0] sm:$0xff]  ;;  %v397_v42 = vld [vmem:[%s2559_s9 + $0x368] sm:$0xff]  ;;  %v2406_v46 = vcombine.low %v401_v32, %v405_v33  ;;  %v426_v32 = vld [vmem:[%s2559_s9 + $0x450] sm:$0xff] }
  0x27   : > { %1223 = vmatprep.subr.bf16.mxu0 %v2309_v48  ;;  %2437 = vmatmul.mubr.msk.bf16.gmra.mxu1 %vm1206_vm0, %v2600_v54  ;;  %v2413_v11 = vcombine.high %v408_v5, %v412_v6  ;;  %v400_v13 = vld [vmem:[%s2559_s9 + $0x380] sm:$0xff]  ;;  %v2412_v17 = vcombine.low %v408_v5, %v412_v6  ;;  %v433_v44 = vld [vmem:[%s2932_s2 + $0x8] sm:$0xff]  ;;  %v2399_v48 = vcombine.high %v393_v41, %v397_v42  ;;  %v430_v33 = vld [vmem:[%s2559_s9 + $0x470] sm:$0xff] }
  0x28   : > { %1324 = vmatpush1.bf16.msra.mxu1 %v2334_v47  ;;  %1351 = vmatprep.mubr.bf16.mxu1 %v2551_v2  ;;  %v404_v14 = vld [vmem:[%s2559_s9 + $0x3a0] sm:$0xff]  ;;  %v385_v51 = vld [vmem:[%s2559_s9 + $0x308] sm:$0xff] }
  0x29   : > { %1325 = vmatprep.subr.bf16.mxu1 %v2327_v49  ;;  %v2405_v19 = vcombine.high %v400_v13, %v404_v14  ;;  %v392_v21 = vld [vmem:[%s2559_s9 + $0x340] sm:$0xff]  ;;  %v2404_v25 = vcombine.low %v400_v13, %v404_v14  ;;  %v389_v52 = vld [vmem:[%s2559_s9 + $0x328] sm:$0xff] }
  0x2a   : > { %1224 = vmatpush1.bf16.msra.mxu0 %v2308_v55  ;;  %v396_v22 = vld [vmem:[%s2559_s9 + $0x360] sm:$0xff]  ;;  %v377_v61 = vld [vmem:[%s2559_s9 + $0x2c8] sm:$0xff] }
  0x2b   : > { %1225 = vmatprep.subr.bf16.mxu0 %v2301_v57  ;;  %v2397_v27 = vcombine.high %v392_v21, %v396_v22  ;;  %v384_v29 = vld [vmem:[%s2559_s9 + $0x300] sm:$0xff]  ;;  %v2396_v34 = vcombine.low %v392_v21, %v396_v22  ;;  %v381_v62 = vld [vmem:[%s2559_s9 + $0x2e8] sm:$0xff] }
  0x2c   : > { %1326 = vmatpush1.bf16.msra.mxu1 %v2326_v56  ;;  %v388_v31 = vld [vmem:[%s2559_s9 + $0x320] sm:$0xff]  ;;  %v2398_v56 = vcombine.low %v393_v41, %v397_v42  ;;  %v369_v7 = vld [vmem:[%s2559_s9 + $0x288] sm:$0xff]  ;;  %v338_v41 = vld [vmem:[%s2559_s9 + $0x190] sm:$0xff] }
  0x2d   : > { %1327 = vmatprep.subr.bf16.mxu1 %v2319_v58  ;;  %v2389_v36 = vcombine.high %v384_v29, %v388_v31  ;;  %v376_v38 = vld [vmem:[%s2559_s9 + $0x2c0] sm:$0xff]  ;;  %v2388_v43 = vcombine.low %v384_v29, %v388_v31  ;;  %v2391_v58 = vcombine.high %v385_v51, %v389_v52  ;;  %v373_v8 = vld [vmem:[%s2559_s9 + $0x2a8] sm:$0xff]  ;;  %v342_v42 = vld [vmem:[%s2559_s9 + $0x1b0] sm:$0xff] }
  0x2e   : > { %1226 = vmatpush1.bf16.msra.mxu0 %v2300_v63  ;;  %v380_v39 = vld [vmem:[%s2559_s9 + $0x2e0] sm:$0xff]  ;;  %v425_v13 = vld [vmem:[%s2559_s9 + $0x448] sm:$0xff] }
  0x2f   : > { %1227 = vmatprep.subr.bf16.mxu0 %v2293_v3  ;;  %v432_v40 = vld [vmem:[%s2932_s2] sm:$0xff]  ;;  %v2381_v47 = vcombine.high %v376_v38, %v380_v39  ;;  %v2380_v55 = vcombine.low %v376_v38, %v380_v39  ;;  %v429_v14 = vld [vmem:[%s2559_s9 + $0x468] sm:$0xff]  ;;  %v2433_v38 = vcombine.high %v426_v32, %v430_v33 }
  0x30   : > { %1328 = vmatpush1.bf16.msra.mxu1 %v2318_v0  ;;  %438 = vperm.xlu1 %2472, %v432_v40   ;;  %v368_v49 = vld [vmem:[%s2559_s9 + $0x280] sm:$0xff]  ;;  %v2390_v0 = vcombine.low %v385_v51, %v389_v52  ;;  %v361_v15 = vld [vmem:[%s2559_s9 + $0x248] sm:$0xff]  ;;  %v418_v51 = vld [vmem:[%s2559_s9 + $0x410] sm:$0xff] }
  0x31   : > { %1329 = vmatprep.subr.bf16.mxu1 %v2311_v4  ;;  %v372_v50 = vld [vmem:[%s2559_s9 + $0x2a0] sm:$0xff]  ;;  %v2383_v4 = vcombine.high %v377_v61, %v381_v62  ;;  %v365_v16 = vld [vmem:[%s2559_s9 + $0x268] sm:$0xff]  ;;  %v422_v52 = vld [vmem:[%s2559_s9 + $0x430] sm:$0xff] }
  0x32   : > { %1228 = vmatpush1.bf16.msra.mxu0 %v2292_v9  ;;  %v2373_v57 = vcombine.high %v368_v49, %v372_v50  ;;  %v360_v59 = vld [vmem:[%s2559_s9 + $0x240] sm:$0xff]  ;;  %v2372_v63 = vcombine.low %v368_v49, %v372_v50  ;;  %v417_v21 = vld [vmem:[%s2559_s9 + $0x408] sm:$0xff]  ;;  %v322_v49 = vld [vmem:[%s2559_s9 + $0x110] sm:$0xff] }
  0x33   : > { %1229 = vmatprep.subr.bf16.mxu0 %v2413_v11  ;;  %v364_v60 = vld [vmem:[%s2559_s9 + $0x260] sm:$0xff]  ;;  %v421_v22 = vld [vmem:[%s2559_s9 + $0x428] sm:$0xff]  ;;  %v326_v50 = vld [vmem:[%s2559_s9 + $0x130] sm:$0xff] }
  0x34   : > { %1330 = vmatpush1.bf16.msra.mxu1 %v2310_v10  ;;  %443 = vperm.xlu1 %2472, %v433_v44   ;;  %v2365_v3 = vcombine.high %v360_v59, %v364_v60  ;;  %v352_v5 = vld [vmem:[%s2559_s9 + $0x200] sm:$0xff]  ;;  %v2364_v9 = vcombine.low %v360_v59, %v364_v60  ;;  %v2382_v10 = vcombine.low %v377_v61, %v381_v62  ;;  %v353_v24 = vld [vmem:[%s2559_s9 + $0x208] sm:$0xff]  ;;  %v1691_v59 = vld [vmem:[%s2934_s4 + $0x10] sm:$0xff] }
  0x35   : > { %1331 = vmatprep.subr.bf16.mxu1 %v2303_v12  ;;  %v356_v6 = vld [vmem:[%s2559_s9 + $0x220] sm:$0xff]  ;;  %v2375_v12 = vcombine.high %v369_v7, %v373_v8  ;;  %v2423_v29 = vcombine.high %v417_v21, %v421_v22  ;;  %v2345_v44 = vcombine.high %v338_v41, %v342_v42  ;;  %v318_v60 = vld [vmem:[%s2559_s9 + $0xf0] sm:$0xff]  ;;  %v347_v61 = vld [vmem:[%s2559_s9 + $0x1d8] sm:$0xff]  ;;  %1705 = vperm.xlu0 %2471, %v1691_v59  }
  0x36   : > { %1230 = vmatpush2.bf16.msra.mxu0 %v2412_v17  ;;  %v2357_v11 = vcombine.high %v352_v5, %v356_v6  ;;  %v2356_v17 = vcombine.low %v352_v5, %v356_v6  ;;  %v2662_v23 = vld [vmem:[%s2931_s1] ss:$12 sps:$4 sm:$0xff]   ;;  %v2680_v40 = vld [vmem:[%s2931_s1 + $0x18] ss:$12 sps:$4 sm:$0xff]  }
  0x37   : > { %1231 = vmatprep.subr.bf16.mxu0 %v2405_v19  ;;  %v2431_v19 = vcombine.high %v425_v13, %v429_v14  ;;  %v351_v62 = vld [vmem:[%s2559_s9 + $0x1f8] sm:$0xff] }
  0x38   : > { %1332 = vmatpush1.bf16.msra.mxu1 %v2302_v18  ;;  %v2374_v18 = vcombine.low %v369_v7, %v373_v8  ;;  %v2355_v6 = vcombine.high %v347_v61, %v351_v62  ;;  %v306_v7 = vld [vmem:[%s2559_s9 + $0x90] sm:$0xff] }
  0x39   : > { %1333 = vmatprep.subr.bf16.mxu1 %v2295_v20  ;;  %v2367_v20 = vcombine.high %v361_v15, %v365_v16  ;;  %v310_v8 = vld [vmem:[%s2559_s9 + $0xb0] sm:$0xff] }
  0x3a   : > { %1232 = vmatpush2.bf16.msra.mxu0 %v2404_v25  ;;  %v357_v25 = vld [vmem:[%s2559_s9 + $0x228] sm:$0xff] }
  0x3b   : > { %1233 = vmatprep.subr.bf16.mxu0 %v2397_v27  ;;  %v2430_v27 = vcombine.low %v425_v13, %v429_v14  ;;  %v2359_v31 = vcombine.high %v353_v24, %v357_v25  ;;  %v298_v13 = vld [vmem:[%s2559_s9 + $0x50] sm:$0xff] }
  0x3c   : > { %1334 = vmatpush1.bf16.msra.mxu1 %v2294_v26  ;;  %v2669_v26 = vld [vmem:[%s2931_s1 + $0x1c] ss:$12 sps:$4 sm:$0xff]   ;;  %v302_v14 = vld [vmem:[%s2559_s9 + $0x70] sm:$0xff] }
  0x3d   : > { %1335 = vmatprep.subr.bf16.mxu1 %v2415_v28  ;;  %v2366_v28 = vcombine.low %v361_v15, %v365_v16  ;;  %v2312_v15 = vcombine.low %v306_v7, %v310_v8  ;;  %v2305_v16 = vcombine.high %v298_v13, %v302_v14 }
  0x3e   : > { %1234 = vmatpush2.bf16.msra.mxu0 %v2396_v34  ;;  %v346_v34 = vld [vmem:[%s2559_s9 + $0x1d0] sm:$0xff] }
  0x3f   : > { %1235 = vmatprep.subr.bf16.mxu0 %v2389_v36  ;;  %v2422_v36 = vcombine.low %v417_v21, %v421_v22  ;;  %v2354_v21 = vcombine.low %v347_v61, %v351_v62  ;;  %v2304_v22 = vcombine.low %v298_v13, %v302_v14  ;;  %v299_v61 = vld [vmem:[%s2559_s9 + $0x58] sm:$0xff] }
  0x40   : > { %1336 = vmatpush2.bf16.msra.mxu1 %v2414_v35  ;;  %v350_v35 = vld [vmem:[%s2559_s9 + $0x1f0] sm:$0xff]  ;;  %v303_v62 = vld [vmem:[%s2559_s9 + $0x78] sm:$0xff] }
  0x41   : > { %1337 = vmatprep.subr.bf16.mxu1 %v2407_v37  ;;  %v2358_v37 = vcombine.low %v353_v24, %v357_v25  ;;  %v2353_v39 = vcombine.high %v346_v34, %v350_v35 }
  0x42   : > { %1236 = vmatpush2.bf16.msra.mxu0 %v2388_v43  ;;  %v2352_v43 = vcombine.low %v346_v34, %v350_v35 }
  0x43   : > { %1237 = vmatprep.subr.bf16.mxu0 %v2381_v47  ;;  %v2344_v47 = vcombine.low %v338_v41, %v342_v42 }
  0x44   : > { %1338 = vmatpush2.bf16.msra.mxu1 %v2406_v46  ;;  %v334_v46 = vld [vmem:[%s2559_s9 + $0x170] sm:$0xff] }
  0x45   : > { %1339 = vmatprep.subr.bf16.mxu1 %v2399_v48  ;;  %v2337_v48 = vcombine.high %v330_v45, %v334_v46  ;;  %v2336_v53 = vcombine.low %v330_v45, %v334_v46  ;;  %v315_v45 = vld [vmem:[%s2559_s9 + $0xd8] sm:$0xff] }
  0x46   : > { %1238 = vmatpush2.bf16.msra.mxu0 %v2380_v55  ;;  %v2432_v55 = vcombine.low %v426_v32, %v430_v33  ;;  %v319_v46 = vld [vmem:[%s2559_s9 + $0xf8] sm:$0xff] }
  0x47   : > { %1239 = vmatprep.subr.bf16.mxu0 %v2373_v57  ;;  %v314_v57 = vld [vmem:[%s2559_s9 + $0xd0] sm:$0xff] }
  0x48   : > { %1340 = vmatpush2.bf16.msra.mxu1 %v2398_v56  ;;  %v2329_v56 = vcombine.high %v322_v49, %v326_v50  ;;  %v2321_v5 = vcombine.high %v314_v57, %v318_v60 }
  0x49   : > { %1341 = vmatprep.subr.bf16.mxu1 %v2391_v58  ;;  %v2425_v58 = vcombine.high %v418_v51, %v422_v52 }
  0x4a   : > { %1240 = vmatpush2.bf16.msra.mxu0 %v2372_v63  ;;  %v1689_v63 = vld [vmem:[%s2934_s4] sm:$0xff] }
  0x4b   : > { %1241 = vmatprep.subr.bf16.mxu0 %v2365_v3  ;;  %v2424_v3 = vcombine.low %v418_v51, %v422_v52  ;;  %1695 = vperm.xlu0 %2471, %v1689_v63   ;;  %v2323_v51 = vcombine.high %v315_v45, %v319_v46  ;;  %v378_v63 = vld [vmem:[%s2559_s9 + $0x2d0] sm:$0xff] }
  0x4c   : > { %1342 = vmatpush2.bf16.msra.mxu1 %v2390_v0  ;;  %v2328_v0 = vcombine.low %v322_v49, %v326_v50 }
  0x4d   : > { %1343 = vmatprep.subr.bf16.mxu1 %v2383_v4  ;;  %v1692_v4 = vld [vmem:[%s2934_s4 + $0x18] sm:$0xff] }
  0x4e   : > { %1242 = vmatpush2.bf16.msra.mxu0 %v2364_v9  ;;  %v1990_v9 = vld [vmem:[#allocation2] sm:$0x1]  ;;  %1710 = vperm.xlu1 %2472, %v1692_v4  }
  0x4f   : > { %1243 = vmatprep.subr.bf16.mxu0 %v2357_v11  ;;  %v1690_v11 = vld [vmem:[%s2934_s4 + $0x8] sm:$0xff]  ;;  %1993 = vperm.xlu0 %2471, %v1990_v9   ;;  %v370_v9 = vld [vmem:[%s2559_s9 + $0x290] sm:$0xff] }
  0x50   : > { %1344 = vmatpush2.bf16.msra.mxu1 %v2382_v10  ;;  %v2320_v10 = vcombine.low %v314_v57, %v318_v60  ;;  %v390_v57 = vld [vmem:[%s2559_s9 + $0x330] sm:$0xff] }
  0x51   : > { %1345 = vmatprep.subr.bf16.mxu1 %v2375_v12  ;;  %v2313_v12 = vcombine.high %v306_v7, %v310_v8  ;;  %v291_v7 = vld [vmem:[%s2559_s9 + $0x18] sm:$0xff] }
  0x52   : > { %1244 = vmatpush2.bf16.msra.mxu0 %v2356_v17  ;;  %1700 = vperm.xlu1 %2472, %v1690_v11   ;;  %v339_v17 = vld [vmem:[%s2559_s9 + $0x198] sm:$0xff]  ;;  %v2306_v11 = vcombine.low %v299_v61, %v303_v62 }
  0x53   : > { %1384 = vmatprep.subr.bf16.mxu0 %v2431_v19  ;;  %v290_v19 = vld [vmem:[%s2559_s9 + $0x10] sm:$0xff]  ;;  %v295_v8 = vld [vmem:[%s2559_s9 + $0x38] sm:$0xff] }
  0x54   : > { %1346 = vmatpush2.bf16.msra.mxu1 %v2374_v18  ;;  %v343_v18 = vld [vmem:[%s2559_s9 + $0x1b8] sm:$0xff]  ;;  %v2299_v13 = vcombine.high %v291_v7, %v295_v8 }
  0x55   : > { %1347 = vmatprep.subr.bf16.mxu1 %v2367_v20  ;;  %1246 = vmatmul.mubr.bf16.vlgmr.msra.gmra.mxu0 %v2662_v23  ;;  %v294_v20 = vld [vmem:[%s2559_s9 + $0x30] sm:$0xff]  ;;  %v2347_v24 = vcombine.high %v339_v17, %v343_v18  ;;  %v2346_v32 = vcombine.low %v339_v17, %v343_v18 }
  0x56   : > { %1255 = vmatprep.mubr.bf16.mxu0 %v2669_v26  ;;  %1385 = vmatpush1.bf16.msra.mxu0 %v2430_v27  ;;  %v2297_v25 = vcombine.high %v290_v19, %v294_v20  ;;  %v331_v27 = vld [vmem:[%s2559_s9 + $0x158] sm:$0xff]  ;;  %v2296_v33 = vcombine.low %v290_v19, %v294_v20  ;;  %v362_v17 = vld [vmem:[%s2559_s9 + $0x250] sm:$0xff]  ;;  %v2298_v19 = vcombine.low %v291_v7, %v295_v8 }
  0x57   : > { %1386 = vmatprep.subr.bf16.mxu0 %v2423_v29  ;;  %v410_v29 = vld [vmem:[%s2559_s9 + $0x3d0] sm:$0xff] }
  0x58   : > { %1348 = vmatpush2.bf16.msra.mxu1 %v2366_v28  ;;  %v335_v28 = vld [vmem:[%s2559_s9 + $0x178] sm:$0xff]  ;;  %v366_v18 = vld [vmem:[%s2559_s9 + $0x270] sm:$0xff] }
  0x59   : > { %1349 = vmatprep.subr.bf16.mxu1 %v2359_v31  ;;  %v414_v31 = vld [vmem:[%s2559_s9 + $0x3f0] sm:$0xff]  ;;  %v2339_v34 = vcombine.high %v331_v27, %v335_v28  ;;  %v2338_v41 = vcombine.low %v331_v27, %v335_v28 }
  0x5a   : > { %1387 = vmatpush1.bf16.msra.mxu0 %v2422_v36  ;;  %v2417_v35 = vcombine.high %v410_v29, %v414_v31  ;;  %v323_v36 = vld [vmem:[%s2559_s9 + $0x118] sm:$0xff]  ;;  %v2416_v42 = vcombine.low %v410_v29, %v414_v31  ;;  %v354_v27 = vld [vmem:[%s2559_s9 + $0x210] sm:$0xff]  ;;  %v2368_v31 = vcombine.low %v362_v17, %v366_v18 }
  0x5b   : > { %1490 = vmatprep.subr.bf16.mxu0 %v2433_v38  ;;  %v402_v38 = vld [vmem:[%s2559_s9 + $0x390] sm:$0xff] }
  0x5c   : > { %1350 = vmatpush2.bf16.msra.mxu1 %v2358_v37  ;;  %v327_v37 = vld [vmem:[%s2559_s9 + $0x138] sm:$0xff]  ;;  %v358_v28 = vld [vmem:[%s2559_s9 + $0x230] sm:$0xff] }
  0x5d   : > { %1425 = vmatprep.subr.bf16.mxu1 %v2353_v39  ;;  %1256 = vmatmul.mubr.bf16.gmra.mxu0 %v2680_v40  ;;  %v406_v39 = vld [vmem:[%s2559_s9 + $0x3b0] sm:$0xff]  ;;  %v2330_v49 = vcombine.low %v323_v36, %v327_v37 }
  0x5e   : > { %1404 = vmatprep.mubr.bf16.mxu0 %v2491_v1  ;;  %v2408_v50 = vcombine.low %v402_v38, %v406_v39 }
  0x5f   : > { %1352 = vmatmul.mubr.bf16.vlgmr.msra.gmra.mxu1 %v2662_v23 }
  0x60   : > { %1426 = vmatpush1.bf16.msra.mxu1 %v2352_v43  ;;  %1361 = vmatprep.mubr.bf16.mxu1 %v2669_v26  ;;  %v2331_v43 = vcombine.high %v323_v36, %v327_v37  ;;  %v427_v36 = vld [vmem:[%s2559_s9 + $0x458] sm:$0xff] }
  0x61   : > { %1427 = vmatprep.subr.bf16.mxu1 %v2345_v44  ;;  %v2409_v44 = vcombine.high %v402_v38, %v406_v39  ;;  %v431_v37 = vld [vmem:[%s2559_s9 + $0x478] sm:$0xff]  ;;  %v2360_v39 = vcombine.low %v354_v27, %v358_v28 }
  0x64   : > { %1428 = vmatpush1.bf16.msra.mxu1 %v2344_v47  ;;  %v394_v47 = vld [vmem:[%s2559_s9 + $0x350] sm:$0xff] }
  0x65   : > { %1429 = vmatprep.subr.bf16.mxu1 %v2337_v48  ;;  %2438 = vmatmul.mubr.msk.bf16.vlgmr.msra.gmra.mxu0 %vm1206_vm0, %v2580_v30  ;;  %v398_v48 = vld [vmem:[%s2559_s9 + $0x370] sm:$0xff] }
  0x66   : > { %1414 = vmatprep.mubr.bf16.mxu0 %v2491_v1  ;;  %1491 = vmatpush1.bf16.msra.mxu0 %v2432_v55  ;;  %v2401_v52 = vcombine.high %v394_v47, %v398_v48  ;;  %v311_v55 = vld [vmem:[%s2559_s9 + $0xb8] sm:$0xff]  ;;  %v2400_v59 = vcombine.low %v394_v47, %v398_v48 }
  0x67   : > { %1362 = vmatmul.mubr.bf16.gmra.mxu1 %v2680_v40  ;;  %1492 = vmatprep.subr.bf16.mxu0 %v2425_v58  ;;  %v2322_v58 = vcombine.low %v315_v45, %v319_v46  ;;  %v419_v46 = vld [vmem:[%s2559_s9 + $0x418] sm:$0xff] }
  0x68   : > { %1430 = vmatpush1.bf16.msra.mxu1 %v2336_v53  ;;  %1457 = vmatprep.mubr.bf16.mxu1 %v2551_v2  ;;  %v307_v53 = vld [vmem:[%s2559_s9 + $0x98] sm:$0xff] }
  0x69   : > { %1431 = vmatprep.subr.bf16.mxu1 %v2329_v56  ;;  %v386_v56 = vld [vmem:[%s2559_s9 + $0x310] sm:$0xff]  ;;  %v423_v47 = vld [vmem:[%s2559_s9 + $0x438] sm:$0xff] }
  0x6a   : > { %1493 = vmatpush1.bf16.msra.mxu0 %v2424_v3  ;;  %v2393_v60 = vcombine.high %v386_v56, %v390_v57  ;;  %v2314_v3 = vcombine.low %v307_v53, %v311_v55  ;;  %v2392_v4 = vcombine.low %v386_v56, %v390_v57  ;;  %v371_v56 = vld [vmem:[%s2559_s9 + $0x298] sm:$0xff] }
  0x6b   : > { %1531 = vmatprep.subr.bf16.mxu0 %v2355_v6  ;;  %v375_v57 = vld [vmem:[%s2559_s9 + $0x2b8] sm:$0xff] }
  0x6c   : > { %1432 = vmatpush1.bf16.msra.mxu1 %v2328_v0  ;;  %v382_v0 = vld [vmem:[%s2559_s9 + $0x2f0] sm:$0xff] }
  0x6d   : > { %1433 = vmatprep.subr.bf16.mxu1 %v2321_v5  ;;  %2439 = vmatmul.mubr.msk.bf16.gmra.mxu0 %vm1206_vm0, %v2600_v54  ;;  %v2307_v5 = vcombine.high %v299_v61, %v303_v62  ;;  %v2385_v6 = vcombine.high %v378_v63, %v382_v0  ;;  %v367_v61 = vld [vmem:[%s2559_s9 + $0x278] sm:$0xff]  ;;  %v2378_v62 = vcombine.low %v371_v56, %v375_v57 }
  0x6e   : > { %1510 = vmatprep.mubr.bf16.mxu0 %v2491_v1 }
  0x70   : > { %1434 = vmatpush1.bf16.msra.mxu1 %v2320_v10  ;;  %v374_v10 = vld [vmem:[%s2559_s9 + $0x2b0] sm:$0xff] }
  0x71   : > { %1435 = vmatprep.subr.bf16.mxu1 %v2313_v12  ;;  %v2384_v12 = vcombine.low %v378_v63, %v382_v0  ;;  %v2377_v14 = vcombine.high %v370_v9, %v374_v10  ;;  %v2376_v20 = vcombine.low %v370_v9, %v374_v10  ;;  %v355_v0 = vld [vmem:[%s2559_s9 + $0x218] sm:$0xff] }
  0x74   : > { %1436 = vmatpush1.bf16.msra.mxu1 %v2312_v15  ;;  %v411_v15 = vld [vmem:[%s2559_s9 + $0x3d8] sm:$0xff] }
  0x75   : > { %1437 = vmatprep.subr.bf16.mxu1 %v2305_v16  ;;  %2440 = vmatmul.mubr.msk.bf16.vlgmr.msra.gmra.mxu0 %vm1206_vm0, %v2580_v30  ;;  %v415_v16 = vld [vmem:[%s2559_s9 + $0x3f8] sm:$0xff] }
  0x76   : > { %1532 = vmatpush1.bf16.msra.mxu0 %v2354_v21  ;;  %1520 = vmatprep.mubr.bf16.mxu0 %v2491_v1  ;;  %v2419_v21 = vcombine.high %v411_v15, %v415_v16  ;;  %v2418_v29 = vcombine.low %v411_v15, %v415_v16 }
  0x77   : > { %1533 = vmatprep.subr.bf16.mxu0 %v2347_v24  ;;  %v403_v24 = vld [vmem:[%s2559_s9 + $0x398] sm:$0xff] }
  0x78   : > { %1438 = vmatpush1.bf16.msra.mxu1 %v2304_v22  ;;  %v2369_v22 = vcombine.high %v362_v17, %v366_v18 }
  0x79   : > { %1439 = vmatprep.subr.bf16.mxu1 %v2297_v25  ;;  %v407_v25 = vld [vmem:[%s2559_s9 + $0x3b8] sm:$0xff] }
  0x7a   : > { %1534 = vmatpush1.bf16.msra.mxu0 %v2346_v32  ;;  %v2411_v32 = vcombine.high %v403_v24, %v407_v25  ;;  %v2410_v38 = vcombine.low %v403_v24, %v407_v25 }
  0x7b   : > { %1535 = vmatprep.subr.bf16.mxu0 %v2339_v34  ;;  %v395_v34 = vld [vmem:[%s2559_s9 + $0x358] sm:$0xff] }
  0x7c   : > { %1440 = vmatpush1.bf16.msra.mxu1 %v2296_v33  ;;  %v2361_v33 = vcombine.high %v354_v27, %v358_v28 }
  0x7d   : > { %1441 = vmatprep.subr.bf16.mxu1 %v2417_v35  ;;  %2441 = vmatmul.mubr.msk.bf16.gmra.mxu0 %vm1206_vm0, %v2600_v54  ;;  %v399_v35 = vld [vmem:[%s2559_s9 + $0x378] sm:$0xff] }
  0x7e   : > { %1536 = vmatpush1.bf16.msra.mxu0 %v2338_v41  ;;  %1563 = vmatprep.mubr.bf16.mxu0 %v2551_v2  ;;  %v2315_v2 = vcombine.high %v307_v53, %v311_v55  ;;  %v2403_v41 = vcombine.high %v395_v34, %v399_v35  ;;  %v2402_v45 = vcombine.low %v395_v34, %v399_v35 }
  0x7f   : > { %1537 = vmatprep.subr.bf16.mxu0 %v2331_v43  ;;  %v391_v43 = vld [vmem:[%s2559_s9 + $0x338] sm:$0xff] }
  0x80   : > { %1442 = vmatpush2.bf16.msra.mxu1 %v2416_v42  ;;  %v387_v42 = vld [vmem:[%s2559_s9 + $0x318] sm:$0xff] }
  0x81   : > { %1443 = vmatprep.subr.bf16.mxu1 %v2409_v44  ;;  %v2435_v44 = vcombine.high %v427_v36, %v431_v37  ;;  %v2395_v48 = vcombine.high %v387_v42, %v391_v43  ;;  %v2394_v53 = vcombine.low %v387_v42, %v391_v43 }
  0x82   : > { %1538 = vmatpush1.bf16.msra.mxu0 %v2330_v49  ;;  %v379_v49 = vld [vmem:[%s2559_s9 + $0x2d8] sm:$0xff] }
  0x83   : > { %1539 = vmatprep.subr.bf16.mxu0 %v2323_v51  ;;  %v2434_v51 = vcombine.low %v427_v36, %v431_v37 }
  0x84   : > { %1444 = vmatpush2.bf16.msra.mxu1 %v2408_v50  ;;  %v383_v50 = vld [vmem:[%s2559_s9 + $0x2f8] sm:$0xff] }
  0x85   : > { %1445 = vmatprep.subr.bf16.mxu1 %v2401_v52  ;;  %v2427_v52 = vcombine.high %v419_v46, %v423_v47  ;;  %v2387_v55 = vcombine.high %v379_v49, %v383_v50 }
  0x86   : > { %1540 = vmatpush1.bf16.msra.mxu0 %v2322_v58  ;;  %v2426_v58 = vcombine.low %v419_v46, %v423_v47 }
  0x87   : > { %1541 = vmatprep.subr.bf16.mxu0 %v2315_v2  ;;  %v2379_v2 = vcombine.high %v371_v56, %v375_v57 }
  0x88   : > { %1446 = vmatpush2.bf16.msra.mxu1 %v2400_v59  ;;  %v2386_v59 = vcombine.low %v379_v49, %v383_v50 }
  0x89   : > { %1447 = vmatprep.subr.bf16.mxu1 %v2393_v60  ;;  %v363_v60 = vld [vmem:[%s2559_s9 + $0x258] sm:$0xff] }
  0x8a   : > { %1542 = vmatpush1.bf16.msra.mxu0 %v2314_v3  ;;  %v2371_v63 = vcombine.high %v363_v60, %v367_v61  ;;  %v359_v3 = vld [vmem:[%s2559_s9 + $0x238] sm:$0xff] }
  0x8b   : > { %1543 = vmatprep.subr.bf16.mxu0 %v2307_v5  ;;  %v2363_v5 = vcombine.high %v355_v0, %v359_v3 }
  0x8c   : > { %1448 = vmatpush2.bf16.msra.mxu1 %v2392_v4  ;;  %v2370_v4 = vcombine.low %v363_v60, %v367_v61 }
  0x8d   : > { %1449 = vmatprep.subr.bf16.mxu1 %v2385_v6  ;;  %v2362_v6 = vcombine.low %v355_v0, %v359_v3 }
  0x8e   : > { %1544 = vmatpush1.bf16.msra.mxu0 %v2306_v11 }
  0x8f   : > { %1545 = vmatprep.subr.bf16.mxu0 %v2299_v13 }
  0x90   : > { %1450 = vmatpush2.bf16.msra.mxu1 %v2384_v12 }
  0x91   : > { %1451 = vmatprep.subr.bf16.mxu1 %v2377_v14 }
  0x92   : > { %1546 = vmatpush1.bf16.msra.mxu0 %v2298_v19 }
  0x93   : > { %1547 = vmatprep.subr.bf16.mxu0 %v2419_v21 }
  0x94   : > { %1452 = vmatpush2.bf16.msra.mxu1 %v2376_v20 }
  0x95   : > { %1453 = vmatprep.subr.bf16.mxu1 %v2369_v22  ;;  %v2796_v15 = vpop.permute.xlu0 %448 }
  0x96   : > { %1548 = vmatpush2.bf16.msra.mxu0 %v2418_v29 }
  0x97   : > { %1549 = vmatprep.subr.bf16.mxu0 %v2411_v32 }
  0x98   : > { %1454 = vmatpush2.bf16.msra.mxu1 %v2368_v31 }
  0x99   : > { %1455 = vmatprep.subr.bf16.mxu1 %v2361_v33  ;;  %v2800_v20 = vpop.permute.xlu0 %453 }
  0x9a   : > { %1550 = vmatpush2.bf16.msra.mxu0 %v2410_v38 }
  0x9b   : > { %1551 = vmatprep.subr.bf16.mxu0 %v2403_v41 }
  0x9c   : > { %1456 = vmatpush2.bf16.msra.mxu1 %v2360_v39 }
  0x9d   : > { %1596 = vmatprep.subr.bf16.mxu1 %v2435_v44 }
  0x9e   : > { %1552 = vmatpush2.bf16.msra.mxu0 %v2402_v45 }
  0x9f   : > { %1458 = vmatmul.mubr.bf16.vlgmr.msra.gmra.mxu1 %v2662_v23  ;;  %1553 = vmatprep.subr.bf16.mxu0 %v2395_v48 }
  0xa0   : > { %1467 = vmatprep.mubr.bf16.mxu1 %v2669_v26  ;;  %1597 = vmatpush1.bf16.msra.mxu1 %v2434_v51 }
  0xa1   : > { %1598 = vmatprep.subr.bf16.mxu1 %v2427_v52 }
  0xa2   : > { %1554 = vmatpush2.bf16.msra.mxu0 %v2394_v53 }
  0xa3   : > { %1555 = vmatprep.subr.bf16.mxu0 %v2387_v55 }
  0xa4   : > { %1599 = vmatpush1.bf16.msra.mxu1 %v2426_v58 }
  0xa6   : > { %1556 = vmatpush2.bf16.msra.mxu0 %v2386_v59 }
  0xa7   : > { %1468 = vmatmul.mubr.bf16.gmra.mxu1 %v2680_v40  ;;  %1557 = vmatprep.subr.bf16.mxu0 %v2379_v2 }
  0xa8   : > { %1616 = vmatprep.mubr.bf16.mxu1 %v2491_v1 }
  0xaa   : > { %1558 = vmatpush2.bf16.msra.mxu0 %v2378_v62 }
  0xab   : > { %1559 = vmatprep.subr.bf16.mxu0 %v2371_v63  ;;  %v2794_v14 = vpop.permute.xlu1 %438 }
  0xae   : > { %1560 = vmatpush2.bf16.msra.mxu0 %v2370_v4 }
  0xaf   : > { %2442 = vmatmul.mubr.msk.bf16.vlgmr.msra.gmra.mxu1 %vm1206_vm0, %v2580_v30  ;;  %1561 = vmatprep.subr.bf16.mxu0 %v2363_v5 }
  0xb0   : > { %1626 = vmatprep.mubr.bf16.mxu1 %v2491_v1 }
  0xb2   : > { %1562 = vmatpush2.bf16.msra.mxu0 %v2362_v6 }
  0xb5   : > { %1564 = vmatmul.mubr.bf16.vlgmr.msra.gmra.mxu0 %v2662_v23 }
  0xb6   : > { %1573 = vmatprep.mubr.bf16.mxu0 %v2669_v26 }
  0xb7   : > { %2443 = vmatmul.mubr.msk.bf16.gmra.mxu1 %vm1206_vm0, %v2600_v54 }
  0xb8   : > { %1761 = vmatprep.mubr.bf16.mxu1 %v2491_v1 }
  0xbd   : > { %1574 = vmatmul.mubr.bf16.gmra.mxu0 %v2680_v40  ;;  %v2798_v40 = vpop.permute.xlu1 %443 }
  0xbe   : > { %1814 = vmatprep.mubr.bf16.mxu0 %v2491_v1 }
  0xdf   : > { %v1300_v7 = vpop.f32.mrf.mxu1 }
  0xe1   : > { %v1302_v8 = vpop.f32.mrf.mxu1 }
  0xe3   : > { %v1304_v30 = vpop.f32.mrf.mxu1 }
  0xe5   : > { %v1306_v9 = vpop.f32.mrf.mxu1 }
  0xe7   : > { %v1310_v10 = vpop.f32.mrf.mxu1 }
  0xe9   : > { %v1312_v11 = vpop.f32.mrf.mxu1 }
  0xeb   : > { %v1314_v13 = vpop.f32.mrf.mxu1 }
  0xed   : > { %v1316_v26 = vpop.f32.mrf.mxu1 }
 0x115   : > { %v1247_v12 = vpop.f32.mrf.mxu0 }
 0x116   : > { %v1248_v39 = vadd.f32 %v1247_v12, %v2794_v14 }
 0x117   : > { %v1249_v23 = vpop.f32.mrf.mxu0 }
 0x118   : > { %v1250_v28 = vadd.f32 %v1249_v23, %v2794_v14  ;;  %v1301_v53 = vadd.f32 %v1300_v7, %v1248_v39 }
 0x119   : > { %v1251_v54 = vpop.f32.mrf.mxu0 }
 0x11a   : > { %v1252_v32 = vadd.f32 %v1251_v54, %v2798_v40  ;;  %v1303_v43 = vadd.f32 %v1302_v8, %v1250_v28  ;;  %v1637_v63 = vmax.f32 %v1301_v53, 0.0 }
 0x11b   : > { %v1253_v16 = vpop.f32.mrf.mxu0 }
 0x11c   : > { %v1254_v21 = vadd.f32 %v1253_v16, %v2798_v40  ;;  %v1305_v46 = vadd.f32 %v1304_v30, %v1252_v32  ;;  %v1638_v57 = vmax.f32 %v1303_v43, 0.0 }
 0x11d   : > { %v1257_v17 = vpop.f32.mrf.mxu0 }
 0x11e   : > { %v1258_v25 = vadd.f32 %v1257_v17, %v2796_v15  ;;  %v1307_v34 = vadd.f32 %v1306_v9, %v1254_v21  ;;  %v1645_v2 = vmax.f32 %v1305_v46, 0.0 }
 0x11f   : > { %v1353_v18 = vpop.f32.mrf.mxu1  ;;  %v1259_v19 = vpop.f32.mrf.mxu0 }
 0x120   : > { %v1260_v22 = vadd.f32 %v1259_v19, %v2796_v15  ;;  %v1311_v41 = vadd.f32 %v1310_v10, %v1258_v25  ;;  %v1646_v49 = vmax.f32 %v1307_v34, 0.0  ;;  %v1673_v6 = vpack.c.bf16 %v1645_v2, %v1637_v63 }
 0x121   : > { %v1355_v24 = vpop.f32.mrf.mxu1  ;;  %v1261_v27 = vpop.f32.mrf.mxu0  ;;  %v1354_v16 = vadd.f32 %v1353_v18, %v2794_v14  ;;  %v2829_v18 = vld [vmem:[%s2933_s3 + $0x8] sm:$0xff]  }
 0x122   : > { %v1262_v29 = vadd.f32 %v1261_v27, %v2800_v20  ;;  %v1313_v35 = vadd.f32 %v1312_v11, %v1260_v22  ;;  %v1653_v55 = vmax.f32 %v1311_v41, 0.0  ;;  %v1674_v62 = vpack.c.bf16 %v1646_v49, %v1638_v57  ;;  %v2819_v11 = vld [vmem:[%s2933_s3] sm:$0xff]  }
 0x123   : > { %v1357_v31 = vpop.f32.mrf.mxu1  ;;  %v1263_v33 = vpop.f32.mrf.mxu0  ;;  %v1356_v30 = vadd.f32 %v1355_v24, %v2794_v14 }
 0x124   : > { %v1315_v36 = vadd.f32 %v1314_v13, %v1262_v29  ;;  %v1264_v37 = vadd.f32 %v1263_v33, %v2800_v20  ;;  %v1654_v50 = vmax.f32 %v1313_v35, 0.0  ;;  %v1358_v12 = vadd.f32 %v1357_v31, %v2798_v40 }
 0x125   : > { %v1359_v38 = vpop.f32.mrf.mxu1  ;;  %v1406_v42 = vpop.f32.mrf.mxu0 }
 0x126   : > { %v1317_v44 = vadd.f32 %v1316_v26, %v1264_v37  ;;  %v1661_v47 = vmax.f32 %v1315_v36, 0.0  ;;  %v1360_v9 = vadd.f32 %v1359_v38, %v2798_v40  ;;  %v1407_v31 = vadd.f32 %v1406_v42, %v1354_v16 }
 0x127   : > { %v1363_v45 = vpop.f32.mrf.mxu1  ;;  %v1408_v48 = vpop.f32.mrf.mxu0 }
 0x128   : > { %v1662_v51 = vmax.f32 %v1317_v44, 0.0  ;;  %v1681_v60 = vpack.c.bf16 %v1661_v47, %v1653_v55  ;;  %v1364_v7 = vadd.f32 %v1363_v45, %v2796_v15  ;;  %v1409_v21 = vadd.f32 %v1408_v48, %v1356_v30 }
 0x129   : > { %v1365_v52 = vpop.f32.mrf.mxu1  ;;  %v1410_v56 = vpop.f32.mrf.mxu0  ;;  %v1639_v38 = vmax.f32 %v1407_v31, 0.0 }
 0x12a   : > { %v1682_v58 = vpack.c.bf16 %v1662_v51, %v1654_v50  ;;  %v1366_v4 = vadd.f32 %v1365_v52, %v2796_v15  ;;  %v1411_v24 = vadd.f32 %v1410_v56, %v1358_v12  ;;  %v1640_v33 = vmax.f32 %v1409_v21, 0.0 }
 0x12b   : > { %v1367_v59 = vpop.f32.mrf.mxu1  ;;  %v1412_v61 = vpop.f32.mrf.mxu0 }
 0x12c   : > { %1741 = vmatprep.subr.bf16.mxu1 %v1682_v58  ;;  %v1368_v5 = vadd.f32 %v1367_v59, %v2800_v20  ;;  %v1413_v23 = vadd.f32 %v1412_v61, %v1360_v9  ;;  %v1647_v35 = vmax.f32 %v1411_v24, 0.0 }
 0x12d   : > { %v1416_v0 = vpop.f32.mrf.mxu0  ;;  %1742 = vmatpush1.bf16.msra.mxu1 %v1681_v60  ;;  %v1369_v3 = vpop.f32.mrf.mxu1 }
 0x12e   : > { %1743 = vmatprep.subr.bf16.mxu1 %v1674_v62  ;;  %v1370_v10 = vadd.f32 %v1369_v3, %v2800_v20  ;;  %v1417_v17 = vadd.f32 %v1416_v0, %v1364_v7  ;;  %v1648_v27 = vmax.f32 %v1413_v23, 0.0  ;;  %v1675_v39 = vpack.c.bf16 %v1647_v35, %v1639_v38 }
 0x12f   : > { %v1418_v8 = vpop.f32.mrf.mxu0 }
 0x130   : > { %v1419_v54 = vadd.f32 %v1418_v8, %v1366_v4  ;;  %v1655_v32 = vmax.f32 %v1417_v17, 0.0  ;;  %v1676_v37 = vpack.c.bf16 %v1648_v27, %v1640_v33 }
 0x131   : > { %v1420_v13 = vpop.f32.mrf.mxu0  ;;  %1744 = vmatpush1.bf16.msra.mxu1 %v1673_v6 }
 0x132   : > { %v1421_v26 = vadd.f32 %v1420_v13, %v1368_v5  ;;  %v1656_v28 = vmax.f32 %v1419_v54, 0.0 }
 0x133   : > { %v1422_v19 = vpop.f32.mrf.mxu0 }
 0x134   : > { %v1423_v22 = vadd.f32 %v1422_v19, %v1370_v10  ;;  %2446 = vmatmul.mubr.msk.bf16.vlgmr.msra.gmra.mxu1 %vm1206_vm0, %v2819_v11  ;;  %v1663_v25 = vmax.f32 %v1421_v26, 0.0 }
 0x135   : > { %1771 = vmatprep.mubr.bf16.mxu1 %v2491_v1  ;;  %v1512_v41 = vpop.f32.mrf.mxu0 }
 0x136   : > { %v1664_v29 = vmax.f32 %v1423_v22, 0.0  ;;  %v1683_v36 = vpack.c.bf16 %v1663_v25, %v1655_v32 }
 0x137   : > { %v1514_v42 = vpop.f32.mrf.mxu0 }
 0x138   : > { %v1684_v34 = vpack.c.bf16 %v1664_v29, %v1656_v28 }
 0x139   : > { %v1516_v43 = vpop.f32.mrf.mxu0 }
 0x13a   : > { %1794 = vmatprep.subr.bf16.mxu0 %v1684_v34 }
 0x13b   : > { %1795 = vmatpush1.bf16.msra.mxu0 %v1683_v36  ;;  %v1518_v44 = vpop.f32.mrf.mxu0 }
 0x13c   : > { %2447 = vmatmul.mubr.msk.bf16.gmra.mxu1 %vm1206_vm0, %v2829_v18  ;;  %1796 = vmatprep.subr.bf16.mxu0 %v1676_v37 }
 0x13d   : > { %1867 = vmatprep.mubr.bf16.mxu1 %v2491_v1  ;;  %v1522_v47 = vpop.f32.mrf.mxu0 }
 0x13f   : > { %1797 = vmatpush1.bf16.msra.mxu0 %v1675_v39  ;;  %v1524_v50 = vpop.f32.mrf.mxu0 }
 0x141   : > { %v1526_v55 = vpop.f32.mrf.mxu0 }
 0x142   : > { %2448 = vmatmul.mubr.msk.bf16.vlgmr.msra.gmra.mxu0 %vm1206_vm0, %v2819_v11 }
 0x143   : > { %1824 = vmatprep.mubr.bf16.mxu0 %v2491_v1  ;;  %v1528_v0 = vpop.f32.mrf.mxu0 }
 0x14a   : > { %2449 = vmatmul.mubr.msk.bf16.gmra.mxu0 %vm1206_vm0, %v2829_v18 }
 0x14b   : > { %1920 = vmatprep.mubr.bf16.mxu0 %v2491_v1 }
 0x15f   : > { %v1459_v45 = vpop.f32.mrf.mxu1 }
 0x160   : > { %v1460_v6 = vadd.f32 %v1459_v45, %v2794_v14 }
 0x161   : > { %v1461_v46 = vpop.f32.mrf.mxu1 }
 0x162   : > { %v1462_v59 = vadd.f32 %v1461_v46, %v2794_v14  ;;  %v1513_v16 = vadd.f32 %v1512_v41, %v1460_v6 }
 0x163   : > { %v1463_v48 = vpop.f32.mrf.mxu1 }
 0x164   : > { %v1464_v61 = vadd.f32 %v1463_v48, %v2798_v40  ;;  %v1515_v8 = vadd.f32 %v1514_v42, %v1462_v59  ;;  %v1641_v29 = vmax.f32 %v1513_v16, 0.0 }
 0x165   : > { %v1465_v49 = vpop.f32.mrf.mxu1 }
 0x166   : > { %v1466_v56 = vadd.f32 %v1465_v49, %v2798_v40  ;;  %v1517_v10 = vadd.f32 %v1516_v43, %v1464_v61  ;;  %v1642_v19 = vmax.f32 %v1515_v8, 0.0 }
 0x167   : > { %v1469_v51 = vpop.f32.mrf.mxu1 }
 0x168   : > { %v1470_v52 = vadd.f32 %v1469_v51, %v2796_v15  ;;  %v1519_v3 = vadd.f32 %v1518_v44, %v1466_v56  ;;  %v1649_v22 = vmax.f32 %v1517_v10, 0.0  ;;  %v2870_v10 = vpop.permute.xlu0 %1705 }
 0x169   : > { %v1471_v53 = vpop.f32.mrf.mxu1 }
 0x16a   : > { %v1472_v57 = vadd.f32 %v1471_v53, %v2796_v15  ;;  %v1523_v62 = vadd.f32 %v1522_v47, %v1470_v52  ;;  %v1650_v54 = vmax.f32 %v1519_v3, 0.0  ;;  %v1677_v32 = vpack.c.bf16 %v1649_v22, %v1641_v29 }
 0x16b   : > { %v1473_v58 = vpop.f32.mrf.mxu1 }
 0x16c   : > { %v1525_v2 = vadd.f32 %v1524_v50, %v1472_v57  ;;  %v1474_v60 = vadd.f32 %v1473_v58, %v2800_v20  ;;  %v1657_v12 = vmax.f32 %v1523_v62, 0.0  ;;  %v1678_v28 = vpack.c.bf16 %v1650_v54, %v1642_v19  ;;  %v2874_v54 = vpop.permute.xlu0 %1695 }
 0x16d   : > { %v1475_v63 = vpop.f32.mrf.mxu1 }
 0x16e   : > { %v1527_v4 = vadd.f32 %v1526_v55, %v1474_v60  ;;  %v1476_v5 = vadd.f32 %v1475_v63, %v2800_v20  ;;  %v1658_v30 = vmax.f32 %v1525_v2, 0.0 }
 0x16f   : > { %v1618_v7 = vpop.f32.mrf.mxu1 }
 0x170   : > { %v1529_v9 = vadd.f32 %v1528_v0, %v1476_v5  ;;  %v1665_v13 = vmax.f32 %v1527_v4, 0.0 }
 0x171   : > { %v1620_v23 = vpop.f32.mrf.mxu1 }
 0x172   : > { %v1666_v26 = vmax.f32 %v1529_v9, 0.0  ;;  %v1685_v24 = vpack.c.bf16 %v1665_v13, %v1657_v12 }
 0x173   : > { %v1622_v17 = vpop.f32.mrf.mxu1 }
 0x174   : > { %v1686_v21 = vpack.c.bf16 %v1666_v26, %v1658_v30  ;;  %v2868_v30 = vpop.permute.xlu1 %1710 }
 0x175   : > { %v1565_v25 = vpop.f32.mrf.mxu0  ;;  %v1624_v27 = vpop.f32.mrf.mxu1 }
 0x176   : > { %1847 = vmatprep.subr.bf16.mxu1 %v1686_v21  ;;  %v1566_v53 = vadd.f32 %v1565_v25, %v2794_v14 }
 0x177   : > { %1848 = vmatpush1.bf16.msra.mxu1 %v1685_v24  ;;  %v1567_v31 = vpop.f32.mrf.mxu0  ;;  %v1628_v34 = vpop.f32.mrf.mxu1 }
 0x178   : > { %1849 = vmatprep.subr.bf16.mxu1 %v1678_v28  ;;  %v1568_v45 = vadd.f32 %v1567_v31, %v2794_v14  ;;  %v1619_v61 = vadd.f32 %v1618_v7, %v1566_v53 }
 0x179   : > { %v1569_v33 = vpop.f32.mrf.mxu0  ;;  %v1630_v36 = vpop.f32.mrf.mxu1 }
 0x17a   : > { %v1570_v47 = vadd.f32 %v1569_v33, %v2798_v40  ;;  %v1643_v4 = vmax.f32 %v1619_v61, 0.0 }
 0x17b   : > { %1850 = vmatpush1.bf16.msra.mxu1 %v1677_v32  ;;  %v1571_v35 = vpop.f32.mrf.mxu0  ;;  %v1632_v43 = vpop.f32.mrf.mxu1 }
 0x17c   : > { %v1572_v39 = vadd.f32 %v1571_v35, %v2798_v40  ;;  %v1623_v58 = vadd.f32 %v1622_v17, %v1570_v47 }
 0x17d   : > { %v1575_v37 = vpop.f32.mrf.mxu0  ;;  %v1634_v56 = vpop.f32.mrf.mxu1 }
 0x17e   : > { %2450 = vmatmul.mubr.msk.bf16.vlgmr.msra.gmra.mxu1 %vm1206_vm0, %v2819_v11  ;;  %v1576_v42 = vadd.f32 %v1575_v37, %v2796_v15  ;;  %v1625_v49 = vadd.f32 %v1624_v27, %v1572_v39  ;;  %v1651_v0 = vmax.f32 %v1623_v58, 0.0 }
 0x17f   : > { %1877 = vmatprep.mubr.bf16.mxu1 %v2491_v1  ;;  %v1577_v38 = vpop.f32.mrf.mxu0 }
 0x180   : > { %v1578_v41 = vadd.f32 %v1577_v38, %v2796_v15  ;;  %v1629_v55 = vadd.f32 %v1628_v34, %v1576_v42  ;;  %v1621_v15 = vadd.f32 %v1620_v23, %v1568_v45  ;;  %v1652_v40 = vmax.f32 %v1625_v49, 0.0  ;;  %v2872_v23 = vpop.permute.xlu1 %1700 }
 0x181   : > { %v1579_v44 = vpop.f32.mrf.mxu0  ;;  %v1679_v5 = vpack.c.bf16 %v1651_v0, %v1643_v4 }
 0x182   : > { %v1580_v46 = vadd.f32 %v1579_v44, %v2800_v20  ;;  %v1631_v50 = vadd.f32 %v1630_v36, %v1578_v41  ;;  %v1659_v62 = vmax.f32 %v1629_v55, 0.0  ;;  %v1644_v63 = vmax.f32 %v1621_v15, 0.0 }
 0x183   : > { %v1581_v48 = vpop.f32.mrf.mxu0 }
 0x184   : > { %v1633_v51 = vadd.f32 %v1632_v43, %v1580_v46  ;;  %v1582_v52 = vadd.f32 %v1581_v48, %v2800_v20  ;;  %v1660_v2 = vmax.f32 %v1631_v50, 0.0  ;;  %v1680_v3 = vpack.c.bf16 %v1652_v40, %v1644_v63  ;;  %v2887_v48 = vld [vmem:[%s2935_s5] sm:$0x1] }
 0x186   : > { %2451 = vmatmul.mubr.msk.bf16.gmra.mxu1 %vm1206_vm0, %v2829_v18  ;;  %v1635_v57 = vadd.f32 %v1634_v56, %v1582_v52  ;;  %v1667_v59 = vmax.f32 %v1633_v51, 0.0 }
 0x187   : > { %2035 = vmatprep.mubr.bf16.mxu1 %v2491_v1 }
 0x188   : > { %v1668_v60 = vmax.f32 %v1635_v57, 0.0  ;;  %v1687_v14 = vpack.c.bf16 %v1667_v59, %v1659_v62 }
 0x18a   : > { %v1688_v20 = vpack.c.bf16 %v1668_v60, %v1660_v2 }
 0x18c   : > { %1900 = vmatprep.subr.bf16.mxu0 %v1688_v20 }
 0x18d   : > { %1901 = vmatpush1.bf16.msra.mxu0 %v1687_v14 }
 0x18e   : > { %1902 = vmatprep.subr.bf16.mxu0 %v1680_v3 }
 0x191   : > { %1903 = vmatpush1.bf16.msra.mxu0 %v1679_v5 }
 0x194   : > { %2452 = vmatmul.mubr.msk.bf16.vlgmr.msra.gmra.mxu0 %vm1206_vm0, %v2819_v11 }
 0x195   : > { %1930 = vmatprep.mubr.bf16.mxu0 %v2491_v1 }
 0x19c   : > { %2453 = vmatmul.mubr.msk.bf16.gmra.mxu0 %vm1206_vm0, %v2829_v18 }
 0x19d   : > { %2076 = vmatprep.mubr.bf16.mxu0 %v2491_v1 }
 0x1f4   : > { %v1763_v6 = vpop.f32.mrf.mxu1 }
 0x1f5   : > { %v1764_v33 = vadd.f32 %v1763_v6, %v2874_v54 }
 0x1f6   : > { %v1765_v7 = vpop.f32.mrf.mxu1 }
 0x1f7   : > { %v1766_v22 = vadd.f32 %v1765_v7, %v2874_v54  ;;  %v1941_v43 = vmax.f32 %v1764_v33, 0.0 }
 0x1f8   : > { %v1767_v8 = vpop.f32.mrf.mxu1 }
 0x1f9   : > { %v1768_v25 = vadd.f32 %v1767_v8, %v2872_v23  ;;  %v1942_v36 = vmax.f32 %v1766_v22, 0.0 }
 0x1fa   : > { %v1769_v9 = vpop.f32.mrf.mxu1 }
 0x1fb   : > { %v1770_v26 = vadd.f32 %v1769_v9, %v2872_v23  ;;  %v1949_v38 = vmax.f32 %v1768_v25, 0.0 }
 0x1fc   : > { %v1773_v12 = vpop.f32.mrf.mxu1 }
 0x1fd   : > { %v1774_v17 = vadd.f32 %v1773_v12, %v2870_v10  ;;  %v1950_v29 = vmax.f32 %v1770_v26, 0.0  ;;  %v1974_v45 = vpack.c.bf16 %v1949_v38, %v1941_v43 }
 0x1fe   : > { %v1775_v13 = vpop.f32.mrf.mxu1 }
 0x1ff   : > { %v1776_v18 = vadd.f32 %v1775_v13, %v2870_v10  ;;  %v1957_v34 = vmax.f32 %v1774_v17, 0.0  ;;  %v1975_v42 = vpack.c.bf16 %v1950_v29, %v1942_v36 }
 0x200   : > { %v1777_v11 = vpop.f32.mrf.mxu1 }
 0x201   : > { %v1778_v16 = vadd.f32 %v1777_v11, %v2868_v30  ;;  %v1958_v31 = vmax.f32 %v1776_v18, 0.0 }
 0x202   : > { %v1779_v19 = vpop.f32.mrf.mxu1  ;;  %v1816_v21 = vpop.f32.mrf.mxu0 }
 0x203   : > { %v1780_v24 = vadd.f32 %v1779_v19, %v2868_v30  ;;  %v1965_v27 = vmax.f32 %v1778_v16, 0.0  ;;  %v1817_v2 = vadd.f32 %v1816_v21, %v2874_v54 }
 0x204   : > { %v1818_v28 = vpop.f32.mrf.mxu0 }
 0x205   : > { %v1966_v32 = vmax.f32 %v1780_v24, 0.0  ;;  %v1982_v39 = vpack.c.bf16 %v1965_v27, %v1957_v34  ;;  %v1819_v55 = vadd.f32 %v1818_v28, %v2874_v54  ;;  %v1943_v14 = vmax.f32 %v1817_v2, 0.0 }
 0x206   : > { %v1820_v35 = vpop.f32.mrf.mxu0 }
 0x207   : > { %v1983_v37 = vpack.c.bf16 %v1966_v32, %v1958_v31  ;;  %v1821_v15 = vadd.f32 %v1820_v35, %v2872_v23  ;;  %v1944_v61 = vmax.f32 %v1819_v55, 0.0 }
 0x208   : > { %v1822_v41 = vpop.f32.mrf.mxu0 }
 0x209   : > { %2015 = vmatprep.subr.bf16.mxu1 %v1983_v37  ;;  %v1823_v49 = vadd.f32 %v1822_v41, %v2872_v23  ;;  %v1951_v63 = vmax.f32 %v1821_v15, 0.0 }
 0x20a   : > { %v1826_v44 = vpop.f32.mrf.mxu0  ;;  %2016 = vmatpush1.bf16.msra.mxu1 %v1982_v39 }
 0x20b   : > { %2017 = vmatprep.subr.bf16.mxu1 %v1975_v42  ;;  %v1827_v52 = vadd.f32 %v1826_v44, %v2870_v10  ;;  %v1952_v58 = vmax.f32 %v1823_v49, 0.0  ;;  %v1976_v3 = vpack.c.bf16 %v1951_v63, %v1943_v14 }
 0x20c   : > { %v1828_v46 = vpop.f32.mrf.mxu0 }
 0x20d   : > { %v1829_v50 = vadd.f32 %v1828_v46, %v2870_v10  ;;  %v1959_v60 = vmax.f32 %v1827_v52, 0.0  ;;  %v1977_v0 = vpack.c.bf16 %v1952_v58, %v1944_v61 }
 0x20e   : > { %v1830_v47 = vpop.f32.mrf.mxu0  ;;  %2018 = vmatpush1.bf16.msra.mxu1 %v1974_v45 }
 0x20f   : > { %v1831_v51 = vadd.f32 %v1830_v47, %v2868_v30  ;;  %v1960_v59 = vmax.f32 %v1829_v50, 0.0 }
 0x210   : > { %v1832_v53 = vpop.f32.mrf.mxu0 }
 0x211   : > { %v1833_v56 = vadd.f32 %v1832_v53, %v2868_v30  ;;  %2454 = vmatmul.mubr.msk.bf16.vlgmr.msra.gmra.mxu1 %vm1206_vm0, %v2887_v48  ;;  %v1967_v57 = vmax.f32 %v1831_v51, 0.0 }
 0x212   : > { %2117 = vmatprep.mubr.bf16.mxu1 %v2491_v1 }
 0x213   : > { %v1968_v40 = vmax.f32 %v1833_v56, 0.0  ;;  %v1984_v20 = vpack.c.bf16 %v1967_v57, %v1959_v60 }
 0x215   : > { %v1985_v62 = vpack.c.bf16 %v1968_v40, %v1960_v59 }
 0x217   : > { %2056 = vmatprep.subr.bf16.mxu0 %v1985_v62 }
 0x218   : > { %2057 = vmatpush1.bf16.msra.mxu0 %v1984_v20 }
 0x219   : > { %2058 = vmatprep.subr.bf16.mxu0 %v1977_v0  ;;  %v1994_v0 = vpop.permute.xlu0 %1993 }
 0x21c   : > { %2059 = vmatpush1.bf16.msra.mxu0 %v1976_v3 }
 0x21f   : > { %2455 = vmatmul.mubr.msk.bf16.vlgmr.msra.gmra.mxu0 %vm1206_vm0, %v2887_v48 }
 0x220   : > { %2158 = vmatprep.mubr.bf16.mxu0 %v2491_v1 }
 0x23e   : > { %v1869_v4 = vpop.f32.mrf.mxu1 }
 0x23f   : > { %v1870_v27 = vadd.f32 %v1869_v4, %v2874_v54 }
 0x240   : > { %v1871_v5 = vpop.f32.mrf.mxu1 }
 0x241   : > { %v1872_v17 = vadd.f32 %v1871_v5, %v2874_v54  ;;  %v1945_v35 = vmax.f32 %v1870_v27, 0.0 }
 0x242   : > { %v1873_v6 = vpop.f32.mrf.mxu1 }
 0x243   : > { %v1874_v19 = vadd.f32 %v1873_v6, %v2872_v23  ;;  %v1946_v29 = vmax.f32 %v1872_v17, 0.0 }
 0x244   : > { %v1875_v7 = vpop.f32.mrf.mxu1 }
 0x245   : > { %v1876_v13 = vadd.f32 %v1875_v7, %v2872_v23  ;;  %v1953_v32 = vmax.f32 %v1874_v19, 0.0 }
 0x246   : > { %v1879_v8 = vpop.f32.mrf.mxu1 }
 0x247   : > { %v1880_v18 = vadd.f32 %v1879_v8, %v2870_v10  ;;  %v1954_v22 = vmax.f32 %v1876_v13, 0.0  ;;  %v1978_v37 = vpack.c.bf16 %v1953_v32, %v1945_v35 }
 0x248   : > { %v1881_v9 = vpop.f32.mrf.mxu1 }
 0x249   : > { %v1882_v11 = vadd.f32 %v1881_v9, %v2870_v10  ;;  %v1961_v28 = vmax.f32 %v1880_v18, 0.0  ;;  %v1979_v34 = vpack.c.bf16 %v1954_v22, %v1946_v29  ;;  %v2492_v9 = vmov 1966171168  }
 0x24a   : > { %v1883_v12 = vpop.f32.mrf.mxu1 }
 0x24b   : > { %v1884_v26 = vadd.f32 %v1883_v12, %v2868_v30  ;;  %v1962_v24 = vmax.f32 %v1882_v11, 0.0  ;;  %v2180_v12 = vunpack.c.l.s4 %v2492_v9 }
 0x24c   : > { %v1885_v16 = vpop.f32.mrf.mxu1 }
 0x24d   : > { %v1886_v1 = vadd.f32 %v1885_v16, %v2868_v30  ;;  %v1969_v21 = vmax.f32 %v1884_v26, 0.0  ;;  %v2181_v13 = vunpack.c.0.s8 %v2180_v12 }
 0x24f   : > { %v1970_v25 = vmax.f32 %v1886_v1, 0.0  ;;  %v1986_v33 = vpack.c.bf16 %v1969_v21, %v1961_v28 }
 0x251   : > { %v1987_v31 = vpack.c.bf16 %v1970_v25, %v1962_v24 }
 0x253   : > { %2097 = vmatprep.subr.bf16.mxu1 %v1987_v31 }
 0x254   : > { %2098 = vmatpush1.bf16.msra.mxu1 %v1986_v33  ;;  %v1922_v36 = vpop.f32.mrf.mxu0 }
 0x255   : > { %2099 = vmatprep.subr.bf16.mxu1 %v1979_v34  ;;  %v1923_v58 = vadd.f32 %v1922_v36, %v2874_v54 }
 0x256   : > { %v1924_v38 = vpop.f32.mrf.mxu0 }
 0x257   : > { %v1925_v51 = vadd.f32 %v1924_v38, %v2874_v54 }
 0x258   : > { %2100 = vmatpush1.bf16.msra.mxu1 %v1978_v37  ;;  %v1926_v39 = vpop.f32.mrf.mxu0 }
 0x259   : > { %v1927_v53 = vadd.f32 %v1926_v39, %v2872_v23  ;;  %v1948_v40 = vmax.f32 %v1925_v51, 0.0 }
 0x25a   : > { %v1928_v41 = vpop.f32.mrf.mxu0 }
 0x25b   : > { %2456 = vmatmul.mubr.msk.bf16.vlgmr.msra.gmra.mxu1 %vm1206_vm0, %v2887_v48  ;;  %v1929_v45 = vadd.f32 %v1928_v41, %v2872_v23  ;;  %v1955_v60 = vmax.f32 %v1927_v53, 0.0 }
 0x25c   : > { %v1932_v42 = vpop.f32.mrf.mxu0 }
 0x25d   : > { %v1933_v49 = vadd.f32 %v1932_v42, %v2870_v10  ;;  %v1956_v56 = vmax.f32 %v1929_v45, 0.0 }
 0x25e   : > { %v1934_v43 = vpop.f32.mrf.mxu0 }
 0x25f   : > { %v1935_v46 = vadd.f32 %v1934_v43, %v2870_v10  ;;  %v1963_v59 = vmax.f32 %v1933_v49, 0.0  ;;  %v1981_v62 = vpack.c.bf16 %v1956_v56, %v1948_v40  ;;  %v1947_v10 = vmax.f32 %v1923_v58, 0.0 }
 0x260   : > { %v1936_v44 = vpop.f32.mrf.mxu0 }
 0x261   : > { %v1937_v47 = vadd.f32 %v1936_v44, %v2868_v30  ;;  %v1964_v15 = vmax.f32 %v1935_v46, 0.0  ;;  %v1980_v63 = vpack.c.bf16 %v1955_v60, %v1947_v10 }
 0x262   : > { %v1938_v50 = vpop.f32.mrf.mxu0 }
 0x263   : > { %v1939_v52 = vadd.f32 %v1938_v50, %v2868_v30  ;;  %v1971_v55 = vmax.f32 %v1937_v47, 0.0  ;;  %v1996_v30 = vlaneseq }
 0x265   : > { %v1972_v57 = vmax.f32 %v1939_v52, 0.0  ;;  %v1988_v61 = vpack.c.bf16 %v1971_v55, %v1963_v59  ;;  %v1997_v23 = vshrl.u32 %v1996_v30, 7 }
 0x267   : > { %v1989_v2 = vpack.c.bf16 %v1972_v57, %v1964_v15  ;;  %v1998_v20 = vsub.s32 0, %v1997_v23  ;;  %v2184_v18 = vsub.s32 %v2181_v13, %v1997_v23 }
 0x269   : > { %2138 = vmatprep.subr.bf16.mxu0 %v1989_v2  ;;  %v1999_v14 = vrot.slane %v1994_v0, %v1998_v20 }
 0x26a   : > { %2139 = vmatpush1.bf16.msra.mxu0 %v1988_v61 }
 0x26b   : > { %2140 = vmatprep.subr.bf16.mxu0 %v1981_v62 }
 0x26e   : > { %2141 = vmatpush1.bf16.msra.mxu0 %v1980_v63 }
 0x271   : > { %2457 = vmatmul.mubr.msk.bf16.vlgmr.msra.gmra.mxu0 %vm1206_vm0, %v2887_v48 }
 0x2d1   : > { %v2037_v54 = vpop.f32.mrf.mxu1 }
 0x2d2   : > { %v2038_v4 = vadd.f32 %v2037_v54, %v1999_v14 }
 0x2d3   : > { %v2039_v3 = vpop.f32.mrf.mxu1 }
 0x2d4   : > { %v2040_v5 = vadd.f32 %v2039_v3, %v1999_v14 }
 0x2d5   : > { %v2041_v6 = vpop.f32.mrf.mxu1 }
 0x2d6   : > { %v2175_v7 = vcombine.low %v2038_v4, %v2040_v5 }
 0x2d7   : > { %v2042_v8 = vpop.f32.mrf.mxu1 }
 0x2d8   : > { %v2185_v21 = vrot.slane %v2175_v7, %v2184_v18 }
 0x2df   : > { %v2078_v11 = vpop.f32.mrf.mxu0 }
 0x2e0   : > { %v2079_v16 = vadd.f32 %v2078_v11, %v1999_v14 }
 0x2e1   : > { %v2080_v26 = vpop.f32.mrf.mxu0 }
 0x2e2   : > { %v2081_v48 = vadd.f32 %v2080_v26, %v1999_v14 }
 0x2e3   : > { %v2082_v17 = vpop.f32.mrf.mxu0 }
 0x2e4   : > { %v2176_v1 = vcombine.low %v2079_v16, %v2081_v48 }
 0x2e5   : > { %v2083_v19 = vpop.f32.mrf.mxu0 }
 0x2e6   : > { %v2192_v22 = vrot.slane %v2176_v1, %v2184_v18 }
 0x2e8   : > { %v2207_v24 = vcombine.low %v2185_v21, %v2192_v22 }
 0x2ea   : > { %v2215_v45 = vrot.slane %v2207_v24, %v2184_v18 }
 0x31b   : > { %v2119_v25 = vpop.f32.mrf.mxu1 }
 0x31c   : > { %v2120_v33 = vadd.f32 %v2119_v25, %v1999_v14 }
 0x31d   : > { %v2121_v27 = vpop.f32.mrf.mxu1 }
 0x31e   : > { %v2122_v31 = vadd.f32 %v2121_v27, %v1999_v14 }
 0x31f   : > { %v2123_v28 = vpop.f32.mrf.mxu1 }
 0x320   : > { %v2177_v35 = vcombine.low %v2120_v33, %v2122_v31 }
 0x321   : > { %v2124_v29 = vpop.f32.mrf.mxu1 }
 0x322   : > { %v2199_v42 = vrot.slane %v2177_v35, %v2184_v18 }
 0x331   : > { %v2160_v32 = vpop.f32.mrf.mxu0 }
 0x332   : > { %v2161_v36 = vadd.f32 %v2160_v32, %v1999_v14 }
 0x333   : > { %v2162_v34 = vpop.f32.mrf.mxu0 }
 0x334   : > { %v2163_v37 = vadd.f32 %v2162_v34, %v1999_v14 }
 0x335   : > { %v2164_v38 = vpop.f32.mrf.mxu0 }
 0x336   : > { %v2178_v39 = vcombine.low %v2161_v36, %v2163_v37 }
 0x337   : > { %v2165_v41 = vpop.f32.mrf.mxu0 }
 0x338   : > { %v2206_v43 = vrot.slane %v2178_v39, %v2184_v18 }
 0x33a   : > { %v2208_v44 = vcombine.low %v2199_v42, %v2206_v43 }
 0x33c   : > { %v2222_v46 = vrot.slane %v2208_v44, %v2184_v18 }
 0x33e   : > { %v2223_v47 = vcombine.low %v2215_v45, %v2222_v46 }
 0x340   : > { %2225 = vst [vmem:[%s278_s23] sm:$0xff] %v2223_v47 }
 0x341 PF: > { %s19_s26 = sadd.s32 1, %s2489_s26  }
 0x342   : > { %p16_p4 = scmp.ge.s32.totalorder %s19_s26, 4  }
 0x344   :  { %18 = sbr.rel (!%p16_p4) target bundleno = 3 (0x3), region = 78 }

</bundles_post_ra>
